<compile_context>
chip_gen: v5e
topology: v5e:2x2
jax: 0.10.0
libtpu: 0.0.40
codegen_flags: <defaults>
</compile_context>

<pallas_src>
import functools
import math

import numpy as np
import jax
import jax.numpy as jnp
from jax import lax
from jax.experimental import pallas as pl
from jax.experimental.pallas import tpu as pltpu


VMEM_LIMIT = 32 * 1024 * 1024   # per-step working set is ~5 MB; safe on v5e/v6e/v7x
MAX_TILE = 8192                 # lanes per pixel tile (multiple of 128)
SQRT2 = math.sqrt(2.0)


def _lrelu(y):
    # fused-lrelu WITHOUT the sqrt(2) gain -- the gain is folded host-side
    # into the next layer's weights.
    return jnp.where(y >= 0.0, y, 0.2 * y)


def _lrelu_gain(y):
    return jnp.where(y >= 0.0, y, 0.2 * y) * SQRT2


def choose_tile(n, max_tile=MAX_TILE):
    """Largest multiple-of-128 divisor of n that is <= max_tile."""
    if n % 128 != 0:
        # TODO(synk): pad the pixel axis to a multiple of 128 for odd sizes.
        raise ValueError(f"pixel count {n} must be a multiple of 128")
    t = min(max_tile, n)
    t = (t // 128) * 128
    while n % t != 0:
        t -= 128
    return t


# ----------------------------------------------------------------------------
# Pixel-ordering permutations that make 2x nearest upsample == "read the
# low-res array at q mod N_lo".  perms[L] maps flat (stored) position at
# level L -> row-major pixel id at level L.  perms[0] is identity.
# ----------------------------------------------------------------------------
def build_upsample_perms(h0, w0, n_levels):
    perms = [np.arange(h0 * w0, dtype=np.int32)]
    h, w = h0, w0
    for _ in range(n_levels):
        prev = perms[-1]
        n = prev.size
        r, c = prev // w, prev % w
        nxt = np.empty(4 * n, dtype=np.int32)
        for k in range(4):
            a, b = k // 2, k % 2
            nxt[k * n:(k + 1) * n] = (2 * r + a) * (2 * w) + (2 * c + b)
        perms.append(nxt)
        h, w = 2 * h, 2 * w
    return perms


# ----------------------------------------------------------------------------
# Host-side (plain jnp / XLA): style mapping network + weight (de)modulation.
# These are tiny (B x 512-ish) -- a Pallas kernel just adds dispatch overhead.
# ----------------------------------------------------------------------------
def style_mlp(z, ws_t, bs, *, lr_mul):
    D = z.shape[1]
    n_mlp = ws_t.shape[0]
    x = z * lax.rsqrt(jnp.mean(z * z, axis=1, keepdims=True) + 1e-8)   # PixelNorm
    scale = (1.0 / math.sqrt(D)) * lr_mul
    for i in range(n_mlp):
        y = jnp.dot(x, ws_t[i] * scale) + bs[i] * lr_mul
        x = _lrelu_gain(y)
    return x


def modulate_weights(latent, layer_params, *, demodulate):
    """StyleGAN2 modulated 1x1 conv -> per-batch (B, Cout, Cin) weight."""
    conv_w, mod_w_t, mod_b, bias = layer_params     # (Cout,Cin),(S,Cin),(1,Cin),(Cout,1)
    S, Cin = mod_w_t.shape
    mod_scale = 1.0 / math.sqrt(S)                  # EqualLinear (lr_mul = 1)
    s = jnp.dot(latent, mod_w_t * mod_scale) + mod_b            # (B, Cin)
    w = conv_w * (1.0 / math.sqrt(Cin))                         # conv scale (k=1)
    wmod = w[None, :, :] * s[:, None, :]                        # (B, Cout, Cin)
    if demodulate:
        d = lax.rsqrt(jnp.sum(wmod * wmod, axis=2, keepdims=True) + 1e-8)
        wmod = wmod * d
    return wmod, bias


# ----------------------------------------------------------------------------
# Kernel 1: fused LFF + conv1
#   sin(Conv1x1(coords)) then demodulated StyledConv + bias + leaky relu.
#   The (hidden, T) Fourier-feature tensor never touches HBM.
#   NoiseInjection weight is init 0 in the reference -> identity, skipped.
# ----------------------------------------------------------------------------
def _lff_conv1_kernel(c_ref, lw_ref, lb_ref, w_ref, b_ref, o_ref):
    c = c_ref[...]                                  # (2, T) f32
    lw = lw_ref[...]                                # (hidden, 2)
    lb = lb_ref[...]                                # (hidden, 1)
    ff = jnp.sin(lw[:, 0:1] * c[0:1, :] + lw[:, 1:2] * c[1:2, :] + lb)   # (hidden, T)
    out = jnp.dot(w_ref[0], ff, preferred_element_type=jnp.float32)      # (Cout, T)
    out = _lrelu(out + b_ref[...])        # sqrt2 gain folded into block0's w1x
    o_ref[0] = out.astype(jnp.bfloat16)


def lff_conv1(coords_flat, lff_w, lff_b, w1, b1, *, max_tile=2048):
    _, N0 = coords_flat.shape
    B, Cout, hidden = w1.shape
    T = choose_tile(N0, max_tile)
    grid = (B, N0 // T)
    return pl.pallas_call(
        _lff_conv1_kernel,
        out_shape=jax.ShapeDtypeStruct((B, Cout, N0), jnp.bfloat16),
        grid=grid,
        in_specs=[
            pl.BlockSpec((2, T), lambda b, t: (0, t)),
            pl.BlockSpec((hidden, 2), lambda b, t: (0, 0)),
            pl.BlockSpec((hidden, 1), lambda b, t: (0, 0)),
            pl.BlockSpec((1, Cout, hidden), lambda b, t: (b, 0, 0)),
            pl.BlockSpec((Cout, 1), lambda b, t: (0, 0)),
        ],
        out_specs=pl.BlockSpec((1, Cout, T), lambda b, t: (b, 0, t)),
        compiler_params=pltpu.CompilerParams(
            dimension_semantics=("parallel", "parallel"),
            vmem_limit_bytes=VMEM_LIMIT),
    )(coords_flat, lff_w, lff_b, w1, b1)


# ----------------------------------------------------------------------------
# Kernel 2: fused resolution block with index-map-fused 2x upsample.
#   h1 = lrelu(W1x @ up2x(x) + W1c @ coords2 + b1)      (StyledConv, split matmul)
#   h2 = lrelu(W2 @ h1 + b2)                            (StyledConv)
#   rgb = W3 @ h2 + b3 (+ up2x(rgb_prev))               (ToRGB + skip)
# All per-batch weights are pre-(de)modulated host-side; h1/h2 never leave VMEM.
# ----------------------------------------------------------------------------
def _block_compute(x, c2, rgbp, w1x_ref, w1c_ref, b1_ref, w2_ref, b2_ref,
                   w3_ref, b3_ref, xo_ref, rgbo_ref):
    w1c = w1c_ref[0]                               # (C, 2) f32
    h1 = jnp.dot(w1x_ref[0], x, preferred_element_type=jnp.float32)      # MXU bf16
    h1 = h1 + w1c[:, 0:1] * c2[0:1, :] + w1c[:, 1:2] * c2[1:2, :]        # VPU (K=2)
    h1 = _lrelu(h1 + b1_ref[...]).astype(jnp.bfloat16)

    h2 = jnp.dot(w2_ref[0], h1, preferred_element_type=jnp.float32)
    h2 = _lrelu(h2 + b2_ref[...])
    h2b = h2.astype(jnp.bfloat16)
    xo_ref[0] = h2b

    rgb = jnp.dot(w3_ref[0], h2b, preferred_element_type=jnp.float32) + b3_ref[...]
    if rgbp is not None:
        rgb = rgb + rgbp
    rgbo_ref[0] = rgb


def _block_kernel_skip(x_ref, c2_ref, rgbp_ref, w1x_ref, w1c_ref, b1_ref,
                       w2_ref, b2_ref, w3_ref, b3_ref, xo_ref, rgbo_ref):
    _block_compute(x_ref[0], c2_ref[...], rgbp_ref[0], w1x_ref, w1c_ref, b1_ref,
                   w2_ref, b2_ref, w3_ref, b3_ref, xo_ref, rgbo_ref)


def _block_kernel_noskip(x_ref, c2_ref, w1x_ref, w1c_ref, b1_ref,
                         w2_ref, b2_ref, w3_ref, b3_ref, xo_ref, rgbo_ref):
    _block_compute(x_ref[0], c2_ref[...], None, w1x_ref, w1c_ref, b1_ref,
                   w2_ref, b2_ref, w3_ref, b3_ref, xo_ref, rgbo_ref)


def fused_block(x_lo, c2_l1, rgb_lo, w1x, w1c, b1, w2, b2, w3, b3, *,
                n1, max_tile=MAX_TILE):
    """x_lo: (B, Cin, N_lo) bf16 low-res activation (permuted pixel order).
       c2_l1: (2, N1) f32 coords2 at level 1 (permuted order), shared by all blocks.
       rgb_lo: (B, 3, N_lo) f32 previous rgb at low res, or None for block 0."""
    B, Cin, N_lo = x_lo.shape
    C = w2.shape[1]
    N_hi = 4 * N_lo
    T = choose_tile(min(N_lo, n1), max_tile)       # divides both N_lo and N1
    n_lo = N_lo // T
    n1_tiles = n1 // T
    has_skip = rgb_lo is not None

    lo_map = lambda b, t, k: (b, 0, t)                              # revisited over k
    hi_map = lambda b, t, k: (b, 0, k * n_lo + t)                   # upsample via indexing
    c2_map = lambda b, t, k: (0, (k * n_lo + t) % n1_tiles)         # nearest coords2
    w_map = lambda b, t, k: (b, 0, 0)
    s_map = lambda b, t, k: (0, 0)

    in_specs = [pl.BlockSpec((1, Cin, T), lo_map),
                pl.BlockSpec((2, T), c2_map)]
    args = [x_lo, c2_l1]
    if has_skip:
        in_specs.append(pl.BlockSpec((1, 3, T), lo_map))
        args.append(rgb_lo)
    in_specs += [pl.BlockSpec((1, C, Cin), w_map),
                 pl.BlockSpec((1, C, 2), w_map),
                 pl.BlockSpec((C, 1), s_map),
                 pl.BlockSpec((1, C, C), w_map),
                 pl.BlockSpec((C, 1), s_map),
                 pl.BlockSpec((1, 3, C), w_map),
                 pl.BlockSpec((3, 1), s_map)]
    args += [w1x, w1c, b1, w2, b2, w3, b3]

    kern = _block_kernel_skip if has_skip else _block_kernel_noskip
    out_shape = (jax.ShapeDtypeStruct((B, C, N_hi), jnp.bfloat16),
                 jax.ShapeDtypeStruct((B, 3, N_hi), jnp.float32))
    out_specs = (pl.BlockSpec((1, C, T), hi_map),
                 pl.BlockSpec((1, 3, T), hi_map))
    return pl.pallas_call(
        kern,
        out_shape=out_shape,
        grid=(B, n_lo, 4),
        in_specs=in_specs,
        out_specs=out_specs,
        compiler_params=pltpu.CompilerParams(
            dimension_semantics=("parallel", "parallel", "arbitrary"),
            vmem_limit_bytes=VMEM_LIMIT),
    )(*args)


# ----------------------------------------------------------------------------
# Parameter init (mirrors the PyTorch module's shapes/init conventions)
# ----------------------------------------------------------------------------
def init_inrgan_params(key, *, hidden_size, style_dim, n_mlp, lr_mlp=0.01,
                       coord_ch=2, base_ch=32, n_blocks=3):
    ks = iter(jax.random.split(key, 64))
    p = {}

    ws_t, bs = [], []
    for _ in range(n_mlp):
        w = jax.random.normal(next(ks), (style_dim, style_dim), jnp.float32) / lr_mlp
        ws_t.append(w.T)
        bs.append(jnp.zeros((style_dim,), jnp.float32))
    p["style_w_t"] = jnp.stack(ws_t)           # (n_mlp, D, D)
    p["style_b"] = jnp.stack(bs)               # (n_mlp, D)

    p["lff_w"] = jax.random.uniform(next(ks), (hidden_size, coord_ch),
                                    jnp.float32, -1.0 / coord_ch, 1.0 / coord_ch)
    p["lff_b"] = jnp.zeros((hidden_size, 1), jnp.float32)

    def styled(cin, cout):
        conv_w = jax.random.normal(next(ks), (cout, cin), jnp.float32)
        mod_w = jax.random.normal(next(ks), (cin, style_dim), jnp.float32)
        return (conv_w,                                   # (Cout, Cin)
                mod_w.T,                                  # (S, Cin)
                jnp.ones((1, cin), jnp.float32),          # modulation bias (init 1)
                jnp.zeros((cout, 1), jnp.float32))        # out bias (init 0)

    p["conv1"] = styled(hidden_size, base_ch)
    linears, to_rgbs = [], []
    in_ch = base_ch
    for _ in range(n_blocks):
        out_ch = base_ch
        # TODO(synk): the PyTorch __init__ builds these layers with in_channels
        # that ignore the torch.cat((x, coords2), 1) in forward; widened by
        # coord_ch here so the forward pass is actually runnable.
        linears.append(styled(in_ch + coord_ch, out_ch))
        linears.append(styled(out_ch, out_ch))
        to_rgbs.append(styled(out_ch, 3))
        in_ch = out_ch
    p["linears"] = linears
    p["to_rgbs"] = to_rgbs
    return p


# ----------------------------------------------------------------------------
# Forward pass
# ----------------------------------------------------------------------------
def inrgan_forward(coords, coords2, coords3, latent_list, params, *,
                   lr_mlp=0.01, n_intermediate=3, to_rgb_stride=2,
                   max_tile=MAX_TILE):
    del coords3  # unused by the reference forward
    # truncation=1 and input_is_latent=False in the reference call path
    latent = style_mlp(latent_list[0], params["style_w_t"], params["style_b"],
                       lr_mul=lr_mlp)

    B, _, H0, W0 = coords.shape
    N0 = H0 * W0
    N1 = 4 * N0

    # TODO(synk): coords/coords2 are assumed identical across batch (CIPS
    # convention); they are read once per tile, not once per batch element.
    coords_flat = coords[0].reshape(2, N0)
    perms = build_upsample_perms(H0, W0, n_intermediate)
    c2_l1 = coords2[0].reshape(2, N1)[:, perms[1]]     # level-1 permuted pixel order

    # conv1: LFF + StyledConv(hidden -> 32), demodulated, leaky relu.
    w1, b1 = modulate_weights(latent, params["conv1"], demodulate=True)
    x = lff_conv1(coords_flat, params["lff_w"], params["lff_b"], w1, b1,
                  max_tile=min(2048, max_tile))        # (B, 32, N0) bf16, level 0

    rgb = None
    for i in range(n_intermediate):
        Cin = x.shape[1]
        wa, ba = modulate_weights(latent, params["linears"][i * to_rgb_stride],
                                  demodulate=True)
        wb, bb = modulate_weights(latent, params["linears"][i * to_rgb_stride + 1],
                                  demodulate=True)
        wr, br = modulate_weights(latent, params["to_rgbs"][i], demodulate=False)
        # split modulated weight into x part / coords part; fold the previous
        # layer's sqrt(2) fused-lrelu gain into the x-path weights (post-demod).
        w1x = (wa[:, :, :Cin] * SQRT2).astype(jnp.bfloat16)
        w1c = wa[:, :, Cin:]                                    # f32, no gain
        wbs = (wb * SQRT2).astype(jnp.bfloat16)                 # absorbs conv_a gain
        wrs = (wr * SQRT2).astype(jnp.bfloat16)                 # absorbs conv_b gain

        x, rgb = fused_block(x, c2_l1, rgb, w1x, w1c, ba, wbs, bb, wrs, br,
                             n1=N1, max_tile=max_tile)

    # un-permute the final rgb back to row-major NCHW (one small XLA gather)
    Hf, Wf = H0 * (2 ** n_intermediate), W0 * (2 ** n_intermediate)
    inv = jnp.asarray(np.argsort(perms[n_intermediate]).astype(np.int32))
    rgb_img = jnp.take(rgb, inv, axis=2).reshape(B, 3, Hf, Wf)
    return rgb_img, None


# ----------------------------------------------------------------------------
# Pure-jnp reference (original, unfused formulation) for correctness checking.
# ----------------------------------------------------------------------------
def upsample_nearest2x(x_bchw):
    B, C, H, W = x_bchw.shape
    y = jnp.broadcast_to(x_bchw[:, :, :, None, :, None], (B, C, H, 2, W, 2))
    return y.reshape(B, C, 2 * H, 2 * W)


def reference_forward(coords, coords2, z, params, *, lr_mlp=0.01,
                      n_intermediate=3, to_rgb_stride=2):
    latent = style_mlp(z, params["style_w_t"], params["style_b"], lr_mul=lr_mlp)
    x = jnp.sin(jnp.einsum("oc,bchw->bohw", params["lff_w"], coords)
                + params["lff_b"].reshape(1, -1, 1, 1))
    w1, b1 = modulate_weights(latent, params["conv1"], demodulate=True)
    x = _lrelu_gain(jnp.einsum("boc,bchw->bohw", w1, x) + b1.reshape(1, -1, 1, 1))
    rgb = None
    c2 = coords2
    for i in range(n_intermediate):
        x = upsample_nearest2x(x)
        while c2.shape[-1] < x.shape[-1]:
            c2 = upsample_nearest2x(c2)
        xc = jnp.concatenate([x, c2], axis=1)
        wa, ba = modulate_weights(latent, params["linears"][i * to_rgb_stride],
                                  demodulate=True)
        wb, bb = modulate_weights(latent, params["linears"][i * to_rgb_stride + 1],
                                  demodulate=True)
        wr, br = modulate_weights(latent, params["to_rgbs"][i], demodulate=False)
        h1 = _lrelu_gain(jnp.einsum("boc,bchw->bohw", wa, xc) + ba.reshape(1, -1, 1, 1))
        h2 = _lrelu_gain(jnp.einsum("boc,bchw->bohw", wb, h1) + bb.reshape(1, -1, 1, 1))
        out = jnp.einsum("boc,bchw->bohw", wr, h2) + br.reshape(1, -1, 1, 1)
        rgb = out if rgb is None else out + upsample_nearest2x(rgb)
        x = h2
    return rgb


# ----------------------------------------------------------------------------
if __name__ == "__main__":
    B, H, W = 2, 16, 16                       # H*W must be a multiple of 128
    hidden_size, style_dim, n_mlp = 32, 32, 8

    key = jax.random.PRNGKey(0)
    kp, kz = jax.random.split(key)
    params = init_inrgan_params(kp, hidden_size=hidden_size, style_dim=style_dim,
                                n_mlp=n_mlp)

    def coord_grid(b, h, w):
        ys = jnp.linspace(-1.0, 1.0, h)
        xs = jnp.linspace(-1.0, 1.0, w)
        gy, gx = jnp.meshgrid(ys, xs, indexing="ij")
        g = jnp.stack([gx, gy], axis=0)                     # (2, h, w)
        return jnp.broadcast_to(g, (b, 2, h, w)).astype(jnp.float32)

    coords = coord_grid(B, H, W)              # (B, 2, 16, 16)   NCHW
    coords2 = coord_grid(B, 2 * H, 2 * W)
    coords3 = coord_grid(B, 4 * H, 4 * W)     # unused, per reference forward
    z = jax.random.normal(kz, (B, style_dim), jnp.float32)

    rgb, lat = jax.jit(inrgan_forward)(coords, coords2, coords3, [z], params)
    rgb = jax.block_until_ready(rgb)

    assert rgb.shape == (B, 3, 8 * H, 8 * W) and rgb.dtype == jnp.float32
    assert lat is None
    assert bool(jnp.all(jnp.isfinite(rgb)))

    # numerical check vs. the unfused f32 jnp reference (tolerance covers the
    # bf16 activation path in the kernels)
    ref = reference_forward(coords, coords2, z, params)
    err = float(jnp.max(jnp.abs(rgb - ref) / (jnp.abs(ref) + 1.0)))
    assert err < 0.15, f"mismatch vs reference: max rel-ish err = {err}"

    print("KERNEL_OK")
</pallas_src>

<mosaic_0001>
module attributes {stable_mosaic.version = 11 : i64} {
  func.func @_block_kernel_skip(%arg0: i32, %arg1: i32, %arg2: i32, %arg3: memref<1x32x1024xbf16, #tpu.memory_space<vmem>>, %arg4: memref<2x1024xf32, #tpu.memory_space<vmem>>, %arg5: memref<1x3x1024xf32, #tpu.memory_space<vmem>>, %arg6: memref<1x32x32xbf16, #tpu.memory_space<vmem>>, %arg7: memref<1x32x2xf32, #tpu.memory_space<vmem>>, %arg8: memref<32x1xf32, #tpu.memory_space<vmem>>, %arg9: memref<1x32x32xbf16, #tpu.memory_space<vmem>>, %arg10: memref<32x1xf32, #tpu.memory_space<vmem>>, %arg11: memref<1x3x32xbf16, #tpu.memory_space<vmem>>, %arg12: memref<3x1xf32, #tpu.memory_space<vmem>>, %arg13: memref<1x32x1024xbf16, #tpu.memory_space<vmem>>, %arg14: memref<1x3x1024xf32, #tpu.memory_space<vmem>>) attributes {dimension_semantics = [#tpu.dimension_semantics<parallel>, #tpu.dimension_semantics<parallel>, #tpu.dimension_semantics<arbitrary>], iteration_bounds = array<i64: 2, 1, 4>, scalar_prefetch = 0 : i64, scratch_operands = 0 : i64, tpu.core_type = #tpu.core_type<tc>, window_params = [{transform_indices = @transform_0, window_bounds = array<i64: 1, 32, 1024>}, {transform_indices = @transform_1, window_bounds = array<i64: 2, 1024>}, {transform_indices = @transform_2, window_bounds = array<i64: 1, 3, 1024>}, {transform_indices = @transform_3, window_bounds = array<i64: 1, 32, 32>}, {transform_indices = @transform_4, window_bounds = array<i64: 1, 32, 2>}, {pipeline_mode = #tpu.pipeline_mode<synchronous>, transform_indices = @transform_5, window_bounds = array<i64: 32, 1>}, {transform_indices = @transform_6, window_bounds = array<i64: 1, 32, 32>}, {pipeline_mode = #tpu.pipeline_mode<synchronous>, transform_indices = @transform_7, window_bounds = array<i64: 32, 1>}, {transform_indices = @transform_8, window_bounds = array<i64: 1, 3, 32>}, {pipeline_mode = #tpu.pipeline_mode<synchronous>, transform_indices = @transform_9, window_bounds = array<i64: 3, 1>}, {transform_indices = @transform_10, window_bounds = array<i64: 1, 32, 1024>}, {transform_indices = @transform_11, window_bounds = array<i64: 1, 3, 1024>}]} {
    %c0 = arith.constant 0 : index
    %c0_0 = arith.constant 0 : index
    %c0_1 = arith.constant 0 : index
    %0 = vector.load %arg3[%c0, %c0_0, %c0_1] : memref<1x32x1024xbf16, #tpu.memory_space<vmem>>, vector<1x32x1024xbf16>
    %1 = vector.shape_cast %0 : vector<1x32x1024xbf16> to vector<32x1024xbf16>
    %c0_2 = arith.constant 0 : index
    %c0_3 = arith.constant 0 : index
    %2 = vector.load %arg4[%c0_2, %c0_3] : memref<2x1024xf32, #tpu.memory_space<vmem>>, vector<2x1024xf32>
    %c0_4 = arith.constant 0 : index
    %c0_5 = arith.constant 0 : index
    %c0_6 = arith.constant 0 : index
    %3 = vector.load %arg5[%c0_4, %c0_5, %c0_6] : memref<1x3x1024xf32, #tpu.memory_space<vmem>>, vector<1x3x1024xf32>
    %4 = vector.shape_cast %3 : vector<1x3x1024xf32> to vector<3x1024xf32>
    %c0_7 = arith.constant 0 : index
    %c0_8 = arith.constant 0 : index
    %c0_9 = arith.constant 0 : index
    %5 = vector.load %arg7[%c0_7, %c0_8, %c0_9] : memref<1x32x2xf32, #tpu.memory_space<vmem>>, vector<1x32x2xf32>
    %6 = vector.shape_cast %5 : vector<1x32x2xf32> to vector<32x2xf32>
    %c0_10 = arith.constant 0 : index
    %c0_11 = arith.constant 0 : index
    %c0_12 = arith.constant 0 : index
    %7 = vector.load %arg6[%c0_10, %c0_11, %c0_12] : memref<1x32x32xbf16, #tpu.memory_space<vmem>>, vector<1x32x32xbf16>
    %8 = vector.shape_cast %7 : vector<1x32x32xbf16> to vector<32x32xbf16>
    %cst = arith.constant dense<0.000000e+00> : vector<32x1024xf32>
    %9 = tpu.matmul %8, %1, %cst {dimension_numbers = #tpu.dot_dimension_numbers<[1], [0], [0], [1], [0, 0, 1, 1], [], []>} : vector<32x32xbf16>, vector<32x1024xbf16>, vector<32x1024xf32> -> vector<32x1024xf32>
    %10 = vector.extract_strided_slice %6 {offsets = [0, 0], sizes = [32, 1], strides = [1, 1]} : vector<32x2xf32> to vector<32x1xf32>
    %11 = vector.extract_strided_slice %2 {offsets = [0, 0], sizes = [1, 1024], strides = [1, 1]} : vector<2x1024xf32> to vector<1x1024xf32>
    %12 = vector.broadcast %10 : vector<32x1xf32> to vector<32x1024xf32>
    %13 = vector.broadcast %11 : vector<1x1024xf32> to vector<32x1024xf32>
    %14 = arith.mulf %12, %13 : vector<32x1024xf32>
    %15 = arith.addf %9, %14 : vector<32x1024xf32>
    %16 = vector.extract_strided_slice %6 {offsets = [0, 1], sizes = [32, 1], strides = [1, 1]} : vector<32x2xf32> to vector<32x1xf32>
    %17 = vector.extract_strided_slice %2 {offsets = [1, 0], sizes = [1, 1024], strides = [1, 1]} : vector<2x1024xf32> to vector<1x1024xf32>
    %18 = vector.broadcast %16 : vector<32x1xf32> to vector<32x1024xf32>
    %19 = vector.broadcast %17 : vector<1x1024xf32> to vector<32x1024xf32>
    %20 = arith.mulf %18, %19 : vector<32x1024xf32>
    %21 = arith.addf %15, %20 : vector<32x1024xf32>
    %c0_13 = arith.constant 0 : index
    %c0_14 = arith.constant 0 : index
    %22 = vector.load %arg8[%c0_13, %c0_14] : memref<32x1xf32, #tpu.memory_space<vmem>>, vector<32x1xf32>
    %23 = vector.broadcast %22 : vector<32x1xf32> to vector<32x1024xf32>
    %24 = arith.addf %21, %23 : vector<32x1024xf32>
    %cst_15 = arith.constant 0.000000e+00 : f32
    %25 = vector.broadcast %cst_15 : f32 to vector<32x1024xf32>
    %26 = arith.cmpf oge, %24, %25 : vector<32x1024xf32>
    %cst_16 = arith.constant 2.000000e-01 : f32
    %27 = vector.broadcast %cst_16 : f32 to vector<32x1024xf32>
    %28 = arith.mulf %27, %24 : vector<32x1024xf32>
    %29 = arith.select %26, %24, %28 : vector<32x1024xi1>, vector<32x1024xf32>
    %30 = arith.truncf %29 : vector<32x1024xf32> to vector<32x1024xbf16>
    %c0_17 = arith.constant 0 : index
    %c0_18 = arith.constant 0 : index
    %c0_19 = arith.constant 0 : index
    %31 = vector.load %arg9[%c0_17, %c0_18, %c0_19] : memref<1x32x32xbf16, #tpu.memory_space<vmem>>, vector<1x32x32xbf16>
    %32 = vector.shape_cast %31 : vector<1x32x32xbf16> to vector<32x32xbf16>
    %cst_20 = arith.constant dense<0.000000e+00> : vector<32x1024xf32>
    %33 = tpu.matmul %32, %30, %cst_20 {dimension_numbers = #tpu.dot_dimension_numbers<[1], [0], [0], [1], [0, 0, 1, 1], [], []>} : vector<32x32xbf16>, vector<32x1024xbf16>, vector<32x1024xf32> -> vector<32x1024xf32>
    %c0_21 = arith.constant 0 : index
    %c0_22 = arith.constant 0 : index
    %34 = vector.load %arg10[%c0_21, %c0_22] : memref<32x1xf32, #tpu.memory_space<vmem>>, vector<32x1xf32>
    %35 = vector.broadcast %34 : vector<32x1xf32> to vector<32x1024xf32>
    %36 = arith.addf %33, %35 : vector<32x1024xf32>
    %cst_23 = arith.constant 0.000000e+00 : f32
    %37 = vector.broadcast %cst_23 : f32 to vector<32x1024xf32>
    %38 = arith.cmpf oge, %36, %37 : vector<32x1024xf32>
    %cst_24 = arith.constant 2.000000e-01 : f32
    %39 = vector.broadcast %cst_24 : f32 to vector<32x1024xf32>
    %40 = arith.mulf %39, %36 : vector<32x1024xf32>
    %41 = arith.select %38, %36, %40 : vector<32x1024xi1>, vector<32x1024xf32>
    %42 = arith.truncf %41 : vector<32x1024xf32> to vector<32x1024xbf16>
    %c0_25 = arith.constant 0 : index
    %c0_26 = arith.constant 0 : index
    %c0_27 = arith.constant 0 : index
    %43 = vector.load %arg13[%c0_25, %c0_26, %c0_27] : memref<1x32x1024xbf16, #tpu.memory_space<vmem>>, vector<1x32x1024xbf16>
    %44 = vector.shape_cast %43 : vector<1x32x1024xbf16> to vector<32x1024xbf16>
    %45 = vector.shape_cast %42 : vector<32x1024xbf16> to vector<1x32x1024xbf16>
    tpu.vector_store %arg13[%c0_25, %c0_26, %c0_27], %45 {strides = array<i32>} : memref<1x32x1024xbf16, #tpu.memory_space<vmem>>, vector<1x32x1024xbf16>,
    %c0_28 = arith.constant 0 : index
    %c0_29 = arith.constant 0 : index
    %c0_30 = arith.constant 0 : index
    %46 = vector.load %arg11[%c0_28, %c0_29, %c0_30] : memref<1x3x32xbf16, #tpu.memory_space<vmem>>, vector<1x3x32xbf16>
    %47 = vector.shape_cast %46 : vector<1x3x32xbf16> to vector<3x32xbf16>
    %cst_31 = arith.constant dense<0.000000e+00> : vector<3x1024xf32>
    %48 = tpu.matmul %47, %42, %cst_31 {dimension_numbers = #tpu.dot_dimension_numbers<[1], [0], [0], [1], [0, 0, 1, 1], [], []>} : vector<3x32xbf16>, vector<32x1024xbf16>, vector<3x1024xf32> -> vector<3x1024xf32>
    %c0_32 = arith.constant 0 : index
    %c0_33 = arith.constant 0 : index
    %49 = vector.load %arg12[%c0_32, %c0_33] : memref<3x1xf32, #tpu.memory_space<vmem>>, vector<3x1xf32>
    %50 = vector.broadcast %49 : vector<3x1xf32> to vector<3x1024xf32>
    %51 = arith.addf %48, %50 : vector<3x1024xf32>
    %52 = arith.addf %51, %4 : vector<3x1024xf32>
    %c0_34 = arith.constant 0 : index
    %c0_35 = arith.constant 0 : index
    %c0_36 = arith.constant 0 : index
    %53 = vector.load %arg14[%c0_34, %c0_35, %c0_36] : memref<1x3x1024xf32, #tpu.memory_space<vmem>>, vector<1x3x1024xf32>
    %54 = vector.shape_cast %53 : vector<1x3x1024xf32> to vector<3x1024xf32>
    %55 = vector.shape_cast %52 : vector<3x1024xf32> to vector<1x3x1024xf32>
    tpu.vector_store %arg14[%c0_34, %c0_35, %c0_36], %55 {strides = array<i32>} : memref<1x3x1024xf32, #tpu.memory_space<vmem>>, vector<1x3x1024xf32>,
    return
  }
  func.func @transform_0(%arg0: i32, %arg1: i32, %arg2: i32) -> (i32, i32, i32) {
    %c0_i32 = arith.constant 0 : i32
    %c0_i32_0 = arith.constant 0 : i32
    return %arg0, %c0_i32, %arg1 : i32, i32, i32
  }
  func.func @transform_1(%arg0: i32, %arg1: i32, %arg2: i32) -> (i32, i32) {
    %c1_i32 = arith.constant 1 : i32
    %0 = arith.muli %arg2, %c1_i32 : i32
    %1 = arith.addi %0, %arg1 : i32
    %c1_i32_0 = arith.constant 1 : i32
    %c0_i32 = arith.constant 0 : i32
    %2 = arith.cmpi eq, %c1_i32_0, %c0_i32 : i32
    %c1_i32_1 = arith.constant 1 : i32
    %3 = arith.select %2, %c1_i32_1, %c1_i32_0 : i32
    %4 = arith.remsi %1, %3 : i32
    %c0_i32_2 = arith.constant 0 : i32
    %5 = arith.cmpi ne, %4, %c0_i32_2 : i32
    %c0_i32_3 = arith.constant 0 : i32
    %6 = arith.cmpi slt, %4, %c0_i32_3 : i32
    %c0_i32_4 = arith.constant 0 : i32
    %7 = arith.cmpi slt, %3, %c0_i32_4 : i32
    %8 = arith.xori %6, %7 : i1
    %9 = arith.andi %8, %5 : i1
    %10 = arith.addi %4, %3 : i32
    %11 = arith.select %9, %10, %4 : i32
    %c0_i32_5 = arith.constant 0 : i32
    %c0_i32_6 = arith.constant 0 : i32
    return %c0_i32_5, %11 : i32, i32
  }
  func.func @transform_2(%arg0: i32, %arg1: i32, %arg2: i32) -> (i32, i32, i32) {
    %c0_i32 = arith.constant 0 : i32
    %c0_i32_0 = arith.constant 0 : i32
    return %arg0, %c0_i32, %arg1 : i32, i32, i32
  }
  func.func @transform_3(%arg0: i32, %arg1: i32, %arg2: i32) -> (i32, i32, i32) {
    %c0_i32 = arith.constant 0 : i32
    %c0_i32_0 = arith.constant 0 : i32
    %c0_i32_1 = arith.constant 0 : i32
    return %arg0, %c0_i32, %c0_i32_0 : i32, i32, i32
  }
  func.func @transform_4(%arg0: i32, %arg1: i32, %arg2: i32) -> (i32, i32, i32) {
    %c0_i32 = arith.constant 0 : i32
    %c0_i32_0 = arith.constant 0 : i32
    %c0_i32_1 = arith.constant 0 : i32
    return %arg0, %c0_i32, %c0_i32_0 : i32, i32, i32
  }
  func.func @transform_5(%arg0: i32, %arg1: i32, %arg2: i32) -> (i32, i32) {
    %c0_i32 = arith.constant 0 : i32
    %c0_i32_0 = arith.constant 0 : i32
    %c0_i32_1 = arith.constant 0 : i32
    return %c0_i32, %c0_i32_0 : i32, i32
  }
  func.func @transform_6(%arg0: i32, %arg1: i32, %arg2: i32) -> (i32, i32, i32) {
    %c0_i32 = arith.constant 0 : i32
    %c0_i32_0 = arith.constant 0 : i32
    %c0_i32_1 = arith.constant 0 : i32
    return %arg0, %c0_i32, %c0_i32_0 : i32, i32, i32
  }
  func.func @transform_7(%arg0: i32, %arg1: i32, %arg2: i32) -> (i32, i32) {
    %c0_i32 = arith.constant 0 : i32
    %c0_i32_0 = arith.constant 0 : i32
    %c0_i32_1 = arith.constant 0 : i32
    return %c0_i32, %c0_i32_0 : i32, i32
  }
  func.func @transform_8(%arg0: i32, %arg1: i32, %arg2: i32) -> (i32, i32, i32) {
    %c0_i32 = arith.constant 0 : i32
    %c0_i32_0 = arith.constant 0 : i32
    %c0_i32_1 = arith.constant 0 : i32
    return %arg0, %c0_i32, %c0_i32_0 : i32, i32, i32
  }
  func.func @transform_9(%arg0: i32, %arg1: i32, %arg2: i32) -> (i32, i32) {
    %c0_i32 = arith.constant 0 : i32
    %c0_i32_0 = arith.constant 0 : i32
    %c0_i32_1 = arith.constant 0 : i32
    return %c0_i32, %c0_i32_0 : i32, i32
  }
  func.func @transform_10(%arg0: i32, %arg1: i32, %arg2: i32) -> (i32, i32, i32) {
    %c1_i32 = arith.constant 1 : i32
    %0 = arith.muli %arg2, %c1_i32 : i32
    %1 = arith.addi %0, %arg1 : i32
    %c0_i32 = arith.constant 0 : i32
    %c0_i32_0 = arith.constant 0 : i32
    return %arg0, %c0_i32, %1 : i32, i32, i32
  }
  func.func @transform_11(%arg0: i32, %arg1: i32, %arg2: i32) -> (i32, i32, i32) {
    %c1_i32 = arith.constant 1 : i32
    %0 = arith.muli %arg2, %c1_i32 : i32
    %1 = arith.addi %0, %arg1 : i32
    %c0_i32 = arith.constant 0 : i32
    %c0_i32_0 = arith.constant 0 : i32
    return %arg0, %c0_i32, %1 : i32, i32, i32
  }
}

module attributes {stable_mosaic.version = 11 : i64} {
  func.func @_block_kernel_noskip(%arg0: i32, %arg1: i32, %arg2: i32, %arg3: memref<1x32x256xbf16, #tpu.memory_space<vmem>>, %arg4: memref<2x256xf32, #tpu.memory_space<vmem>>, %arg5: memref<1x32x32xbf16, #tpu.memory_space<vmem>>, %arg6: memref<1x32x2xf32, #tpu.memory_space<vmem>>, %arg7: memref<32x1xf32, #tpu.memory_space<vmem>>, %arg8: memref<1x32x32xbf16, #tpu.memory_space<vmem>>, %arg9: memref<32x1xf32, #tpu.memory_space<vmem>>, %arg10: memref<1x3x32xbf16, #tpu.memory_space<vmem>>, %arg11: memref<3x1xf32, #tpu.memory_space<vmem>>, %arg12: memref<1x32x256xbf16, #tpu.memory_space<vmem>>, %arg13: memref<1x3x256xf32, #tpu.memory_space<vmem>>) attributes {dimension_semantics = [#tpu.dimension_semantics<parallel>, #tpu.dimension_semantics<parallel>, #tpu.dimension_semantics<arbitrary>], iteration_bounds = array<i64: 2, 1, 4>, scalar_prefetch = 0 : i64, scratch_operands = 0 : i64, tpu.core_type = #tpu.core_type<tc>, window_params = [{transform_indices = @transform_0, window_bounds = array<i64: 1, 32, 256>}, {transform_indices = @transform_1, window_bounds = array<i64: 2, 256>}, {transform_indices = @transform_2, window_bounds = array<i64: 1, 32, 32>}, {transform_indices = @transform_3, window_bounds = array<i64: 1, 32, 2>}, {pipeline_mode = #tpu.pipeline_mode<synchronous>, transform_indices = @transform_4, window_bounds = array<i64: 32, 1>}, {transform_indices = @transform_5, window_bounds = array<i64: 1, 32, 32>}, {pipeline_mode = #tpu.pipeline_mode<synchronous>, transform_indices = @transform_6, window_bounds = array<i64: 32, 1>}, {transform_indices = @transform_7, window_bounds = array<i64: 1, 3, 32>}, {pipeline_mode = #tpu.pipeline_mode<synchronous>, transform_indices = @transform_8, window_bounds = array<i64: 3, 1>}, {transform_indices = @transform_9, window_bounds = array<i64: 1, 32, 256>}, {transform_indices = @transform_10, window_bounds = array<i64: 1, 3, 256>}]} {
    %c0 = arith.constant 0 : index
    %c0_0 = arith.constant 0 : index
    %c0_1 = arith.constant 0 : index
    %0 = vector.load %arg3[%c0, %c0_0, %c0_1] : memref<1x32x256xbf16, #tpu.memory_space<vmem>>, vector<1x32x256xbf16>
    %1 = vector.shape_cast %0 : vector<1x32x256xbf16> to vector<32x256xbf16>
    %c0_2 = arith.constant 0 : index
    %c0_3 = arith.constant 0 : index
    %2 = vector.load %arg4[%c0_2, %c0_3] : memref<2x256xf32, #tpu.memory_space<vmem>>, vector<2x256xf32>
    %c0_4 = arith.constant 0 : index
    %c0_5 = arith.constant 0 : index
    %c0_6 = arith.constant 0 : index
    %3 = vector.load %arg6[%c0_4, %c0_5, %c0_6] : memref<1x32x2xf32, #tpu.memory_space<vmem>>, vector<1x32x2xf32>
    %4 = vector.shape_cast %3 : vector<1x32x2xf32> to vector<32x2xf32>
    %c0_7 = arith.constant 0 : index
    %c0_8 = arith.constant 0 : index
    %c0_9 = arith.constant 0 : index
    %5 = vector.load %arg5[%c0_7, %c0_8, %c0_9] : memref<1x32x32xbf16, #tpu.memory_space<vmem>>, vector<1x32x32xbf16>
    %6 = vector.shape_cast %5 : vector<1x32x32xbf16> to vector<32x32xbf16>
    %cst = arith.constant dense<0.000000e+00> : vector<32x256xf32>
    %7 = tpu.matmul %6, %1, %cst {dimension_numbers = #tpu.dot_dimension_numbers<[1], [0], [0], [1], [0, 0, 1, 1], [], []>} : vector<32x32xbf16>, vector<32x256xbf16>, vector<32x256xf32> -> vector<32x256xf32>
    %8 = vector.extract_strided_slice %4 {offsets = [0, 0], sizes = [32, 1], strides = [1, 1]} : vector<32x2xf32> to vector<32x1xf32>
    %9 = vector.extract_strided_slice %2 {offsets = [0, 0], sizes = [1, 256], strides = [1, 1]} : vector<2x256xf32> to vector<1x256xf32>
    %10 = vector.broadcast %8 : vector<32x1xf32> to vector<32x256xf32>
    %11 = vector.broadcast %9 : vector<1x256xf32> to vector<32x256xf32>
    %12 = arith.mulf %10, %11 : vector<32x256xf32>
    %13 = arith.addf %7, %12 : vector<32x256xf32>
    %14 = vector.extract_strided_slice %4 {offsets = [0, 1], sizes = [32, 1], strides = [1, 1]} : vector<32x2xf32> to vector<32x1xf32>
    %15 = vector.extract_strided_slice %2 {offsets = [1, 0], sizes = [1, 256], strides = [1, 1]} : vector<2x256xf32> to vector<1x256xf32>
    %16 = vector.broadcast %14 : vector<32x1xf32> to vector<32x256xf32>
    %17 = vector.broadcast %15 : vector<1x256xf32> to vector<32x256xf32>
    %18 = arith.mulf %16, %17 : vector<32x256xf32>
    %19 = arith.addf %13, %18 : vector<32x256xf32>
    %c0_10 = arith.constant 0 : index
    %c0_11 = arith.constant 0 : index
    %20 = vector.load %arg7[%c0_10, %c0_11] : memref<32x1xf32, #tpu.memory_space<vmem>>, vector<32x1xf32>
    %21 = vector.broadcast %20 : vector<32x1xf32> to vector<32x256xf32>
    %22 = arith.addf %19, %21 : vector<32x256xf32>
    %cst_12 = arith.constant 0.000000e+00 : f32
    %23 = vector.broadcast %cst_12 : f32 to vector<32x256xf32>
    %24 = arith.cmpf oge, %22, %23 : vector<32x256xf32>
    %cst_13 = arith.constant 2.000000e-01 : f32
    %25 = vector.broadcast %cst_13 : f32 to vector<32x256xf32>
    %26 = arith.mulf %25, %22 : vector<32x256xf32>
    %27 = arith.select %24, %22, %26 : vector<32x256xi1>, vector<32x256xf32>
    %28 = arith.truncf %27 : vector<32x256xf32> to vector<32x256xbf16>
    %c0_14 = arith.constant 0 : index
    %c0_15 = arith.constant 0 : index
    %c0_16 = arith.constant 0 : index
    %29 = vector.load %arg8[%c0_14, %c0_15, %c0_16] : memref<1x32x32xbf16, #tpu.memory_space<vmem>>, vector<1x32x32xbf16>
    %30 = vector.shape_cast %29 : vector<1x32x32xbf16> to vector<32x32xbf16>
    %cst_17 = arith.constant dense<0.000000e+00> : vector<32x256xf32>
    %31 = tpu.matmul %30, %28, %cst_17 {dimension_numbers = #tpu.dot_dimension_numbers<[1], [0], [0], [1], [0, 0, 1, 1], [], []>} : vector<32x32xbf16>, vector<32x256xbf16>, vector<32x256xf32> -> vector<32x256xf32>
    %c0_18 = arith.constant 0 : index
    %c0_19 = arith.constant 0 : index
    %32 = vector.load %arg9[%c0_18, %c0_19] : memref<32x1xf32, #tpu.memory_space<vmem>>, vector<32x1xf32>
    %33 = vector.broadcast %32 : vector<32x1xf32> to vector<32x256xf32>
    %34 = arith.addf %31, %33 : vector<32x256xf32>
    %cst_20 = arith.constant 0.000000e+00 : f32
    %35 = vector.broadcast %cst_20 : f32 to vector<32x256xf32>
    %36 = arith.cmpf oge, %34, %35 : vector<32x256xf32>
    %cst_21 = arith.constant 2.000000e-01 : f32
    %37 = vector.broadcast %cst_21 : f32 to vector<32x256xf32>
    %38 = arith.mulf %37, %34 : vector<32x256xf32>
    %39 = arith.select %36, %34, %38 : vector<32x256xi1>, vector<32x256xf32>
    %40 = arith.truncf %39 : vector<32x256xf32> to vector<32x256xbf16>
    %c0_22 = arith.constant 0 : index
    %c0_23 = arith.constant 0 : index
    %c0_24 = arith.constant 0 : index
    %41 = vector.load %arg12[%c0_22, %c0_23, %c0_24] : memref<1x32x256xbf16, #tpu.memory_space<vmem>>, vector<1x32x256xbf16>
    %42 = vector.shape_cast %41 : vector<1x32x256xbf16> to vector<32x256xbf16>
    %43 = vector.shape_cast %40 : vector<32x256xbf16> to vector<1x32x256xbf16>
    tpu.vector_store %arg12[%c0_22, %c0_23, %c0_24], %43 {strides = array<i32>} : memref<1x32x256xbf16, #tpu.memory_space<vmem>>, vector<1x32x256xbf16>,
    %c0_25 = arith.constant 0 : index
    %c0_26 = arith.constant 0 : index
    %c0_27 = arith.constant 0 : index
    %44 = vector.load %arg10[%c0_25, %c0_26, %c0_27] : memref<1x3x32xbf16, #tpu.memory_space<vmem>>, vector<1x3x32xbf16>
    %45 = vector.shape_cast %44 : vector<1x3x32xbf16> to vector<3x32xbf16>
    %cst_28 = arith.constant dense<0.000000e+00> : vector<3x256xf32>
    %46 = tpu.matmul %45, %40, %cst_28 {dimension_numbers = #tpu.dot_dimension_numbers<[1], [0], [0], [1], [0, 0, 1, 1], [], []>} : vector<3x32xbf16>, vector<32x256xbf16>, vector<3x256xf32> -> vector<3x256xf32>
    %c0_29 = arith.constant 0 : index
    %c0_30 = arith.constant 0 : index
    %47 = vector.load %arg11[%c0_29, %c0_30] : memref<3x1xf32, #tpu.memory_space<vmem>>, vector<3x1xf32>
    %48 = vector.broadcast %47 : vector<3x1xf32> to vector<3x256xf32>
    %49 = arith.addf %46, %48 : vector<3x256xf32>
    %c0_31 = arith.constant 0 : index
    %c0_32 = arith.constant 0 : index
    %c0_33 = arith.constant 0 : index
    %50 = vector.load %arg13[%c0_31, %c0_32, %c0_33] : memref<1x3x256xf32, #tpu.memory_space<vmem>>, vector<1x3x256xf32>
    %51 = vector.shape_cast %50 : vector<1x3x256xf32> to vector<3x256xf32>
    %52 = vector.shape_cast %49 : vector<3x256xf32> to vector<1x3x256xf32>
    tpu.vector_store %arg13[%c0_31, %c0_32, %c0_33], %52 {strides = array<i32>} : memref<1x3x256xf32, #tpu.memory_space<vmem>>, vector<1x3x256xf32>,
    return
  }
  func.func @transform_0(%arg0: i32, %arg1: i32, %arg2: i32) -> (i32, i32, i32) {
    %c0_i32 = arith.constant 0 : i32
    %c0_i32_0 = arith.constant 0 : i32
    return %arg0, %c0_i32, %arg1 : i32, i32, i32
  }
  func.func @transform_1(%arg0: i32, %arg1: i32, %arg2: i32) -> (i32, i32) {
    %c1_i32 = arith.constant 1 : i32
    %0 = arith.muli %arg2, %c1_i32 : i32
    %1 = arith.addi %0, %arg1 : i32
    %c4_i32 = arith.constant 4 : i32
    %c0_i32 = arith.constant 0 : i32
    %2 = arith.cmpi eq, %c4_i32, %c0_i32 : i32
    %c1_i32_0 = arith.constant 1 : i32
    %3 = arith.select %2, %c1_i32_0, %c4_i32 : i32
    %4 = arith.remsi %1, %3 : i32
    %c0_i32_1 = arith.constant 0 : i32
    %5 = arith.cmpi ne, %4, %c0_i32_1 : i32
    %c0_i32_2 = arith.constant 0 : i32
    %6 = arith.cmpi slt, %4, %c0_i32_2 : i32
    %c0_i32_3 = arith.constant 0 : i32
    %7 = arith.cmpi slt, %3, %c0_i32_3 : i32
    %8 = arith.xori %6, %7 : i1
    %9 = arith.andi %8, %5 : i1
    %10 = arith.addi %4, %3 : i32
    %11 = arith.select %9, %10, %4 : i32
    %c0_i32_4 = arith.constant 0 : i32
    %c0_i32_5 = arith.constant 0 : i32
    return %c0_i32_4, %11 : i32, i32
  }
  func.func @transform_2(%arg0: i32, %arg1: i32, %arg2: i32) -> (i32, i32, i32) {
    %c0_i32 = arith.constant 0 : i32
    %c0_i32_0 = arith.constant 0 : i32
    %c0_i32_1 = arith.constant 0 : i32
    return %arg0, %c0_i32, %c0_i32_0 : i32, i32, i32
  }
  func.func @transform_3(%arg0: i32, %arg1: i32, %arg2: i32) -> (i32, i32, i32) {
    %c0_i32 = arith.constant 0 : i32
    %c0_i32_0 = arith.constant 0 : i32
    %c0_i32_1 = arith.constant 0 : i32
    return %arg0, %c0_i32, %c0_i32_0 : i32, i32, i32
  }
  func.func @transform_4(%arg0: i32, %arg1: i32, %arg2: i32) -> (i32, i32) {
    %c0_i32 = arith.constant 0 : i32
    %c0_i32_0 = arith.constant 0 : i32
    %c0_i32_1 = arith.constant 0 : i32
    return %c0_i32, %c0_i32_0 : i32, i32
  }
  func.func @transform_5(%arg0: i32, %arg1: i32, %arg2: i32) -> (i32, i32, i32) {
    %c0_i32 = arith.constant 0 : i32
    %c0_i32_0 = arith.constant 0 : i32
    %c0_i32_1 = arith.constant 0 : i32
    return %arg0, %c0_i32, %c0_i32_0 : i32, i32, i32
  }
  func.func @transform_6(%arg0: i32, %arg1: i32, %arg2: i32) -> (i32, i32) {
    %c0_i32 = arith.constant 0 : i32
    %c0_i32_0 = arith.constant 0 : i32
    %c0_i32_1 = arith.constant 0 : i32
    return %c0_i32, %c0_i32_0 : i32, i32
  }
  func.func @transform_7(%arg0: i32, %arg1: i32, %arg2: i32) -> (i32, i32, i32) {
    %c0_i32 = arith.constant 0 : i32
    %c0_i32_0 = arith.constant 0 : i32
    %c0_i32_1 = arith.constant 0 : i32
    return %arg0, %c0_i32, %c0_i32_0 : i32, i32, i32
  }
  func.func @transform_8(%arg0: i32, %arg1: i32, %arg2: i32) -> (i32, i32) {
    %c0_i32 = arith.constant 0 : i32
    %c0_i32_0 = arith.constant 0 : i32
    %c0_i32_1 = arith.constant 0 : i32
    return %c0_i32, %c0_i32_0 : i32, i32
  }
  func.func @transform_9(%arg0: i32, %arg1: i32, %arg2: i32) -> (i32, i32, i32) {
    %c1_i32 = arith.constant 1 : i32
    %0 = arith.muli %arg2, %c1_i32 : i32
    %1 = arith.addi %0, %arg1 : i32
    %c0_i32 = arith.constant 0 : i32
    %c0_i32_0 = arith.constant 0 : i32
    return %arg0, %c0_i32, %1 : i32, i32, i32
  }
  func.func @transform_10(%arg0: i32, %arg1: i32, %arg2: i32) -> (i32, i32, i32) {
    %c1_i32 = arith.constant 1 : i32
    %0 = arith.muli %arg2, %c1_i32 : i32
    %1 = arith.addi %0, %arg1 : i32
    %c0_i32 = arith.constant 0 : i32
    %c0_i32_0 = arith.constant 0 : i32
    return %arg0, %c0_i32, %1 : i32, i32, i32
  }
}

module attributes {stable_mosaic.version = 11 : i64} {
  func.func @_lff_conv1_kernel(%arg0: i32, %arg1: i32, %arg2: memref<2x256xf32, #tpu.memory_space<vmem>>, %arg3: memref<32x2xf32, #tpu.memory_space<vmem>>, %arg4: memref<32x1xf32, #tpu.memory_space<vmem>>, %arg5: memref<1x32x32xf32, #tpu.memory_space<vmem>>, %arg6: memref<32x1xf32, #tpu.memory_space<vmem>>, %arg7: memref<1x32x256xbf16, #tpu.memory_space<vmem>>) attributes {dimension_semantics = [#tpu.dimension_semantics<parallel>, #tpu.dimension_semantics<parallel>], iteration_bounds = array<i64: 2, 1>, scalar_prefetch = 0 : i64, scratch_operands = 0 : i64, tpu.core_type = #tpu.core_type<tc>, window_params = [{transform_indices = @transform_0, window_bounds = array<i64: 2, 256>}, {pipeline_mode = #tpu.pipeline_mode<synchronous>, transform_indices = @transform_1, window_bounds = array<i64: 32, 2>}, {pipeline_mode = #tpu.pipeline_mode<synchronous>, transform_indices = @transform_2, window_bounds = array<i64: 32, 1>}, {transform_indices = @transform_3, window_bounds = array<i64: 1, 32, 32>}, {pipeline_mode = #tpu.pipeline_mode<synchronous>, transform_indices = @transform_4, window_bounds = array<i64: 32, 1>}, {transform_indices = @transform_5, window_bounds = array<i64: 1, 32, 256>}]} {
    %c0 = arith.constant 0 : index
    %c0_0 = arith.constant 0 : index
    %0 = vector.load %arg2[%c0, %c0_0] : memref<2x256xf32, #tpu.memory_space<vmem>>, vector<2x256xf32>
    %c0_1 = arith.constant 0 : index
    %c0_2 = arith.constant 0 : index
    %1 = vector.load %arg3[%c0_1, %c0_2] : memref<32x2xf32, #tpu.memory_space<vmem>>, vector<32x2xf32>
    %c0_3 = arith.constant 0 : index
    %c0_4 = arith.constant 0 : index
    %2 = vector.load %arg4[%c0_3, %c0_4] : memref<32x1xf32, #tpu.memory_space<vmem>>, vector<32x1xf32>
    %3 = vector.extract_strided_slice %1 {offsets = [0, 0], sizes = [32, 1], strides = [1, 1]} : vector<32x2xf32> to vector<32x1xf32>
    %4 = vector.extract_strided_slice %0 {offsets = [0, 0], sizes = [1, 256], strides = [1, 1]} : vector<2x256xf32> to vector<1x256xf32>
    %5 = vector.broadcast %3 : vector<32x1xf32> to vector<32x256xf32>
    %6 = vector.broadcast %4 : vector<1x256xf32> to vector<32x256xf32>
    %7 = arith.mulf %5, %6 : vector<32x256xf32>
    %8 = vector.extract_strided_slice %1 {offsets = [0, 1], sizes = [32, 1], strides = [1, 1]} : vector<32x2xf32> to vector<32x1xf32>
    %9 = vector.extract_strided_slice %0 {offsets = [1, 0], sizes = [1, 256], strides = [1, 1]} : vector<2x256xf32> to vector<1x256xf32>
    %10 = vector.broadcast %8 : vector<32x1xf32> to vector<32x256xf32>
    %11 = vector.broadcast %9 : vector<1x256xf32> to vector<32x256xf32>
    %12 = arith.mulf %10, %11 : vector<32x256xf32>
    %13 = arith.addf %7, %12 : vector<32x256xf32>
    %14 = vector.broadcast %2 : vector<32x1xf32> to vector<32x256xf32>
    %15 = arith.addf %13, %14 : vector<32x256xf32>
    %16 = math.sin %15 : vector<32x256xf32>
    %c0_5 = arith.constant 0 : index
    %c0_6 = arith.constant 0 : index
    %c0_7 = arith.constant 0 : index
    %17 = vector.load %arg5[%c0_5, %c0_6, %c0_7] : memref<1x32x32xf32, #tpu.memory_space<vmem>>, vector<1x32x32xf32>
    %18 = vector.shape_cast %17 : vector<1x32x32xf32> to vector<32x32xf32>
    %cst = arith.constant dense<0.000000e+00> : vector<32x256xf32>
    %19 = tpu.matmul %18, %16, %cst {dimension_numbers = #tpu.dot_dimension_numbers<[1], [0], [0], [1], [0, 0, 1, 1], [], []>} : vector<32x32xf32>, vector<32x256xf32>, vector<32x256xf32> -> vector<32x256xf32>
    %c0_8 = arith.constant 0 : index
    %c0_9 = arith.constant 0 : index
    %20 = vector.load %arg6[%c0_8, %c0_9] : memref<32x1xf32, #tpu.memory_space<vmem>>, vector<32x1xf32>
    %21 = vector.broadcast %20 : vector<32x1xf32> to vector<32x256xf32>
    %22 = arith.addf %19, %21 : vector<32x256xf32>
    %cst_10 = arith.constant 0.000000e+00 : f32
    %23 = vector.broadcast %cst_10 : f32 to vector<32x256xf32>
    %24 = arith.cmpf oge, %22, %23 : vector<32x256xf32>
    %cst_11 = arith.constant 2.000000e-01 : f32
    %25 = vector.broadcast %cst_11 : f32 to vector<32x256xf32>
    %26 = arith.mulf %25, %22 : vector<32x256xf32>
    %27 = arith.select %24, %22, %26 : vector<32x256xi1>, vector<32x256xf32>
    %28 = arith.truncf %27 : vector<32x256xf32> to vector<32x256xbf16>
    %c0_12 = arith.constant 0 : index
    %c0_13 = arith.constant 0 : index
    %c0_14 = arith.constant 0 : index
    %29 = vector.load %arg7[%c0_12, %c0_13, %c0_14] : memref<1x32x256xbf16, #tpu.memory_space<vmem>>, vector<1x32x256xbf16>
    %30 = vector.shape_cast %29 : vector<1x32x256xbf16> to vector<32x256xbf16>
    %31 = vector.shape_cast %28 : vector<32x256xbf16> to vector<1x32x256xbf16>
    tpu.vector_store %arg7[%c0_12, %c0_13, %c0_14], %31 {strides = array<i32>} : memref<1x32x256xbf16, #tpu.memory_space<vmem>>, vector<1x32x256xbf16>,
    return
  }
  func.func @transform_0(%arg0: i32, %arg1: i32) -> (i32, i32) {
    %c0_i32 = arith.constant 0 : i32
    %c0_i32_0 = arith.constant 0 : i32
    return %c0_i32, %arg1 : i32, i32
  }
  func.func @transform_1(%arg0: i32, %arg1: i32) -> (i32, i32) {
    %c0_i32 = arith.constant 0 : i32
    %c0_i32_0 = arith.constant 0 : i32
    %c0_i32_1 = arith.constant 0 : i32
    return %c0_i32, %c0_i32_0 : i32, i32
  }
  func.func @transform_2(%arg0: i32, %arg1: i32) -> (i32, i32) {
    %c0_i32 = arith.constant 0 : i32
    %c0_i32_0 = arith.constant 0 : i32
    %c0_i32_1 = arith.constant 0 : i32
    return %c0_i32, %c0_i32_0 : i32, i32
  }
  func.func @transform_3(%arg0: i32, %arg1: i32) -> (i32, i32, i32) {
    %c0_i32 = arith.constant 0 : i32
    %c0_i32_0 = arith.constant 0 : i32
    %c0_i32_1 = arith.constant 0 : i32
    return %arg0, %c0_i32, %c0_i32_0 : i32, i32, i32
  }
  func.func @transform_4(%arg0: i32, %arg1: i32) -> (i32, i32) {
    %c0_i32 = arith.constant 0 : i32
    %c0_i32_0 = arith.constant 0 : i32
    %c0_i32_1 = arith.constant 0 : i32
    return %c0_i32, %c0_i32_0 : i32, i32
  }
  func.func @transform_5(%arg0: i32, %arg1: i32) -> (i32, i32, i32) {
    %c0_i32 = arith.constant 0 : i32
    %c0_i32_0 = arith.constant 0 : i32
    return %arg0, %c0_i32, %arg1 : i32, i32, i32
  }
}

module attributes {stable_mosaic.version = 11 : i64} {
  func.func @_block_kernel_skip(%arg0: i32, %arg1: i32, %arg2: i32, %arg3: memref<1x32x1024xbf16, #tpu.memory_space<vmem>>, %arg4: memref<2x1024xf32, #tpu.memory_space<vmem>>, %arg5: memref<1x3x1024xf32, #tpu.memory_space<vmem>>, %arg6: memref<1x32x32xbf16, #tpu.memory_space<vmem>>, %arg7: memref<1x32x2xf32, #tpu.memory_space<vmem>>, %arg8: memref<32x1xf32, #tpu.memory_space<vmem>>, %arg9: memref<1x32x32xbf16, #tpu.memory_space<vmem>>, %arg10: memref<32x1xf32, #tpu.memory_space<vmem>>, %arg11: memref<1x3x32xbf16, #tpu.memory_space<vmem>>, %arg12: memref<3x1xf32, #tpu.memory_space<vmem>>, %arg13: memref<1x32x1024xbf16, #tpu.memory_space<vmem>>, %arg14: memref<1x3x1024xf32, #tpu.memory_space<vmem>>) attributes {dimension_semantics = [#tpu.dimension_semantics<parallel>, #tpu.dimension_semantics<parallel>, #tpu.dimension_semantics<arbitrary>], iteration_bounds = array<i64: 2, 4, 4>, scalar_prefetch = 0 : i64, scratch_operands = 0 : i64, tpu.core_type = #tpu.core_type<tc>, window_params = [{transform_indices = @transform_0, window_bounds = array<i64: 1, 32, 1024>}, {transform_indices = @transform_1, window_bounds = array<i64: 2, 1024>}, {transform_indices = @transform_2, window_bounds = array<i64: 1, 3, 1024>}, {transform_indices = @transform_3, window_bounds = array<i64: 1, 32, 32>}, {transform_indices = @transform_4, window_bounds = array<i64: 1, 32, 2>}, {pipeline_mode = #tpu.pipeline_mode<synchronous>, transform_indices = @transform_5, window_bounds = array<i64: 32, 1>}, {transform_indices = @transform_6, window_bounds = array<i64: 1, 32, 32>}, {pipeline_mode = #tpu.pipeline_mode<synchronous>, transform_indices = @transform_7, window_bounds = array<i64: 32, 1>}, {transform_indices = @transform_8, window_bounds = array<i64: 1, 3, 32>}, {pipeline_mode = #tpu.pipeline_mode<synchronous>, transform_indices = @transform_9, window_bounds = array<i64: 3, 1>}, {transform_indices = @transform_10, window_bounds = array<i64: 1, 32, 1024>}, {transform_indices = @transform_11, window_bounds = array<i64: 1, 3, 1024>}]} {
    %c0 = arith.constant 0 : index
    %c0_0 = arith.constant 0 : index
    %c0_1 = arith.constant 0 : index
    %0 = vector.load %arg3[%c0, %c0_0, %c0_1] : memref<1x32x1024xbf16, #tpu.memory_space<vmem>>, vector<1x32x1024xbf16>
    %1 = vector.shape_cast %0 : vector<1x32x1024xbf16> to vector<32x1024xbf16>
    %c0_2 = arith.constant 0 : index
    %c0_3 = arith.constant 0 : index
    %2 = vector.load %arg4[%c0_2, %c0_3] : memref<2x1024xf32, #tpu.memory_space<vmem>>, vector<2x1024xf32>
    %c0_4 = arith.constant 0 : index
    %c0_5 = arith.constant 0 : index
    %c0_6 = arith.constant 0 : index
    %3 = vector.load %arg5[%c0_4, %c0_5, %c0_6] : memref<1x3x1024xf32, #tpu.memory_space<vmem>>, vector<1x3x1024xf32>
    %4 = vector.shape_cast %3 : vector<1x3x1024xf32> to vector<3x1024xf32>
    %c0_7 = arith.constant 0 : index
    %c0_8 = arith.constant 0 : index
    %c0_9 = arith.constant 0 : index
    %5 = vector.load %arg7[%c0_7, %c0_8, %c0_9] : memref<1x32x2xf32, #tpu.memory_space<vmem>>, vector<1x32x2xf32>
    %6 = vector.shape_cast %5 : vector<1x32x2xf32> to vector<32x2xf32>
    %c0_10 = arith.constant 0 : index
    %c0_11 = arith.constant 0 : index
    %c0_12 = arith.constant 0 : index
    %7 = vector.load %arg6[%c0_10, %c0_11, %c0_12] : memref<1x32x32xbf16, #tpu.memory_space<vmem>>, vector<1x32x32xbf16>
    %8 = vector.shape_cast %7 : vector<1x32x32xbf16> to vector<32x32xbf16>
    %cst = arith.constant dense<0.000000e+00> : vector<32x1024xf32>
    %9 = tpu.matmul %8, %1, %cst {dimension_numbers = #tpu.dot_dimension_numbers<[1], [0], [0], [1], [0, 0, 1, 1], [], []>} : vector<32x32xbf16>, vector<32x1024xbf16>, vector<32x1024xf32> -> vector<32x1024xf32>
    %10 = vector.extract_strided_slice %6 {offsets = [0, 0], sizes = [32, 1], strides = [1, 1]} : vector<32x2xf32> to vector<32x1xf32>
    %11 = vector.extract_strided_slice %2 {offsets = [0, 0], sizes = [1, 1024], strides = [1, 1]} : vector<2x1024xf32> to vector<1x1024xf32>
    %12 = vector.broadcast %10 : vector<32x1xf32> to vector<32x1024xf32>
    %13 = vector.broadcast %11 : vector<1x1024xf32> to vector<32x1024xf32>
    %14 = arith.mulf %12, %13 : vector<32x1024xf32>
    %15 = arith.addf %9, %14 : vector<32x1024xf32>
    %16 = vector.extract_strided_slice %6 {offsets = [0, 1], sizes = [32, 1], strides = [1, 1]} : vector<32x2xf32> to vector<32x1xf32>
    %17 = vector.extract_strided_slice %2 {offsets = [1, 0], sizes = [1, 1024], strides = [1, 1]} : vector<2x1024xf32> to vector<1x1024xf32>
    %18 = vector.broadcast %16 : vector<32x1xf32> to vector<32x1024xf32>
    %19 = vector.broadcast %17 : vector<1x1024xf32> to vector<32x1024xf32>
    %20 = arith.mulf %18, %19 : vector<32x1024xf32>
    %21 = arith.addf %15, %20 : vector<32x1024xf32>
    %c0_13 = arith.constant 0 : index
    %c0_14 = arith.constant 0 : index
    %22 = vector.load %arg8[%c0_13, %c0_14] : memref<32x1xf32, #tpu.memory_space<vmem>>, vector<32x1xf32>
    %23 = vector.broadcast %22 : vector<32x1xf32> to vector<32x1024xf32>
    %24 = arith.addf %21, %23 : vector<32x1024xf32>
    %cst_15 = arith.constant 0.000000e+00 : f32
    %25 = vector.broadcast %cst_15 : f32 to vector<32x1024xf32>
    %26 = arith.cmpf oge, %24, %25 : vector<32x1024xf32>
    %cst_16 = arith.constant 2.000000e-01 : f32
    %27 = vector.broadcast %cst_16 : f32 to vector<32x1024xf32>
    %28 = arith.mulf %27, %24 : vector<32x1024xf32>
    %29 = arith.select %26, %24, %28 : vector<32x1024xi1>, vector<32x1024xf32>
    %30 = arith.truncf %29 : vector<32x1024xf32> to vector<32x1024xbf16>
    %c0_17 = arith.constant 0 : index
    %c0_18 = arith.constant 0 : index
    %c0_19 = arith.constant 0 : index
    %31 = vector.load %arg9[%c0_17, %c0_18, %c0_19] : memref<1x32x32xbf16, #tpu.memory_space<vmem>>, vector<1x32x32xbf16>
    %32 = vector.shape_cast %31 : vector<1x32x32xbf16> to vector<32x32xbf16>
    %cst_20 = arith.constant dense<0.000000e+00> : vector<32x1024xf32>
    %33 = tpu.matmul %32, %30, %cst_20 {dimension_numbers = #tpu.dot_dimension_numbers<[1], [0], [0], [1], [0, 0, 1, 1], [], []>} : vector<32x32xbf16>, vector<32x1024xbf16>, vector<32x1024xf32> -> vector<32x1024xf32>
    %c0_21 = arith.constant 0 : index
    %c0_22 = arith.constant 0 : index
    %34 = vector.load %arg10[%c0_21, %c0_22] : memref<32x1xf32, #tpu.memory_space<vmem>>, vector<32x1xf32>
    %35 = vector.broadcast %34 : vector<32x1xf32> to vector<32x1024xf32>
    %36 = arith.addf %33, %35 : vector<32x1024xf32>
    %cst_23 = arith.constant 0.000000e+00 : f32
    %37 = vector.broadcast %cst_23 : f32 to vector<32x1024xf32>
    %38 = arith.cmpf oge, %36, %37 : vector<32x1024xf32>
    %cst_24 = arith.constant 2.000000e-01 : f32
    %39 = vector.broadcast %cst_24 : f32 to vector<32x1024xf32>
    %40 = arith.mulf %39, %36 : vector<32x1024xf32>
    %41 = arith.select %38, %36, %40 : vector<32x1024xi1>, vector<32x1024xf32>
    %42 = arith.truncf %41 : vector<32x1024xf32> to vector<32x1024xbf16>
    %c0_25 = arith.constant 0 : index
    %c0_26 = arith.constant 0 : index
    %c0_27 = arith.constant 0 : index
    %43 = vector.load %arg13[%c0_25, %c0_26, %c0_27] : memref<1x32x1024xbf16, #tpu.memory_space<vmem>>, vector<1x32x1024xbf16>
    %44 = vector.shape_cast %43 : vector<1x32x1024xbf16> to vector<32x1024xbf16>
    %45 = vector.shape_cast %42 : vector<32x1024xbf16> to vector<1x32x1024xbf16>
    tpu.vector_store %arg13[%c0_25, %c0_26, %c0_27], %45 {strides = array<i32>} : memref<1x32x1024xbf16, #tpu.memory_space<vmem>>, vector<1x32x1024xbf16>,
    %c0_28 = arith.constant 0 : index
    %c0_29 = arith.constant 0 : index
    %c0_30 = arith.constant 0 : index
    %46 = vector.load %arg11[%c0_28, %c0_29, %c0_30] : memref<1x3x32xbf16, #tpu.memory_space<vmem>>, vector<1x3x32xbf16>
    %47 = vector.shape_cast %46 : vector<1x3x32xbf16> to vector<3x32xbf16>
    %cst_31 = arith.constant dense<0.000000e+00> : vector<3x1024xf32>
    %48 = tpu.matmul %47, %42, %cst_31 {dimension_numbers = #tpu.dot_dimension_numbers<[1], [0], [0], [1], [0, 0, 1, 1], [], []>} : vector<3x32xbf16>, vector<32x1024xbf16>, vector<3x1024xf32> -> vector<3x1024xf32>
    %c0_32 = arith.constant 0 : index
    %c0_33 = arith.constant 0 : index
    %49 = vector.load %arg12[%c0_32, %c0_33] : memref<3x1xf32, #tpu.memory_space<vmem>>, vector<3x1xf32>
    %50 = vector.broadcast %49 : vector<3x1xf32> to vector<3x1024xf32>
    %51 = arith.addf %48, %50 : vector<3x1024xf32>
    %52 = arith.addf %51, %4 : vector<3x1024xf32>
    %c0_34 = arith.constant 0 : index
    %c0_35 = arith.constant 0 : index
    %c0_36 = arith.constant 0 : index
    %53 = vector.load %arg14[%c0_34, %c0_35, %c0_36] : memref<1x3x1024xf32, #tpu.memory_space<vmem>>, vector<1x3x1024xf32>
    %54 = vector.shape_cast %53 : vector<1x3x1024xf32> to vector<3x1024xf32>
    %55 = vector.shape_cast %52 : vector<3x1024xf32> to vector<1x3x1024xf32>
    tpu.vector_store %arg14[%c0_34, %c0_35, %c0_36], %55 {strides = array<i32>} : memref<1x3x1024xf32, #tpu.memory_space<vmem>>, vector<1x3x1024xf32>,
    return
  }
  func.func @transform_0(%arg0: i32, %arg1: i32, %arg2: i32) -> (i32, i32, i32) {
    %c0_i32 = arith.constant 0 : i32
    %c0_i32_0 = arith.constant 0 : i32
    return %arg0, %c0_i32, %arg1 : i32, i32, i32
  }
  func.func @transform_1(%arg0: i32, %arg1: i32, %arg2: i32) -> (i32, i32) {
    %c4_i32 = arith.constant 4 : i32
    %0 = arith.muli %arg2, %c4_i32 : i32
    %1 = arith.addi %0, %arg1 : i32
    %c1_i32 = arith.constant 1 : i32
    %c0_i32 = arith.constant 0 : i32
    %2 = arith.cmpi eq, %c1_i32, %c0_i32 : i32
    %c1_i32_0 = arith.constant 1 : i32
    %3 = arith.select %2, %c1_i32_0, %c1_i32 : i32
    %4 = arith.remsi %1, %3 : i32
    %c0_i32_1 = arith.constant 0 : i32
    %5 = arith.cmpi ne, %4, %c0_i32_1 : i32
    %c0_i32_2 = arith.constant 0 : i32
    %6 = arith.cmpi slt, %4, %c0_i32_2 : i32
    %c0_i32_3 = arith.constant 0 : i32
    %7 = arith.cmpi slt, %3, %c0_i32_3 : i32
    %8 = arith.xori %6, %7 : i1
    %9 = arith.andi %8, %5 : i1
    %10 = arith.addi %4, %3 : i32
    %11 = arith.select %9, %10, %4 : i32
    %c0_i32_4 = arith.constant 0 : i32
    %c0_i32_5 = arith.constant 0 : i32
    return %c0_i32_4, %11 : i32, i32
  }
  func.func @transform_2(%arg0: i32, %arg1: i32, %arg2: i32) -> (i32, i32, i32) {
    %c0_i32 = arith.constant 0 : i32
    %c0_i32_0 = arith.constant 0 : i32
    return %arg0, %c0_i32, %arg1 : i32, i32, i32
  }
  func.func @transform_3(%arg0: i32, %arg1: i32, %arg2: i32) -> (i32, i32, i32) {
    %c0_i32 = arith.constant 0 : i32
    %c0_i32_0 = arith.constant 0 : i32
    %c0_i32_1 = arith.constant 0 : i32
    return %arg0, %c0_i32, %c0_i32_0 : i32, i32, i32
  }
  func.func @transform_4(%arg0: i32, %arg1: i32, %arg2: i32) -> (i32, i32, i32) {
    %c0_i32 = arith.constant 0 : i32
    %c0_i32_0 = arith.constant 0 : i32
    %c0_i32_1 = arith.constant 0 : i32
    return %arg0, %c0_i32, %c0_i32_0 : i32, i32, i32
  }
  func.func @transform_5(%arg0: i32, %arg1: i32, %arg2: i32) -> (i32, i32) {
    %c0_i32 = arith.constant 0 : i32
    %c0_i32_0 = arith.constant 0 : i32
    %c0_i32_1 = arith.constant 0 : i32
    return %c0_i32, %c0_i32_0 : i32, i32
  }
  func.func @transform_6(%arg0: i32, %arg1: i32, %arg2: i32) -> (i32, i32, i32) {
    %c0_i32 = arith.constant 0 : i32
    %c0_i32_0 = arith.constant 0 : i32
    %c0_i32_1 = arith.constant 0 : i32
    return %arg0, %c0_i32, %c0_i32_0 : i32, i32, i32
  }
  func.func @transform_7(%arg0: i32, %arg1: i32, %arg2: i32) -> (i32, i32) {
    %c0_i32 = arith.constant 0 : i32
    %c0_i32_0 = arith.constant 0 : i32
    %c0_i32_1 = arith.constant 0 : i32
    return %c0_i32, %c0_i32_0 : i32, i32
  }
  func.func @transform_8(%arg0: i32, %arg1: i32, %arg2: i32) -> (i32, i32, i32) {
    %c0_i32 = arith.constant 0 : i32
    %c0_i32_0 = arith.constant 0 : i32
    %c0_i32_1 = arith.constant 0 : i32
    return %arg0, %c0_i32, %c0_i32_0 : i32, i32, i32
  }
  func.func @transform_9(%arg0: i32, %arg1: i32, %arg2: i32) -> (i32, i32) {
    %c0_i32 = arith.constant 0 : i32
    %c0_i32_0 = arith.constant 0 : i32
    %c0_i32_1 = arith.constant 0 : i32
    return %c0_i32, %c0_i32_0 : i32, i32
  }
  func.func @transform_10(%arg0: i32, %arg1: i32, %arg2: i32) -> (i32, i32, i32) {
    %c4_i32 = arith.constant 4 : i32
    %0 = arith.muli %arg2, %c4_i32 : i32
    %1 = arith.addi %0, %arg1 : i32
    %c0_i32 = arith.constant 0 : i32
    %c0_i32_0 = arith.constant 0 : i32
    return %arg0, %c0_i32, %1 : i32, i32, i32
  }
  func.func @transform_11(%arg0: i32, %arg1: i32, %arg2: i32) -> (i32, i32, i32) {
    %c4_i32 = arith.constant 4 : i32
    %0 = arith.muli %arg2, %c4_i32 : i32
    %1 = arith.addi %0, %arg1 : i32
    %c0_i32 = arith.constant 0 : i32
    %c0_i32_0 = arith.constant 0 : i32
    return %arg0, %c0_i32, %1 : i32, i32, i32
  }
}

</mosaic_0001>

<bundles_post_ra>
// kernel: squeeze.34
= control target key start
LH: loop header
LB: loop body
LE: loop exit
PB: predicated region body
PF: predicated region fallthrough
CT: control target
= control target key end

     0   :  { %s8_s6 = smov 3  ;;  %s11_s7 = smov 12  ;;  %vm13_vm0 = vcmask 1043458   ;;  %vm3_vm1 = vcmask 130048   ;;  %vm17_vm2 = vcmask 1048448   ;;  %vm31_vm3 = vcmask 917248   ;;  %s214_s0 = inlined_call_operand.vmem [shape: f32[1,2,16,16], index: 0, kind: input, shape index: {}]   ;;  %s215_s1 = inlined_call_operand.vmem [shape: f32[2,256], index: 1, kind: output, shape index: {}]  }
   0x1   :  { %v117_v0 = vld [vmem:[%s214_s0 + $0x7] ss:$16 sm:%s8_s6]   ;;  %v118_v1 = vld [vmem:[%s214_s0 - $0x11] ss:$16 sm:%s11_s7]   ;;  %s36_s12 = smov 3  ;;  %s39_s15 = smov 12 }
   0x2   :  { %v14_v2 = vsel %vm13_vm0, %v118_v1, %v117_v0  ;;  %v121_v3 = vld [vmem:[%s214_s0 + $0x5] ss:$16 sm:%s36_s12]   ;;  %s139_s16 = smov 112   ;;  %v122_v4 = vld [vmem:[%s214_s0 - $0x13] ss:$16 sm:%s39_s15]   ;;  %s22_s19 = smov 3 }
   0x3   :  { %15 = vrot.lane.b32.xlu0 %v14_v2, %s139_s16  ;;  %s25_s20 = smov 12  ;;  %v42_v5 = vsel %vm13_vm0, %v122_v4, %v121_v3  ;;  %v119_v6 = vld [vmem:[%s214_s0 + $0x6] ss:$16 sm:%s22_s19]   ;;  %s50_s23 = smov 3  ;;  %vm45_vm4 = vcmask 786048   ;;  %vm59_vm5 = vcmask 654848  }
   0x4   :  { %s140_s24 = smov 80   ;;  %v120_v7 = vld [vmem:[%s214_s0 - $0x12] ss:$16 sm:%s25_s20]   ;;  %s53_s27 = smov 12  ;;  %v123_v8 = vld [vmem:[%s214_s0 + $0x4] ss:$16 sm:%s50_s23]  }
   0x5   :  { %43 = vrot.lane.b32.xlu1 %v42_v5, %s140_s24  ;;  %v124_v9 = vld [vmem:[%s214_s0 - $0x14] ss:$16 sm:%s53_s27]   ;;  %s92_s3 = smov 3  ;;  %s64_s4 = smov 3  ;;  %v28_v10 = vsel %vm13_vm0, %v120_v7, %v119_v6  ;;  %vm73_vm6 = vcmask 523648   ;;  %vm87_vm7 = vcmask 392448  }
   0x6   :  { %v125_v11 = vld [vmem:[%s214_s0 + $0x3] ss:$16 sm:%s64_s4]   ;;  %s67_s7 = smov 12  ;;  %s95_s8 = smov 12  ;;  %v56_v13 = vsel %vm13_vm0, %v124_v9, %v123_v8  ;;  %v129_v15 = vld [vmem:[%s214_s0 + $0x1] ss:$16 sm:%s92_s3]  }
   0x7   :  { %v126_v12 = vld [vmem:[%s214_s0 - $0x15] ss:$16 sm:%s67_s7]   ;;  %s78_s11 = smov 3  ;;  %s81_s12 = smov 12  ;;  %v130_v16 = vld [vmem:[%s214_s0 - $0x17] ss:$16 sm:%s95_s8]  }
   0x8   :  { %v70_v14 = vsel %vm13_vm0, %v126_v12, %v125_v11  ;;  %s141_s13 = smov 96   ;;  %s142_s16 = smov 48   ;;  %v127_v17 = vld [vmem:[%s214_s0 + $0x2] ss:$16 sm:%s78_s11]   ;;  %v128_v18 = vld [vmem:[%s214_s0 - $0x16] ss:$16 sm:%s81_s12]   ;;  %v98_v19 = vsel %vm13_vm0, %v130_v16, %v129_v15 }
   0x9   :  { %71 = vrot.lane.b32.xlu2 %v70_v14, %s142_s16  ;;  %s143_s21 = smov 64   ;;  %v84_v20 = vsel %vm13_vm0, %v128_v18, %v127_v17  ;;  %s144_s24 = smov 16   ;;  %v2_v21 = vld [vmem:[%s214_s0] ss:$8 sm:$0xf]   ;;  %vm101_vm8 = vcmask 261248  }
   0xa   :  { %s145_s25 = smov 32   ;;  %4 = vst.msk [vmem:[#allocation0] ss:$8 sm:$0x3] %vm3_vm1, %v2_v21  }
   0xb   :  { %29 = vrot.lane.b32.xlu0 %v28_v10, %s141_s13  ;;  %6 = vst.msk [vmem:[#allocation0 - $0xf] ss:$8 sm:$0xc] %vm3_vm1, %v2_v21  }
   0xd   :  { %57 = vrot.lane.b32.xlu1 %v56_v13, %s143_s21 }
  0x11   :  { %85 = vrot.lane.b32.xlu2 %v84_v20, %s145_s25 }
  0x13   :  { %99 = vrot.lane.b32.xlu0 %v98_v19, %s144_s24 }
  0x63   :  { %v72_v22 = vpop.permute.xlu2 %71  }
  0x6b   :  { %v86_v23 = vpop.permute.xlu2 %85  }
  0x75   :  { %v16_v24 = vpop.permute.xlu0 %15  }
  0x76   :  { %18 = vst.msk [vmem:[#allocation0] sm:$0x3] %vm17_vm2, %v16_v24  }
  0x77   :  { %20 = vst.msk [vmem:[#allocation0 + $0x6] sm:$0xc] %vm17_vm2, %v16_v24   ;;  %v44_v25 = vpop.permute.xlu1 %43  }
  0x7d   :  { %v30_v26 = vpop.permute.xlu0 %29  }
  0x7e   :  { %32 = vst.msk [vmem:[#allocation0] sm:$0x3] %vm31_vm3, %v30_v26  }
  0x7f   :  { %34 = vst.msk [vmem:[#allocation0 + $0x6] sm:$0xc] %vm31_vm3, %v30_v26   ;;  %v58_v27 = vpop.permute.xlu1 %57  }
  0x80   :  { %46 = vst.msk [vmem:[#allocation0] sm:$0x3] %vm45_vm4, %v44_v25  }
  0x81   :  { %48 = vst.msk [vmem:[#allocation0 + $0x6] sm:$0xc] %vm45_vm4, %v44_v25  }
  0x82   :  { %60 = vst.msk [vmem:[#allocation0] sm:$0x3] %vm59_vm5, %v58_v27  }
  0x83   :  { %62 = vst.msk [vmem:[#allocation0 + $0x6] sm:$0xc] %vm59_vm5, %v58_v27  }
  0x84   :  { %74 = vst.msk [vmem:[#allocation0] sm:$0x3] %vm73_vm6, %v72_v22  }
  0x85   :  { %76 = vst.msk [vmem:[#allocation0 + $0x6] sm:$0xc] %vm73_vm6, %v72_v22   ;;  %v100_v28 = vpop.permute.xlu0 %99  }
  0x86   :  { %88 = vst.msk [vmem:[#allocation0] sm:$0x3] %vm87_vm7, %v86_v23  }
  0x87   :  { %90 = vst.msk [vmem:[#allocation0 + $0x6] sm:$0xc] %vm87_vm7, %v86_v23  }
  0x88   :  { %102 = vst.msk [vmem:[#allocation0] sm:$0x3] %vm101_vm8, %v100_v28  }
  0x89   :  { %104 = vst.msk [vmem:[#allocation0 + $0x6] sm:$0xc] %vm101_vm8, %v100_v28  }
  0x8f   :  { %v107_v29 = vld [vmem:[#allocation0] sm:$0x3] }
  0x90   :  { %110 = vst [vmem:[%s215_s1] sm:$0x3] %v107_v29  ;;  %v112_v30 = vld [vmem:[#allocation0 + $0x8] sm:$0x3] }
  0x91   :  { %131 = vst [vmem:[%s215_s1 + $0x2] sm:$0x3] %v112_v30 }

// kernel: inrgan_forward.5
= control target key start
LH: loop header
LB: loop body
LE: loop exit
PB: predicated region body
PF: predicated region fallthrough
CT: control target
= control target key end

     0   :  { %s1697_s0 = inlined_call_operand.vmem [shape: bf16[2,32,256], index: 0, kind: input, shape index: {}]   ;;  %s1698_s1 = inlined_call_operand.vmem [shape: f32[2,1024], index: 1, kind: input, shape index: {}]   ;;  %s1699_s2 = inlined_call_operand.vmem [shape: bf16[2,32,32], index: 2, kind: input, shape index: {}]   ;;  %s1700_s3 = inlined_call_operand.vmem [shape: f32[2,32,2], index: 3, kind: input, shape index: {}]   ;;  %s1701_s4 = inlined_call_operand.vmem [shape: f32[32,1], index: 4, kind: input, shape index: {}]   ;;  %s1702_s5 = inlined_call_operand.vmem [shape: bf16[2,32,32], index: 5, kind: input, shape index: {}]   ;;  %s1703_s6 = inlined_call_operand.vmem [shape: f32[32,1], index: 6, kind: input, shape index: {}]   ;;  %s1704_s7 = inlined_call_operand.vmem [shape: bf16[2,3,32], index: 7, kind: input, shape index: {}]   ;;  %s1705_s8 = inlined_call_operand.vmem [shape: f32[3,1], index: 8, kind: input, shape index: {}]   ;;  %s1706_s9 = inlined_call_operand.vmem [shape: bf16[2,32,1024], index: 9, kind: output, shape index: {0}]   ;;  %s1707_s10 = inlined_call_operand.vmem [shape: f32[2,3,1024], index: 10, kind: output, shape index: {1}]  }
   0x1   :  { %1709 = sst [smem:[#allocation3_spill]] %s1697_s0 }
   0x2   :  { %1710 = sst [smem:[#allocation4_spill]] %s1699_s2 }
   0x3   :  { %s1525_s13 = smov 0   ;;  %s1527_s14 = smov 0  }
   0x4   :  { %s1529_s15 = smov 0   ;;  %s1531_s16 = smov 0  }
   0x5   :  { %s1533_s17 = smov 0   ;;  %s1535_s18 = smov 0  }
   0x6   :  { %s1537_s19 = smov 0  }
   0x7 LB: > { %s33_s20 = sadd.s32 1, %s1458_s17  ;;  %s40_s21 = sadd.s32 1, %s1462_s18  ;;  %s1466_s19 = sphi %s1537_s19, %s21_s19   ;;  %s1462_s18 = sphi %s1535_s18, %s1720_s18   ;;  %s1458_s17 = sphi %s1533_s17, %s1719_s17   ;;  %s1454_s16 = sphi %s1531_s16, %s1718_s16   ;;  %s1450_s15 = sphi %s1529_s15, %s1717_s15   ;;  %s1446_s14 = sphi %s1527_s14, %s1716_s14   ;;  %s1442_s13 = sphi %s1525_s13, %s1715_s13  }
   0x8   : > { %p34_p0 = scmp.ge.s32.totalorder %s33_s20, 4  ;;  %s1259_s22 = sadd.s32 4294967295, %s1466_s19  }
   0x9   : > { %p308_p1 = scmp.ne.s32.totalorder %s1446_s14, %s1442_s13  ;;  %p309_p2 = scmp.eq.s32.totalorder %s1259_s22, 7 }
   0xa   : > { %s1722_s20 = smov (%p34_p0, %s33_s20), 0  ;;  %s1724_s21 = smov (!%p34_p0, %s40_s21), %s1462_s18 }
   0xb   : > { %s294_s23 = ssub.s32 %s1458_s17, %s1722_s20  ;;  %p42_p3 = scmp.ge.s32.totalorder %s1724_s21, 2 }
   0xc   : > { %p1269_p4 = scmp.ge.s32.totalorder %s1466_s19, 1  ;;  %p1571_p5 = por %p309_p2, %p308_p1 }
   0xd   : > { %p451_p6 = scmp.lt.s32.totalorder %s1466_s19, 9  ;;  %s1726_s21 = smov (%p42_p3, %s1724_s21), 0 }
   0xe   : > { %s293_s25 = ssub.s32 %s1462_s18, %s1726_s21  ;;  %s298_s27 = sadd.s32 1, %s1446_s14 }
   0xf   : > { %p452_p7 = pnand %p1269_p4, %p451_p6  ;;  %s295_s26 = sor.u32 %s294_s23, %s293_s25 }
  0x10   : > { %p296_p8 = scmp.eq.s32.totalorder %s295_s26, 0  ;;  %p540_p9 = scmp.lt.s32.totalorder (!%p452_p7), %s1454_s16, 1 }
  0x11   : > { %455 = sbr.rel (%p452_p7) target bundleno = 513 (0x201), region = 56  ;;  %s1712_s0 = sld [smem:[#allocation3_spill]] (!%p452_p7) }
  0x12   : > { %s1582_s28 = scalar_select %p296_p8, %s1446_s14, %s298_s27  }
  0x13   : > { %s1713_s2 = sld [smem:[#allocation4_spill]] (!%p452_p7)  ;;  %p550_p10 = scmp.lt.s32.totalorder (!%p452_p7), %s1450_s15, 0 }
  0x16   : > { %v1468_v0 = vmov 0   ;;  %v1469_v1 = vmov 1   ;;  %s1586_s29 = scalar_select %p540_p9, %s1454_s16, 1  ;;  %vm693_vm0 = vcmask 261120   ;;  %v778_v19 = vld [vmem:[%s1701_s4 + $0x10] sm:$0xff]  ;;  %v779_v21 = vld [vmem:[%s1701_s4 + $0x18] sm:$0xff] }
  0x17   : > { %1406 = vset.pattern.permute.xlu0 %v1468_v0  ;;  %1407 = vset.pattern.permute.xlu1 %v1469_v1  ;;  %v777_v22 = vld [vmem:[%s1701_s4 + $0x8] sm:$0xff]  ;;  %v776_v23 = vld [vmem:[%s1701_s4] sm:$0xff]  ;;  %v842_v24 = vld [vmem:[%s1703_s6 + $0x10] sm:$0xff] }
  0x18   : > { %1408 = vset.pattern.permute.xlu2 %v1468_v0  ;;  %s1336_s30 = sshll.u32 %s1586_s29, 5  ;;  %s1708_s11 = sshll.u32 %s1586_s29, 4  ;;  %v843_v25 = vld [vmem:[%s1703_s6 + $0x18] sm:$0xff]  ;;  %v951_v26 = vld [vmem:[%s1705_s8] sm:$0x7]  ;;  %v841_v28 = vld [vmem:[%s1703_s6 + $0x8] sm:$0xff] }
  0x19   : > { %s547_s23 = scalar_lea.vmem %s1712_s0, %s1336_s30  ;;  %s590_s27 = scalar_lea.vmem %s1700_s3, %s1336_s30  ;;  %v840_v27 = vld [vmem:[%s1703_s6] sm:$0xff] }
  0x1a   : > { %v1306_v2 = vld [vmem:[%s547_s23 + $0x10] sm:$0xf]  ;;  %v1343_v3 = vld [vmem:[%s547_s23 + $0x14] sm:$0xf0]  ;;  %v1342_v4 = vld [vmem:[%s547_s23 + $0x14] sm:$0xf]  ;;  %s585_s30 = scalar_lea.vmem %s1713_s2, %s1708_s11 }
  0x1b   : > { %v1307_v5 = vor.u32 %v1343_v3, %v1306_v2  ;;  %v1308_v6 = vld [vmem:[%s547_s23 + $0x18] sm:$0xf0]  ;;  %v622_v7 = vld [vmem:[%s590_s27 + $0x10] sm:$0xff]  ;;  %v1298_v8 = vld [vmem:[%s547_s23] sm:$0xf] }
  0x1c   : > { %v1311_v9 = vor.u32 %v1342_v4, %v1308_v6  ;;  %640 = vperm.xlu0 %1406, %v622_v7   ;;  %v1341_v10 = vld [vmem:[%s547_s23 + $0x4] sm:$0xf0]  ;;  %v1340_v11 = vld [vmem:[%s547_s23 + $0x4] sm:$0xf]  ;;  %v1300_v12 = vld [vmem:[%s547_s23 + $0x8] sm:$0xf0]  ;;  %747 = vperm.xlu1 %1407, %v622_v7  }
  0x1d   : > { %706 = vmatpush.bf16.msra.mxu0 %v1307_v5  ;;  %v1299_v13 = vor.u32 %v1341_v10, %v1298_v8  ;;  %v620_v14 = vld [vmem:[%s590_s27] sm:$0xff]  ;;  %v1303_v15 = vor.u32 %v1340_v11, %v1300_v12  ;;  %v623_v17 = vld [vmem:[%s590_s27 + $0x18] sm:$0xff]  ;;  %v621_v18 = vld [vmem:[%s590_s27 + $0x8] sm:$0xff] }
  0x1e   : > { %725 = vmatpush.bf16.msra.mxu1 %v1311_v9  ;;  %630 = vperm.xlu2 %1408, %v620_v14   ;;  %v1344_v16 = vld [vmem:[%s585_s30] sm:$0xff]  ;;  %v1345_v20 = vld [vmem:[%s585_s30 + $0x8] sm:$0xff]  ;;  %s551_s30 = ssub.s32 0, %s1450_s15 }
  0x1f   : > { %s1273_s23 = smin.u32 %s1450_s15, %s551_s30  ;;  %s1714_s30 = sshll.u32 %s1586_s29, 4 }
  0x20   : > { %s553_s25 = sand.u32 3, %s1273_s23  }
  0x21   : > { %707 = vmatpush.bf16.msra.mxu0 %v1299_v13  ;;  %s554_s26 = ssub.s32 0, %s553_s25 }
  0x22   : > { %726 = vmatpush.bf16.msra.mxu1 %v1303_v15  ;;  %s1728_s26 = smov (!%p550_p10, %s554_s26), %s553_s25  ;;  %s1286_s25 = sshll.u32 %s1586_s29, 3 }
  0x23   : > { %p1275_p11 = scmp.lt.s32.totalorder %s1728_s26, 0  ;;  %s560_s0 = sadd.s32 4, %s1728_s26 }
  0x24   : > { %1312 = vmatmul.msk.bf16.vlgmr.msra.gmra.mxu0 %vm693_vm0, %v1344_v16  ;;  %645 = vperm.xlu0 %1406, %v623_v17  }
  0x25   : > { %1314 = vmatmul.msk.bf16.vlgmr.msra.gmra.mxu1 %vm693_vm0, %v1344_v16  ;;  %751 = vperm.xlu1 %1407, %v623_v17   ;;  %s1730_s0 = smov (!%p1275_p11, %s560_s0), %s1728_s26  ;;  %s595_s26 = scalar_lea.vmem %s1702_s5, %s1714_s30 }
  0x26   : > { %635 = vperm.xlu2 %1408, %v621_v18   ;;  %s1276_s11 = sshll.u32 %s1730_s0, 1  ;;  %s524_s0 = sand.u32 1, %s1442_s13  }
  0x27   : > { %p563_p12 = scmp.lt.s32.totalorder %s1276_s11, 7  ;;  %s1284_s13 = sshll.u32 %s1586_s29, 1 }
  0x28   : > { %s1285_s30 = sshll.u32 %s1450_s15, 1  ;;  %s1332_s15 = sshll.u32 (%p1571_p5), %s1454_s16, 5 }
  0x29   : > { %s1732_s11 = smov (!%p563_p12, %s1276_s11), 7  ;;  %p606_p13 = scmp.lt.s32.totalorder %s1285_s30, 7 }
  0x2a   : > { %s1277_s12 = sshll.u32 %s1732_s11, 1  ;;  %s1270_s11 = sshll.u32 %s524_s0, 5 }
  0x2b   : > { %s566_s22 = scalar_lea.vmem %s1698_s1, %s1277_s12  ;;  %s1649_s12 = scalar_lea.vmem [#allocation2], %s1270_s11 }
  0x2c   : > { %1409 = vset.pattern.permute.xlu0 %v1469_v1  ;;  %v619_v34 = vld [vmem:[%s566_s22] sm:$0xf]  ;;  %s599_s22 = scalar_lea.vmem %s1704_s7, %s1284_s13  ;;  %s1033_s29 = sadd.s32 (%p1571_p5), %s1332_s15, %s1285_s30 }
  0x2d   : > { %739 = vperm.xlu0 %1409, %v620_v14   ;;  %743 = vperm.xlu1 %1407, %v621_v18   ;;  %v649_v37 = vperm.slane %v619_v34, 0  ;;  %v650_v40 = vperm.slane %v619_v34, 2  ;;  %v754_v43 = vperm.slane %v619_v34, 1  ;;  %v755_v45 = vperm.slane %v619_v34, 3  ;;  %s607_s23 = scalar_select %p606_p13, %s1285_s30, 7 }
  0x2e   : > { %792 = vperm.xlu2 %1408, %v778_v19   ;;  %s1333_s27 = sshll.u32 (%p1571_p5), %s1033_s29, 2 }
  0x2f   : > { %v653_v42 = vperm.slane %v649_v37, 0  ;;  %v654_v44 = vperm.slane %v650_v40, 0  ;;  %v758_v47 = vperm.slane %v754_v43, 1  ;;  %v759_v56 = vperm.slane %v755_v45, 1 }
  0x34   : > { %1313 = vmatmul.msk.bf16.gmra.mxu0 %vm693_vm0, %v1345_v20 }
  0x35   : > { %1315 = vmatmul.msk.bf16.gmra.mxu1 %vm693_vm0, %v1345_v20  ;;  %1410 = vset.pattern.permute.xlu1 %v1468_v0 }
  0x36   : > { %1411 = vset.pattern.permute.xlu0 %v1468_v0  ;;  %797 = vperm.xlu1 %1410, %v779_v21  }
  0x37   : > { %787 = vperm.xlu0 %1411, %v777_v22   ;;  %782 = vperm.xlu2 %1408, %v776_v23  }
  0x3e   : > { %856 = vperm.xlu1 %1410, %v842_v24  }
  0x3f   : > { %861 = vperm.xlu2 %1408, %v843_v25   ;;  %954 = vperm.xlu0 %1411, %v951_v26  }
  0x46   : > { %846 = vperm.xlu1 %1410, %v840_v27  }
  0x47   : > { %851 = vperm.xlu2 %1408, %v841_v28  }
  0x78   : > { %v631_v29 = vpop.permute.xlu2 %630 }
  0x79   : > { %v655_v46 = vmul.f32 %v653_v42, %v631_v29  ;;  %v656_v55 = vmul.f32 %v654_v44, %v631_v29 }
  0x80   : > { %v636_v35 = vpop.permute.xlu2 %635 }
  0x81   : > { %v657_v48 = vmul.f32 %v653_v42, %v636_v35  ;;  %v658_v52 = vmul.f32 %v654_v44, %v636_v35 }
  0x88   : > { %v793_v50 = vpop.permute.xlu2 %792 }
  0x8e   : > { %v641_v30 = vpop.permute.xlu0 %640  ;;  %v748_v31 = vpop.permute.xlu1 %747 }
  0x8f   : > { %v659_v49 = vmul.f32 %v653_v42, %v641_v30  ;;  %v660_v53 = vmul.f32 %v654_v44, %v641_v30  ;;  %v764_v63 = vmul.f32 %v758_v47, %v748_v31  ;;  %v765_v1 = vmul.f32 %v759_v56, %v748_v31 }
  0x91   : > { %v783_v16 = vpop.permute.xlu2 %782 }
  0x96   : > { %v646_v36 = vpop.permute.xlu0 %645 }
  0x97   : > { %v752_v38 = vpop.permute.xlu1 %751  ;;  %v661_v10 = vmul.f32 %v653_v42, %v646_v36  ;;  %v662_v12 = vmul.f32 %v654_v44, %v646_v36 }
  0x98   : > { %v766_v17 = vmul.f32 %v758_v47, %v752_v38  ;;  %v767_v22 = vmul.f32 %v759_v56, %v752_v38 }
  0x9f   : > { %v740_v51 = vpop.permute.xlu0 %739  ;;  %v744_v61 = vpop.permute.xlu1 %743 }
  0xa0   : > { %v760_v59 = vmul.f32 %v758_v47, %v740_v51  ;;  %v761_v3 = vmul.f32 %v759_v56, %v740_v51  ;;  %v762_v5 = vmul.f32 %v758_v47, %v744_v61  ;;  %v763_v8 = vmul.f32 %v759_v56, %v744_v61 }
  0xa1   : > { %v709_v32 = vpop.f32.mrf.mxu0 }
  0xa2   : > { %v728_v33 = vpop.f32.mrf.mxu1  ;;  %v710_v60 = vadd.f32 %v709_v32, %v655_v46 }
  0xa3   : > { %v729_v4 = vadd.f32 %v728_v33, %v656_v55  ;;  %v1347_v55 = vld [vmem:[%s595_s26 + $0x8] sm:$0xff] }
  0xa4   : > { %v768_v7 = vadd.f32 %v760_v59, %v710_v60 }
  0xa5   : > { %v769_v18 = vadd.f32 %v761_v3, %v729_v4 }
  0xa6   : > { %v800_v23 = vadd.f32 %v783_v16, %v768_v7 }
  0xa7   : > { %v801_v31 = vadd.f32 %v783_v16, %v769_v18 }
  0xa8   : > { %v798_v28 = vpop.permute.xlu1 %797  ;;  %vm808_vm2 = vcmp.ge.f32.partialorder %v800_v23, 0.0  ;;  %v816_v42 = vmul.f32 0.2, %v800_v23 }
  0xa9   : > { %v711_v39 = vpop.f32.mrf.mxu0  ;;  %v788_v14 = vpop.permute.xlu0 %787  ;;  %v817_v46 = vmul.f32 0.2, %v801_v31  ;;  %vm809_vm8 = vcmp.ge.f32.partialorder %v801_v31, 0.0 }
  0xaa   : > { %v730_v41 = vpop.f32.mrf.mxu1  ;;  %v712_v0 = vadd.f32 %v711_v39, %v657_v48 }
  0xab   : > { %v731_v2 = vadd.f32 %v730_v41, %v658_v52  ;;  %v825_v52 = vsel %vm809_vm8, %v801_v31, %v817_v46 }
  0xac   : > { %v770_v11 = vadd.f32 %v762_v5, %v712_v0 }
  0xad   : > { %v771_v13 = vadd.f32 %v763_v8, %v731_v2 }
  0xae   : > { %v802_v26 = vadd.f32 %v788_v14, %v770_v11 }
  0xaf   : > { %v803_v29 = vadd.f32 %v788_v14, %v771_v13 }
  0xb0   : > { %v818_v36 = vmul.f32 0.2, %v802_v26  ;;  %vm810_vm6 = vcmp.ge.f32.partialorder %v802_v26, 0.0  ;;  %v857_v56 = vpop.permute.xlu1 %856 }
  0xb1   : > { %v714_v54 = vpop.f32.mrf.mxu0  ;;  %v819_v38 = vmul.f32 0.2, %v803_v29  ;;  %vm811_vm7 = vcmp.ge.f32.partialorder %v803_v29, 0.0 }
  0xb2   : > { %v715_v57 = vadd.f32 %v714_v54, %v659_v49  ;;  %v733_v58 = vpop.f32.mrf.mxu1  ;;  %v826_v48 = vsel %vm810_vm6, %v802_v26, %v818_v36  ;;  %v1346_v54 = vld [vmem:[%s595_s26] sm:$0xff]  ;;  %s609_s26 = sadd.s32 %s1286_s25, %s607_s23  ;;  %s1035_s25 = scalar_lea.vmem (%p1571_p5), %s1706_s9, %s1333_s27 }
  0xb3   : > { %v734_v62 = vadd.f32 %v733_v58, %v660_v53  ;;  %v827_v49 = vsel %vm811_vm7, %v803_v29, %v819_v38  ;;  %s1287_s0 = sshll.u32 %s609_s26, 2 }
  0xb4   : > { %v772_v6 = vadd.f32 %v764_v63, %v715_v57  ;;  %v833_v53 = vpack.c.bf16 %v827_v49, %v825_v52  ;;  %v862_v57 = vpop.permute.xlu2 %861  ;;  %s611_s2 = scalar_lea.vmem %s1707_s10, %s1287_s0 }
  0xb5   : > { %v773_v9 = vadd.f32 %v765_v1, %v734_v62 }
  0xb6   : > { %v804_v19 = vadd.f32 %v793_v50, %v772_v6 }
  0xb7   : > { %v805_v24 = vadd.f32 %v793_v50, %v773_v9  ;;  %v824_v50 = vsel %vm808_vm2, %v800_v23, %v816_v42  ;;  %vm1009_vm2 = vcmask 1043456  }
  0xb8   : > { %v820_v33 = vmul.f32 0.2, %v804_v19  ;;  %vm812_vm1 = vcmp.ge.f32.partialorder %v804_v19, 0.0  ;;  %v832_v51 = vpack.c.bf16 %v826_v48, %v824_v50  ;;  %v847_v58 = vpop.permute.xlu1 %846 }
  0xb9   : > { %v716_v15 = vpop.f32.mrf.mxu0  ;;  %v821_v35 = vmul.f32 0.2, %v805_v24  ;;  %vm813_vm4 = vcmp.ge.f32.partialorder %v805_v24, 0.0 }
  0xba   : > { %v717_v20 = vadd.f32 %v716_v15, %v661_v10  ;;  %v735_v21 = vpop.f32.mrf.mxu1  ;;  %v828_v40 = vsel %vm812_vm1, %v804_v19, %v820_v33 }
  0xbb   : > { %v736_v25 = vadd.f32 %v735_v21, %v662_v12  ;;  %v829_v44 = vsel %vm813_vm4, %v805_v24, %v821_v35 }
  0xbc   : > { %v774_v27 = vadd.f32 %v766_v17, %v717_v20  ;;  %v852_v4 = vpop.permute.xlu2 %851 }
  0xbd   : > { %v775_v30 = vadd.f32 %v767_v22, %v736_v25 }
  0xbe   : > { %v806_v32 = vadd.f32 %v798_v28, %v774_v27 }
  0xbf   : > { %v807_v34 = vadd.f32 %v798_v28, %v775_v30 }
  0xc0   : > { %vm814_vm3 = vcmp.ge.f32.partialorder %v806_v32, 0.0  ;;  %v822_v37 = vmul.f32 0.2, %v806_v32 }
  0xc1   : > { %vm815_vm5 = vcmp.ge.f32.partialorder %v807_v34, 0.0  ;;  %v823_v39 = vmul.f32 0.2, %v807_v34 }
  0xc2   : > { %v830_v41 = vsel %vm814_vm3, %v806_v32, %v822_v37 }
  0xc3   : > { %v834_v43 = vpack.c.bf16 %v830_v41, %v828_v40  ;;  %v831_v45 = vsel %vm815_vm5, %v807_v34, %v823_v39 }
  0xc4   : > { %v835_v47 = vpack.c.bf16 %v831_v45, %v829_v44  ;;  %v950_v44 = vld [vmem:[%s599_s22] sm:$0x3]  ;;  %v955_v45 = vpop.permute.xlu0 %954 }
  0xc5   : > { %886 = vmatpush.bf16.msra.mxu2 %v834_v43 }
  0xc6   : > { %905 = vmatpush.bf16.msra.mxu3 %v835_v47 }
  0xc9   : > { %887 = vmatpush.bf16.msra.mxu2 %v832_v51 }
  0xca   : > { %906 = vmatpush.bf16.msra.mxu3 %v833_v53 }
  0xcc   : > { %1324 = vmatmul.msk.bf16.vlgmr.msra.gmra.mxu2 %vm693_vm0, %v1346_v54 }
  0xcd   : > { %1326 = vmatmul.msk.bf16.vlgmr.msra.gmra.mxu3 %vm693_vm0, %v1346_v54 }
  0xdc   : > { %1325 = vmatmul.msk.bf16.gmra.mxu2 %vm693_vm0, %v1347_v55 }
  0xdd   : > { %1327 = vmatmul.msk.bf16.gmra.mxu3 %vm693_vm0, %v1347_v55 }
 0x14f   : > { %v889_v59 = vpop.f32.mrf.mxu2 }
 0x150   : > { %v890_v60 = vadd.f32 %v889_v59, %v847_v58  ;;  %v908_v61 = vpop.f32.mrf.mxu3 }
 0x151   : > { %v909_v62 = vadd.f32 %v908_v61, %v847_v58 }
 0x152   : > { %vm918_vm9 = vcmp.ge.f32.partialorder %v890_v60, 0.0  ;;  %v926_v63 = vmul.f32 0.2, %v890_v60 }
 0x153   : > { %vm919_vm10 = vcmp.ge.f32.partialorder %v909_v62, 0.0  ;;  %v927_v0 = vmul.f32 0.2, %v909_v62 }
 0x154   : > { %v934_v1 = vsel %vm918_vm9, %v890_v60, %v926_v63 }
 0x155   : > { %v935_v2 = vsel %vm919_vm10, %v909_v62, %v927_v0 }
 0x156   : > { %v942_v3 = vpack.c.bf16 %v935_v2, %v934_v1 }
 0x157   : > { %v891_v5 = vpop.f32.mrf.mxu2 }
 0x158   : > { %946 = vst [vmem:[%s1649_s12] sm:$0xff] %v942_v3  ;;  %v892_v6 = vadd.f32 %v891_v5, %v852_v4  ;;  %v910_v7 = vpop.f32.mrf.mxu3  ;;  %v961_v40 = vunpack.c.l.b16 %v942_v3  ;;  %v962_v41 = vunpack.c.h.b16 %v942_v3 }
 0x159   : > { %v911_v8 = vadd.f32 %v910_v7, %v852_v4 }
 0x15a   : > { %vm920_vm11 = vcmp.ge.f32.partialorder %v892_v6, 0.0  ;;  %v928_v9 = vmul.f32 0.2, %v892_v6 }
 0x15b   : > { %vm921_vm12 = vcmp.ge.f32.partialorder %v911_v8, 0.0  ;;  %v929_v10 = vmul.f32 0.2, %v911_v8 }
 0x15c   : > { %v936_v11 = vsel %vm920_vm11, %v892_v6, %v928_v9 }
 0x15d   : > { %v937_v12 = vsel %vm921_vm12, %v911_v8, %v929_v10 }
 0x15e   : > { %v943_v13 = vpack.c.bf16 %v937_v12, %v936_v11 }
 0x15f   : > { %v894_v14 = vpop.f32.mrf.mxu2  ;;  %v1070_v54 = vld [vmem:[%s1649_s12] sm:$0xff] (%p1571_p5) }
 0x160   : > { %947 = vst [vmem:[%s1649_s12 + $0x8] sm:$0xff] %v943_v13  ;;  %v895_v15 = vadd.f32 %v894_v14, %v857_v56  ;;  %v913_v16 = vpop.f32.mrf.mxu3  ;;  %v963_v38 = vunpack.c.l.b16 %v943_v13  ;;  %v964_v39 = vunpack.c.h.b16 %v943_v13 }
 0x161   : > { %v914_v17 = vadd.f32 %v913_v16, %v857_v56  ;;  %1071 = vst [vmem:[%s1035_s25] sm:$0xff] (%p1571_p5), %v1070_v54 }
 0x162   : > { %vm922_vm13 = vcmp.ge.f32.partialorder %v895_v15, 0.0  ;;  %v930_v18 = vmul.f32 0.2, %v895_v15  ;;  %v969_v42 = vpack.c.b16 %v963_v38, %v961_v40  ;;  %v970_v43 = vpack.c.b16 %v964_v39, %v962_v41 }
 0x163   : > { %vm923_vm14 = vcmp.ge.f32.partialorder %v914_v17, 0.0  ;;  %v931_v19 = vmul.f32 0.2, %v914_v17 }
 0x164   : > { %v938_v20 = vsel %vm922_vm13, %v895_v15, %v930_v18 }
 0x165   : > { %v939_v21 = vsel %vm923_vm14, %v914_v17, %v931_v19 }
 0x166   : > { %v944_v22 = vpack.c.bf16 %v939_v21, %v938_v20 }
 0x167   : > { %v896_v23 = vpop.f32.mrf.mxu2  ;;  %v1072_v55 = vld [vmem:[%s1649_s12 + $0x8] sm:$0xff] (%p1571_p5) }
 0x168   : > { %948 = vst [vmem:[%s1649_s12 + $0x10] sm:$0xff] %v944_v22  ;;  %v897_v24 = vadd.f32 %v896_v23, %v862_v57  ;;  %v915_v25 = vpop.f32.mrf.mxu3  ;;  %v965_v32 = vunpack.c.l.b16 %v944_v22  ;;  %v966_v34 = vunpack.c.h.b16 %v944_v22 }
 0x169   : > { %v916_v26 = vadd.f32 %v915_v25, %v862_v57  ;;  %1073 = vst [vmem:[%s1035_s25 + $0x20] sm:$0xff] (%p1571_p5), %v1072_v55 }
 0x16a   : > { %vm924_vm15 = vcmp.ge.f32.partialorder %v897_v24, 0.0  ;;  %v932_v27 = vmul.f32 0.2, %v897_v24 }
 0x16b   : > { %vm925_vm1 = vcmp.ge.f32.partialorder %v916_v26, 0.0  ;;  %v933_v28 = vmul.f32 0.2, %v916_v26 }
 0x16c   : > { %v940_v29 = vsel %vm924_vm15, %v897_v24, %v932_v27 }
 0x16d   : > { %v941_v30 = vsel %vm925_vm1, %v916_v26, %v933_v28 }
 0x16e   : > { %v945_v31 = vpack.c.bf16 %v941_v30, %v940_v29 }
 0x16f   : > { %v1074_v56 = vld [vmem:[%s1649_s12 + $0x10] sm:$0xff] (%p1571_p5) }
 0x170   : > { %949 = vst [vmem:[%s1649_s12 + $0x18] sm:$0xff] %v945_v31  ;;  %v967_v33 = vunpack.c.l.b16 %v945_v31  ;;  %v968_v35 = vunpack.c.h.b16 %v945_v31 }
 0x171   : > { %1075 = vst [vmem:[%s1035_s25 + $0x40] sm:$0xff] (%p1571_p5), %v1074_v56 }
 0x172   : > { %v971_v36 = vpack.c.b16 %v967_v33, %v965_v32  ;;  %v972_v37 = vpack.c.b16 %v968_v35, %v966_v34 }
 0x174   : > { %986 = vmatpush.bf16.msrb.mxu0 %v971_v36  ;;  %999 = vmatpush.bf16.msrb.mxu1 %v972_v37 }
 0x177   : > { %v1076_v57 = vld [vmem:[%s1649_s12 + $0x18] sm:$0xff] (%p1571_p5) }
 0x178   : > { %987 = vmatpush.bf16.msrb.mxu0 %v969_v42  ;;  %1000 = vmatpush.bf16.msrb.mxu1 %v970_v43  ;;  %1077 = vst [vmem:[%s1035_s25 + $0x60] sm:$0xff] (%p1571_p5), %v1076_v57 }
 0x17b   : > { %1328 = vmatmul.msk.bf16.vlgmr.msrb.gmra.mxu0 %vm693_vm0, %v950_v44  ;;  %1329 = vmatmul.msk.bf16.vlgmr.msrb.gmra.mxu1 %vm693_vm0, %v950_v44 }
 0x1f8   : > { %v989_v46 = vpop.f32.mrf.mxu0  ;;  %v1002_v47 = vpop.f32.mrf.mxu1 }
 0x1f9   : > { %v1003_v48 = vadd.f32 %v1002_v47, %v955_v45  ;;  %v990_v49 = vadd.f32 %v989_v46, %v955_v45 }
 0x1fb   : > { %v1008_v50 = vrot.slane %v1003_v48, 4 }
 0x1fc   : > { %1029 = sbr.rel (!%p1571_p5) target bundleno = 513 (0x201), region = 60 }
 0x1fd   : > { %v1010_v51 = vsel %vm1009_vm2, %v990_v49, %v1008_v50 }
 0x1fe   : > { %1012 = vst [vmem:[%s611_s2] sm:$0x77] %v1010_v51 }
 0x200   : > { %v991_v52 = vpop.f32.mrf.mxu0  ;;  %v1004_v53 = vpop.f32.mrf.mxu1 }
 0x201 PF: > { %s21_s19 = sadd.s32 1, %s1466_s19   ;;  %s1715_s13 = smov %s1446_s14 }
 0x202   : > { %p18_p0 = scmp.ge.s32.totalorder %s21_s19, 10   ;;  %s1716_s14 = smov %s1582_s28 }
 0x203   : > { %s1717_s15 = smov %s1458_s17  ;;  %s1718_s16 = smov %s1462_s18 }
 0x204   : > { %s1719_s17 = smov %s1722_s20  ;;  %s1720_s18 = smov %s1726_s21 }
 0x205   :  { %20 = sbr.rel (!%p18_p0) target bundleno = 7 (0x7), region = 151 }

// kernel: inrgan_forward.4
= control target key start
LH: loop header
LB: loop body
LE: loop exit
PB: predicated region body
PF: predicated region fallthrough
CT: control target
= control target key end

     0   :  { %s2004_s18 = smov 0   ;;  %s2006_s19 = smov 0   ;;  %s3205_s0 = inlined_call_operand.vmem [shape: f32[2,256], index: 0, kind: input, shape index: {}]   ;;  %s3206_s1 = inlined_call_operand.vmem [shape: f32[32,2], index: 1, kind: input, shape index: {}]   ;;  %s3207_s2 = inlined_call_operand.vmem [shape: f32[32,1], index: 2, kind: input, shape index: {}]   ;;  %s3208_s3 = inlined_call_operand.vmem [shape: f32[2,32,32], index: 3, kind: input, shape index: {}]   ;;  %s3209_s4 = inlined_call_operand.vmem [shape: f32[32,1], index: 4, kind: input, shape index: {}]   ;;  %s3210_s5 = inlined_call_operand.vmem [shape: bf16[2,32,256], index: 5, kind: output, shape index: {}]  }
   0x1   :  { %s2008_s20 = smov 0  }
   0x2 LB: > { %s27_s21 = sadd.s32 1, %s1960_s19  ;;  %p1852_p0 = scmp.ge.s32.totalorder %s1964_s20, 1  ;;  %s1964_s20 = sphi %s2008_s20, %s15_s20   ;;  %s1960_s19 = sphi %s2006_s19, %s3264_s19   ;;  %s1956_s18 = sphi %s2004_s18, %s3263_s18  }
   0x3   : > { %p29_p1 = scmp.ge.s32.totalorder %s27_s21, 2  ;;  %p212_p2 = scmp.lt.s32.totalorder %s1964_s20, 3 }
   0x5   : > { %s3266_s21 = smov (%p29_p1, %s27_s21), 0  ;;  %p213_p3 = pnand %p1852_p0, %p212_p2 }
   0x7   : > { %216 = sbr.rel (%p213_p3) target bundleno = 635 (0x27b), region = 40 }
   0xc   : > { %v274_v0 = vld [vmem:[%s3206_s1 + $0x18] sm:$0xff]  ;;  %v273_v1 = vld [vmem:[%s3206_s1 + $0x10] sm:$0xff]  ;;  %v272_v2 = vld [vmem:[%s3206_s1 + $0x8] sm:$0xff]  ;;  %v1966_v3 = vmov 0   ;;  %v1967_v4 = vmov 1   ;;  %p255_p4 = scmp.lt.s32.totalorder %s1956_s18, 1 }
   0xd   : > { %1937 = vset.pattern.permute.xlu2 %v1966_v3  ;;  %1935 = vset.pattern.permute.xlu1 %v1966_v3  ;;  %v271_v5 = vld [vmem:[%s3206_s1] sm:$0xff]  ;;  %v278_v6 = vld [vmem:[%s3207_s2 + $0x18] sm:$0xff]  ;;  %v277_v7 = vld [vmem:[%s3207_s2 + $0x10] sm:$0xff] }
   0xe   : > { %1933 = vset.pattern.permute.xlu0 %v1966_v3  ;;  %291 = vperm.xlu1 %1935, %v273_v1   ;;  %v275_v8 = vld [vmem:[%s3207_s2] sm:$0xff]  ;;  %v276_v9 = vld [vmem:[%s3207_s2 + $0x8] sm:$0xff]  ;;  %v1626_v12 = vld [vmem:[%s3209_s4 + $0x10] sm:$0xff]  ;;  %s3268_s18 = smov (!%p255_p4, %s1956_s18), 1 }
   0xf   : > { %296 = vperm.xlu0 %1933, %v274_v0   ;;  %286 = vperm.xlu2 %1937, %v272_v2   ;;  %v1624_v10 = vld [vmem:[%s3209_s4] sm:$0xff]  ;;  %v1625_v11 = vld [vmem:[%s3209_s4 + $0x8] sm:$0xff]  ;;  %v1627_v13 = vld [vmem:[%s3209_s4 + $0x18] sm:$0xff]  ;;  %s1891_s27 = sshll.u32 %s3268_s18, 5 }
  0x10   : > { %v270_v14 = vld [vmem:[%s3205_s0] sm:$0xf]  ;;  %s259_s30 = scalar_lea.vmem %s3208_s3, %s1891_s27  ;;  %s3190_s8 = scalar_lea.vmem %s3210_s5, %s1891_s27 }
  0x11   : > { %v300_v16 = vperm.slane %v270_v14, 0  ;;  %v301_v17 = vperm.slane %v270_v14, 2  ;;  %v330_v18 = vperm.slane %v270_v14, 1  ;;  %v331_v19 = vperm.slane %v270_v14, 3 }
  0x13   : > { %v304_v20 = vperm.slane %v300_v16, 0  ;;  %v305_v21 = vperm.slane %v301_v17, 0  ;;  %v334_v22 = vperm.slane %v330_v18, 1  ;;  %v335_v23 = vperm.slane %v331_v19, 1 }
  0x16   : > { %1936 = vset.pattern.permute.xlu1 %v1967_v4 }
  0x17   : > { %1934 = vset.pattern.permute.xlu0 %v1967_v4  ;;  %1938 = vset.pattern.permute.xlu2 %v1967_v4 }
  0x18   : > { %327 = vperm.xlu0 %1934, %v274_v0   ;;  %323 = vperm.xlu1 %1936, %v273_v1  }
  0x19   : > { %319 = vperm.xlu2 %1938, %v272_v2  }
  0x20   : > { %1939 = vset.pattern.permute.xlu1 %v1966_v3  ;;  %315 = vperm.xlu0 %1934, %v271_v5  }
  0x21   : > { %1940 = vset.pattern.permute.xlu2 %v1966_v3  ;;  %369 = vperm.xlu1 %1939, %v278_v6  }
  0x22   : > { %281 = vperm.xlu2 %1940, %v271_v5  }
  0x28   : > { %1941 = vset.pattern.permute.xlu0 %v1966_v3 }
  0x29   : > { %364 = vperm.xlu1 %1939, %v277_v7   ;;  %354 = vperm.xlu0 %1941, %v275_v8  }
  0x2a   : > { %359 = vperm.xlu2 %1940, %v276_v9  }
  0x31   : > { %1630 = vperm.xlu1 %1939, %v1624_v10  }
  0x32   : > { %1635 = vperm.xlu2 %1940, %v1625_v11  }
  0x39   : > { %1640 = vperm.xlu1 %1939, %v1626_v12  }
  0x3a   : > { %1645 = vperm.xlu2 %1940, %v1627_v13  }
  0x69   : > { %v287_v15 = vpop.permute.xlu2 %286 }
  0x6a   : > { %v308_v24 = vmul.f32 %v304_v20, %v287_v15  ;;  %v309_v25 = vmul.f32 %v305_v21, %v287_v15 }
  0x73   : > { %v320_v26 = vpop.permute.xlu2 %319 }
  0x74   : > { %v338_v27 = vmul.f32 %v334_v22, %v320_v26  ;;  %v339_v28 = vmul.f32 %v335_v23, %v320_v26 }
  0x76   : > { %v346_v29 = vadd.f32 %v338_v27, %v308_v24  ;;  %v347_v30 = vadd.f32 %v339_v28, %v309_v25 }
  0x7c   : > { %v282_v31 = vpop.permute.xlu2 %281 }
  0x7d   : > { %v306_v32 = vmul.f32 %v304_v20, %v282_v31  ;;  %v307_v33 = vmul.f32 %v305_v21, %v282_v31 }
  0x80   : > { %v292_v34 = vpop.permute.xlu1 %291 }
  0x81   : > { %v311_v35 = vmul.f32 %v305_v21, %v292_v34  ;;  %v297_v36 = vpop.permute.xlu0 %296  ;;  %v310_v2 = vmul.f32 %v304_v20, %v292_v34 }
  0x82   : > { %v312_v47 = vmul.f32 %v304_v20, %v297_v36  ;;  %v313_v48 = vmul.f32 %v305_v21, %v297_v36 }
  0x84   : > { %v360_v37 = vpop.permute.xlu2 %359 }
  0x85   : > { %v2069_v38 = vadd.f32 %v360_v37, %v346_v29  ;;  %v2071_v41 = vadd.f32 %v360_v37, %v347_v30 }
  0x87   : > { %v693_v43 = vand.u32 2139095040, %v2069_v38  ;;  %v848_v49 = vand.u32 2139095040, %v2071_v41 }
  0x89   : > { %v694_v50 = vshrl.u32 %v693_v43, 23  ;;  %v849_v57 = vshrl.u32 %v848_v49, 23 }
  0x8a   : > { %v328_v39 = vpop.permute.xlu0 %327  ;;  %v324_v40 = vpop.permute.xlu1 %323 }
  0x8b   : > { %v341_v42 = vmul.f32 %v335_v23, %v324_v40  ;;  %v342_v44 = vmul.f32 %v334_v22, %v328_v39  ;;  %v343_v45 = vmul.f32 %v335_v23, %v328_v39  ;;  %v1863_v62 = vadd.s32 4294967169, %v694_v50 }
  0x8c   : > { %v340_v63 = vmul.f32 %v334_v22, %v324_v40  ;;  %v1866_v4 = vadd.s32 4294967169, %v849_v57  ;;  %v3224_v50 = vmov 2475754826  }
  0x8d   : > { %v349_v46 = vadd.f32 %v341_v42, %v311_v35  ;;  %v350_v52 = vadd.f32 %v342_v44, %v312_v47  ;;  %v351_v53 = vadd.f32 %v343_v45, %v313_v48  ;;  %v700_v6 = vadd.s32 1, %v1863_v62 }
  0x8e   : > { %v348_v8 = vadd.f32 %v340_v63, %v310_v2  ;;  %v855_v12 = vadd.s32 1, %v1866_v4  ;;  %v3218_v63 = vmov 2102212464  }
  0x8f   : > { %vm701_vm0 = vcmp.gt.s32.totalorder %v700_v6, 0 }
  0x90   : > { %vm856_vm2 = vcmp.gt.s32.totalorder %v855_v12, 0  ;;  %v702_v24 = vsel %vm701_vm0, %v700_v6, 0 }
  0x91   : > { %v857_v26 = vsel %vm856_vm2, %v855_v12, 0  ;;  %v2099_v40 = vshrl.u32 %v702_v24, 5 }
  0x92   : > { %v316_v51 = vpop.permute.xlu0 %315  ;;  %v2097_v35 = vand.u32 31, %v857_v26  ;;  %v2104_v45 = vshrl.u32 %v857_v26, 5 }
  0x93   : > { %v336_v54 = vmul.f32 %v334_v22, %v316_v51  ;;  %v337_v55 = vmul.f32 %v335_v23, %v316_v51  ;;  %v370_v56 = vpop.permute.xlu1 %369 }
  0x94   : > { %v2075_v58 = vadd.f32 %v370_v56, %v350_v52  ;;  %v2077_v59 = vadd.f32 %v370_v56, %v351_v53  ;;  %v2113_v48 = vsub.s32 32, %v2097_v35  ;;  %v3220_v52 = vmov 2131351028  }
  0x95   : > { %v344_v60 = vadd.f32 %v336_v54, %v306_v32  ;;  %v345_v61 = vadd.f32 %v337_v55, %v307_v33  ;;  %v2093_v32 = vand.u32 31, %v702_v24  ;;  %v3222_v56 = vmov 683565275  }
  0x96   : > { %v1313_v0 = vand.u32 2139095040, %v2075_v58  ;;  %v1468_v1 = vand.u32 2139095040, %v2077_v59  ;;  %v3212_v33 = vand.u32 2147483647, %v2075_v58  ;;  %v3211_v34 = vand.u32 2147483647, %v2077_v59 }
  0x97   : > { %v2102_v44 = vsub.s32 32, %v2093_v32 }
  0x98   : > { %v1314_v5 = vshrl.u32 %v1313_v0, 23  ;;  %v1469_v9 = vshrl.u32 %v1468_v1, 23  ;;  %v2110_v47 = vand.u32 8388607, %v3211_v34  ;;  %v3216_v1 = vmov 920167782  }
  0x9a   : > { %v1875_v7 = vadd.s32 4294967169, %v1314_v5  ;;  %v1878_v19 = vadd.s32 4294967169, %v1469_v9 }
  0x9b   : > { %v365_v10 = vpop.permute.xlu1 %364  ;;  %v355_v11 = vpop.permute.xlu0 %354 }
  0x9c   : > { %v1320_v13 = vadd.s32 1, %v1875_v7  ;;  %v2081_v14 = vadd.f32 %v365_v10, %v348_v8  ;;  %v2083_v15 = vadd.f32 %v365_v10, %v349_v46  ;;  %v2085_v16 = vadd.f32 %v355_v11, %v344_v60 }
  0x9d   : > { %v2087_v17 = vadd.f32 %v355_v11, %v345_v61  ;;  %v1475_v27 = vadd.s32 1, %v1878_v19  ;;  %v1317_v46 = vand.u32 8388607, %v3212_v33  ;;  %v1473_v7 = vor.u32 8388608, %v2110_v47 }
  0x9e   : > { %vm1321_vm1 = vcmp.gt.s32.totalorder %v1320_v13, 0  ;;  %v1003_v20 = vand.u32 2139095040, %v2081_v14  ;;  %v1158_v21 = vand.u32 2139095040, %v2083_v15  ;;  %v383_v22 = vand.u32 2139095040, %v2085_v16 }
  0x9f   : > { %3231 = vst [vmem:[#allocation2_spill] sm:$0xff] %v2087_v17  ;;  %v1322_v18 = vsel %vm1321_vm1, %v1320_v13, 0  ;;  %v538_v23 = vand.u32 2139095040, %v2087_v17  ;;  %vm1476_vm3 = vcmp.gt.s32.totalorder %v1475_v27, 0  ;;  %v1318_v6 = vor.u32 8388608, %v1317_v46 }
  0xa0   : > { %v1324_v25 = vand.u32 31, %v1322_v18  ;;  %v1004_v28 = vshrl.u32 %v1003_v20, 23  ;;  %v1159_v29 = vshrl.u32 %v1158_v21, 23  ;;  %v384_v30 = vshrl.u32 %v383_v22, 23 }
  0xa1   : > { %v539_v31 = vshrl.u32 %v538_v23, 23  ;;  %v1477_v49 = vsel %vm1476_vm3, %v1475_v27, 0  ;;  %v2121_v4 = vshrl.u32 %v1322_v18, 5  ;;  %v3214_v13 = vmov 1326507024  }
  0xa2   : > { %v1325_v36 = vsub.s32 32, %v1324_v25  ;;  %v1869_v37 = vadd.s32 4294967169, %v1004_v28  ;;  %v1872_v39 = vadd.s32 4294967169, %v1159_v29  ;;  %v1857_v42 = vadd.s32 4294967169, %v384_v30 }
  0xa3   : > { %v1860_v43 = vadd.s32 4294967169, %v539_v31  ;;  %v1327_v57 = vshll.u32 %v3222_v56, %v1324_v25  ;;  %v1330_v60 = vshll.u32 %v3224_v50, %v1324_v25  ;;  %v2123_v5 = vand.u32 31, %v1477_v49 }
  0xa4   : > { %v1328_v51 = vshrl.u32 %v3224_v50, %v1325_v36  ;;  %v1331_v53 = vshrl.u32 %v3220_v52, %v1325_v36  ;;  %v1010_v54 = vadd.s32 1, %v1869_v37  ;;  %v1165_v55 = vadd.s32 1, %v1872_v39 }
  0xa5   : > { %v390_v61 = vadd.s32 1, %v1857_v42  ;;  %v545_v62 = vadd.s32 1, %v1860_v43  ;;  %v1334_v0 = vshrl.u32 %v3218_v63, %v1325_v36  ;;  %v1337_v2 = vshrl.u32 %v3216_v1, %v1325_v36 }
  0xa6   : > { %v1329_v8 = vor.u32 %v1328_v51, %v1327_v57  ;;  %v1332_v9 = vor.u32 %v1331_v53, %v1330_v60  ;;  %v1333_v10 = vshll.u32 %v3220_v52, %v1324_v25  ;;  %v1336_v11 = vshll.u32 %v3218_v63, %v1324_v25 }
  0xa7   : > { %vm1011_vm4 = vcmp.gt.s32.totalorder %v1010_v54, 0  ;;  %vm1166_vm5 = vcmp.gt.s32.totalorder %v1165_v55, 0  ;;  %v1339_v12 = vshll.u32 %v3216_v1, %v1324_v25  ;;  %v1340_v19 = vshrl.u32 %v3214_v13, %v1325_v36 }
  0xa8   : > { %vm391_vm6 = vcmp.gt.s32.totalorder %v390_v61, 0  ;;  %vm546_vm7 = vcmp.gt.s32.totalorder %v545_v62, 0  ;;  %v1335_v18 = vor.u32 %v1334_v0, %v1333_v10  ;;  %v1338_v20 = vor.u32 %v1337_v2, %v1336_v11 }
  0xa9   : > { %v2130_v21 = vshrl.u32 %v1477_v49, 5  ;;  %v2133_v22 = vsub.s32 32, %v2123_v5  ;;  %v1341_v23 = vor.u32 %v1340_v19, %v1339_v12  ;;  %v2135_v24 = vshll.u32 %v1318_v6, 8 }
  0xaa   : > { %v1012_v26 = vsel %vm1011_vm4, %v1010_v54, 0  ;;  %v2137_v27 = vsel %vm1166_vm5, %v1165_v55, 0  ;;  %v1326_v25 = vshrl.u32 %v3222_v56, %v1325_v36  ;;  %vm1342_vm8 = vcmp.lt.s32.totalorder %v2121_v4, 1 }
  0xab   : > { %v2141_v28 = vsel %vm391_vm6, %v390_v61, 0  ;;  %v2143_v29 = vsel %vm546_vm7, %v545_v62, 0  ;;  %vm1345_vm9 = vcmp.lt.s32.totalorder %v2121_v4, 4  ;;  %v1350_v30 = vsel %vm1342_vm8, %v1329_v8, %v1332_v9 }
  0xac   : > { %vm1344_vm10 = vcmp.lt.s32.totalorder %v2121_v4, 3  ;;  %v1351_v31 = vsel %vm1345_vm9, %v1338_v20, 920167782  ;;  %v1354_v37 = vsel %vm1342_vm8, %v1332_v9, %v1335_v18  ;;  %v1355_v39 = vsel %vm1345_vm9, %v1341_v23, 1326507024 }
  0xad   : > { %vm1343_vm11 = vcmp.lt.s32.totalorder %v2121_v4, 2  ;;  %v1347_v36 = vsel %vm1345_vm9, %v1335_v18, 2102212464  ;;  %v1352_v42 = vsel %vm1344_vm10, %v1335_v18, %v1351_v31  ;;  %v1356_v43 = vsel %vm1344_vm10, %v1338_v20, %v1355_v39 }
  0xae   : > { %v1353_v46 = vsel %vm1343_vm11, %v1350_v30, %v1352_v42  ;;  %v1357_v49 = vsel %vm1343_vm11, %v1354_v37, %v1356_v43  ;;  %v1359_v51 = vand.u32 65535, %v2135_v24  ;;  %v1360_v53 = vshrl.u32 %v2135_v24, 16 }
  0xaf   : > { %v1361_v54 = vand.u32 65535, %v1357_v49  ;;  %v1362_v55 = vshrl.u32 %v1357_v49, 16  ;;  %v1383_v57 = vand.u32 65535, %v1353_v46  ;;  %v1384_v60 = vshrl.u32 %v1353_v46, 16 }
  0xb0   : > { %v2162_v61 = vshrl.u32 %v1012_v26, 5  ;;  %v2164_v62 = vand.u32 31, %v1012_v26  ;;  %v1346_v0 = vsel %vm1342_vm8, %v1326_v25, %v1329_v8  ;;  %v1348_v2 = vsel %vm1344_vm10, %v1332_v9, %v1347_v36 }
  0xb1   : > { %v1364_v6 = vmul.u32 %v1362_v55, %v1359_v51  ;;  %v1365_v10 = vmul.u32 %v1361_v54, %v1360_v53  ;;  %v1482_v11 = vshll.u32 %v3222_v56, %v2123_v5  ;;  %v1483_v12 = vshrl.u32 %v3224_v50, %v2133_v22 }
  0xb2   : > { %v1386_v19 = vmul.u32 %v1384_v60, %v1359_v51  ;;  %v1387_v18 = vmul.u32 %v1383_v57, %v1360_v53  ;;  %v1485_v20 = vshll.u32 %v3224_v50, %v2123_v5  ;;  %v1486_v23 = vshrl.u32 %v3220_v52, %v2133_v22 }
  0xb3   : > { %v1363_v8 = vmul.u32 %v1361_v54, %v1359_v51  ;;  %v1366_v26 = vmul.u32 %v1362_v55, %v1360_v53  ;;  %v1367_v25 = vshll.u32 %v1364_v6, 16  ;;  %v1385_v9 = vmul.u32 %v1383_v57, %v1359_v51 }
  0xb4   : > { %v1368_v30 = vshrl.u32 %v1364_v6, 16  ;;  %v1369_v31 = vshll.u32 %v1365_v10, 16  ;;  %v1388_v37 = vmul.u32 %v1384_v60, %v1360_v53  ;;  %v1389_v39 = vshll.u32 %v1386_v19, 16 }
  0xb5   : > { %vm1371_vm12 = vc.u32 %v1363_v8, %v1367_v25  ;;  %v1373_v36 = vadd.s32 %v1367_v25, %v1363_v8  ;;  %v1390_v42 = vshrl.u32 %v1386_v19, 16  ;;  %v1391_v43 = vshll.u32 %v1387_v18, 16 }
  0xb6   : > { %v1372_v46 = vsel %vm1371_vm12, 1, %v1966_v3  ;;  %vm1393_vm13 = vc.u32 %v1385_v9, %v1389_v39  ;;  %v1395_v49 = vadd.s32 %v1389_v39, %v1385_v9  ;;  %v2179_v34 = vor.u32 %v1483_v12, %v1482_v11 }
  0xb7   : > { %v1374_v33 = vadd.s32 %v1372_v46, %v1366_v26  ;;  %vm1375_vm14 = vc.u32 %v1373_v36, %v1369_v31  ;;  %v1394_v54 = vsel %vm1393_vm13, 1, %v1966_v3  ;;  %v1489_v51 = vshrl.u32 %v3218_v63, %v2133_v22 }
  0xb8   : > { %v1376_v53 = vsel %vm1375_vm14, 1, %v1966_v3  ;;  %v1396_v55 = vadd.s32 %v1394_v54, %v1388_v37  ;;  %vm1397_vm15 = vc.u32 %v1395_v49, %v1391_v43  ;;  %v2185_v57 = vor.u32 %v1486_v23, %v1485_v20 }
  0xb9   : > { %v1378_v60 = vadd.s32 %v1376_v53, %v1374_v33  ;;  %v1398_v6 = vsel %vm1397_vm15, 1, %v1966_v3  ;;  %v1488_v11 = vshll.u32 %v3220_v52, %v2123_v5  ;;  %v1491_v12 = vshll.u32 %v3218_v63, %v2123_v5 }
  0xba   : > { %v1400_v19 = vadd.s32 %v1398_v6, %v1396_v55  ;;  %v1492_v8 = vshrl.u32 %v3216_v1, %v2133_v22  ;;  %v1494_v26 = vshll.u32 %v3216_v1, %v2123_v5  ;;  %v1495_v20 = vshrl.u32 %v3214_v13, %v2133_v22 }
  0xbb   : > { %v1370_v23 = vshrl.u32 %v1365_v10, 16  ;;  %v1379_v33 = vadd.s32 %v1378_v60, %v1368_v30  ;;  %v1392_v25 = vshrl.u32 %v1387_v18, 16  ;;  %v1490_v9 = vor.u32 %v1489_v51, %v1488_v11 }
  0xbc   : > { %v1401_v31 = vadd.s32 %v1400_v19, %v1390_v42  ;;  %v1493_v37 = vor.u32 %v1492_v8, %v1491_v12  ;;  %v1496_v39 = vor.u32 %v1495_v20, %v1494_v26  ;;  %vm1497_vm0 = vcmp.lt.s32.totalorder %v2130_v21, 1 }
  0xbd   : > { %v2199_v36 = vadd.s32 %v1379_v33, %v1370_v23  ;;  %v2201_v46 = vadd.s32 %v1395_v49, %v1391_v43  ;;  %vm1500_vm1 = vcmp.lt.s32.totalorder %v2130_v21, 4  ;;  %v1505_v5 = vsel %vm1497_vm0, %v2179_v34, %v2185_v57 }
  0xbe   : > { %v1349_v10 = vsel %vm1343_vm11, %v1346_v0, %v1348_v2  ;;  %v1402_v18 = vadd.s32 %v1401_v31, %v1392_v25  ;;  %vm1499_vm2 = vcmp.lt.s32.totalorder %v2130_v21, 3  ;;  %v1506_v30 = vsel %vm1500_vm1, %v1493_v37, 920167782 }
  0xbf   : > { %vm1405_vm3 = vc.u32 %v2199_v36, %v2201_v46  ;;  %vm1498_vm4 = vcmp.lt.s32.totalorder %v2130_v21, 2  ;;  %v1507_v42 = vsel %vm1499_vm2, %v1490_v9, %v1506_v30  ;;  %v1509_v43 = vsel %vm1497_vm0, %v2185_v57, %v1490_v9 }
  0xc0   : > { %v1406_v4 = vadd.s32 1, %v1402_v18  ;;  %v1508_v0 = vsel %vm1498_vm4, %v1505_v5, %v1507_v42  ;;  %v1510_v2 = vsel %vm1500_vm1, %v1496_v39, 1326507024  ;;  %v2227_v49 = vshll.u32 %v1473_v7, 8 }
  0xc1   : > { %v1403_v54 = vmul.u32 %v2135_v24, %v1349_v10  ;;  %v1511_v51 = vsel %vm1499_vm2, %v1493_v37, %v1510_v2  ;;  %v1538_v53 = vand.u32 65535, %v1508_v0  ;;  %v1539_v55 = vshrl.u32 %v1508_v0, 16 }
  0xc2   : > { %v1407_v60 = vsel %vm1405_vm3, %v1406_v4, %v1402_v18  ;;  %v1512_v6 = vsel %vm1498_vm4, %v1509_v43, %v1511_v51  ;;  %v1514_v11 = vand.u32 65535, %v2227_v49  ;;  %v1515_v12 = vshrl.u32 %v2227_v49, 16 }
  0xc3   : > { %v2237_v19 = vshrl.u32 %v2137_v27, 5  ;;  %v1408_v47 = vadd.s32 %v1407_v60, %v1403_v54  ;;  %v1516_v7 = vand.u32 65535, %v1512_v6  ;;  %v1517_v8 = vshrl.u32 %v1512_v6, 16 }
  0xc4   : > { %v2240_v24 = vand.u32 31, %v2137_v27  ;;  %v2243_v26 = vshrl.u32 %v2141_v28, 5  ;;  %v1541_v20 = vmul.u32 %v1539_v55, %v1514_v11  ;;  %v1542_v23 = vmul.u32 %v1538_v53, %v1515_v12 }
  0xc5   : > { %v2246_v33 = vand.u32 31, %v2141_v28  ;;  %v1409_v25 = vadd.s32 536870912, %v1408_v47  ;;  %v1519_v31 = vmul.u32 %v1517_v8, %v1514_v11  ;;  %v1520_v37 = vmul.u32 %v1516_v7, %v1515_v12 }
  0xc6   : > { %v2249_v39 = vshrl.u32 %v2143_v29, 5  ;;  %v1481_v5 = vshrl.u32 %v3222_v56, %v2133_v22  ;;  %v1540_v10 = vmul.u32 %v1538_v53, %v1514_v11  ;;  %v1544_v27 = vshll.u32 %v1541_v20, 16 }
  0xc7   : > { %v2253_v18 = vshrl.u32 %v1409_v25, 30  ;;  %v1502_v30 = vsel %vm1500_vm1, %v1490_v9, 2102212464  ;;  %v1518_v42 = vmul.u32 %v1516_v7, %v1514_v11  ;;  %v1522_v43 = vshll.u32 %v1519_v31, 16 }
  0xc8   : > { %3232 = vst [vmem:[#allocation3_spill] sm:$0xff] %v2249_v39  ;;  %v1521_v28 = vmul.u32 %v1517_v8, %v1515_v12  ;;  %v1546_v4 = vshll.u32 %v1542_v23, 16  ;;  %vm1548_vm5 = vc.u32 %v1540_v10, %v1544_v27  ;;  %v1550_v0 = vadd.s32 %v1544_v27, %v1540_v10 }
  0xc9   : > { %v1411_v2 = vshll.u32 %v2253_v18, 30  ;;  %v1524_v54 = vshll.u32 %v1520_v37, 16  ;;  %vm1526_vm6 = vc.u32 %v1518_v42, %v1522_v43  ;;  %v1528_v51 = vadd.s32 %v1522_v43, %v1518_v42 }
  0xca   : > { %v1527_v22 = vsel %vm1526_vm6, 1, %v1966_v3  ;;  %v1543_v53 = vmul.u32 %v1539_v55, %v1515_v12  ;;  %v1549_v60 = vsel %vm1548_vm5, 1, %v1966_v3  ;;  %vm1552_vm7 = vc.u32 %v1550_v0, %v1546_v4 }
  0xcb   : > { %v2260_v6 = vsub.s32 %v1408_v47, %v1411_v2  ;;  %v1501_v9 = vsel %vm1497_vm0, %v1481_v5, %v2179_v34  ;;  %v1529_v11 = vadd.s32 %v1527_v22, %v1521_v28  ;;  %vm1530_vm8 = vc.u32 %v1528_v51, %v1524_v54 }
  0xcc   : > { %v1503_v7 = vsel %vm1499_vm2, %v2185_v57, %v1502_v30  ;;  %v1531_v8 = vsel %vm1530_vm8, 1, %v1966_v3  ;;  %v1551_v25 = vadd.s32 %v1549_v60, %v1543_v53  ;;  %v1553_v55 = vsel %vm1552_vm7, 1, %v1966_v3 }
  0xcd   : > { %vm1413_vm9 = vcmp.lt.s32.totalorder %v2260_v6, 0  ;;  %v1414_v12 = vsub.s32 0, %v2260_v6  ;;  %v1523_v47 = vshrl.u32 %v1519_v31, 16  ;;  %v1533_v10 = vadd.s32 %v1531_v8, %v1529_v11 }
  0xce   : > { %v2273_v27 = vsub.s32 32, %v2164_v62  ;;  %v2276_v34 = vand.u32 31, %v2143_v29  ;;  %v1545_v5 = vshrl.u32 %v1541_v20, 16  ;;  %v1555_v42 = vadd.s32 %v1553_v55, %v1551_v25 }
  0xcf   : > { %v1415_v57 = vsel %vm1413_vm9, %v1414_v12, %v2260_v6  ;;  %v1504_v30 = vsel %vm1498_vm4, %v1501_v9, %v1503_v7  ;;  %v1525_v43 = vshrl.u32 %v1520_v37, 16  ;;  %v1534_v28 = vadd.s32 %v1533_v10, %v1523_v47 }
  0xd0   : > { %v1416_v2 = vclz %v1415_v57  ;;  %v1547_v54 = vshrl.u32 %v1542_v23, 16  ;;  %v1556_v51 = vadd.s32 %v1555_v42, %v1545_v5  ;;  %v3213_v31 = vand.u32 2147483647, %v2081_v14 }
  0xd1   : > { %v2283_v22 = vsub.s32 32, %v2240_v24  ;;  %v2286_v29 = vsub.s32 32, %v2246_v33  ;;  %vm1312_vm10 = vcmp.lt.s32.totalorder %v2075_v58, 0  ;;  %v2289_v20 = vadd.s32 %v1534_v28, %v1525_v43 }
  0xd2   : > { %v2291_v53 = vadd.s32 %v1550_v0, %v1546_v4  ;;  %v1404_v21 = vadd.s32 %v2201_v46, %v2199_v36  ;;  %v1876_v37 = vadd.s32 4294967294, %v1416_v2  ;;  %v1557_v23 = vadd.s32 %v1556_v51, %v1547_v54 }
  0xd3   : > { %v1018_v60 = vshrl.u32 %v3224_v50, %v2273_v27  ;;  %v1434_v9 = vsub.s32 4, %v2253_v18  ;;  %v1558_v11 = vmul.u32 %v2227_v49, %v1504_v30  ;;  %v1017_v7 = vshll.u32 %v3222_v56, %v2164_v62 }
  0xd4   : > { %vm1560_vm11 = vc.u32 %v2289_v20, %v2291_v53  ;;  %v3233_v4 = vand.u32 2147483647, %v2075_v58  ;;  %vm1877_vm13 = vcmp.lt.s32.totalorder %v1876_v37, 0  ;;  %v1561_v36 = vadd.s32 1, %v1557_v23 }
  0xd5   : > { %v1007_v46 = vand.u32 8388607, %v3213_v31  ;;  %v1020_v49 = vshll.u32 %v3224_v50, %v2164_v62  ;;  %v1419_v8 = vsel %vm1877_vm13, 0, %v1876_v37  ;;  %v2313_v25 = vor.u32 %v1018_v60, %v1017_v7 }
  0xd6   : > { %vm2305_vm12 = vcmp.le.f32.partialorder %v3233_v4, 0.7853982  ;;  %v1021_v55 = vshrl.u32 %v3220_v52, %v2273_v27  ;;  %v1024_v12 = vshrl.u32 %v3218_v63, %v2273_v27  ;;  %v1420_v47 = vsub.s32 32, %v1419_v8 }
  0xd7   : > { %v1424_v10 = vsub.s32 4294967266, %v1419_v8  ;;  %v1562_v5 = vsel %vm1560_vm11, %v1561_v36, %v1557_v23  ;;  %v1023_v42 = vshll.u32 %v3220_v52, %v2164_v62  ;;  %v1421_v57 = vshll.u32 %v2260_v6, %v1419_v8 }
  0xd8   : > { %v1563_v30 = vadd.s32 %v1562_v5, %v1558_v11  ;;  %v1026_v43 = vshll.u32 %v3218_v63, %v2164_v62  ;;  %v1027_v28 = vshrl.u32 %v3216_v1, %v2273_v27  ;;  %v1422_v2 = vshrl.u32 %v1404_v21, %v1420_v47 }
  0xd9   : > { %v1425_v54 = vadd.s32 127, %v1424_v10  ;;  %v1029_v51 = vshll.u32 %v3216_v1, %v2164_v62  ;;  %v1030_v37 = vshrl.u32 %v3214_v13, %v2273_v27  ;;  %v1022_v60 = vor.u32 %v1021_v55, %v1020_v49 }
  0xda   : > { %v1564_v23 = vadd.s32 536870912, %v1563_v30  ;;  %v1025_v7 = vor.u32 %v1024_v12, %v1023_v42  ;;  %v1028_v4 = vor.u32 %v1027_v28, %v1026_v43  ;;  %v1423_v6 = vor.u32 %v1422_v2, %v1421_v57 }
  0xdb   : > { %v1426_v11 = vshll.u32 %v1425_v54, 23  ;;  %v1435_v36 = vsel %vm1312_vm10, %v1434_v9, %v2253_v18  ;;  %v1031_v8 = vor.u32 %v1030_v37, %v1029_v51  ;;  %v2335_v21 = vshll.u32 %v3218_v63, %v2246_v33 }
  0xdc   : > { %v2337_v47 = vshrl.u32 %v1564_v23, 30  ;;  %v1008_v62 = vor.u32 8388608, %v1007_v46  ;;  %vm1035_vm14 = vcmp.lt.s32.totalorder %v2162_v61, 4  ;;  %vm1032_vm15 = vcmp.lt.s32.totalorder %v2162_v61, 1 }
  0xdd   : > { %v1427_v10 = vor.u32 4788187, %v1426_v11  ;;  %vm1034_vm0 = vcmp.lt.s32.totalorder %v2162_v61, 3  ;;  %v1041_v49 = vsel %vm1035_vm14, %v1028_v4, 920167782  ;;  %v1437_v18 = vsel %vm2305_vm12, 0, %v1435_v36 }
  0xde   : > { %v1566_v9 = vshll.u32 %v2337_v47, 30  ;;  %v1040_v55 = vsel %vm1032_vm15, %v2313_v25, %v1022_v60  ;;  %v1042_v46 = vsel %vm1034_vm0, %v1025_v7, %v1041_v49  ;;  %v1430_v5 = vcvt.s32.f32 %v1423_v6 }
  0xdf   : > { %v1428_v12 = vand.u32 2147483647, %v1427_v10  ;;  %v1044_v42 = vsel %vm1032_vm15, %v1022_v60, %v1025_v7  ;;  %v1045_v57 = vsel %vm1035_vm14, %v1031_v8, 1326507024  ;;  %vm1033_vm1 = vcmp.lt.s32.totalorder %v2162_v61, 2 }
  0xe0   : > { %v2356_v43 = vsub.s32 %v1563_v30, %v1566_v9  ;;  %v1046_v28 = vsel %vm1034_vm0, %v1028_v4, %v1045_v57  ;;  %v2361_v2 = vshll.u32 %v1008_v62, 8  ;;  %v2365_v54 = vshll.u32 %v3216_v1, %v2246_v33 }
  0xe1   : > { %v1431_v51 = vmul.f32 %v1430_v5, %v1428_v12  ;;  %v2369_v37 = vsel %vm1033_vm1, %v1040_v55, %v1042_v46  ;;  %v1047_v30 = vsel %vm1033_vm1, %v1044_v42, %v1046_v28  ;;  %v1454_v23 = vadd.s32 3, %v1437_v18 }
  0xe2   : > { %vm1568_vm2 = vcmp.lt.s32.totalorder %v2356_v43, 0  ;;  %v1569_v6 = vsub.s32 0, %v2356_v43  ;;  %v1016_v4 = vshrl.u32 %v3222_v56, %v2273_v27  ;;  %v1049_v36 = vand.u32 65535, %v2361_v2 }
  0xe3   : > { %v1432_v11 = vxor.u32 2147483648, %v1431_v51  ;;  %v1051_v8 = vand.u32 65535, %v1047_v30  ;;  %v1052_v62 = vshrl.u32 %v1047_v30, 16  ;;  %v1037_v49 = vsel %vm1035_vm14, %v1025_v7, 2102212464 }
  0xe4   : > { %v1570_v10 = vsel %vm1568_vm2, %v1569_v6, %v2356_v43  ;;  %v1050_v9 = vshrl.u32 %v2361_v2, 16  ;;  %v1073_v18 = vand.u32 65535, %v2369_v37  ;;  %v1074_v27 = vshrl.u32 %v2369_v37, 16 }
  0xe5   : > { %v1433_v55 = vsel %vm1312_vm10, %v1432_v11, %v1431_v51  ;;  %v1571_v46 = vclz %v1570_v10  ;;  %v1054_v12 = vmul.u32 %v1052_v62, %v1049_v36  ;;  %v2391_v42 = vand.u32 3, %v1454_v23 }
  0xe6   : > { %v2389_v5 = vsel %vm2305_vm12, %v2075_v58, %v1433_v55  ;;  %vm1467_vm3 = vcmp.lt.s32.totalorder %v2077_v59, 0  ;;  %v1559_v7 = vadd.s32 %v2291_v53, %v2289_v20  ;;  %v2399_v57 = vsel %vm1032_vm15, %v1016_v4, %v2313_v25 }
  0xe7   : > { %v1438_v28 = vmul.f32 %v2389_v5, %v2389_v5  ;;  %v1879_v51 = vadd.s32 4294967294, %v1571_v46  ;;  %v1038_v0 = vsel %vm1034_vm0, %v1022_v60, %v1037_v49  ;;  %v2405_v37 = vmul.u32 %v1051_v8, %v1050_v9 }
  0xe8   : > { %v1589_v30 = vsub.s32 4, %v2337_v47  ;;  %v1053_v23 = vmul.u32 %v1051_v8, %v1049_v36  ;;  %v1057_v6 = vshll.u32 %v1054_v12, 16  ;;  %v1075_v11 = vmul.u32 %v1073_v18, %v1049_v36 }
  0xe9   : > { %v1439_v20 = vmul.f32 -0.001358992, %v1438_v28  ;;  %v1446_v53 = vmul.f32 -0.00019511016, %v1438_v28  ;;  %vm1880_vm4 = vcmp.lt.s32.totalorder %v1879_v51, 0  ;;  %v2408_v10 = vmul.u32 %v1074_v27, %v1049_v36 }
  0xea   : > { %v3236_v25 = vand.u32 2147483647, %v2077_v59  ;;  %v1574_v55 = vsel %vm1880_vm4, 0, %v1879_v51  ;;  %v1059_v60 = vshll.u32 %v2405_v37, 16  ;;  %vm1061_vm6 = vc.u32 %v1053_v23, %v1057_v6 }
  0xeb   : > { %v1063_v49 = vadd.s32 %v1057_v6, %v1053_v23  ;;  %v1440_v46 = vadd.f32 0.041655596, %v1439_v20  ;;  %v1447_v8 = vadd.f32 0.008332121, %v1446_v53  ;;  %v1575_v31 = vsub.s32 32, %v1574_v55 }
  0xec   : > { %vm2412_vm5 = vcmp.le.f32.partialorder %v3236_v25, 0.7853982  ;;  %v1056_v13 = vmul.u32 %v1052_v62, %v1050_v9  ;;  %v1579_v1 = vsub.s32 4294967266, %v1574_v55  ;;  %v1062_v63 = vsel %vm1061_vm6, 1, %v1966_v3 }
  0xed   : > { %vm1065_vm7 = vc.u32 %v1063_v49, %v1059_v60  ;;  %v1077_v36 = vmul.u32 %v1073_v18, %v1050_v9  ;;  %v1441_v52 = vmul.f32 %v1440_v46, %v1438_v28  ;;  %v1448_v56 = vmul.f32 %v1447_v8, %v1438_v28 }
  0xee   : > { %v1577_v25 = vshrl.u32 %v1559_v7, %v1575_v31  ;;  %v1064_v50 = vadd.s32 %v1062_v63, %v1056_v13  ;;  %v1576_v17 = vshll.u32 %v2356_v43, %v1574_v55  ;;  %v1580_v51 = vadd.s32 127, %v1579_v1 }
  0xef   : > { %v1066_v39 = vsel %vm1065_vm7, 1, %v1966_v3  ;;  %v1079_v23 = vshll.u32 %v2408_v10, 16  ;;  %v1442_v6 = vadd.f32 -0.4999988, %v1441_v52  ;;  %v1449_v20 = vadd.f32 -0.16666654, %v1448_v56 }
  0xf0   : > { %v1590_v62 = vsel %vm1467_vm3, %v1589_v30, %v2337_v47  ;;  %v1068_v53 = vadd.s32 %v1066_v39, %v1064_v50  ;;  %vm1457_vm8 = vcmp.eq.s32.totalorder %v2391_v42, 0  ;;  %v1578_v18 = vor.u32 %v1577_v25, %v1576_v17 }
  0xf1   : > { %v1581_v60 = vshll.u32 %v1580_v51, 23  ;;  %v1058_v31 = vshrl.u32 %v1054_v12, 16  ;;  %vm1083_vm9 = vc.u32 %v1075_v11, %v1079_v23  ;;  %v1443_v63 = vmul.f32 %v1442_v6, %v1438_v28 }
  0xf2   : > { %v1450_v13 = vmul.f32 %v1449_v20, %v1438_v28  ;;  %vm1456_vm10 = vcmp.lt.s32.totalorder %v2391_v42, 2  ;;  %v1078_v1 = vmul.u32 %v1074_v27, %v1050_v9  ;;  %v1081_v43 = vshll.u32 %v1077_v36, 16 }
  0xf3   : > { %vm1453_vm11 = vweird.f32 %v2075_v58  ;;  %v1582_v52 = vor.u32 4788187, %v1581_v60  ;;  %v1069_v56 = vadd.s32 %v1068_v53, %v1058_v31  ;;  %v1084_v7 = vsel %vm1083_vm9, 1, %v1966_v3 }
  0xf4   : > { %v1085_v47 = vadd.s32 %v1079_v23, %v1075_v11  ;;  %v1444_v50 = vadd.f32 1.0, %v1443_v63  ;;  %v1451_v39 = vadd.f32 1.0, %v1450_v13  ;;  %v1592_v17 = vsel %vm2412_vm5, 0, %v1590_v62 }
  0xf5   : > { %v1086_v12 = vadd.s32 %v1084_v7, %v1078_v1  ;;  %v1583_v30 = vand.u32 2147483647, %v1582_v52  ;;  %v1585_v55 = vcvt.s32.f32 %v1578_v18  ;;  %v1060_v28 = vshrl.u32 %v2405_v37, 16 }
  0xf6   : > { %vm1087_vm12 = vc.u32 %v1085_v47, %v1081_v43  ;;  %v1452_v9 = vmul.f32 %v1451_v39, %v2389_v5  ;;  %v1461_v27 = vxor.u32 2147483648, %v1444_v50  ;;  %v1039_v49 = vsel %vm1033_vm1, %v2399_v57, %v1038_v0 }
  0xf7   : > { %v1088_v11 = vsel %vm1087_vm12, 1, %v1966_v3  ;;  %v1586_v46 = vmul.f32 %v1585_v55, %v1583_v30  ;;  %v2436_v8 = vadd.s32 %v1069_v56, %v1060_v28  ;;  %v1080_v25 = vshrl.u32 %v2408_v10, 16 }
  0xf8   : > { %v1090_v51 = vadd.s32 %v1088_v11, %v1086_v12  ;;  %v1458_v23 = vxor.u32 2147483648, %v1452_v9  ;;  %vm1460_vm13 = vcmp.eq.s32.totalorder %v2391_v42, 2  ;;  %v1609_v37 = vadd.s32 3, %v1592_v17 }
  0xf9   : > { %v3230_v6 = vand.u32 2147483647, %v2083_v15  ;;  %v1587_v5 = vxor.u32 2147483648, %v1586_v46  ;;  %v1082_v20 = vshrl.u32 %v1077_v36, 16  ;;  %v2441_v62 = vadd.s32 %v1085_v47, %v1081_v43 }
  0xfa   : > { %v1091_v61 = vadd.s32 %v1090_v51, %v1080_v25  ;;  %v1459_v57 = vsel %vm1457_vm8, %v1444_v50, %v1458_v23  ;;  %v1462_v0 = vsel %vm1460_vm13, %v1461_v27, %v1452_v9  ;;  %v1093_v53 = vmul.u32 %v2361_v2, %v1039_v49 }
  0xfb   : > { %v3239_v10 = vmov 2475754826   ;;  %v1463_v60 = vsel %vm1456_vm10, %v1459_v57, %v1462_v0  ;;  %v1588_v31 = vsel %vm1467_vm3, %v1587_v5, %v1586_v46  ;;  %vm1095_vm14 = vc.u32 %v2436_v8, %v2441_v62 }
  0xfc   : > { %v1173_v18 = vshrl.u32 %v3239_v10, %v2283_v22  ;;  %v1092_v63 = vadd.s32 %v1091_v61, %v1082_v20  ;;  %v1464_v36 = vsel %vm1453_vm11, nan, %v1463_v60  ;;  %v2459_v2 = vsel %vm2412_vm5, %v2077_v59, %v1588_v31 }
  0xfd   : > { %v1162_v13 = vand.u32 8388607, %v3230_v6  ;;  %v3240_v42 = vmov 683565275   ;;  %1673 = vmatpush.msra.mxu0 %v1464_v36  ;;  %1893 = vmatpush.msra.mxu2 %v1464_v36  ;;  %v1593_v43 = vmul.f32 %v2459_v2, %v2459_v2  ;;  %v3241_v58 = vmov 2131351028  }
  0xfe   : > { %v1172_v1 = vshll.u32 %v3240_v42, %v2240_v24  ;;  %v1096_v52 = vadd.s32 1, %v1092_v63  ;;  %v1176_v56 = vshrl.u32 %v3241_v58, %v2283_v22  ;;  %v3242_v7 = vmov 2102212464  }
  0xff   : > { %v1179_v4 = vshrl.u32 %v3242_v7, %v2283_v22  ;;  %v1175_v50 = vshll.u32 %v3239_v10, %v2240_v24  ;;  %v1181_v39 = vshll.u32 %v3242_v7, %v2240_v24  ;;  %v3243_v17 = vmov 920167782  }
 0x100   : > { %v2471_v47 = vor.u32 %v1173_v18, %v1172_v1  ;;  %v1182_v12 = vshrl.u32 %v3243_v17, %v2283_v22  ;;  %v1594_v30 = vmul.f32 -0.001358992, %v1593_v43  ;;  %v1601_v55 = vmul.f32 -0.00019511016, %v1593_v43 }
 0x101   : > { %v1097_v28 = vsel %vm1095_vm14, %v1096_v52, %v1092_v63  ;;  %v1178_v9 = vshll.u32 %v3241_v58, %v2240_v24  ;;  %v1184_v11 = vshll.u32 %v3243_v17, %v2240_v24  ;;  %v3244_v46 = vmov 1326507024  }
 0x102   : > { %v1098_v27 = vadd.s32 %v1097_v28, %v1093_v53  ;;  %v1183_v49 = vor.u32 %v1182_v12, %v1181_v39  ;;  %v1185_v25 = vshrl.u32 %v3244_v46, %v2283_v22  ;;  %v1595_v51 = vadd.f32 0.041655596, %v1594_v30 }
 0x103   : > { %v1602_v23 = vadd.f32 0.008332121, %v1601_v55  ;;  %v1177_v5 = vor.u32 %v1176_v56, %v1175_v50  ;;  %v1180_v20 = vor.u32 %v1179_v4, %v1178_v9  ;;  %v1610_v61 = vand.u32 3, %v1609_v37 }
 0x104   : > { %vm1002_vm15 = vcmp.lt.s32.totalorder %v2081_v14, 0  ;;  %v1099_v57 = vadd.s32 536870912, %v1098_v27  ;;  %v1186_v0 = vor.u32 %v1185_v25, %v1184_v11  ;;  %v1596_v18 = vmul.f32 %v1595_v51, %v1593_v43 }
 0x105   : > { %v1603_v60 = vmul.f32 %v1602_v23, %v1593_v43  ;;  %v1163_v31 = vor.u32 8388608, %v1162_v13  ;;  %vm1190_vm0 = vcmp.lt.s32.totalorder %v2237_v19, 4  ;;  %vm1187_vm1 = vcmp.lt.s32.totalorder %v2237_v19, 1 }
 0x106   : > { %v1100_v53 = vshrl.u32 %v1099_v57, 30  ;;  %vm1189_vm2 = vcmp.lt.s32.totalorder %v2237_v19, 3  ;;  %v1196_v24 = vsel %vm1190_vm0, %v1183_v49, 920167782  ;;  %v1597_v63 = vadd.f32 -0.4999988, %v1596_v18 }
 0x107   : > { %v1604_v36 = vadd.f32 -0.16666654, %v1603_v60  ;;  %v3245_v37 = vand.u32 2147483647, %v2081_v14  ;;  %v1195_v13 = vsel %vm1187_vm1, %v2471_v47, %v1177_v5  ;;  %v1199_v52 = vsel %vm1187_vm1, %v1177_v5, %v1180_v20 }
 0x108   : > { %vm1612_vm4 = vcmp.eq.s32.totalorder %v1610_v61, 0  ;;  %v1101_v56 = vshll.u32 %v1100_v53, 30  ;;  %v1124_v4 = vsub.s32 4, %v1100_v53  ;;  %v1197_v50 = vsel %vm1189_vm2, %v1180_v20, %v1196_v24 }
 0x109   : > { %vm2496_vm3 = vcmp.le.f32.partialorder %v3245_v37, 0.7853982  ;;  %v1200_v39 = vsel %vm1190_vm0, %v1186_v0, 1326507024  ;;  %v1598_v12 = vmul.f32 %v1597_v63, %v1593_v43  ;;  %v1605_v30 = vmul.f32 %v1604_v36, %v1593_v43 }
 0x10a   : > { %vm1611_vm5 = vcmp.lt.s32.totalorder %v1610_v61, 2  ;;  %vm1188_vm6 = vcmp.lt.s32.totalorder %v2237_v19, 2  ;;  %v1201_v55 = vsel %vm1189_vm2, %v1183_v49, %v1200_v39  ;;  %vm1608_vm7 = vweird.f32 %v2077_v59 }
 0x10b   : > { %vm1615_vm8 = vcmp.eq.s32.totalorder %v1610_v61, 2  ;;  %v1102_v28 = vsub.s32 %v1098_v27, %v1101_v56  ;;  %v1202_v9 = vsel %vm1188_vm6, %v1199_v52, %v1201_v55  ;;  %v2515_v11 = vshll.u32 %v1163_v31, 8 }
 0x10c   : > { %v1599_v25 = vadd.f32 1.0, %v1598_v12  ;;  %v1606_v51 = vadd.f32 1.0, %v1605_v30  ;;  %v1171_v43 = vshrl.u32 %v3240_v42, %v2283_v22  ;;  %v1198_v23 = vsel %vm1188_vm6, %v1195_v13, %v1197_v50 }
 0x10d   : > { %vm1103_vm9 = vcmp.lt.s32.totalorder %v1102_v28, 0  ;;  %v1104_v57 = vsub.s32 0, %v1102_v28  ;;  %v1125_v49 = vsel %vm1002_vm15, %v1124_v4, %v1100_v53  ;;  %v1192_v27 = vsel %vm1190_vm0, %v1180_v20, 2102212464 }
 0x10e   : > { %v1607_v0 = vmul.f32 %v1606_v51, %v2459_v2  ;;  %v1616_v18 = vxor.u32 2147483648, %v1599_v25  ;;  %v1206_v60 = vand.u32 65535, %v1202_v9  ;;  %v1207_v31 = vshrl.u32 %v1202_v9, 16 }
 0x10f   : > { %v1094_v24 = vadd.s32 %v2441_v62, %v2436_v8  ;;  %v1105_v22 = vsel %vm1103_vm9, %v1104_v57, %v1102_v28  ;;  %v1204_v63 = vand.u32 65535, %v2515_v11  ;;  %v1229_v36 = vshrl.u32 %v1198_v23, 16 }
 0x110   : > { %v1613_v37 = vxor.u32 2147483648, %v1607_v0  ;;  %v1106_v13 = vclz %v1105_v22  ;;  %v1191_v53 = vsel %vm1187_vm1, %v1171_v43, %v2471_v47  ;;  %v1205_v20 = vshrl.u32 %v2515_v11, 16 }
 0x111   : > { %v1127_v2 = vsel %vm2496_vm3, 0, %v1125_v49  ;;  %v1193_v52 = vsel %vm1189_vm2, %v1177_v5, %v1192_v27  ;;  %v1209_v56 = vmul.u32 %v1207_v31, %v1204_v63  ;;  %v1228_v8 = vand.u32 65535, %v1198_v23 }
 0x112   : > { %v1614_v62 = vsel %vm1612_vm4, %v1599_v25, %v1613_v37  ;;  %v1617_v4 = vsel %vm1615_vm8, %v1616_v18, %v1607_v0  ;;  %v1870_v50 = vadd.s32 4294967294, %v1106_v13  ;;  %v1210_v39 = vmul.u32 %v1206_v60, %v1205_v20 }
 0x113   : > { %v1618_v12 = vsel %vm1611_vm5, %v1614_v62, %v1617_v4  ;;  %v1208_v30 = vmul.u32 %v1206_v60, %v1204_v63  ;;  %v1212_v47 = vshll.u32 %v1209_v56, 16  ;;  %v1231_v55 = vmul.u32 %v1229_v36, %v1204_v63 }
 0x114   : > { %v1619_v9 = vsel %vm1608_vm7, nan, %v1618_v12  ;;  %vm1871_vm10 = vcmp.lt.s32.totalorder %v1870_v50, 0  ;;  %v1211_v51 = vmul.u32 %v1207_v31, %v1205_v20  ;;  %v1214_v43 = vshll.u32 %v1210_v39, 16 }
 0x115   : > { %1702 = vmatpush.msra.mxu1 %v1619_v9  ;;  %1897 = vmatpush.msra.mxu3 %v1619_v9  ;;  %v1109_v5 = vsel %vm1871_vm10, 0, %v1870_v50  ;;  %vm1216_vm11 = vc.u32 %v1208_v30, %v1212_v47  ;;  %v1218_v25 = vadd.s32 %v1212_v47, %v1208_v30  ;;  %v1232_v23 = vmul.u32 %v1228_v8, %v1205_v20 }
 0x116   : > { %v1110_v57 = vsub.s32 32, %v1109_v5  ;;  %v1114_v49 = vsub.s32 4294967266, %v1109_v5  ;;  %v1217_v61 = vsel %vm1216_vm11, 1, %v1966_v3  ;;  %v1230_v27 = vmul.u32 %v1228_v8, %v1204_v63 }
 0x117   : > { %v1213_v0 = vshrl.u32 %v1209_v56, 16  ;;  %v1219_v18 = vadd.s32 %v1217_v61, %v1211_v51  ;;  %vm1220_vm12 = vc.u32 %v1218_v25, %v1214_v43  ;;  %v1234_v60 = vshll.u32 %v1231_v55, 16 }
 0x118   : > { %v1111_v59 = vshll.u32 %v1102_v28, %v1109_v5  ;;  %v1112_v22 = vshrl.u32 %v1094_v24, %v1110_v57  ;;  %v1115_v37 = vadd.s32 127, %v1114_v49  ;;  %v1221_v31 = vsel %vm1220_vm12, 1, %v1966_v3 }
 0x119   : > { %v1223_v13 = vadd.s32 %v1221_v31, %v1219_v18  ;;  %v1233_v62 = vmul.u32 %v1229_v36, %v1205_v20  ;;  %v1236_v4 = vshll.u32 %v1232_v23, 16  ;;  %vm1238_vm13 = vc.u32 %v1230_v27, %v1234_v60 }
 0x11a   : > { %v1113_v50 = vor.u32 %v1112_v22, %v1111_v59  ;;  %v1116_v12 = vshll.u32 %v1115_v37, 23  ;;  %v1239_v30 = vsel %vm1238_vm13, 1, %v1966_v3  ;;  %v1240_v47 = vadd.s32 %v1234_v60, %v1230_v27 }
 0x11b   : > { %v2546_v63 = vsub.s32 32, %v2276_v34  ;;  %v1144_v56 = vadd.s32 3, %v1127_v2  ;;  %v1224_v8 = vadd.s32 %v1223_v13, %v1213_v0  ;;  %v1241_v9 = vadd.s32 %v1239_v30, %v1233_v62 }
 0x11c   : > { %v2550_v28 = vshll.u32 %v3242_v7, %v2276_v34  ;;  %v2554_v24 = vshll.u32 %v3243_v17, %v2276_v34  ;;  %v1117_v36 = vor.u32 4788187, %v1116_v12  ;;  %vm1242_vm14 = vc.u32 %v1240_v47, %v1236_v4 }
 0x11d   : > { %v1194_v20 = vsel %vm1188_vm6, %v1191_v53, %v1193_v52  ;;  %v1215_v51 = vshrl.u32 %v1210_v39, 16  ;;  %v1235_v43 = vshrl.u32 %v1231_v55, 16  ;;  %v1243_v5 = vsel %vm1242_vm14, 1, %v1966_v3 }
 0x11e   : > { %v1118_v2 = vand.u32 2147483647, %v1117_v36  ;;  %v1120_v25 = vcvt.s32.f32 %v1113_v50  ;;  %v1245_v57 = vadd.s32 %v1243_v5, %v1241_v9  ;;  %v3229_v49 = vand.u32 2147483647, %v2069_v38 }
 0x11f   : > { %v2560_v61 = vand.u32 3, %v1144_v56  ;;  %v2562_v27 = vadd.s32 %v1224_v8, %v1215_v51  ;;  %v1237_v0 = vshrl.u32 %v1232_v23, 16  ;;  %v2564_v18 = vadd.s32 %v1240_v47, %v1236_v4 }
 0x120   : > { %v1121_v60 = vmul.f32 %v1120_v25, %v1118_v2  ;;  %v1246_v59 = vadd.s32 %v1245_v57, %v1235_v43  ;;  %v707_v19 = vshll.u32 %v3240_v42, %v2093_v32  ;;  %v708_v53 = vshrl.u32 %v3239_v10, %v2102_v44 }
 0x121   : > { %v710_v52 = vshll.u32 %v3239_v10, %v2093_v32  ;;  %v711_v39 = vshrl.u32 %v3241_v58, %v2102_v44  ;;  %v713_v55 = vshll.u32 %v3241_v58, %v2093_v32  ;;  %v714_v23 = vshrl.u32 %v3242_v7, %v2102_v44 }
 0x122   : > { %v1122_v22 = vxor.u32 2147483648, %v1121_v60  ;;  %v1247_v37 = vadd.s32 %v1246_v59, %v1237_v0  ;;  %v697_v31 = vand.u32 8388607, %v3229_v49  ;;  %v716_v13 = vshll.u32 %v3242_v7, %v2093_v32 }
 0x123   : > { %v1248_v62 = vmul.u32 %v2515_v11, %v1194_v20  ;;  %vm1250_vm0 = vc.u32 %v2562_v27, %v2564_v18  ;;  %v717_v4 = vshrl.u32 %v3243_v17, %v2102_v44  ;;  %v719_v50 = vshll.u32 %v3243_v17, %v2093_v32 }
 0x124   : > { %v1123_v12 = vsel %vm1002_vm15, %v1122_v22, %v1121_v60  ;;  %v1251_v30 = vadd.s32 1, %v1247_v37  ;;  %v2591_v47 = vor.u32 %v708_v53, %v707_v19  ;;  %v720_v56 = vshrl.u32 %v3244_v46, %v2102_v44 }
 0x125   : > { %v2598_v11 = vsel %vm2496_vm3, %v2081_v14, %v1123_v12  ;;  %v2600_v8 = vor.u32 %v711_v39, %v710_v52  ;;  %v2602_v9 = vor.u32 %v714_v23, %v713_v55  ;;  %v718_v36 = vor.u32 %v717_v4, %v716_v13 }
 0x126   : > { %v1128_v32 = vmul.f32 %v2598_v11, %v2598_v11  ;;  %v1252_v20 = vsel %vm1250_vm0, %v1251_v30, %v1247_v37  ;;  %v698_v51 = vor.u32 8388608, %v697_v31  ;;  %v721_v43 = vor.u32 %v720_v56, %v719_v50 }
 0x127   : > { %v1253_v5 = vadd.s32 %v1252_v20, %v1248_v62  ;;  %vm722_vm15 = vcmp.lt.s32.totalorder %v2099_v40, 1  ;;  %vm724_vm1 = vcmp.lt.s32.totalorder %v2099_v40, 3  ;;  %vm725_vm2 = vcmp.lt.s32.totalorder %v2099_v40, 4 }
 0x128   : > { %v407_v1 = vshrl.u32 %v3243_v17, %v2286_v29  ;;  %v1129_v2 = vmul.f32 -0.001358992, %v1128_v32  ;;  %v1136_v25 = vmul.f32 -0.00019511016, %v1128_v32  ;;  %v731_v57 = vsel %vm725_vm2, %v718_v36, 920167782 }
 0x129   : > { %v1254_v0 = vadd.s32 536870912, %v1253_v5  ;;  %v730_v60 = vsel %vm722_vm15, %v2591_v47, %v2600_v8  ;;  %v732_v59 = vsel %vm724_vm1, %v2602_v9, %v731_v57  ;;  %v734_v19 = vsel %vm722_vm15, %v2600_v8, %v2602_v9 }
 0x12a   : > { %v2626_v53 = vshrl.u32 %v3244_v46, %v2286_v29  ;;  %v1130_v52 = vadd.f32 0.041655596, %v1129_v2  ;;  %v1137_v39 = vadd.f32 0.008332121, %v1136_v25  ;;  %v735_v55 = vsel %vm725_vm2, %v721_v43, 1326507024 }
 0x12b   : > { %v2630_v23 = vshrl.u32 %v1254_v0, 30  ;;  %vm723_vm3 = vcmp.lt.s32.totalorder %v2099_v40, 2  ;;  %v736_v22 = vsel %vm724_vm1, %v718_v36, %v735_v55  ;;  %v2635_v37 = vshll.u32 %v698_v51, 8 }
 0x12c   : > { %v1131_v31 = vmul.f32 %v1130_v52, %v1128_v32  ;;  %v1138_v13 = vmul.f32 %v1137_v39, %v1128_v32  ;;  %v2639_v62 = vsel %vm723_vm3, %v730_v60, %v732_v59  ;;  %v737_v4 = vsel %vm723_vm3, %v734_v19, %v736_v22 }
 0x12d   : > { %v2644_v50 = vor.u32 %v407_v1, %v2335_v21  ;;  %v2648_v12 = vshrl.u32 %v3243_v17, %v2546_v63  ;;  %v2652_v30 = vshrl.u32 %v3244_v46, %v2546_v63  ;;  %v1256_v56 = vshll.u32 %v2630_v23, 30 }
 0x12e   : > { %v1132_v20 = vadd.f32 -0.4999988, %v1131_v31  ;;  %v1139_v51 = vadd.f32 -0.16666654, %v1138_v13  ;;  %v742_v43 = vshrl.u32 %v737_v4, 16  ;;  %vm1147_vm4 = vcmp.eq.s32.totalorder %v2560_v61, 0 }
 0x12f   : > { %v2658_v21 = vsub.s32 %v1253_v5, %v1256_v56  ;;  %v739_v1 = vand.u32 65535, %v2635_v37  ;;  %v741_v2 = vand.u32 65535, %v737_v4  ;;  %v764_v25 = vshrl.u32 %v2639_v62, 16 }
 0x130   : > { %v1133_v57 = vmul.f32 %v1132_v20, %v1128_v32  ;;  %v1140_v0 = vmul.f32 %v1139_v51, %v1128_v32  ;;  %vm1146_vm5 = vcmp.lt.s32.totalorder %v2560_v61, 2  ;;  %v706_v60 = vshrl.u32 %v3240_v42, %v2102_v44 }
 0x131   : > { %v763_v59 = vand.u32 65535, %v2639_v62  ;;  %vm1143_vm6 = vweird.f32 %v2081_v14  ;;  %vm1258_vm7 = vcmp.lt.s32.totalorder %v2658_v21, 0  ;;  %v1259_v5 = vsub.s32 0, %v2658_v21 }
 0x132   : > { %v740_v19 = vshrl.u32 %v2635_v37, 16  ;;  %v744_v52 = vmul.u32 %v742_v43, %v739_v1  ;;  %v1134_v39 = vadd.f32 1.0, %v1133_v57  ;;  %v1141_v55 = vadd.f32 1.0, %v1140_v0 }
 0x133   : > { %vm1150_vm8 = vcmp.eq.s32.totalorder %v2560_v61, 2  ;;  %v1249_v32 = vadd.s32 %v2564_v18, %v2562_v27  ;;  %v1260_v44 = vsel %vm1258_vm7, %v1259_v5, %v2658_v21  ;;  %v2676_v13 = vmul.u32 %v764_v25, %v739_v1 }
 0x134   : > { %v2674_v22 = vmul.u32 %v741_v2, %v740_v19  ;;  %v747_v31 = vshll.u32 %v744_v52, 16  ;;  %v1142_v62 = vmul.f32 %v1141_v55, %v2598_v11  ;;  %v1151_v4 = vxor.u32 2147483648, %v1134_v39 }
 0x135   : > { %v1261_v56 = vclz %v1260_v44  ;;  %v743_v20 = vmul.u32 %v741_v2, %v739_v1  ;;  %vm1157_vm9 = vcmp.lt.s32.totalorder %v2083_v15, 0  ;;  %v1279_v51 = vsub.s32 4, %v2630_v23 }
 0x136   : > { %v726_v27 = vsel %vm722_vm15, %v706_v60, %v2591_v47  ;;  %v727_v18 = vsel %vm725_vm2, %v2602_v9, 2102212464  ;;  %v765_v57 = vmul.u32 %v763_v59, %v739_v1  ;;  %v1148_v0 = vxor.u32 2147483648, %v1142_v62 }
 0x137   : > { %v1873_v5 = vadd.s32 4294967294, %v1261_v56  ;;  %v746_v49 = vmul.u32 %v742_v43, %v740_v19  ;;  %vm751_vm10 = vc.u32 %v743_v20, %v747_v31  ;;  %v1152_v11 = vsel %vm1150_vm8, %v1151_v4, %v1142_v62 }
 0x138   : > { %v749_v2 = vshll.u32 %v2674_v22, 16  ;;  %v752_v55 = vsel %vm751_vm10, 1, %v1966_v3  ;;  %v753_v44 = vadd.s32 %v747_v31, %v743_v20  ;;  %v1149_v47 = vsel %vm1147_vm4, %v1134_v39, %v1148_v0 }
 0x139   : > { %vm1874_vm11 = vcmp.lt.s32.totalorder %v1873_v5, 0  ;;  %v754_v60 = vadd.s32 %v752_v55, %v746_v49  ;;  %v769_v9 = vshll.u32 %v2676_v13, 16  ;;  %v1153_v1 = vsel %vm1146_vm5, %v1149_v47, %v1152_v11 }
 0x13a   : > { %v1264_v43 = vsel %vm1874_vm11, 0, %v1873_v5  ;;  %vm755_vm12 = vc.u32 %v753_v44, %v749_v2  ;;  %v767_v56 = vmul.u32 %v763_v59, %v740_v19  ;;  %v1154_v62 = vsel %vm1143_vm6, nan, %v1153_v1 }
 0x13b   : > { %v1265_v4 = vsub.s32 32, %v1264_v43  ;;  %v1269_v36 = vsub.s32 4294967266, %v1264_v43  ;;  %v748_v6 = vshrl.u32 %v744_v52, 16  ;;  %1674 = vmatpush.msra.mxu0 %v1154_v62  ;;  %1894 = vmatpush.msra.mxu2 %v1154_v62  ;;  %v1266_v39 = vshll.u32 %v2658_v21, %v1264_v43 }
 0x13c   : > { %v756_v49 = vsel %vm755_vm12, 1, %v1966_v3  ;;  %v768_v31 = vmul.u32 %v764_v25, %v740_v19  ;;  %vm773_vm13 = vc.u32 %v765_v57, %v769_v9  ;;  %v728_v14 = vsel %vm724_vm1, %v2600_v8, %v727_v18 }
 0x13d   : > { %v1267_v20 = vshrl.u32 %v1249_v32, %v1265_v4  ;;  %v1270_v61 = vadd.s32 127, %v1269_v36  ;;  %v758_v0 = vadd.s32 %v756_v49, %v754_v60  ;;  %v774_v5 = vsel %vm773_vm13, 1, %v1966_v3 }
 0x13e   : > { %v771_v59 = vshll.u32 %v767_v56, 16  ;;  %v775_v11 = vadd.s32 %v769_v9, %v765_v57  ;;  %v776_v52 = vadd.s32 %v774_v5, %v768_v31  ;;  %v1280_v21 = vsel %vm1157_vm9, %v1279_v51, %v2630_v23 }
 0x13f   : > { %v1268_v2 = vor.u32 %v1267_v20, %v1266_v39  ;;  %v1271_v55 = vshll.u32 %v1270_v61, 23  ;;  %v759_v25 = vadd.s32 %v758_v0, %v748_v6  ;;  %v2709_v36 = vor.u32 %v2648_v12, %v2550_v28 }
 0x140   : > { %v3248_v19 = vand.u32 2147483647, %v2083_v15  ;;  %vm777_vm0 = vc.u32 %v775_v11, %v771_v59  ;;  %v845_v8 = vand.u32 2147483647, %v2071_v41  ;;  %v729_v57 = vsel %vm723_vm3, %v726_v27, %v728_v14 }
 0x141   : > { %v1272_v18 = vor.u32 4788187, %v1271_v55  ;;  %v750_v23 = vshrl.u32 %v2674_v22, 16  ;;  %v778_v6 = vsel %vm777_vm0, 1, %v1966_v3  ;;  %v770_v12 = vshrl.u32 %v2676_v13, 16 }
 0x142   : > { %vm2713_vm14 = vcmp.le.f32.partialorder %v3248_v19, 0.7853982  ;;  %v772_v51 = vshrl.u32 %v767_v56, 16  ;;  %v780_v44 = vadd.s32 %v778_v6, %v776_v52  ;;  %v1275_v60 = vcvt.s32.f32 %v1268_v2 }
 0x143   : > { %v1282_v28 = vsel %vm2713_vm14, 0, %v1280_v21  ;;  %v1273_v47 = vand.u32 2147483647, %v1272_v18  ;;  %v2725_v9 = vadd.s32 %v759_v25, %v750_v23  ;;  %v2727_v1 = vadd.s32 %v775_v11, %v771_v59 }
 0x144   : > { %v781_v43 = vadd.s32 %v780_v44, %v770_v12  ;;  %v852_v40 = vand.u32 8388607, %v845_v8  ;;  %v865_v22 = vshll.u32 %v3239_v10, %v2097_v35  ;;  %v866_v27 = vshrl.u32 %v3241_v58, %v2113_v48 }
 0x145   : > { %v1276_v62 = vmul.f32 %v1275_v60, %v1273_v47  ;;  %v862_v13 = vshll.u32 %v3240_v42, %v2097_v35  ;;  %v868_v56 = vshll.u32 %v3241_v58, %v2097_v35  ;;  %v869_v4 = vshrl.u32 %v3242_v7, %v2113_v48 }
 0x146   : > { %v782_v39 = vadd.s32 %v781_v43, %v772_v51  ;;  %v863_v49 = vshrl.u32 %v3239_v10, %v2113_v48  ;;  %v871_v31 = vshll.u32 %v3242_v7, %v2097_v35  ;;  %v872_v20 = vshrl.u32 %v3243_v17, %v2113_v48 }
 0x147   : > { %v1277_v61 = vxor.u32 2147483648, %v1276_v62  ;;  %vm785_vm15 = vc.u32 %v2725_v9, %v2727_v1  ;;  %v874_v0 = vshll.u32 %v3243_v17, %v2097_v35  ;;  %v875_v5 = vshrl.u32 %v3244_v46, %v2113_v48 }
 0x148   : > { %v1299_v14 = vadd.s32 3, %v1282_v28  ;;  %v786_v59 = vadd.s32 1, %v782_v39  ;;  %v2753_v11 = vor.u32 %v866_v27, %v865_v22  ;;  %v2755_v52 = vor.u32 %v869_v4, %v868_v56 }
 0x149   : > { %vm415_vm1 = vcmp.lt.s32.totalorder %v2243_v26, 4  ;;  %v1278_v2 = vsel %vm1157_vm9, %v1277_v61, %v1276_v62  ;;  %v783_v55 = vmul.u32 %v2635_v37, %v729_v57  ;;  %v853_v21 = vor.u32 8388608, %v852_v40 }
 0x14a   : > { %v876_v25 = vor.u32 %v875_v5, %v874_v0  ;;  %v1281_v35 = vsel %vm2713_vm14, %v2083_v15, %v1278_v2  ;;  %v787_v17 = vsel %vm785_vm15, %v786_v59, %v782_v39  ;;  %v2764_v46 = vor.u32 %v863_v49, %v862_v13 }
 0x14b   : > { %v873_v19 = vor.u32 %v872_v20, %v871_v31  ;;  %v1283_v18 = vmul.f32 %v1281_v35, %v1281_v35  ;;  %v788_v23 = vadd.s32 %v787_v17, %v783_v55  ;;  %vm877_vm2 = vcmp.lt.s32.totalorder %v2104_v45, 1 }
 0x14c   : > { %vm880_vm3 = vcmp.lt.s32.totalorder %v2104_v45, 4  ;;  %v2768_v6 = vand.u32 3, %v1299_v14  ;;  %vm878_vm4 = vcmp.lt.s32.totalorder %v2104_v45, 2  ;;  %v889_v37 = vsel %vm877_vm2, %v2753_v11, %v2755_v52 }
 0x14d   : > { %v890_v32 = vsel %vm880_vm3, %v876_v25, 1326507024  ;;  %v1284_v57 = vmul.f32 -0.001358992, %v1283_v18  ;;  %v1291_v28 = vmul.f32 -0.00019511016, %v1283_v18  ;;  %v885_v51 = vsel %vm877_vm2, %v2764_v46, %v2753_v11 }
 0x14e   : > { %v789_v12 = vadd.s32 536870912, %v788_v23  ;;  %vm879_vm5 = vcmp.lt.s32.totalorder %v2104_v45, 3  ;;  %v886_v44 = vsel %vm880_vm3, %v873_v19, 920167782  ;;  %v2786_v60 = vshll.u32 %v853_v21, 8 }
 0x14f   : > { %v891_v47 = vsel %vm879_vm5, %v873_v19, %v890_v32  ;;  %v1285_v43 = vadd.f32 0.041655596, %v1284_v57  ;;  %v1292_v40 = vadd.f32 0.008332121, %v1291_v28  ;;  %v887_v20 = vsel %vm879_vm5, %v2755_v52, %v886_v44 }
 0x150   : > { %v2788_v22 = vshrl.u32 %v789_v12, 30  ;;  %v892_v27 = vsel %vm878_vm4, %v889_v37, %v891_v47  ;;  %v2793_v62 = vand.u32 65535, %v2786_v60  ;;  %v2796_v13 = vshrl.u32 %v2786_v60, 16 }
 0x151   : > { %v896_v56 = vand.u32 65535, %v892_v27  ;;  %v897_v4 = vshrl.u32 %v892_v27, 16  ;;  %v1286_v39 = vmul.f32 %v1285_v43, %v1283_v18  ;;  %v1293_v49 = vmul.f32 %v1292_v40, %v1283_v18 }
 0x152   : > { %v791_v31 = vshll.u32 %v2788_v22, 30  ;;  %v2805_v61 = vsel %vm415_vm1, %v2644_v50, 920167782  ;;  %v566_v0 = vor.u32 %v2652_v30, %v2554_v24  ;;  %v3251_v59 = vor.u32 %v2626_v53, %v2365_v54 }
 0x153   : > { %v899_v5 = vmul.u32 %v897_v4, %v2793_v62  ;;  %v2811_v14 = vmul.u32 %v896_v56, %v2796_v13  ;;  %v1287_v55 = vadd.f32 -0.4999988, %v1286_v39  ;;  %v1294_v21 = vadd.f32 -0.16666654, %v1293_v49 }
 0x154   : > { %v2818_v2 = vsel %vm415_vm1, %v3251_v59, 1326507024  ;;  %v2820_v25 = vsub.s32 %v788_v23, %v791_v31  ;;  %v861_v17 = vshrl.u32 %v3240_v42, %v2113_v48  ;;  %v888_v19 = vsel %vm878_vm4, %v885_v51, %v887_v20 }
 0x155   : > { %v898_v37 = vmul.u32 %v896_v56, %v2793_v62  ;;  %v902_v32 = vshll.u32 %v899_v5, 16  ;;  %v1288_v57 = vmul.f32 %v1287_v55, %v1283_v18  ;;  %v1295_v28 = vmul.f32 %v1294_v21, %v1283_v18 }
 0x156   : > { %vm1301_vm6 = vcmp.lt.s32.totalorder %v2768_v6, 2  ;;  %vm793_vm7 = vcmp.lt.s32.totalorder %v2820_v25, 0  ;;  %v794_v54 = vsub.s32 0, %v2820_v25  ;;  %vm1298_vm8 = vweird.f32 %v2083_v15 }
 0x157   : > { %v901_v53 = vmul.u32 %v897_v4, %v2796_v13  ;;  %v904_v48 = vshll.u32 %v2811_v14, 16  ;;  %vm906_vm9 = vc.u32 %v898_v37, %v902_v32  ;;  %v908_v23 = vadd.s32 %v902_v32, %v898_v37 }
 0x158   : > { %v1289_v12 = vadd.f32 1.0, %v1288_v57  ;;  %v1296_v51 = vadd.f32 1.0, %v1295_v28  ;;  %v795_v44 = vsel %vm793_vm7, %v794_v54, %v2820_v25  ;;  %v907_v18 = vsel %vm906_vm9, 1, %v1966_v3 }
 0x159   : > { %v796_v47 = vclz %v795_v44  ;;  %v882_v43 = vsel %vm880_vm3, %v2755_v52, 2102212464  ;;  %v909_v40 = vadd.s32 %v907_v18, %v901_v53  ;;  %vm910_vm10 = vc.u32 %v908_v23, %v904_v48 }
 0x15a   : > { %v1297_v27 = vmul.f32 %v1296_v51, %v1281_v35  ;;  %v1306_v56 = vxor.u32 2147483648, %v1289_v12  ;;  %v911_v4 = vsel %vm910_vm10, 1, %v1966_v3  ;;  %v918_v39 = vand.u32 65535, %v888_v19 }
 0x15b   : > { %vm1302_vm11 = vcmp.eq.s32.totalorder %v2768_v6, 0  ;;  %vm1305_vm12 = vcmp.eq.s32.totalorder %v2768_v6, 2  ;;  %vm692_vm13 = vcmp.lt.s32.totalorder %v2069_v38, 0  ;;  %v784_v49 = vadd.s32 %v2727_v1, %v2725_v9 }
 0x15c   : > { %v1864_v31 = vadd.s32 4294967294, %v796_v47  ;;  %v1303_v20 = vxor.u32 2147483648, %v1297_v27  ;;  %v881_v52 = vsel %vm877_vm2, %v861_v17, %v2764_v46  ;;  %v913_v35 = vadd.s32 %v911_v4, %v909_v40 }
 0x15d   : > { %v919_v59 = vshrl.u32 %v888_v19, 16  ;;  %v1307_v55 = vsel %vm1305_vm12, %v1306_v56, %v1297_v27  ;;  %v883_v21 = vsel %vm879_vm5, %v2753_v11, %v882_v43  ;;  %v903_v37 = vshrl.u32 %v899_v5, 16 }
 0x15e   : > { %vm1865_vm14 = vcmp.lt.s32.totalorder %v1864_v31, 0  ;;  %v1304_v32 = vsel %vm1302_vm11, %v1289_v12, %v1303_v20  ;;  %v922_v9 = vmul.u32 %v918_v39, %v2796_v13  ;;  %v814_v17 = vsub.s32 4, %v2788_v22 }
 0x15f   : > { %v799_v57 = vsel %vm1865_vm14, 0, %v1864_v31  ;;  %v921_v28 = vmul.u32 %v919_v59, %v2793_v62  ;;  %v1308_v1 = vsel %vm1301_vm6, %v1304_v32, %v1307_v55  ;;  %v914_v53 = vadd.s32 %v913_v35, %v903_v37 }
 0x160   : > { %v800_v54 = vsub.s32 32, %v799_v57  ;;  %v804_v46 = vsub.s32 4294967266, %v799_v57  ;;  %v1309_v19 = vsel %vm1298_vm8, nan, %v1308_v1  ;;  %v920_v11 = vmul.u32 %v918_v39, %v2793_v62 }
 0x161   : > { %v924_v5 = vshll.u32 %v921_v28, 16  ;;  %1703 = vmatpush.msra.mxu1 %v1309_v19  ;;  %1898 = vmatpush.msra.mxu3 %v1309_v19  ;;  %v3252_v48 = vand.u32 2147483647, %v2069_v38  ;;  %v801_v6 = vshll.u32 %v2820_v25, %v799_v57  ;;  %v923_v44 = vmul.u32 %v919_v59, %v2796_v13 }
 0x162   : > { %v802_v12 = vshrl.u32 %v784_v49, %v800_v54  ;;  %v805_v51 = vadd.s32 127, %v804_v46  ;;  %v926_v15 = vshll.u32 %v922_v9, 16  ;;  %v380_v62 = vand.u32 2147483647, %v2085_v16 }
 0x163   : > { %vm2860_vm0 = vcmp.le.f32.partialorder %v3252_v48, 0.7853982  ;;  %vm928_vm15 = vc.u32 %v920_v11, %v924_v5  ;;  %v930_v18 = vadd.s32 %v924_v5, %v920_v11  ;;  %v905_v40 = vshrl.u32 %v2811_v14, 16 }
 0x164   : > { %v803_v47 = vor.u32 %v802_v12, %v801_v6  ;;  %v806_v43 = vshll.u32 %v805_v51, 23  ;;  %v929_v27 = vsel %vm928_vm15, 1, %v1966_v3  ;;  %v815_v56 = vsel %vm692_vm13, %v814_v17, %v2788_v22 }
 0x165   : > { %v884_v25 = vsel %vm878_vm4, %v881_v52, %v883_v21  ;;  %v931_v4 = vadd.s32 %v929_v27, %v923_v44  ;;  %vm932_vm2 = vc.u32 %v930_v18, %v926_v15  ;;  %v2874_v39 = vadd.s32 %v914_v53, %v905_v40 }
 0x166   : > { %v807_v13 = vor.u32 4788187, %v806_v43  ;;  %v933_v49 = vsel %vm932_vm2, 1, %v1966_v3  ;;  %v387_v31 = vand.u32 8388607, %v380_v62  ;;  %v925_v14 = vshrl.u32 %v921_v28, 16 }
 0x167   : > { %v927_v20 = vshrl.u32 %v922_v9, 16  ;;  %v2879_v35 = vadd.s32 %v930_v18, %v926_v15  ;;  %v935_v59 = vadd.s32 %v933_v49, %v931_v4  ;;  %v810_v22 = vcvt.s32.f32 %v803_v47 }
 0x168   : > { %v808_v55 = vand.u32 2147483647, %v807_v13  ;;  %v397_v45 = vshll.u32 %v3240_v42, %v2246_v33  ;;  %v398_v52 = vshrl.u32 %v3239_v10, %v2286_v29  ;;  %v388_v37 = vor.u32 8388608, %v387_v31 }
 0x169   : > { %v936_v21 = vadd.s32 %v935_v59, %v925_v14  ;;  %v400_v32 = vshll.u32 %v3239_v10, %v2246_v33  ;;  %v401_v57 = vshrl.u32 %v3241_v58, %v2286_v29  ;;  %v403_v1 = vshll.u32 %v3241_v58, %v2246_v33 }
 0x16a   : > { %v811_v28 = vmul.f32 %v810_v22, %v808_v55  ;;  %v2889_v9 = vor.u32 %v398_v52, %v397_v45  ;;  %v404_v54 = vshrl.u32 %v3242_v7, %v2286_v29  ;;  %v817_v46 = vsel %vm2860_vm0, 0, %v815_v56 }
 0x16b   : > { %v937_v17 = vadd.s32 %v936_v21, %v927_v20  ;;  %vm940_vm3 = vc.u32 %v2874_v39, %v2879_v35  ;;  %v2899_v19 = vor.u32 %v401_v57, %v400_v32  ;;  %vm412_vm4 = vcmp.lt.s32.totalorder %v2243_v26, 1 }
 0x16c   : > { %v812_v53 = vxor.u32 2147483648, %v811_v28  ;;  %v405_v11 = vor.u32 %v404_v54, %v403_v1  ;;  %vm414_vm5 = vcmp.lt.s32.totalorder %v2243_v26, 3  ;;  %v2911_v6 = vshll.u32 %v388_v37, 8 }
 0x16d   : > { %v941_v5 = vadd.s32 1, %v937_v17  ;;  %v420_v33 = vsel %vm412_vm4, %v2889_v9, %v2899_v19  ;;  %v426_v48 = vsel %vm414_vm5, %v2644_v50, %v2818_v2  ;;  %v938_v51 = vmul.u32 %v2786_v60, %v884_v25  ;;  %v3255_v25 = vld [vmem:[#allocation3_spill] sm:$0xff] }
 0x16e   : > { %v813_v12 = vsel %vm692_vm13, %v812_v53, %v811_v28  ;;  %v422_v44 = vsel %vm414_vm5, %v405_v11, %v2805_v61  ;;  %v424_v15 = vsel %vm412_vm4, %v2899_v19, %v405_v11  ;;  %v834_v50 = vadd.s32 3, %v817_v46 }
 0x16f   : > { %v2925_v18 = vsel %vm2860_vm0, %v2069_v38, %v813_v12  ;;  %v942_v2 = vsel %vm940_vm3, %v941_v5, %v937_v17  ;;  %vm413_vm6 = vcmp.lt.s32.totalorder %v2243_v26, 2  ;;  %v429_v43 = vand.u32 65535, %v2911_v6 }
 0x170   : > { %v818_v60 = vmul.f32 %v2925_v18, %v2925_v18  ;;  %v943_v61 = vadd.s32 %v942_v2, %v938_v51  ;;  %v2935_v47 = vsel %vm413_vm6, %v420_v33, %v422_v44  ;;  %v427_v23 = vsel %vm413_vm6, %v424_v15, %v426_v48 }
 0x171   : > { %v2941_v40 = vshrl.u32 %v2911_v6, 16  ;;  %v431_v27 = vand.u32 65535, %v427_v23  ;;  %v432_v56 = vshrl.u32 %v427_v23, 16  ;;  %vm570_vm7 = vcmp.lt.s32.totalorder %v3255_v25, 4 }
 0x172   : > { %v819_v4 = vmul.f32 -0.001358992, %v818_v60  ;;  %v826_v13 = vmul.f32 -0.00019511016, %v818_v60  ;;  %v944_v49 = vadd.s32 536870912, %v943_v61  ;;  %v454_v45 = vshrl.u32 %v2935_v47, 16 }
 0x173   : > { %v2947_v31 = vsel %vm570_vm7, %v2709_v36, 920167782  ;;  %v2949_v14 = vmul.u32 %v432_v56, %v429_v43  ;;  %v2952_v20 = vmul.u32 %v431_v27, %v2941_v40  ;;  %v2962_v52 = vsel %vm570_vm7, %v566_v0, 1326507024 }
 0x174   : > { %v820_v59 = vadd.f32 0.041655596, %v819_v4  ;;  %v827_v55 = vadd.f32 0.008332121, %v826_v13  ;;  %v2954_v22 = vshrl.u32 %v944_v49, 30  ;;  %v835_v21 = vand.u32 3, %v834_v50 }
 0x175   : > { %v433_v37 = vmul.u32 %v431_v27, %v429_v43  ;;  %v437_v32 = vshll.u32 %v2949_v14, 16  ;;  %v396_v54 = vshrl.u32 %v3240_v42, %v2286_v29  ;;  %v417_v46 = vsel %vm415_vm1, %v405_v11, 2102212464 }
 0x176   : > { %v821_v57 = vmul.f32 %v820_v59, %v818_v60  ;;  %v828_v28 = vmul.f32 %v827_v55, %v818_v60  ;;  %v946_v1 = vshll.u32 %v2954_v22, 30  ;;  %v439_v24 = vshll.u32 %v2952_v20, 16 }
 0x177   : > { %vm441_vm8 = vc.u32 %v433_v37, %v437_v32  ;;  %v443_v30 = vadd.s32 %v437_v32, %v433_v37  ;;  %v2973_v5 = vmul.u32 %v454_v45, %v429_v43  ;;  %vm837_vm9 = vcmp.eq.s32.totalorder %v835_v21, 0 }
 0x178   : > { %v822_v0 = vadd.f32 -0.4999988, %v821_v57  ;;  %v829_v17 = vadd.f32 -0.16666654, %v828_v28  ;;  %v2971_v53 = vsub.s32 %v943_v61, %v946_v1  ;;  %v436_v33 = vmul.u32 %v432_v56, %v2941_v40 }
 0x179   : > { %v442_v48 = vsel %vm441_vm8, 1, %v1966_v3  ;;  %vm445_vm10 = vc.u32 %v443_v30, %v439_v24  ;;  %v453_v29 = vand.u32 65535, %v2935_v47  ;;  %vm836_vm1 = vcmp.lt.s32.totalorder %v835_v21, 2 }
 0x17a   : > { %v823_v12 = vmul.f32 %v822_v0, %v818_v60  ;;  %v830_v11 = vmul.f32 %v829_v17, %v818_v60  ;;  %vm948_vm11 = vcmp.lt.s32.totalorder %v2971_v53, 0  ;;  %v949_v51 = vsub.s32 0, %v2971_v53  ;;  %v3256_v0 = vld [vmem:[#allocation2_spill] sm:$0xff] }
 0x17b   : > { %vm833_vm12 = vweird.f32 %v2069_v38  ;;  %vm847_vm13 = vcmp.lt.s32.totalorder %v2071_v41, 0  ;;  %v416_v44 = vsel %vm412_vm4, %v396_v54, %v2889_v9  ;;  %v418_v15 = vsel %vm414_vm5, %v2899_v19, %v417_v46 }
 0x17c   : > { %v444_v50 = vadd.s32 %v442_v48, %v436_v33  ;;  %v446_v2 = vsel %vm445_vm10, 1, %v1966_v3  ;;  %v824_v60 = vadd.f32 1.0, %v823_v12  ;;  %v831_v61 = vadd.f32 1.0, %v830_v11 }
 0x17d   : > { %v950_v47 = vsel %vm948_vm11, %v949_v51, %v2971_v53  ;;  %v459_v23 = vshll.u32 %v2973_v5, 16  ;;  %vm840_vm14 = vcmp.eq.s32.totalorder %v835_v21, 2  ;;  %v939_v27 = vadd.s32 %v2879_v35, %v2874_v39 }
 0x17e   : > { %v951_v56 = vclz %v950_v47  ;;  %v457_v9 = vmul.u32 %v453_v29, %v2941_v40  ;;  %v832_v4 = vmul.f32 %v831_v61, %v2925_v18  ;;  %v841_v13 = vxor.u32 2147483648, %v824_v60 }
 0x17f   : > { %v2997_v19 = vsel %vm413_vm6, %v416_v44, %v418_v15  ;;  %v455_v49 = vmul.u32 %v453_v29, %v429_v43  ;;  %v438_v55 = vshrl.u32 %v2949_v14, 16  ;;  %v440_v37 = vshrl.u32 %v2952_v20, 16 }
 0x180   : > { %v1867_v59 = vadd.s32 4294967294, %v951_v56  ;;  %v448_v32 = vadd.s32 %v446_v2, %v444_v50  ;;  %v838_v57 = vxor.u32 2147483648, %v832_v4  ;;  %v969_v39 = vsub.s32 4, %v2954_v22 }
 0x181   : > { %v458_v35 = vmul.u32 %v454_v45, %v2941_v40  ;;  %vm463_vm0 = vc.u32 %v455_v49, %v459_v23  ;;  %v461_v18 = vshll.u32 %v457_v9, 16  ;;  %v465_v26 = vadd.s32 %v459_v23, %v455_v49 }
 0x182   : > { %vm1868_vm15 = vcmp.lt.s32.totalorder %v1867_v59, 0  ;;  %v464_v28 = vsel %vm463_vm0, 1, %v1966_v3  ;;  %v839_v1 = vsel %vm837_vm9, %v824_v60, %v838_v57  ;;  %v842_v43 = vsel %vm840_vm14, %v841_v13, %v832_v4 }
 0x183   : > { %v954_v54 = vsel %vm1868_vm15, 0, %v1867_v59  ;;  %v466_v14 = vadd.s32 %v464_v28, %v458_v35  ;;  %v843_v20 = vsel %vm836_vm1, %v839_v1, %v842_v43  ;;  %v449_v30 = vadd.s32 %v448_v32, %v438_v55 }
 0x184   : > { %v955_v46 = vsub.s32 32, %v954_v54  ;;  %v959_v24 = vsub.s32 4294967266, %v954_v54  ;;  %v844_v40 = vsel %vm833_vm12, nan, %v843_v20  ;;  %v970_v45 = vsel %vm847_vm13, %v969_v39, %v2954_v22 }
 0x185   : > { %vm467_vm2 = vc.u32 %v465_v26, %v461_v18  ;;  %v535_v17 = vand.u32 2147483647, %v3256_v0  ;;  %1675 = vmatpush.msra.mxu0 %v844_v40  ;;  %1895 = vmatpush.msra.mxu2 %v844_v40  ;;  %v956_v33 = vshll.u32 %v2971_v53, %v954_v54  ;;  %v460_v12 = vshrl.u32 %v2973_v5, 16 }
 0x186   : > { %v957_v48 = vshrl.u32 %v939_v27, %v955_v46  ;;  %v960_v21 = vadd.s32 127, %v959_v24  ;;  %v468_v29 = vsel %vm467_vm2, 1, %v1966_v3  ;;  %v462_v11 = vshrl.u32 %v457_v9, 16 }
 0x187   : > { %v470_v38 = vadd.s32 %v468_v29, %v466_v14  ;;  %v473_v51 = vmul.u32 %v2911_v6, %v2997_v19  ;;  %v3018_v15 = vadd.s32 %v449_v30, %v440_v37  ;;  %v542_v50 = vand.u32 8388607, %v535_v17 }
 0x188   : > { %v958_v44 = vor.u32 %v957_v48, %v956_v33  ;;  %v961_v22 = vshll.u32 %v960_v21, 23  ;;  %v3022_v2 = vadd.s32 %v465_v26, %v461_v18  ;;  %v552_v60 = vshll.u32 %v3240_v42, %v2276_v34 }
 0x189   : > { %v471_v53 = vadd.s32 %v470_v38, %v460_v12  ;;  %v553_v5 = vshrl.u32 %v3239_v10, %v2546_v63  ;;  %v543_v47 = vor.u32 8388608, %v542_v50  ;;  %v555_v6 = vshll.u32 %v3239_v10, %v2276_v34 }
 0x18a   : > { %v962_v61 = vor.u32 4788187, %v961_v22  ;;  %v556_v23 = vshrl.u32 %v3241_v58, %v2546_v63  ;;  %v558_v9 = vshll.u32 %v3241_v58, %v2276_v34  ;;  %v559_v4 = vshrl.u32 %v3242_v7, %v2546_v63 }
 0x18b   : > { %v472_v27 = vadd.s32 %v471_v53, %v462_v11  ;;  %v3032_v56 = vor.u32 %v553_v5, %v552_v60  ;;  %v965_v19 = vcvt.s32.f32 %v958_v44  ;;  %vm475_vm3 = vc.u32 %v3018_v15, %v3022_v2 }
 0x18c   : > { %v963_v13 = vand.u32 2147483647, %v962_v61  ;;  %v3040_v49 = vor.u32 %v556_v23, %v555_v6  ;;  %v560_v59 = vor.u32 %v559_v4, %v558_v9  ;;  %vm567_vm4 = vcmp.lt.s32.totalorder %v3255_v25, 1 }
 0x18d   : > { %v476_v10 = vadd.s32 1, %v472_v27  ;;  %vm569_vm5 = vcmp.lt.s32.totalorder %v3255_v25, 3  ;;  %v3052_v7 = vshll.u32 %v543_v47, 8  ;;  %vm3056_vm6 = vcmp.le.f32.partialorder %v845_v8, 0.7853982 }
 0x18e   : > { %v966_v55 = vmul.f32 %v965_v19, %v963_v13  ;;  %v575_v34 = vsel %vm567_vm4, %v3032_v56, %v3040_v49  ;;  %v581_v58 = vsel %vm569_vm5, %v2709_v36, %v2962_v52  ;;  %v577_v57 = vsel %vm569_vm5, %v560_v59, %v2947_v31 }
 0x18f   : > { %v477_v32 = vsel %vm475_vm3, %v476_v10, %v472_v27  ;;  %v579_v39 = vsel %vm567_vm4, %v3040_v49, %v560_v59  ;;  %v972_v36 = vsel %vm3056_vm6, 0, %v970_v45  ;;  %vm568_vm8 = vcmp.lt.s32.totalorder %v3255_v25, 2 }
 0x190   : > { %v967_v35 = vxor.u32 2147483648, %v966_v55  ;;  %v478_v52 = vadd.s32 %v477_v32, %v473_v51  ;;  %v3071_v8 = vsel %vm568_vm8, %v575_v34, %v577_v57  ;;  %v582_v18 = vsel %vm568_vm8, %v579_v39, %v581_v58 }
 0x191   : > { %v584_v31 = vand.u32 65535, %v3052_v7  ;;  %v586_v1 = vand.u32 65535, %v582_v18  ;;  %v587_v43 = vshrl.u32 %v582_v18, 16  ;;  %v989_v14 = vadd.s32 3, %v972_v36 }
 0x192   : > { %v968_v28 = vsel %vm847_vm13, %v967_v35, %v966_v55  ;;  %v479_v26 = vadd.s32 536870912, %v478_v52  ;;  %v585_v20 = vshrl.u32 %v3052_v7, 16  ;;  %v609_v45 = vshrl.u32 %v3071_v8, 16 }
 0x193   : > { %v971_v54 = vsel %vm3056_vm6, %v2071_v41, %v968_v28  ;;  %v589_v30 = vmul.u32 %v587_v43, %v584_v31  ;;  %v3088_v29 = vand.u32 3, %v989_v14  ;;  %v588_v12 = vmul.u32 %v586_v1, %v584_v31 }
 0x194   : > { %v973_v46 = vmul.f32 %v971_v54, %v971_v54  ;;  %v3082_v24 = vshrl.u32 %v479_v26, 30  ;;  %v3084_v40 = vmul.u32 %v586_v1, %v585_v20  ;;  %v608_v38 = vand.u32 65535, %v3071_v8 }
 0x195   : > { %v592_v11 = vshll.u32 %v589_v30, 16  ;;  %v591_v50 = vmul.u32 %v587_v43, %v585_v20  ;;  %v3094_v5 = vmul.u32 %v609_v45, %v584_v31  ;;  %v551_v23 = vshrl.u32 %v3240_v42, %v2546_v63 }
 0x196   : > { %v974_v33 = vmul.f32 -0.001358992, %v973_v46  ;;  %v981_v48 = vmul.f32 -0.00019511016, %v973_v46  ;;  %v481_v21 = vshll.u32 %v3082_v24, 30  ;;  %v594_v53 = vshll.u32 %v3084_v40, 16 }
 0x197   : > { %vm596_vm9 = vc.u32 %v588_v12, %v592_v11  ;;  %v598_v60 = vadd.s32 %v592_v11, %v588_v12  ;;  %vm992_vm11 = vcmp.eq.s32.totalorder %v3088_v29, 0  ;;  %vm995_vm12 = vcmp.eq.s32.totalorder %v3088_v29, 2 }
 0x198   : > { %v975_v51 = vadd.f32 0.041655596, %v974_v33  ;;  %v982_v44 = vadd.f32 0.008332121, %v981_v48  ;;  %v3091_v22 = vsub.s32 %v478_v52, %v481_v21  ;;  %v597_v27 = vsel %vm596_vm9, 1, %v1966_v3 }
 0x199   : > { %vm600_vm1 = vc.u32 %v598_v60, %v594_v53  ;;  %v599_v19 = vadd.s32 %v597_v27, %v591_v50  ;;  %v572_v55 = vsel %vm570_vm7, %v560_v59, 2102212464  ;;  %v614_v42 = vshll.u32 %v3094_v5, 16 }
 0x19a   : > { %v976_v61 = vmul.f32 %v975_v51, %v973_v46  ;;  %v983_v47 = vmul.f32 %v982_v44, %v973_v46  ;;  %vm483_vm10 = vcmp.lt.s32.totalorder %v3091_v22, 0  ;;  %v484_v6 = vsub.s32 0, %v3091_v22 }
 0x19b   : > { %v601_v34 = vsel %vm600_vm1, 1, %v1966_v3  ;;  %vm991_vm13 = vcmp.lt.s32.totalorder %v3088_v29, 2  ;;  %v474_v37 = vadd.s32 %v3022_v2, %v3018_v15  ;;  %v612_v32 = vmul.u32 %v608_v38, %v585_v20 }
 0x19c   : > { %v977_v9 = vadd.f32 -0.4999988, %v976_v61  ;;  %v984_v4 = vadd.f32 -0.16666654, %v983_v47  ;;  %v485_v13 = vsel %vm483_vm10, %v484_v6, %v3091_v22  ;;  %vm988_vm14 = vweird.f32 %v2071_v41 }
 0x19d   : > { %v486_v10 = vclz %v485_v13  ;;  %v571_v39 = vsel %vm567_vm4, %v551_v23, %v3032_v56  ;;  %v603_v59 = vadd.s32 %v601_v34, %v599_v19  ;;  %v610_v35 = vmul.u32 %v608_v38, %v584_v31 }
 0x19e   : > { %v978_v63 = vmul.f32 %v977_v9, %v973_v46  ;;  %v985_v58 = vmul.f32 %v984_v4, %v973_v46  ;;  %v573_v8 = vsel %vm569_vm5, %v3040_v49, %v572_v55  ;;  %v593_v18 = vshrl.u32 %v589_v30, 16 }
 0x19f   : > { %v1858_v57 = vadd.s32 4294967294, %v486_v10  ;;  %v613_v28 = vmul.u32 %v609_v45, %v585_v20  ;;  %vm618_vm0 = vc.u32 %v610_v35, %v614_v42  ;;  %v620_v15 = vadd.s32 %v614_v42, %v610_v35 }
 0x1a0   : > { %v979_v36 = vadd.f32 1.0, %v978_v63  ;;  %v986_v52 = vadd.f32 1.0, %v985_v58  ;;  %v616_v43 = vshll.u32 %v612_v32, 16  ;;  %v604_v56 = vadd.s32 %v603_v59, %v593_v18 }
 0x1a1   : > { %vm1859_vm7 = vcmp.lt.s32.totalorder %v1858_v57, 0  ;;  %v619_v31 = vsel %vm618_vm0, 1, %v1966_v3  ;;  %v595_v48 = vshrl.u32 %v3084_v40, 16  ;;  %v615_v11 = vshrl.u32 %v3094_v5, 16 }
 0x1a2   : > { %v987_v2 = vmul.f32 %v986_v52, %v971_v54  ;;  %v996_v26 = vxor.u32 2147483648, %v979_v36  ;;  %v489_v1 = vsel %vm1859_vm7, 0, %v1858_v57  ;;  %v621_v21 = vadd.s32 %v619_v31, %v613_v28 }
 0x1a3   : > { %v490_v14 = vsub.s32 32, %v489_v1  ;;  %v494_v46 = vsub.s32 4294967266, %v489_v1  ;;  %vm622_vm15 = vc.u32 %v620_v15, %v616_v43  ;;  %v491_v49 = vshll.u32 %v3091_v22, %v489_v1 }
 0x1a4   : > { %v993_v33 = vxor.u32 2147483648, %v987_v2  ;;  %v623_v45 = vsel %vm622_vm15, 1, %v1966_v3  ;;  %v997_v12 = vsel %vm995_vm12, %v996_v26, %v987_v2  ;;  %v605_v50 = vadd.s32 %v604_v56, %v595_v48 }
 0x1a5   : > { %v492_v30 = vshrl.u32 %v474_v37, %v490_v14  ;;  %v495_v20 = vadd.s32 127, %v494_v46  ;;  %v625_v38 = vadd.s32 %v623_v45, %v621_v21  ;;  %v617_v53 = vshrl.u32 %v612_v32, 16 }
 0x1a6   : > { %v994_v54 = vsel %vm992_vm11, %v979_v36, %v993_v33  ;;  %v624_v61 = vadd.s32 %v620_v15, %v616_v43  ;;  %v574_v47 = vsel %vm568_vm8, %v571_v39, %v573_v8  ;;  %vm382_vm3 = vcmp.lt.s32.totalorder %v2085_v16, 0 }
 0x1a7   : > { %v998_v40 = vsel %vm991_vm13, %v994_v54, %v997_v12  ;;  %v493_v51 = vor.u32 %v492_v30, %v491_v49  ;;  %v496_v44 = vshll.u32 %v495_v20, 23  ;;  %v626_v3 = vadd.s32 %v625_v38, %v615_v11 }
 0x1a8   : > { %v999_v22 = vsel %vm988_vm14, nan, %v998_v40  ;;  %vm630_vm2 = vc.u32 %v605_v50, %v624_v61  ;;  %v628_v9 = vmul.u32 %v3052_v7, %v574_v47  ;;  %vm3137_vm4 = vcmp.le.f32.partialorder %v380_v62, 0.7853982 }
 0x1a9   : > { %1704 = vmatpush.msra.mxu1 %v999_v22  ;;  %1899 = vmatpush.msra.mxu3 %v999_v22  ;;  %v497_v60 = vor.u32 4788187, %v496_v44  ;;  %v627_v5 = vadd.s32 %v626_v3, %v617_v53  ;;  %v500_v23 = vcvt.s32.f32 %v493_v51  ;;  %v504_v10 = vsub.s32 4, %v3082_v24  ;;  %v1622_v22 = vld [vmem:[%s259_s30 + $0x10] sm:$0xff] }
 0x1aa   : > { %v629_v48 = vadd.s32 %v624_v61, %v605_v50  ;;  %vm523_vm1 = vweird.f32 %v2085_v16  ;;  %v1620_v50 = vld [vmem:[%s259_s30] sm:$0xff]  ;;  %vm1648_vm11 = vcmask 261120   ;;  %vm537_vm12 = vcmp.lt.s32.totalorder %v3256_v0, 0 }
 0x1ab   : > { %v498_v6 = vand.u32 2147483647, %v497_v60  ;;  %v631_v29 = vadd.s32 1, %v627_v5  ;;  %v505_v63 = vsel %vm382_vm3, %v504_v10, %v3082_v24  ;;  %vm3167_vm13 = vcmp.le.f32.partialorder %v535_v17, 0.7853982 }
 0x1ac   : > { %v507_v59 = vsel %vm3137_vm4, 0, %v505_v63  ;;  %vm678_vm15 = vweird.f32 %v3256_v0 }
 0x1ad   : > { %v501_v27 = vmul.f32 %v500_v23, %v498_v6  ;;  %v632_v4 = vsel %vm630_vm2, %v631_v29, %v627_v5  ;;  %v524_v28 = vadd.s32 3, %v507_v59  ;;  %v1621_v5 = vld [vmem:[%s259_s30 + $0x8] sm:$0xff] }
 0x1ae   : > { %v633_v13 = vadd.s32 %v632_v4, %v628_v9 }
 0x1af   : > { %v502_v41 = vxor.u32 2147483648, %v501_v27  ;;  %v525_v46 = vand.u32 3, %v524_v28 }
 0x1b0   : > { %v634_v55 = vadd.s32 536870912, %v633_v13 }
 0x1b1   : > { %v503_v25 = vsel %vm382_vm3, %v502_v41, %v501_v27  ;;  %vm527_vm8 = vcmp.eq.s32.totalorder %v525_v46, 0  ;;  %vm530_vm9 = vcmp.eq.s32.totalorder %v525_v46, 2  ;;  %vm526_vm10 = vcmp.lt.s32.totalorder %v525_v46, 2 }
 0x1b2   : > { %v506_v7 = vsel %vm3137_vm4, %v2085_v16, %v503_v25  ;;  %v3145_v42 = vshrl.u32 %v634_v55, 30  ;;  %v1623_v16 = vld [vmem:[%s259_s30 + $0x18] sm:$0xff] }
 0x1b3   : > { %v508_v34 = vmul.f32 %v506_v7, %v506_v7 }
 0x1b4   : > { %v636_v62 = vshll.u32 %v3145_v42, 30  ;;  %v659_v29 = vsub.s32 4, %v3145_v42 }
 0x1b5   : > { %v509_v58 = vmul.f32 -0.001358992, %v508_v34  ;;  %v516_v37 = vmul.f32 -0.00019511016, %v508_v34 }
 0x1b6   : > { %v637_v39 = vsub.s32 %v633_v13, %v636_v62  ;;  %v660_v13 = vsel %vm537_vm12, %v659_v29, %v3145_v42 }
 0x1b7   : > { %v510_v32 = vadd.f32 0.041655596, %v509_v58  ;;  %v517_v57 = vadd.f32 0.008332121, %v516_v37  ;;  %v662_v25 = vsel %vm3167_vm13, 0, %v660_v13 }
 0x1b8   : > { %vm638_vm5 = vcmp.lt.s32.totalorder %v637_v39, 0  ;;  %v639_v52 = vsub.s32 0, %v637_v39  ;;  %v679_v63 = vadd.s32 3, %v662_v25 }
 0x1b9   : > { %v511_v35 = vmul.f32 %v510_v32, %v508_v34  ;;  %v518_v36 = vmul.f32 %v517_v57, %v508_v34 }
 0x1ba   : > { %v640_v24 = vsel %vm638_vm5, %v639_v52, %v637_v39  ;;  %v680_v57 = vand.u32 3, %v679_v63 }
 0x1bb   : > { %v512_v8 = vadd.f32 -0.4999988, %v511_v35  ;;  %v519_v18 = vadd.f32 -0.16666654, %v518_v36  ;;  %v641_v15 = vclz %v640_v24 }
 0x1bc   : > { %vm682_vm14 = vcmp.eq.s32.totalorder %v680_v57, 0  ;;  %vm685_vm7 = vcmp.eq.s32.totalorder %v680_v57, 2  ;;  %vm681_vm0 = vcmp.lt.s32.totalorder %v680_v57, 2 }
 0x1bd   : > { %v513_v2 = vmul.f32 %v512_v8, %v508_v34  ;;  %v520_v26 = vmul.f32 %v519_v18, %v508_v34  ;;  %v1861_v1 = vadd.s32 4294967294, %v641_v15  ;;  %v1631_v18 = vpop.permute.xlu1 %1630 }
 0x1bf   : > { %v514_v43 = vadd.f32 1.0, %v513_v2  ;;  %v521_v14 = vadd.f32 1.0, %v520_v26  ;;  %vm1862_vm6 = vcmp.lt.s32.totalorder %v1861_v1, 0  ;;  %v1636_v2 = vpop.permute.xlu2 %1635 }
 0x1c0   : > { %v644_v33 = vsel %vm1862_vm6, 0, %v1861_v1 }
 0x1c1   : > { %v522_v56 = vmul.f32 %v521_v14, %v506_v7  ;;  %v531_v31 = vxor.u32 2147483648, %v514_v43  ;;  %v645_v21 = vsub.s32 32, %v644_v33  ;;  %v649_v49 = vsub.s32 4294967266, %v644_v33 }
 0x1c2   : > { %v646_v20 = vshll.u32 %v637_v39, %v644_v33 }
 0x1c3   : > { %v528_v30 = vxor.u32 2147483648, %v522_v56  ;;  %v647_v45 = vshrl.u32 %v629_v48, %v645_v21  ;;  %v650_v54 = vadd.s32 127, %v649_v49  ;;  %v532_v11 = vsel %vm530_vm9, %v531_v31, %v522_v56 }
 0x1c5   : > { %v529_v12 = vsel %vm527_vm8, %v514_v43, %v528_v30  ;;  %v648_v40 = vor.u32 %v647_v45, %v646_v20  ;;  %v651_v51 = vshll.u32 %v650_v54, 23  ;;  %v1641_v26 = vpop.permute.xlu1 %1640 }
 0x1c6   : > { %v533_v38 = vsel %vm526_vm10, %v529_v12, %v532_v11 }
 0x1c7   : > { %v534_v44 = vsel %vm523_vm1, nan, %v533_v38  ;;  %v652_v53 = vor.u32 4788187, %v651_v51  ;;  %v655_v60 = vcvt.s32.f32 %v648_v40  ;;  %v1646_v12 = vpop.permute.xlu2 %1645 }
 0x1c8   : > { %1676 = vmatpush.msra.mxu0 %v534_v44  ;;  %1896 = vmatpush.msra.mxu2 %v534_v44 }
 0x1c9   : > { %1881 = vmatmul.msk.f32.vlgmr.msra.gmra.mxu0 %vm1648_vm11, %v1620_v50  ;;  %1883 = vmatmul.msk.f32.vlgmr.msra.gmra.mxu2 %vm1648_vm11, %v1622_v22  ;;  %v653_v3 = vand.u32 2147483647, %v652_v53 }
 0x1cb   : > { %v656_v61 = vmul.f32 %v655_v60, %v653_v3 }
 0x1cd   : > { %v657_v47 = vxor.u32 2147483648, %v656_v61 }
 0x1cf   : > { %v658_v23 = vsel %vm537_vm12, %v657_v47, %v656_v61 }
 0x1d0   : > { %v661_v27 = vsel %vm3167_vm13, %v3256_v0, %v658_v23 }
 0x1d1   : > { %1882 = vmatmul.msk.f32.gmra.mxu0 %vm1648_vm11, %v1621_v5  ;;  %1884 = vmatmul.msk.f32.gmra.mxu2 %vm1648_vm11, %v1623_v16  ;;  %v663_v9 = vmul.f32 %v661_v27, %v661_v27 }
 0x1d3   : > { %v664_v4 = vmul.f32 -0.001358992, %v663_v9  ;;  %v671_v41 = vmul.f32 -0.00019511016, %v663_v9 }
 0x1d5   : > { %v665_v17 = vadd.f32 0.041655596, %v664_v4  ;;  %v672_v19 = vadd.f32 0.008332121, %v671_v41 }
 0x1d7   : > { %v666_v10 = vmul.f32 %v665_v17, %v663_v9  ;;  %v673_v55 = vmul.f32 %v672_v19, %v663_v9 }
 0x1d9   : > { %v667_v7 = vadd.f32 -0.4999988, %v666_v10  ;;  %v674_v34 = vadd.f32 -0.16666654, %v673_v55 }
 0x1db   : > { %v668_v58 = vmul.f32 %v667_v7, %v663_v9  ;;  %v675_v37 = vmul.f32 %v674_v34, %v663_v9 }
 0x1dd   : > { %v669_v62 = vadd.f32 1.0, %v668_v58  ;;  %v676_v32 = vadd.f32 1.0, %v675_v37 }
 0x1df   : > { %v677_v39 = vmul.f32 %v676_v32, %v661_v27  ;;  %v686_v59 = vxor.u32 2147483648, %v669_v62 }
 0x1e1   : > { %v683_v35 = vxor.u32 2147483648, %v677_v39  ;;  %v687_v36 = vsel %vm685_vm7, %v686_v59, %v677_v39 }
 0x1e3   : > { %v684_v42 = vsel %vm682_vm14, %v669_v62, %v683_v35 }
 0x1e4   : > { %v688_v52 = vsel %vm681_vm0, %v684_v42, %v687_v36 }
 0x1e5   : > { %v689_v8 = vsel %vm678_vm15, nan, %v688_v52 }
 0x1e6   : > { %1705 = vmatpush.msra.mxu1 %v689_v8  ;;  %1900 = vmatpush.msra.mxu3 %v689_v8 }
 0x1e7   : > { %1885 = vmatmul.msk.f32.vlgmr.msra.gmra.mxu1 %vm1648_vm11, %v1620_v50  ;;  %1887 = vmatmul.msk.f32.vlgmr.msra.gmra.mxu3 %vm1648_vm11, %v1622_v22 }
 0x1ef   : > { %1886 = vmatmul.msk.f32.gmra.mxu1 %vm1648_vm11, %v1621_v5  ;;  %1888 = vmatmul.msk.f32.gmra.mxu3 %vm1648_vm11, %v1623_v16 }
 0x246   : > { %v1678_v28 = vpop.f32.mrf.mxu0 }
 0x247   : > { %v1679_v24 = vadd.f32 %v1678_v28, %v1631_v18 }
 0x249   : > { %v1727_v0 = vmul.f32 0.2, %v1679_v24  ;;  %vm1719_vm2 = vcmp.ge.f32.partialorder %v1679_v24, 0.0 }
 0x24b   : > { %v1735_v56 = vsel %vm1719_vm2, %v1679_v24, %v1727_v0 }
 0x24c   : > { %v1684_v15 = vpop.f32.mrf.mxu2 }
 0x24d   : > { %v1685_v43 = vadd.f32 %v1684_v15, %v1641_v26 }
 0x24e   : > { %v1681_v14 = vpop.f32.mrf.mxu0 }
 0x24f   : > { %v1682_v33 = vadd.f32 %v1681_v14, %v1636_v2  ;;  %v1731_v48 = vmul.f32 0.2, %v1685_v43  ;;  %vm1723_vm4 = vcmp.ge.f32.partialorder %v1685_v43, 0.0 }
 0x251   : > { %v1729_v54 = vmul.f32 0.2, %v1682_v33  ;;  %v1739_v11 = vsel %vm1723_vm4, %v1685_v43, %v1731_v48  ;;  %vm1721_vm5 = vcmp.ge.f32.partialorder %v1682_v33, 0.0 }
 0x253   : > { %v1737_v22 = vsel %vm1721_vm5, %v1682_v33, %v1729_v54 }
 0x254   : > { %v1687_v20 = vpop.f32.mrf.mxu2 }
 0x255   : > { %v1688_v44 = vadd.f32 %v1687_v20, %v1646_v12 }
 0x257   : > { %v1733_v61 = vmul.f32 0.2, %v1688_v44  ;;  %vm1725_vm9 = vcmp.ge.f32.partialorder %v1688_v44, 0.0 }
 0x259   : > { %v1741_v6 = vsel %vm1725_vm9, %v1688_v44, %v1733_v61 }
 0x264   : > { %v1707_v1 = vpop.f32.mrf.mxu1 }
 0x265   : > { %v1708_v46 = vadd.f32 %v1707_v1, %v1631_v18 }
 0x267   : > { %vm1720_vm3 = vcmp.ge.f32.partialorder %v1708_v46, 0.0  ;;  %v1728_v31 = vmul.f32 0.2, %v1708_v46 }
 0x269   : > { %v1736_v21 = vsel %vm1720_vm3, %v1708_v46, %v1728_v31 }
 0x26a   : > { %v1743_v49 = vpack.c.bf16 %v1736_v21, %v1735_v56  ;;  %v1713_v30 = vpop.f32.mrf.mxu3 }
 0x26b   : > { %v1714_v45 = vadd.f32 %v1713_v30, %v1641_v26 }
 0x26c   : > { %1747 = vst [vmem:[%s3190_s8] sm:$0xff] %v1743_v49  ;;  %v1710_v38 = vpop.f32.mrf.mxu1 }
 0x26d   : > { %vm1724_vm6 = vcmp.ge.f32.partialorder %v1714_v45, 0.0  ;;  %v1732_v40 = vmul.f32 0.2, %v1714_v45  ;;  %v1711_v51 = vadd.f32 %v1710_v38, %v1636_v2 }
 0x26f   : > { %v1740_v50 = vsel %vm1724_vm6, %v1714_v45, %v1732_v40  ;;  %vm1722_vm8 = vcmp.ge.f32.partialorder %v1711_v51, 0.0  ;;  %v1730_v53 = vmul.f32 0.2, %v1711_v51 }
 0x270   : > { %v1745_v3 = vpack.c.bf16 %v1740_v50, %v1739_v11 }
 0x271   : > { %v1738_v60 = vsel %vm1722_vm8, %v1711_v51, %v1730_v53 }
 0x272   : > { %1749 = vst [vmem:[%s3190_s8 + $0x10] sm:$0xff] %v1745_v3  ;;  %v1744_v47 = vpack.c.bf16 %v1738_v60, %v1737_v22  ;;  %v1716_v5 = vpop.f32.mrf.mxu3 }
 0x273   : > { %v1717_v16 = vadd.f32 %v1716_v5, %v1646_v12 }
 0x274   : > { %1748 = vst [vmem:[%s3190_s8 + $0x8] sm:$0xff] %v1744_v47 }
 0x275   : > { %vm1726_vm10 = vcmp.ge.f32.partialorder %v1717_v16, 0.0  ;;  %v1734_v23 = vmul.f32 0.2, %v1717_v16 }
 0x277   : > { %v1742_v29 = vsel %vm1726_vm10, %v1717_v16, %v1734_v23 }
 0x278   : > { %v1746_v27 = vpack.c.bf16 %v1742_v29, %v1741_v6 }
 0x27a   : > { %1750 = vst [vmem:[%s3190_s8 + $0x18] sm:$0xff] %v1746_v27 }
 0x27b PF: > { %s15_s20 = sadd.s32 1, %s1964_s20   ;;  %s3263_s18 = smov %s1960_s19 }
 0x27c   : > { %p12_p5 = scmp.ge.s32.totalorder %s15_s20, 4   ;;  %s3264_s19 = smov %s3266_s21 }
 0x27e   :  { %14 = sbr.rel (!%p12_p5) target bundleno = 2 (0x2), region = 73 }

// kernel: inrgan_forward.6
= control target key start
LH: loop header
LB: loop body
LE: loop exit
PB: predicated region body
PF: predicated region fallthrough
CT: control target
= control target key end

     0   :  { %s3120_s0 = inlined_call_operand.vmem [shape: bf16[2,32,1024], index: 0, kind: input, shape index: {}]   ;;  %s3121_s1 = inlined_call_operand.vmem [shape: f32[2,1024], index: 1, kind: input, shape index: {}]   ;;  %s3122_s2 = inlined_call_operand.vmem [shape: f32[2,3,1024], index: 2, kind: input, shape index: {}]   ;;  %s3123_s3 = inlined_call_operand.vmem [shape: bf16[2,32,32], index: 3, kind: input, shape index: {}]   ;;  %s3124_s4 = inlined_call_operand.vmem [shape: f32[2,32,2], index: 4, kind: input, shape index: {}]   ;;  %s3125_s5 = inlined_call_operand.vmem [shape: f32[32,1], index: 5, kind: input, shape index: {}]   ;;  %s3126_s6 = inlined_call_operand.vmem [shape: bf16[2,32,32], index: 6, kind: input, shape index: {}]   ;;  %s3127_s7 = inlined_call_operand.vmem [shape: f32[32,1], index: 7, kind: input, shape index: {}]   ;;  %s3128_s8 = inlined_call_operand.vmem [shape: bf16[2,3,32], index: 8, kind: input, shape index: {}]   ;;  %s3129_s9 = inlined_call_operand.vmem [shape: f32[3,1], index: 9, kind: input, shape index: {}]   ;;  %s3130_s10 = inlined_call_operand.vmem [shape: bf16[2,32,4096], index: 10, kind: output, shape index: {0}]   ;;  %s3131_s11 = inlined_call_operand.vmem [shape: f32[2,3,4096], index: 11, kind: output, shape index: {1}]  }
   0x1   :  { %3136 = sst [smem:[#allocation9_spill]] %s3120_s0 }
   0x2   :  { %s2379_s17 = smov 0   ;;  %s2381_s18 = smov 0  }
   0x3   :  { %s2383_s19 = smov 0   ;;  %s2385_s20 = smov 0  }
   0x4   :  { %s2387_s21 = smov 0   ;;  %s2389_s22 = smov 0  }
   0x5   :  { %s2391_s23 = smov 0  }
   0x6 LB: > { %s34_s24 = sadd.s32 1, %s2307_s21  ;;  %s41_s25 = sadd.s32 1, %s2311_s22  ;;  %s2315_s23 = sphi %s2391_s23, %s22_s23   ;;  %s2311_s22 = sphi %s2389_s22, %s3159_s22   ;;  %s2307_s21 = sphi %s2387_s21, %s3158_s21   ;;  %s2303_s20 = sphi %s2385_s20, %s3157_s20   ;;  %s2299_s19 = sphi %s2383_s19, %s3156_s19   ;;  %s2295_s18 = sphi %s2381_s18, %s3155_s18   ;;  %s2291_s17 = sphi %s2379_s17, %s3154_s17  }
   0x7   : > { %p35_p0 = scmp.ge.s32.totalorder %s34_s24, 4  ;;  %s2026_s26 = sadd.s32 4294967295, %s2315_s23  }
   0x8   : > { %p306_p1 = scmp.ne.s32.totalorder %s2295_s18, %s2291_s17  ;;  %p307_p2 = scmp.eq.s32.totalorder %s2026_s26, 7 }
   0x9   : > { %s3161_s24 = smov (%p35_p0, %s34_s24), 0  ;;  %s3163_s25 = smov (!%p35_p0, %s41_s25), %s2311_s22 }
   0xa   : > { %s292_s27 = ssub.s32 %s2307_s21, %s3161_s24  ;;  %p43_p3 = scmp.ge.s32.totalorder %s3163_s25, 2 }
   0xb   : > { %p2030_p4 = scmp.ge.s32.totalorder %s2315_s23, 1  ;;  %p2425_p5 = por %p307_p2, %p306_p1 }
   0xc   : > { %p430_p6 = scmp.lt.s32.totalorder %s2315_s23, 9  ;;  %s3165_s25 = smov (%p43_p3, %s3163_s25), 0 }
   0xd   : > { %3138 = sst [smem:[#allocation3_spill]] %s3165_s25  ;;  %s291_s29 = ssub.s32 %s2311_s22, %s3165_s25 }
   0xe   : > { %p431_p7 = pnand %p2030_p4, %p430_p6  ;;  %s293_s30 = sor.u32 %s292_s27, %s291_s29 }
   0xf   : > { %s296_s12 = sadd.s32 1, %s2295_s18  ;;  %p294_p8 = scmp.eq.s32.totalorder %s293_s30, 0 }
  0x10   : > { %434 = sbr.rel (%p431_p7) target bundleno = 561 (0x231), region = 60 }
  0x11   : > { %s2436_s13 = scalar_select %p294_p8, %s2295_s18, %s296_s12  }
  0x15   : > { %p512_p9 = scmp.lt.s32.totalorder %s2303_s20, 1  ;;  %v2317_v0 = vmov 0   ;;  %v2318_v1 = vmov 1   ;;  %s3139_s0 = sld [smem:[#allocation9_spill]]  ;;  %vm763_vm0 = vcmask 261120   ;;  %v1028_v59 = vld [vmem:[%s3125_s5 + $0x10] sm:$0xff] }
  0x16   : > { %2255 = vset.pattern.permute.xlu0 %v2317_v0  ;;  %2256 = vset.pattern.permute.xlu1 %v2318_v1  ;;  %v1027_v61 = vld [vmem:[%s3125_s5 + $0x8] sm:$0xff]  ;;  %v1029_v62 = vld [vmem:[%s3125_s5 + $0x18] sm:$0xff]  ;;  %v1026_v63 = vld [vmem:[%s3125_s5] sm:$0xff]  ;;  %s496_s12 = sand.u32 1, %s2291_s17  }
  0x17   : > { %s2442_s14 = scalar_select %p512_p9, %s2303_s20, 1  ;;  %2257 = vset.pattern.permute.xlu2 %v2317_v0 }
  0x19   : > { %s2172_s15 = sshll.u32 %s2442_s14, 7  ;;  %s2447_s16 = sshll.u32 %s2442_s14, 5 }
  0x1a   : > { %s2458_s25 = scalar_lea.vmem %s3124_s4, %s2447_s16  ;;  %s529_s27 = scalar_lea.vmem %s3122_s2, %s2447_s16 }
  0x1b   : > { %s2452_s29 = scalar_lea.vmem %s3139_s0, %s2172_s15  ;;  %v589_v13 = vld [vmem:[%s2458_s25 + $0x10] sm:$0xff]  ;;  %v583_v15 = vld [vmem:[%s529_s27] sm:$0x77]  ;;  %v584_v16 = vld [vmem:[%s529_s27 + $0x8] sm:$0x77]  ;;  %s3133_s30 = sshll.u32 %s2442_s14, 4 }
  0x1c   : > { %v2088_v2 = vld [vmem:[%s2452_s29 + $0x40] sm:$0xf]  ;;  %v2185_v4 = vld [vmem:[%s2452_s29 + $0x44] sm:$0xf]  ;;  %v2096_v7 = vld [vmem:[%s2452_s29 + $0x48] sm:$0xf]  ;;  %607 = vperm.xlu0 %2255, %v589_v13   ;;  %931 = vperm.xlu1 %2256, %v589_v13   ;;  %s2489_s15 = scalar_lea.vmem %s3123_s3, %s3133_s30 }
  0x1d   : > { %v2189_v3 = vld [vmem:[%s2452_s29 + $0x5c] sm:$0xf0]  ;;  %v2090_v6 = vld [vmem:[%s2452_s29 + $0x60] sm:$0xf0]  ;;  %v2190_v8 = vld [vmem:[%s2452_s29 + $0x64] sm:$0xf0] }
  0x1e   : > { %v2089_v5 = vor.u32 %v2189_v3, %v2088_v2  ;;  %v2093_v9 = vor.u32 %v2185_v4, %v2090_v6  ;;  %v2097_v10 = vor.u32 %v2190_v8, %v2096_v7  ;;  %v2186_v11 = vld [vmem:[%s2452_s29 + $0x4c] sm:$0xf]  ;;  %v585_v17 = vld [vmem:[%s529_s27 + $0x10] sm:$0x77]  ;;  %v586_v18 = vld [vmem:[%s529_s27 + $0x18] sm:$0x77] }
  0x1f   : > { %v2098_v12 = vld [vmem:[%s2452_s29 + $0x68] sm:$0xf0]  ;;  %1716 = vst [vmem:[#allocation1] ss:$2 sm:$0xff] %v583_v15  ;;  %v2056_v19 = vld [vmem:[%s2452_s29] sm:$0xf] }
  0x20   : > { %776 = vmatpush.bf16.msra.mxu0 %v2089_v5  ;;  %v2101_v14 = vor.u32 %v2186_v11, %v2098_v12  ;;  %795 = vmatpush.bf16.msra.mxu1 %v2093_v9  ;;  %1718 = vst [vmem:[#allocation1 + $0x10] ss:$2 sm:$0xff] %v584_v16  ;;  %v2181_v20 = vld [vmem:[%s2452_s29 + $0x1c] sm:$0xf0]  ;;  %v2177_v21 = vld [vmem:[%s2452_s29 + $0x4] sm:$0xf] }
  0x21   : > { %814 = vmatpush.bf16.msra.mxu2 %v2097_v10  ;;  %1720 = vst [vmem:[#allocation1 + $0x20] ss:$2 sm:$0xff] %v585_v17  ;;  %v2057_v22 = vor.u32 %v2181_v20, %v2056_v19  ;;  %v2058_v23 = vld [vmem:[%s2452_s29 + $0x20] sm:$0xf0]  ;;  %v2064_v24 = vld [vmem:[%s2452_s29 + $0x8] sm:$0xf] }
  0x22   : > { %833 = vmatpush.bf16.msra.mxu3 %v2101_v14  ;;  %1722 = vst [vmem:[#allocation1 + $0x30] ss:$2 sm:$0xff] %v586_v18  ;;  %v2061_v25 = vor.u32 %v2177_v21, %v2058_v23  ;;  %v2182_v26 = vld [vmem:[%s2452_s29 + $0x24] sm:$0xf0]  ;;  %v2178_v27 = vld [vmem:[%s2452_s29 + $0xc] sm:$0xf] }
  0x23   : > { %v2065_v28 = vor.u32 %v2182_v26, %v2064_v24  ;;  %v2066_v29 = vld [vmem:[%s2452_s29 + $0x28] sm:$0xf0]  ;;  %v590_v30 = vld [vmem:[%s2458_s25 + $0x18] sm:$0xff]  ;;  %v587_v31 = vld [vmem:[%s2458_s25] sm:$0xff]  ;;  %s2042_s17 = sshll.u32 %s2442_s14, 1 }
  0x24   : > { %777 = vmatpush.bf16.msra.mxu0 %v2057_v22  ;;  %796 = vmatpush.bf16.msra.mxu1 %v2061_v25  ;;  %v2069_v32 = vor.u32 %v2178_v27, %v2066_v29  ;;  %v2104_v33 = vld [vmem:[%s2452_s29 + $0x50] sm:$0xf]  ;;  %v2494_v35 = vld [vmem:[%s2489_s15] sm:$0xff]  ;;  %v2187_v37 = vld [vmem:[%s2452_s29 + $0x54] sm:$0xf] }
  0x25   : > { %597 = vperm.xlu2 %2257, %v587_v31   ;;  %v2191_v34 = vld [vmem:[%s2452_s29 + $0x6c] sm:$0xf0]  ;;  %815 = vmatpush.bf16.msra.mxu2 %v2065_v28  ;;  %v2106_v38 = vld [vmem:[%s2452_s29 + $0x70] sm:$0xf0]  ;;  %v2112_v39 = vld [vmem:[%s2452_s29 + $0x58] sm:$0xf] }
  0x26   : > { %v2105_v36 = vor.u32 %v2191_v34, %v2104_v33  ;;  %834 = vmatpush.bf16.msra.mxu3 %v2069_v32  ;;  %612 = vperm.xlu0 %2255, %v590_v30   ;;  %v2192_v40 = vld [vmem:[%s2452_s29 + $0x74] sm:$0xf0]  ;;  %v588_v41 = vld [vmem:[%s2458_s25 + $0x8] sm:$0xff]  ;;  %v2109_v42 = vor.u32 %v2187_v37, %v2106_v38  ;;  %v2188_v44 = vld [vmem:[%s2452_s29 + $0x5c] sm:$0xf]  ;;  %s3058_s25 = sshll.u32 %s2299_s19, 3 }
  0x27   : > { %2118 = vmatmul.msk.bf16.vlgmr.msra.gmra.mxu0 %vm763_vm0, %v2494_v35  ;;  %2120 = vmatmul.msk.bf16.vlgmr.msra.gmra.mxu1 %vm763_vm0, %v2494_v35  ;;  %v2113_v43 = vor.u32 %v2192_v40, %v2112_v39  ;;  %v2114_v45 = vld [vmem:[%s2452_s29 + $0x78] sm:$0xf0]  ;;  %v2072_v47 = vld [vmem:[%s2452_s29 + $0x10] sm:$0xf]  ;;  %v2179_v49 = vld [vmem:[%s2452_s29 + $0x14] sm:$0xf] }
  0x28   : > { %2122 = vmatmul.msk.bf16.vlgmr.msra.gmra.mxu2 %vm763_vm0, %v2494_v35  ;;  %935 = vperm.xlu1 %2256, %v590_v30   ;;  %v2117_v46 = vor.u32 %v2188_v44, %v2114_v45  ;;  %v2183_v48 = vld [vmem:[%s2452_s29 + $0x2c] sm:$0xf0]  ;;  %v2074_v51 = vld [vmem:[%s2452_s29 + $0x30] sm:$0xf0]  ;;  %v2080_v52 = vld [vmem:[%s2452_s29 + $0x18] sm:$0xf] }
  0x29   : > { %2124 = vmatmul.msk.bf16.vlgmr.msra.gmra.mxu3 %vm763_vm0, %v2494_v35  ;;  %852 = vmatpush.bf16.msrb.mxu0 %v2105_v36  ;;  %v2073_v50 = vor.u32 %v2183_v48, %v2072_v47  ;;  %v2184_v53 = vld [vmem:[%s2452_s29 + $0x34] sm:$0xf0]  ;;  %v2077_v54 = vor.u32 %v2179_v49, %v2074_v51  ;;  %v2180_v55 = vld [vmem:[%s2452_s29 + $0x1c] sm:$0xf]  ;;  %v2194_v60 = vld [vmem:[%s2489_s15 + $0x8] sm:$0xff]  ;;  %s3145_s15 = sshll.u32 %s2442_s14, 4 }
  0x2a   : > { %871 = vmatpush.bf16.msrb.mxu1 %v2109_v42  ;;  %890 = vmatpush.bf16.msrb.mxu2 %v2113_v43  ;;  %v2082_v56 = vld [vmem:[%s2452_s29 + $0x38] sm:$0xf0]  ;;  %v2081_v57 = vor.u32 %v2184_v53, %v2080_v52  ;;  %v1200_v2 = vld [vmem:[%s3127_s7 + $0x10] sm:$0xff]  ;;  %v1199_v4 = vld [vmem:[%s3127_s7 + $0x8] sm:$0xff]  ;;  %s2787_s27 = scalar_lea.vmem %s3126_s6, %s3145_s15  ;;  %s2031_s29 = sshll.u32 %s496_s12, 7 }
  0x2b   : > { %909 = vmatpush.bf16.msrb.mxu3 %v2117_v46  ;;  %v2085_v58 = vor.u32 %v2180_v55, %v2082_v56  ;;  %v1201_v3 = vld [vmem:[%s3127_s7 + $0x18] sm:$0xff]  ;;  %v581_v8 = vld [vmem:[%s3121_s1] sm:$0xff]  ;;  %v2590_v22 = vld [vmem:[%s3121_s1 + $0x8] sm:$0xff]  ;;  %s2949_s30 = scalar_lea.vmem [#allocation2], %s2031_s29  ;;  %s549_s15 = scalar_lea.vmem %s3128_s8, %s2042_s17 }
  0x2c   : > { %v617_v10 = vperm.slane %v581_v8, 0  ;;  %v618_v11 = vperm.slane %v581_v8, 2  ;;  %v619_v13 = vperm.slane %v581_v8, 4  ;;  %v620_v14 = vperm.slane %v581_v8, 6  ;;  %p556_p10 = scmp.lt.s32.totalorder %s3058_s25, 31 }
  0x2d   : > { %602 = vperm.xlu2 %2257, %v588_v41   ;;  %853 = vmatpush.bf16.msrb.mxu0 %v2073_v50  ;;  %v938_v18 = vperm.slane %v581_v8, 1  ;;  %v940_v23 = vperm.slane %v581_v8, 5  ;;  %v941_v25 = vperm.slane %v581_v8, 7  ;;  %v939_v26 = vperm.slane %v581_v8, 3 }
  0x2e   : > { %2258 = vset.pattern.permute.xlu0 %v2318_v1  ;;  %872 = vmatpush.bf16.msrb.mxu1 %v2077_v54  ;;  %v1519_v1 = vld [vmem:[%s3129_s9] sm:$0x7]  ;;  %v2581_v16 = vperm.slane %v617_v10, 0  ;;  %v2583_v17 = vperm.slane %v618_v11, 0  ;;  %v2585_v21 = vperm.slane %v619_v13, 0  ;;  %v2592_v24 = vperm.slane %v620_v14, 0 }
  0x2f   : > { %923 = vperm.xlu0 %2258, %v587_v31   ;;  %891 = vmatpush.bf16.msrb.mxu2 %v2081_v57  ;;  %v2598_v29 = vperm.slane %v938_v18, 1  ;;  %v942_v30 = vperm.slane %v2590_v22, 1  ;;  %v621_v33 = vperm.slane %v2590_v22, 0  ;;  %v622_v34 = vperm.slane %v2590_v22, 2  ;;  %s557_s0 = scalar_select %p556_p10, %s3058_s25, 31 }
  0x30   : > { %927 = vperm.xlu1 %2256, %v588_v41   ;;  %910 = vmatpush.bf16.msrb.mxu3 %v2085_v58  ;;  %v2610_v36 = vperm.slane %v940_v23, 1  ;;  %v623_v38 = vperm.slane %v2590_v22, 4  ;;  %v624_v39 = vperm.slane %v2590_v22, 6  ;;  %v2620_v41 = vperm.slane %v941_v25, 1 }
  0x31   : > { %v955_v43 = vperm.slane %v939_v26, 1  ;;  %v2627_v48 = vperm.slane %v942_v30, 1  ;;  %v2631_v52 = vperm.slane %v621_v33, 0  ;;  %v2633_v53 = vperm.slane %v622_v34, 0 }
  0x35   : > { %1042 = vperm.xlu2 %2257, %v1028_v59  }
  0x37   : > { %2119 = vmatmul.msk.bf16.gmra.mxu0 %vm763_vm0, %v2194_v60  ;;  %2121 = vmatmul.msk.bf16.gmra.mxu1 %vm763_vm0, %v2194_v60 }
  0x38   : > { %2123 = vmatmul.msk.bf16.gmra.mxu2 %vm763_vm0, %v2194_v60  ;;  %2260 = vset.pattern.permute.xlu0 %v2317_v0 }
  0x39   : > { %2125 = vmatmul.msk.bf16.gmra.mxu3 %vm763_vm0, %v2194_v60  ;;  %1037 = vperm.xlu0 %2260, %v1027_v61   ;;  %v2650_v61 = vperm.slane %v624_v39, 0 }
  0x3a   : > { %2259 = vset.pattern.permute.xlu1 %v2317_v0  ;;  %v1198_v0 = vld [vmem:[%s3127_s7] sm:$0xff] }
  0x3b   : > { %1047 = vperm.xlu1 %2259, %v1029_v62  }
  0x3d   : > { %1032 = vperm.xlu2 %2257, %v1026_v63  }
  0x41   : > { %1522 = vperm.xlu0 %2260, %v1519_v1  }
  0x43   : > { %1214 = vperm.xlu1 %2259, %v1200_v2  }
  0x45   : > { %1219 = vperm.xlu2 %2257, %v1201_v3  }
  0x47   : > { %2126 = vmatmul.msk.bf16.vlgmr.msrb.gmra.mxu0 %vm763_vm0, %v2494_v35  ;;  %2128 = vmatmul.msk.bf16.vlgmr.msrb.gmra.mxu1 %vm763_vm0, %v2494_v35 }
  0x48   : > { %2130 = vmatmul.msk.bf16.vlgmr.msrb.gmra.mxu2 %vm763_vm0, %v2494_v35 }
  0x49   : > { %2132 = vmatmul.msk.bf16.vlgmr.msrb.gmra.mxu3 %vm763_vm0, %v2494_v35  ;;  %v943_v35 = vperm.slane %v2590_v22, 3 }
  0x4b   : > { %1204 = vperm.xlu1 %2259, %v1198_v0   ;;  %v2635_v54 = vperm.slane %v943_v35, 1 }
  0x4d   : > { %1209 = vperm.xlu2 %2257, %v1199_v4  }
  0x57   : > { %2127 = vmatmul.msk.bf16.gmra.mxu0 %vm763_vm0, %v2194_v60  ;;  %2129 = vmatmul.msk.bf16.gmra.mxu1 %vm763_vm0, %v2194_v60 }
  0x58   : > { %2131 = vmatmul.msk.bf16.gmra.mxu2 %vm763_vm0, %v2194_v60 }
  0x59   : > { %2133 = vmatmul.msk.bf16.gmra.mxu3 %vm763_vm0, %v2194_v60  ;;  %v2648_v60 = vperm.slane %v623_v38, 0 }
  0x7f   : > { %v2566_v5 = vpop.permute.xlu2 %597 }
  0x80   : > { %v641_v27 = vmul.f32 %v2581_v16, %v2566_v5  ;;  %v642_v28 = vmul.f32 %v2583_v17, %v2566_v5  ;;  %v2605_v32 = vmul.f32 %v2585_v21, %v2566_v5  ;;  %v2614_v37 = vmul.f32 %v2592_v24, %v2566_v5 }
  0x81   : > { %v2677_v23 = vmul.f32 %v2631_v52, %v2566_v5  ;;  %v2683_v26 = vmul.f32 %v2633_v53, %v2566_v5 }
  0x87   : > { %v2575_v9 = vpop.permute.xlu2 %602 }
  0x88   : > { %v649_v42 = vmul.f32 %v2581_v16, %v2575_v9  ;;  %v650_v47 = vmul.f32 %v2583_v17, %v2575_v9  ;;  %v2642_v58 = vmul.f32 %v2585_v21, %v2575_v9  ;;  %v2646_v59 = vmul.f32 %v2592_v24, %v2575_v9 }
  0x89   : > { %v2695_v34 = vmul.f32 %v2631_v52, %v2575_v9  ;;  %v2699_v35 = vmul.f32 %v2633_v53, %v2575_v9  ;;  %v2704_v39 = vmul.f32 %v2648_v60, %v2575_v9 }
  0x8b   : > { %3143 = vst [vmem:[#allocation7_spill] sm:$0xff] %v2704_v39 }
  0x8e   : > { %v2568_v6 = vpop.permute.xlu0 %607  ;;  %v2570_v7 = vpop.permute.xlu1 %931 }
  0x8f   : > { %v2601_v31 = vpop.permute.xlu2 %1042  ;;  %v657_v63 = vmul.f32 %v2581_v16, %v2568_v6  ;;  %v978_v1 = vmul.f32 %v2598_v29, %v2570_v7  ;;  %v658_v3 = vmul.f32 %v2583_v17, %v2568_v6  ;;  %v979_v0 = vmul.f32 %v955_v43, %v2570_v7 }
  0x90   : > { %v659_v4 = vmul.f32 %v2585_v21, %v2568_v6  ;;  %v2666_v13 = vmul.f32 %v2610_v36, %v2570_v7  ;;  %v660_v14 = vmul.f32 %v2592_v24, %v2568_v6 }
  0x97   : > { %v2679_v25 = vpop.permute.xlu2 %1032 }
  0x98   : > { %v2577_v12 = vpop.permute.xlu0 %612 }
  0x9a   : > { %v2579_v15 = vpop.permute.xlu1 %935 }
  0x9b   : > { %3140 = vst [vmem:[#allocation4_spill] sm:$0xff] %v2579_v15 }
  0xa1   : > { %v2618_v40 = vpop.permute.xlu0 %923 }
  0xa2   : > { %v962_v49 = vmul.f32 %v2598_v29, %v2618_v40  ;;  %v2638_v56 = vpop.permute.xlu1 %927  ;;  %v963_v2 = vmul.f32 %v955_v43, %v2618_v40 }
  0xa3   : > { %v970_v11 = vmul.f32 %v2598_v29, %v2638_v56 }
  0xa4   : > { %v779_v19 = vpop.f32.mrf.mxu0  ;;  %v798_v20 = vpop.f32.mrf.mxu1 }
  0xa5   : > { %v780_v45 = vadd.f32 %v779_v19, %v641_v27  ;;  %v799_v62 = vadd.f32 %v798_v20, %v642_v28  ;;  %v971_v19 = vmul.f32 %v955_v43, %v2638_v56  ;;  %v2673_v20 = vmul.f32 %v2620_v41, %v2570_v7 }
  0xa6   : > { %v2687_v27 = vmul.f32 %v2648_v60, %v2566_v5  ;;  %v2691_v28 = vmul.f32 %v2650_v61, %v2566_v5 }
  0xa7   : > { %v994_v8 = vadd.f32 %v962_v49, %v780_v45  ;;  %v995_v30 = vadd.f32 %v963_v2, %v799_v62  ;;  %v666_v49 = vmul.f32 %v2583_v17, %v2577_v12  ;;  %v986_v17 = vmul.f32 %v2598_v29, %v2579_v15 }
  0xa8   : > { %3141 = vst [vmem:[#allocation5_spill] sm:$0xff] %v2687_v27 }
  0xa9   : > { %3142 = vst [vmem:[#allocation6_spill] sm:$0xff] %v2691_v28  ;;  %v1050_v38 = vadd.f32 %v2679_v25, %v994_v8 }
  0xab   : > { %v817_v46 = vpop.f32.mrf.mxu2  ;;  %v2714_v62 = vpop.permute.xlu0 %1037  ;;  %vm1082_vm1 = vcmp.ge.f32.partialorder %v1050_v38, 0.0 }
  0xac   : > { %v836_v50 = vpop.f32.mrf.mxu3  ;;  %v781_v51 = vpop.f32.mrf.mxu0 }
  0xad   : > { %v800_v57 = vpop.f32.mrf.mxu1  ;;  %v782_v10 = vadd.f32 %v781_v51, %v649_v42  ;;  %v2712_v51 = vmul.f32 %v2650_v61, %v2575_v9  ;;  %v987_v9 = vmul.f32 %v955_v43, %v2579_v15  ;;  %v972_v43 = vmul.f32 %v2610_v36, %v2638_v56 }
  0xae   : > { %v801_v18 = vadd.f32 %v800_v57, %v650_v47  ;;  %v665_v47 = vmul.f32 %v2581_v16, %v2577_v12 }
  0xaf   : > { %v1002_v42 = vadd.f32 %v970_v11, %v782_v10  ;;  %3144 = vst [vmem:[#allocation8_spill] sm:$0xff] %v2712_v51  ;;  %v2718_v10 = vmul.f32 %v2585_v21, %v2577_v12  ;;  %v2722_v11 = vmul.f32 %v2592_v24, %v2577_v12  ;;  %v2733_v21 = vmul.f32 %v2610_v36, %v2579_v15 }
  0xb0   : > { %v1003_v57 = vadd.f32 %v971_v19, %v801_v18  ;;  %v1051_v18 = vadd.f32 %v2679_v25, %v995_v30  ;;  %v818_v19 = vadd.f32 %v817_v46, %v2605_v32  ;;  %v837_v24 = vadd.f32 %v836_v50, %v2614_v37 }
  0xb1   : > { %v1058_v29 = vadd.f32 %v2714_v62, %v1002_v42  ;;  %v2743_v46 = vmul.f32 %v2620_v41, %v2579_v15  ;;  %v2750_v50 = vmul.f32 %v2627_v48, %v2618_v40 }
  0xb2   : > { %v1059_v30 = vadd.f32 %v2714_v62, %v1003_v57  ;;  %vm1083_vm2 = vcmp.ge.f32.partialorder %v1051_v18, 0.0 }
  0xb3   : > { %v819_v33 = vpop.f32.mrf.mxu2  ;;  %vm1090_vm3 = vcmp.ge.f32.partialorder %v1058_v29, 0.0  ;;  %v1122_v28 = vmul.f32 0.2, %v1058_v29 }
  0xb4   : > { %v838_v45 = vpop.f32.mrf.mxu3  ;;  %v784_v5 = vpop.f32.mrf.mxu0  ;;  %v820_v55 = vadd.f32 %v819_v33, %v2642_v58  ;;  %v1123_v15 = vmul.f32 0.2, %v1059_v30  ;;  %vm1091_vm4 = vcmp.ge.f32.partialorder %v1059_v30, 0.0 }
  0xb5   : > { %v785_v2 = vadd.f32 %v784_v5, %v657_v63  ;;  %v803_v8 = vpop.f32.mrf.mxu1  ;;  %v964_v63 = vmul.f32 %v2610_v36, %v2618_v40  ;;  %v1114_v5 = vmul.f32 0.2, %v1050_v38 }
  0xb6   : > { %v804_v16 = vadd.f32 %v803_v8, %v658_v3  ;;  %v965_v3 = vmul.f32 %v2620_v41, %v2618_v40  ;;  %v973_v8 = vmul.f32 %v2620_v41, %v2638_v56 }
  0xb7   : > { %v1010_v32 = vadd.f32 %v978_v1, %v785_v2  ;;  %v996_v42 = vadd.f32 %v964_v63, %v818_v19  ;;  %v2753_v1 = vsel %vm1082_vm1, %v1050_v38, %v1114_v5  ;;  %v1115_v2 = vmul.f32 0.2, %v1051_v18 }
  0xb8   : > { %v1011_v37 = vadd.f32 %v979_v0, %v804_v16  ;;  %v997_v44 = vadd.f32 %v965_v3, %v837_v24  ;;  %v839_v19 = vadd.f32 %v838_v45, %v2646_v59  ;;  %v1154_v45 = vsel %vm1090_vm3, %v1058_v29, %v1122_v28 }
  0xb9   : > { %v1066_v41 = vadd.f32 %v2601_v31, %v1010_v32  ;;  %v2759_v38 = vadd.f32 %v2679_v25, %v996_v42  ;;  %v2762_v5 = vsel %vm1083_vm2, %v1051_v18, %v1115_v2 }
  0xba   : > { %v1067_v58 = vadd.f32 %v2601_v31, %v1011_v37  ;;  %v2765_v24 = vadd.f32 %v2679_v25, %v997_v44 }
  0xbb   : > { %v822_v36 = vpop.f32.mrf.mxu2  ;;  %vm1098_vm5 = vcmp.ge.f32.partialorder %v1066_v41, 0.0  ;;  %vm1084_vm9 = vcmp.ge.f32.partialorder %v2759_v38, 0.0 }
  0xbc   : > { %v823_v51 = vadd.f32 %v822_v36, %v659_v4  ;;  %v841_v39 = vpop.f32.mrf.mxu3  ;;  %v786_v57 = vpop.f32.mrf.mxu0  ;;  %v1004_v4 = vadd.f32 %v972_v43, %v820_v55  ;;  %v1155_v55 = vsel %vm1091_vm4, %v1059_v30, %v1123_v15  ;;  %v1131_v18 = vmul.f32 0.2, %v1067_v58 }
  0xbd   : > { %v842_v0 = vadd.f32 %v841_v39, %v660_v14  ;;  %v787_v16 = vadd.f32 %v786_v57, %v665_v47  ;;  %v805_v27 = vpop.f32.mrf.mxu1  ;;  %v2767_v14 = vpop.permute.xlu1 %1047  ;;  %vm1099_vm6 = vcmp.ge.f32.partialorder %v1067_v58, 0.0  ;;  %vm1085_vm1 = vcmp.ge.f32.partialorder %v2765_v24, 0.0 }
  0xbe   : > { %v806_v33 = vadd.f32 %v805_v27, %v666_v49  ;;  %v1012_v39 = vadd.f32 %v2666_v13, %v823_v51  ;;  %v1130_v27 = vmul.f32 0.2, %v1066_v41  ;;  %v1060_v44 = vadd.f32 %v2714_v62, %v1004_v4 }
  0xbf   : > { %v1018_v63 = vadd.f32 %v986_v17, %v787_v16  ;;  %v1013_v47 = vadd.f32 %v2673_v20, %v842_v0  ;;  %v1005_v17 = vadd.f32 %v973_v8, %v839_v19  ;;  %v1163_v2 = vsel %vm1099_vm6, %v1067_v58, %v1131_v18 }
  0xc0   : > { %v1019_v59 = vadd.f32 %v987_v9, %v806_v33  ;;  %v1068_v28 = vadd.f32 %v2601_v31, %v1012_v39  ;;  %v1162_v8 = vsel %vm1098_vm5, %v1066_v41, %v1130_v27  ;;  %v1178_v19 = vpack.c.bf16 %v1154_v45, %v2753_v1 }
  0xc1   : > { %v1074_v49 = vadd.f32 %v2767_v14, %v1018_v63  ;;  %v1069_v29 = vadd.f32 %v2601_v31, %v1013_v47  ;;  %v1179_v4 = vpack.c.bf16 %v1155_v55, %v2762_v5  ;;  %v2798_v63 = vld [vmem:[%s2787_s27] sm:$0xff]  ;;  %v1124_v39 = vmul.f32 0.2, %v1060_v44 }
  0xc2   : > { %v1075_v3 = vadd.f32 %v2767_v14, %v1019_v59  ;;  %v1132_v16 = vmul.f32 0.2, %v1068_v28  ;;  %vm1100_vm10 = vcmp.ge.f32.partialorder %v1068_v28, 0.0  ;;  %vm1092_vm14 = vcmp.ge.f32.partialorder %v1060_v44, 0.0 }
  0xc3   : > { %vm1106_vm7 = vcmp.ge.f32.partialorder %v1074_v49, 0.0  ;;  %v1138_v43 = vmul.f32 0.2, %v1074_v49  ;;  %v824_v13 = vpop.f32.mrf.mxu2  ;;  %v1133_v58 = vmul.f32 0.2, %v1069_v29  ;;  %vm1101_vm11 = vcmp.ge.f32.partialorder %v1069_v29, 0.0 }
  0xc4   : > { %vm1107_vm8 = vcmp.ge.f32.partialorder %v1075_v3, 0.0  ;;  %v1139_v51 = vmul.f32 0.2, %v1075_v3  ;;  %v825_v20 = vadd.f32 %v824_v13, %v2718_v10  ;;  %v843_v9 = vpop.f32.mrf.mxu3  ;;  %v855_v15 = vpop.f32.mrf.mxu0  ;;  %v1116_v10 = vmul.f32 0.2, %v2759_v38 }
  0xc5   : > { %v844_v32 = vadd.f32 %v843_v9, %v2722_v11  ;;  %v874_v30 = vpop.f32.mrf.mxu1  ;;  %v1170_v37 = vsel %vm1106_vm7, %v1074_v49, %v1138_v43  ;;  %v1061_v11 = vadd.f32 %v2714_v62, %v1005_v17  ;;  %v856_v1 = vadd.f32 %v855_v15, %v2677_v23 }
  0xc6   : > { %v1020_v42 = vadd.f32 %v2733_v21, %v825_v20  ;;  %v1186_v36 = vpack.c.bf16 %v1170_v37, %v1162_v8  ;;  %v1171_v57 = vsel %vm1107_vm8, %v1075_v3, %v1139_v51  ;;  %v1164_v17 = vsel %vm1100_vm10, %v1068_v28, %v1132_v16 }
  0xc7   : > { %v1021_v41 = vadd.f32 %v2743_v46, %v844_v32  ;;  %v1187_v0 = vpack.c.bf16 %v1171_v57, %v1163_v2  ;;  %v1125_v59 = vmul.f32 0.2, %v1061_v11  ;;  %vm1093_vm15 = vcmp.ge.f32.partialorder %v1061_v11, 0.0 }
  0xc8   : > { %v1076_v21 = vadd.f32 %v2767_v14, %v1020_v42  ;;  %1244 = vmatpush.bf16.msra.mxu0 %v1186_v36  ;;  %v1117_v55 = vmul.f32 0.2, %v2765_v24  ;;  %v1165_v43 = vsel %vm1101_vm11, %v1069_v29, %v1133_v58  ;;  %v875_v51 = vadd.f32 %v874_v30, %v2683_v26 }
  0xc9   : > { %v1077_v33 = vadd.f32 %v2767_v14, %v1021_v41  ;;  %1263 = vmatpush.bf16.msra.mxu1 %v1187_v0  ;;  %v1156_v20 = vsel %vm1092_vm14, %v1060_v44, %v1124_v39  ;;  %v967_v28 = vmul.f32 %v2635_v54, %v2618_v40  ;;  %v3146_v9 = vperm.slane %v2590_v22, 5 }
  0xca   : > { %vm1108_vm12 = vcmp.ge.f32.partialorder %v1076_v21, 0.0  ;;  %v1140_v46 = vmul.f32 0.2, %v1076_v21  ;;  %v1157_v29 = vsel %vm1093_vm15, %v1061_v11, %v1125_v59  ;;  %v661_v32 = vmul.f32 %v2631_v52, %v2568_v6 }
  0xcb   : > { %vm1109_vm13 = vcmp.ge.f32.partialorder %v1077_v33, 0.0  ;;  %v1141_v27 = vmul.f32 0.2, %v1077_v33  ;;  %v893_v47 = vpop.f32.mrf.mxu2  ;;  %v960_v15 = vperm.slane %v3146_v9, 1  ;;  %v998_v26 = vadd.f32 %v2750_v50, %v856_v1 }
  0xcc   : > { %v2801_v45 = vpop.f32.mrf.mxu3  ;;  %v857_v49 = vpop.f32.mrf.mxu0  ;;  %1245 = vmatpush.bf16.msra.mxu0 %v1178_v19  ;;  %v1172_v5 = vsel %vm1108_vm12, %v1076_v21, %v1140_v46  ;;  %v3147_v44 = vperm.slane %v2590_v22, 7  ;;  %v1148_v37 = vsel %vm1084_vm9, %v2759_v38, %v1116_v10  ;;  %v1149_v2 = vsel %vm1085_vm1, %v2765_v24, %v1117_v55 }
  0xcd   : > { %v876_v18 = vpop.f32.mrf.mxu1  ;;  %1264 = vmatpush.bf16.msra.mxu1 %v1179_v4  ;;  %v1188_v3 = vpack.c.bf16 %v1172_v5, %v1164_v17  ;;  %v1173_v13 = vsel %vm1109_vm13, %v1077_v33, %v1141_v27  ;;  %v858_v8 = vadd.f32 %v857_v49, %v2695_v34  ;;  %v1180_v36 = vpack.c.bf16 %v1156_v20, %v1148_v37  ;;  %v3148_v17 = vld [vmem:[#allocation4_spill] sm:$0xff]  ;;  %v3149_v5 = vld [vmem:[#allocation5_spill] sm:$0xff] }
  0xce   : > { %v1189_v23 = vpack.c.bf16 %v1173_v13, %v1165_v43  ;;  %v961_v30 = vperm.slane %v3147_v44, 1  ;;  %v877_v42 = vadd.f32 %v876_v18, %v2699_v35  ;;  %v982_v50 = vmul.f32 %v2627_v48, %v2570_v7  ;;  %v2882_v44 = vld [vmem:[%s2787_s27 + $0x8] sm:$0xff]  ;;  %s559_s27 = sadd.s32 %s2447_s16, %s557_s0  ;;  %s2168_s16 = sshll.u32 (%p2425_p5), %s2303_s20, 7 }
  0xcf   : > { %1282 = vmatpush.bf16.msra.mxu2 %v1188_v3  ;;  %2142 = vmatmul.msk.bf16.vlgmr.msra.gmra.mxu0 %vm763_vm0, %v2798_v63  ;;  %v999_v22 = vadd.f32 %v967_v28, %v875_v51  ;;  %v974_v34 = vmul.f32 %v2627_v48, %v2638_v56  ;;  %v1181_v57 = vpack.c.bf16 %v1157_v29, %v1149_v2  ;;  %v3150_v28 = vld [vmem:[#allocation6_spill] sm:$0xff]  ;;  %v3151_v29 = vld [vmem:[#allocation7_spill] sm:$0xff]  ;;  %s2045_s12 = sshll.u32 %s559_s27, 2  ;;  %s1792_s26 = sadd.s32 (%p2425_p5), %s2168_s16, %s3058_s25 }
  0xd0   : > { %1301 = vmatpush.bf16.msra.mxu3 %v1189_v23  ;;  %2144 = vmatmul.msk.bf16.vlgmr.msra.gmra.mxu1 %vm763_vm0, %v2798_v63  ;;  %v662_v11 = vmul.f32 %v2633_v53, %v2568_v6  ;;  %v975_v41 = vmul.f32 %v2635_v54, %v2638_v56  ;;  %v983_v35 = vmul.f32 %v2635_v54, %v2570_v7  ;;  %s3066_s19 = scalar_lea.vmem %s3131_s11, %s2045_s12  ;;  %s2169_s14 = sshll.u32 (%p2425_p5), %s1792_s26, 2 }
  0xd1   : > { %v663_v24 = vmul.f32 %v2648_v60, %v2568_v6  ;;  %v984_v10 = vmul.f32 %v960_v15, %v2570_v7  ;;  %v1054_v0 = vadd.f32 %v2679_v25, %v998_v26  ;;  %v1006_v16 = vadd.f32 %v974_v34, %v858_v8  ;;  %s1794_s28 = scalar_lea.vmem (%p2425_p5), %s3130_s10, %s2169_s14 }
  0xd2   : > { %v664_v58 = vmul.f32 %v2650_v61, %v2568_v6  ;;  %v985_v33 = vmul.f32 %v961_v30, %v2570_v7  ;;  %v1007_v4 = vadd.f32 %v975_v41, %v877_v42  ;;  %v669_v59 = vmul.f32 %v2631_v52, %v2577_v12 }
  0xd3   : > { %v895_v38 = vpop.f32.mrf.mxu2  ;;  %1283 = vmatpush.bf16.msra.mxu2 %v1180_v36  ;;  %v670_v27 = vmul.f32 %v2633_v53, %v2577_v12  ;;  %v1055_v1 = vadd.f32 %v2679_v25, %v999_v22  ;;  %v990_v6 = vmul.f32 %v2627_v48, %v3148_v17  ;;  %v991_v7 = vmul.f32 %v2635_v54, %v3148_v17 }
  0xd4   : > { %v914_v21 = vpop.f32.mrf.mxu3  ;;  %1302 = vmatpush.bf16.msra.mxu3 %v1181_v57  ;;  %v860_v19 = vpop.f32.mrf.mxu0  ;;  %v894_v55 = vadd.f32 %v893_v47, %v3149_v5  ;;  %v671_v52 = vmul.f32 %v2648_v60, %v2577_v12  ;;  %v2863_v53 = vmul.f32 %v960_v15, %v3148_v17  ;;  %v2867_v18 = vmul.f32 %v2650_v61, %v2577_v12 }
  0xd5   : > { %v861_v39 = vadd.f32 %v860_v19, %v661_v32  ;;  %v879_v46 = vpop.f32.mrf.mxu1  ;;  %v1118_v3 = vmul.f32 0.2, %v1054_v0  ;;  %v968_v48 = vmul.f32 %v960_v15, %v2618_v40  ;;  %v1062_v54 = vadd.f32 %v2714_v62, %v1006_v16 }
  0xd6   : > { %v880_v49 = vadd.f32 %v879_v46, %v662_v11  ;;  %2146 = vmatmul.msk.bf16.vlgmr.msra.gmra.mxu2 %vm763_vm0, %v2798_v63  ;;  %v2872_v47 = vmul.f32 %v961_v30, %v3148_v17  ;;  %v969_v43 = vmul.f32 %v961_v30, %v2618_v40  ;;  %v1063_v60 = vadd.f32 %v2714_v62, %v1007_v4 }
  0xd7   : > { %2148 = vmatmul.msk.bf16.vlgmr.msra.gmra.mxu3 %vm763_vm0, %v2798_v63  ;;  %v1014_v13 = vadd.f32 %v982_v50, %v861_v39  ;;  %vm1086_vm2 = vcmp.ge.f32.partialorder %v1054_v0, 0.0  ;;  %v1119_v51 = vmul.f32 0.2, %v1055_v1  ;;  %v976_v23 = vmul.f32 %v960_v15, %v2638_v56  ;;  %v3152_v50 = vld [vmem:[#allocation8_spill] sm:$0xff] }
  0xd8   : > { %v977_v12 = vmul.f32 %v961_v30, %v2638_v56  ;;  %v1015_v61 = vadd.f32 %v983_v35, %v880_v49  ;;  %v1000_v20 = vadd.f32 %v968_v48, %v894_v55  ;;  %v913_v9 = vadd.f32 %v2801_v45, %v3150_v28 }
  0xd9   : > { %v896_v32 = vadd.f32 %v895_v38, %v3151_v29  ;;  %vm1087_vm3 = vcmp.ge.f32.partialorder %v1055_v1, 0.0  ;;  %v1126_v40 = vmul.f32 0.2, %v1062_v54  ;;  %vm1094_vm4 = vcmp.ge.f32.partialorder %v1062_v54, 0.0 }
  0xda   : > { %v2885_v15 = vsel %vm1086_vm2, %v1054_v0, %v1118_v3  ;;  %v1127_v56 = vmul.f32 0.2, %v1063_v60  ;;  %v1070_v30 = vadd.f32 %v2601_v31, %v1014_v13  ;;  %v915_v22 = vadd.f32 %v914_v21, %v3152_v50  ;;  %v2936_v50 = vpop.permute.xlu1 %1214 }
  0xdb   : > { %v898_v26 = vpop.f32.mrf.mxu2  ;;  %v1071_v34 = vadd.f32 %v2601_v31, %v1015_v61  ;;  %vm1095_vm5 = vcmp.ge.f32.partialorder %v1063_v60, 0.0  ;;  %v1001_v11 = vadd.f32 %v969_v43, %v913_v9  ;;  %v1008_v41 = vadd.f32 %v976_v23, %v896_v32 }
  0xdc   : > { %v899_v8 = vadd.f32 %v898_v26, %v663_v24  ;;  %v917_v37 = vpop.f32.mrf.mxu3  ;;  %v862_v42 = vpop.f32.mrf.mxu0  ;;  %v1151_v35 = vsel %vm1087_vm3, %v1055_v1, %v1119_v51  ;;  %v2894_v24 = vadd.f32 %v2679_v25, %v1000_v20  ;;  %v1158_v21 = vsel %vm1094_vm4, %v1062_v54, %v1126_v40 }
  0xdd   : > { %v918_v36 = vadd.f32 %v917_v37, %v664_v58  ;;  %v863_v2 = vadd.f32 %v862_v42, %v669_v59  ;;  %v881_v45 = vpop.f32.mrf.mxu1  ;;  %v1134_v19 = vmul.f32 0.2, %v1070_v30  ;;  %v1159_v39 = vsel %vm1095_vm5, %v1063_v60, %v1127_v56 }
  0xde   : > { %v882_v57 = vadd.f32 %v881_v45, %v670_v27  ;;  %v1016_v0 = vadd.f32 %v984_v10, %v899_v8  ;;  %v1009_v46 = vadd.f32 %v977_v12, %v915_v22  ;;  %vm1102_vm6 = vcmp.ge.f32.partialorder %v1070_v30, 0.0  ;;  %v2938_v22 = vpop.permute.xlu2 %1219 }
  0xdf   : > { %v1022_v38 = vadd.f32 %v990_v6, %v863_v2  ;;  %2143 = vmatmul.msk.bf16.gmra.mxu0 %vm763_vm0, %v2882_v44  ;;  %v1017_v58 = vadd.f32 %v985_v33, %v918_v36  ;;  %v1135_v59 = vmul.f32 0.2, %v1071_v34  ;;  %v1064_v1 = vadd.f32 %v2714_v62, %v1008_v41 }
  0xe0   : > { %v1023_v16 = vadd.f32 %v991_v7, %v882_v57  ;;  %2145 = vmatmul.msk.bf16.gmra.mxu1 %vm763_vm0, %v2882_v44  ;;  %vm1103_vm7 = vcmp.ge.f32.partialorder %v1071_v34, 0.0  ;;  %v1072_v17 = vadd.f32 %v2601_v31, %v1016_v0  ;;  %v1166_v3 = vsel %vm1102_vm6, %v1070_v30, %v1134_v19 }
  0xe1   : > { %v1078_v4 = vadd.f32 %v2767_v14, %v1022_v38  ;;  %v1073_v5 = vadd.f32 %v2601_v31, %v1017_v58  ;;  %v1167_v60 = vsel %vm1103_vm7, %v1071_v34, %v1135_v59  ;;  %v1057_v51 = vadd.f32 %v2679_v25, %v1001_v11 }
  0xe2   : > { %v1079_v27 = vadd.f32 %v2767_v14, %v1023_v16  ;;  %v1182_v61 = vpack.c.bf16 %v1158_v21, %v2885_v15  ;;  %vm1104_vm10 = vcmp.ge.f32.partialorder %v1072_v17, 0.0  ;;  %v1128_v28 = vmul.f32 0.2, %v1064_v1  ;;  %v2940_v34 = vpop.permute.xlu1 %1204 }
  0xe3   : > { %vm1110_vm8 = vcmp.ge.f32.partialorder %v1078_v4, 0.0  ;;  %v1142_v10 = vmul.f32 0.2, %v1078_v4  ;;  %v900_v49 = vpop.f32.mrf.mxu2  ;;  %v1137_v20 = vmul.f32 0.2, %v1073_v5  ;;  %vm1105_vm11 = vcmp.ge.f32.partialorder %v1073_v5, 0.0 }
  0xe4   : > { %vm1111_vm9 = vcmp.ge.f32.partialorder %v1079_v27, 0.0  ;;  %v1143_v6 = vmul.f32 0.2, %v1079_v27  ;;  %v901_v7 = vadd.f32 %v900_v49, %v671_v52  ;;  %v919_v33 = vpop.f32.mrf.mxu3  ;;  %v1065_v52 = vadd.f32 %v2714_v62, %v1009_v46 }
  0xe5   : > { %v920_v55 = vadd.f32 %v919_v33, %v2867_v18  ;;  %v1174_v48 = vsel %vm1110_vm8, %v1078_v4, %v1142_v10  ;;  %v1120_v18 = vmul.f32 0.2, %v2894_v24  ;;  %v1183_v62 = vpack.c.bf16 %v1159_v39, %v1151_v35 }
  0xe6   : > { %v1024_v54 = vadd.f32 %v2863_v53, %v901_v7  ;;  %2147 = vmatmul.msk.bf16.gmra.mxu2 %vm763_vm0, %v2882_v44  ;;  %v1190_v43 = vpack.c.bf16 %v1174_v48, %v1166_v3  ;;  %v1175_v13 = vsel %vm1111_vm9, %v1079_v27, %v1143_v6  ;;  %v1136_v53 = vmul.f32 0.2, %v1072_v17  ;;  %v2947_v16 = vpop.permute.xlu2 %1209 }
  0xe7   : > { %v1025_v23 = vadd.f32 %v2872_v47, %v920_v55  ;;  %2149 = vmatmul.msk.bf16.gmra.mxu3 %vm763_vm0, %v2882_v44  ;;  %v1191_v31 = vpack.c.bf16 %v1175_v13, %v1167_v60  ;;  %v1129_v9 = vmul.f32 0.2, %v1065_v52  ;;  %vm1096_vm14 = vcmp.ge.f32.partialorder %v1064_v1, 0.0 }
  0xe8   : > { %v1080_v12 = vadd.f32 %v2767_v14, %v1024_v54  ;;  %1320 = vmatpush.bf16.msrb.mxu0 %v1190_v43  ;;  %v1168_v32 = vsel %vm1104_vm10, %v1072_v17, %v1136_v53  ;;  %vm1088_vm15 = vcmp.ge.f32.partialorder %v2894_v24, 0.0  ;;  %vm1097_vm1 = vcmp.ge.f32.partialorder %v1065_v52, 0.0 }
  0xe9   : > { %v1081_v25 = vadd.f32 %v2767_v14, %v1025_v23  ;;  %1339 = vmatpush.bf16.msrb.mxu1 %v1191_v31  ;;  %v1121_v40 = vmul.f32 0.2, %v1057_v51  ;;  %v1169_v14 = vsel %vm1105_vm11, %v1073_v5, %v1137_v20  ;;  %v1160_v15 = vsel %vm1096_vm14, %v1064_v1, %v1128_v28 }
  0xea   : > { %vm1112_vm12 = vcmp.ge.f32.partialorder %v1080_v12, 0.0  ;;  %v1144_v47 = vmul.f32 0.2, %v1080_v12  ;;  %vm1089_vm2 = vcmp.ge.f32.partialorder %v1057_v51, 0.0  ;;  %v1161_v56 = vsel %vm1097_vm1, %v1065_v52, %v1129_v9 }
  0xeb   : > { %vm1113_vm13 = vcmp.ge.f32.partialorder %v1081_v25, 0.0  ;;  %v1145_v29 = vmul.f32 0.2, %v1081_v25  ;;  %v1152_v30 = vsel %vm1088_vm15, %v2894_v24, %v1120_v18  ;;  %v1153_v2 = vsel %vm1089_vm2, %v1057_v51, %v1121_v40 }
  0xec   : > { %1321 = vmatpush.bf16.msrb.mxu0 %v1182_v61  ;;  %v1176_v26 = vsel %vm1112_vm12, %v1080_v12, %v1144_v47  ;;  %v1184_v36 = vpack.c.bf16 %v1160_v15, %v1152_v30  ;;  %v1185_v45 = vpack.c.bf16 %v1161_v56, %v1153_v2 }
  0xed   : > { %1340 = vmatpush.bf16.msrb.mxu1 %v1183_v62  ;;  %v1192_v8 = vpack.c.bf16 %v1176_v26, %v1168_v32  ;;  %v1177_v37 = vsel %vm1113_vm13, %v1081_v25, %v1145_v29 }
  0xee   : > { %v1193_v42 = vpack.c.bf16 %v1177_v37, %v1169_v14 }
  0xef   : > { %1358 = vmatpush.bf16.msrb.mxu2 %v1192_v8  ;;  %2150 = vmatmul.msk.bf16.vlgmr.msrb.gmra.mxu0 %vm763_vm0, %v2798_v63 }
  0xf0   : > { %1377 = vmatpush.bf16.msrb.mxu3 %v1193_v42  ;;  %2152 = vmatmul.msk.bf16.vlgmr.msrb.gmra.mxu1 %vm763_vm0, %v2798_v63 }
  0xf3   : > { %1359 = vmatpush.bf16.msrb.mxu2 %v1184_v36 }
  0xf4   : > { %1378 = vmatpush.bf16.msrb.mxu3 %v1185_v45 }
  0xf6   : > { %2154 = vmatmul.msk.bf16.vlgmr.msrb.gmra.mxu2 %vm763_vm0, %v2798_v63 }
  0xf7   : > { %2156 = vmatmul.msk.bf16.vlgmr.msrb.gmra.mxu3 %vm763_vm0, %v2798_v63 }
  0xff   : > { %2151 = vmatmul.msk.bf16.gmra.mxu0 %vm763_vm0, %v2882_v44 }
 0x100   : > { %2153 = vmatmul.msk.bf16.gmra.mxu1 %vm763_vm0, %v2882_v44 }
 0x106   : > { %2155 = vmatmul.msk.bf16.gmra.mxu2 %vm763_vm0, %v2882_v44 }
 0x107   : > { %2157 = vmatmul.msk.bf16.gmra.mxu3 %vm763_vm0, %v2882_v44 }
 0x14c   : > { %v1247_v57 = vpop.f32.mrf.mxu0 }
 0x14d   : > { %v1248_v63 = vadd.f32 %v1247_v57, %v2940_v34  ;;  %v1266_v11 = vpop.f32.mrf.mxu1 }
 0x14e   : > { %v1267_v41 = vadd.f32 %v1266_v11, %v2940_v34 }
 0x14f   : > { %vm1390_vm3 = vcmp.ge.f32.partialorder %v1248_v63, 0.0  ;;  %v1422_v38 = vmul.f32 0.2, %v1248_v63 }
 0x150   : > { %vm1391_vm4 = vcmp.ge.f32.partialorder %v1267_v41, 0.0  ;;  %v1423_v35 = vmul.f32 0.2, %v1267_v41 }
 0x151   : > { %v1454_v24 = vsel %vm1390_vm3, %v1248_v63, %v1422_v38 }
 0x152   : > { %v1455_v44 = vsel %vm1391_vm4, %v1267_v41, %v1423_v35 }
 0x153   : > { %v2945_v0 = vpack.c.bf16 %v1455_v44, %v1454_v24 }
 0x154   : > { %v1249_v21 = vpop.f32.mrf.mxu0 }
 0x155   : > { %1502 = vst [vmem:[%s2949_s30] sm:$0xff] %v2945_v0  ;;  %v1250_v19 = vadd.f32 %v1249_v21, %v2947_v16  ;;  %v1268_v58 = vpop.f32.mrf.mxu1 }
 0x156   : > { %v1269_v4 = vadd.f32 %v1268_v58, %v2947_v16 }
 0x157   : > { %vm1398_vm5 = vcmp.ge.f32.partialorder %v1250_v19, 0.0  ;;  %v1430_v39 = vmul.f32 0.2, %v1250_v19 }
 0x158   : > { %vm1399_vm6 = vcmp.ge.f32.partialorder %v1269_v4, 0.0  ;;  %v1431_v46 = vmul.f32 0.2, %v1269_v4 }
 0x159   : > { %v1462_v59 = vsel %vm1398_vm5, %v1250_v19, %v1430_v39  ;;  %v1285_v27 = vpop.f32.mrf.mxu2 }
 0x15a   : > { %v1463_v1 = vsel %vm1399_vm6, %v1269_v4, %v1431_v46  ;;  %v1286_v10 = vadd.f32 %v1285_v27, %v2940_v34  ;;  %v1304_v49 = vpop.f32.mrf.mxu3 }
 0x15b   : > { %v2956_v17 = vpack.c.bf16 %v1463_v1, %v1462_v59  ;;  %v1305_v6 = vadd.f32 %v1304_v49, %v2940_v34 }
 0x15c   : > { %vm1392_vm7 = vcmp.ge.f32.partialorder %v1286_v10, 0.0  ;;  %v1424_v7 = vmul.f32 0.2, %v1286_v10  ;;  %v1252_v33 = vpop.f32.mrf.mxu0 }
 0x15d   : > { %1506 = vst [vmem:[%s2949_s30 + $0x20] sm:$0xff] %v2956_v17  ;;  %vm1393_vm8 = vcmp.ge.f32.partialorder %v1305_v6, 0.0  ;;  %v1425_v5 = vmul.f32 0.2, %v1305_v6  ;;  %v1253_v55 = vadd.f32 %v1252_v33, %v2936_v50  ;;  %v1271_v3 = vpop.f32.mrf.mxu1  ;;  %v1549_v2 = vunpack.c.l.b16 %v2956_v17 }
 0x15e   : > { %v1456_v48 = vsel %vm1392_vm7, %v1286_v10, %v1424_v7  ;;  %v1272_v54 = vadd.f32 %v1271_v3, %v2936_v50  ;;  %v1550_v11 = vunpack.c.h.b16 %v2956_v17  ;;  %v1541_v17 = vunpack.c.l.b16 %v2945_v0 }
 0x15f   : > { %v1457_v43 = vsel %vm1393_vm8, %v1305_v6, %v1425_v5  ;;  %vm1406_vm9 = vcmp.ge.f32.partialorder %v1253_v55, 0.0  ;;  %v1438_v60 = vmul.f32 0.2, %v1253_v55  ;;  %v1542_v5 = vunpack.c.h.b16 %v2945_v0 }
 0x160   : > { %v2963_v13 = vpack.c.bf16 %v1457_v43, %v1456_v48  ;;  %vm1407_vm10 = vcmp.ge.f32.partialorder %v1272_v54, 0.0  ;;  %v1439_v51 = vmul.f32 0.2, %v1272_v54  ;;  %v1573_v48 = vpack.c.b16 %v1549_v2, %v1541_v17 }
 0x161   : > { %v1470_v52 = vsel %vm1406_vm9, %v1253_v55, %v1438_v60  ;;  %v1287_v23 = vpop.f32.mrf.mxu2  ;;  %v1574_v60 = vpack.c.b16 %v1550_v11, %v1542_v5 }
 0x162   : > { %1503 = vst [vmem:[%s2949_s30 + $0x8] sm:$0xff] %v2963_v13  ;;  %v1471_v31 = vsel %vm1407_vm10, %v1272_v54, %v1439_v51  ;;  %v1288_v18 = vadd.f32 %v1287_v23, %v2947_v16  ;;  %v1306_v53 = vpop.f32.mrf.mxu3  ;;  %v2997_v23 = vld [vmem:[%s549_s15] sm:$0x3]  ;;  %v1543_v11 = vunpack.c.l.b16 %v2963_v13 }
 0x163   : > { %v1494_v12 = vpack.c.bf16 %v1471_v31, %v1470_v52  ;;  %v1307_v61 = vadd.f32 %v1306_v53, %v2947_v16 }
 0x164   : > { %vm1400_vm11 = vcmp.ge.f32.partialorder %v1288_v18, 0.0  ;;  %v1432_v20 = vmul.f32 0.2, %v1288_v18  ;;  %v1254_v25 = vpop.f32.mrf.mxu0 }
 0x165   : > { %1510 = vst [vmem:[%s2949_s30 + $0x40] sm:$0xff] %v1494_v12  ;;  %vm1401_vm12 = vcmp.ge.f32.partialorder %v1307_v61, 0.0  ;;  %v1433_v62 = vmul.f32 0.2, %v1307_v61  ;;  %v1255_v28 = vadd.f32 %v1254_v25, %v2938_v22  ;;  %v1273_v47 = vpop.f32.mrf.mxu1  ;;  %v1557_v63 = vunpack.c.l.b16 %v1494_v12 }
 0x166   : > { %v1464_v9 = vsel %vm1400_vm11, %v1288_v18, %v1432_v20  ;;  %v1274_v29 = vadd.f32 %v1273_v47, %v2938_v22  ;;  %v1558_v19 = vunpack.c.h.b16 %v1494_v12 }
 0x167   : > { %v1465_v32 = vsel %vm1401_vm12, %v1307_v61, %v1433_v62  ;;  %vm1414_vm13 = vcmp.ge.f32.partialorder %v1255_v28, 0.0  ;;  %v1446_v26 = vmul.f32 0.2, %v1255_v28 }
 0x168   : > { %v2972_v40 = vpack.c.bf16 %v1465_v32, %v1464_v9  ;;  %vm1415_vm14 = vcmp.ge.f32.partialorder %v1274_v29, 0.0  ;;  %v1447_v8 = vmul.f32 0.2, %v1274_v29 }
 0x169   : > { %v1478_v14 = vsel %vm1414_vm13, %v1255_v28, %v1446_v26  ;;  %v1290_v37 = vpop.f32.mrf.mxu2 }
 0x16a   : > { %1507 = vst [vmem:[%s2949_s30 + $0x28] sm:$0xff] %v2972_v40  ;;  %v1479_v42 = vsel %vm1415_vm14, %v1274_v29, %v1447_v8  ;;  %v1291_v15 = vadd.f32 %v1290_v37, %v2936_v50  ;;  %v1309_v56 = vpop.f32.mrf.mxu3 }
 0x16b   : > { %v1498_v30 = vpack.c.bf16 %v1479_v42, %v1478_v14  ;;  %v1310_v36 = vadd.f32 %v1309_v56, %v2936_v50  ;;  %v1551_v42 = vunpack.c.l.b16 %v2972_v40 }
 0x16c   : > { %vm1408_vm15 = vcmp.ge.f32.partialorder %v1291_v15, 0.0  ;;  %v1440_v45 = vmul.f32 0.2, %v1291_v15  ;;  %v1323_v57 = vpop.f32.mrf.mxu0 }
 0x16d   : > { %1514 = vst [vmem:[%s2949_s30 + $0x60] sm:$0xff] %v1498_v30  ;;  %vm1409_vm1 = vcmp.ge.f32.partialorder %v1310_v36, 0.0  ;;  %v1441_v41 = vmul.f32 0.2, %v1310_v36  ;;  %v1324_v38 = vadd.f32 %v1323_v57, %v2940_v34  ;;  %v1342_v35 = vpop.f32.mrf.mxu1  ;;  %v1565_v24 = vunpack.c.l.b16 %v1498_v30 }
 0x16e   : > { %v1472_v44 = vsel %vm1408_vm15, %v1291_v15, %v1440_v45  ;;  %v1343_v21 = vadd.f32 %v1342_v35, %v2940_v34  ;;  %v1566_v58 = vunpack.c.h.b16 %v1498_v30  ;;  %v1552_v15 = vunpack.c.h.b16 %v2972_v40 }
 0x16f   : > { %v1473_v4 = vsel %vm1409_vm1, %v1310_v36, %v1441_v41  ;;  %vm1394_vm2 = vcmp.ge.f32.partialorder %v1324_v38, 0.0  ;;  %v1426_v39 = vmul.f32 0.2, %v1324_v38  ;;  %v1581_v46 = vpack.c.b16 %v1565_v24, %v1557_v63 }
 0x170   : > { %v1495_v59 = vpack.c.bf16 %v1473_v4, %v1472_v44  ;;  %vm1395_vm3 = vcmp.ge.f32.partialorder %v1343_v21, 0.0  ;;  %v1427_v27 = vmul.f32 0.2, %v1343_v21  ;;  %v1582_v1 = vpack.c.b16 %v1566_v58, %v1558_v19 }
 0x171   : > { %v1458_v10 = vsel %vm1394_vm2, %v1324_v38, %v1426_v39  ;;  %v1292_v49 = vpop.f32.mrf.mxu2  ;;  %1614 = vmatpush.bf16.msra.mxu0 %v1581_v46  ;;  %v1544_v40 = vunpack.c.h.b16 %v2963_v13  ;;  %v1575_v24 = vpack.c.b16 %v1551_v42, %v1543_v11 }
 0x172   : > { %1511 = vst [vmem:[%s2949_s30 + $0x48] sm:$0xff] %v1495_v59  ;;  %v1459_v6 = vsel %vm1395_vm3, %v1343_v21, %v1427_v27  ;;  %v1293_v7 = vadd.f32 %v1292_v49, %v2938_v22  ;;  %v1311_v33 = vpop.f32.mrf.mxu3  ;;  %1627 = vmatpush.bf16.msra.mxu1 %v1582_v1  ;;  %v1559_v28 = vunpack.c.l.b16 %v1495_v59  ;;  %v1560_v47 = vunpack.c.h.b16 %v1495_v59 }
 0x173   : > { %v2991_v55 = vpack.c.bf16 %v1459_v6, %v1458_v10  ;;  %v1312_v3 = vadd.f32 %v1311_v33, %v2938_v22  ;;  %v1576_v19 = vpack.c.b16 %v1552_v15, %v1544_v40 }
 0x174   : > { %vm1416_vm4 = vcmp.ge.f32.partialorder %v1293_v7, 0.0  ;;  %v1448_v54 = vmul.f32 0.2, %v1293_v7  ;;  %v1325_v43 = vpop.f32.mrf.mxu0 }
 0x175   : > { %1504 = vst [vmem:[%s2949_s30 + $0x10] sm:$0xff] %v2991_v55  ;;  %vm1417_vm5 = vcmp.ge.f32.partialorder %v1312_v3, 0.0  ;;  %v1449_v51 = vmul.f32 0.2, %v1312_v3  ;;  %v1326_v52 = vadd.f32 %v1325_v43, %v2947_v16  ;;  %v1344_v0 = vpop.f32.mrf.mxu1  ;;  %1615 = vmatpush.bf16.msra.mxu0 %v1573_v48 }
 0x176   : > { %v1480_v31 = vsel %vm1416_vm4, %v1293_v7, %v1448_v54  ;;  %v1345_v18 = vadd.f32 %v1344_v0, %v2947_v16  ;;  %1628 = vmatpush.bf16.msra.mxu1 %v1574_v60 }
 0x177   : > { %v1481_v53 = vsel %vm1417_vm5, %v1312_v3, %v1449_v51  ;;  %vm1402_vm6 = vcmp.ge.f32.partialorder %v1326_v52, 0.0  ;;  %v1434_v12 = vmul.f32 0.2, %v1326_v52  ;;  %vm1759_vm5 = vcmask 1043456  }
 0x178   : > { %v1499_v61 = vpack.c.bf16 %v1481_v53, %v1480_v31  ;;  %vm1403_vm7 = vcmp.ge.f32.partialorder %v1345_v18, 0.0  ;;  %v1435_v20 = vmul.f32 0.2, %v1345_v18  ;;  %2158 = vmatmul.msk.bf16.vlgmr.msra.gmra.mxu0 %vm763_vm0, %v2997_v23 }
 0x179   : > { %v1466_v25 = vsel %vm1402_vm6, %v1326_v52, %v1434_v12  ;;  %2159 = vmatmul.msk.bf16.vlgmr.msra.gmra.mxu1 %vm763_vm0, %v2997_v23  ;;  %v1361_v62 = vpop.f32.mrf.mxu2 }
 0x17a   : > { %1515 = vst [vmem:[%s2949_s30 + $0x68] sm:$0xff] %v1499_v61  ;;  %v1467_v9 = vsel %vm1403_vm7, %v1345_v18, %v1435_v20  ;;  %v1362_v29 = vadd.f32 %v1361_v62, %v2940_v34  ;;  %v1380_v32 = vpop.f32.mrf.mxu3  ;;  %v1567_v26 = vunpack.c.l.b16 %v1499_v61  ;;  %v1568_v8 = vunpack.c.h.b16 %v1499_v61 }
 0x17b   : > { %v3006_v14 = vpack.c.bf16 %v1467_v9, %v1466_v25  ;;  %v1381_v37 = vadd.f32 %v1380_v32, %v2940_v34 }
 0x17c   : > { %vm1396_vm8 = vcmp.ge.f32.partialorder %v1362_v29, 0.0  ;;  %v1428_v56 = vmul.f32 0.2, %v1362_v29  ;;  %v1328_v30 = vpop.f32.mrf.mxu0  ;;  %v1583_v36 = vpack.c.b16 %v1567_v26, %v1559_v28  ;;  %v1584_v2 = vpack.c.b16 %v1568_v8, %v1560_v47 }
 0x17d   : > { %1508 = vst [vmem:[%s2949_s30 + $0x30] sm:$0xff] %v3006_v14  ;;  %vm1397_vm9 = vcmp.ge.f32.partialorder %v1381_v37, 0.0  ;;  %v1429_v45 = vmul.f32 0.2, %v1381_v37  ;;  %v1329_v57 = vadd.f32 %v1328_v30, %v2936_v50  ;;  %v1347_v63 = vpop.f32.mrf.mxu1  ;;  %v1553_v28 = vunpack.c.l.b16 %v3006_v14 }
 0x17e   : > { %v1460_v34 = vsel %vm1396_vm8, %v1362_v29, %v1428_v56  ;;  %v1348_v41 = vadd.f32 %v1347_v63, %v2936_v50  ;;  %1640 = vmatpush.bf16.msra.mxu2 %v1583_v36  ;;  %1653 = vmatpush.bf16.msra.mxu3 %v1584_v2  ;;  %v1554_v32 = vunpack.c.h.b16 %v3006_v14  ;;  %v1545_v8 = vunpack.c.l.b16 %v2991_v55 }
 0x17f   : > { %v1461_v38 = vsel %vm1397_vm9, %v1381_v37, %v1429_v45  ;;  %vm1410_vm10 = vcmp.ge.f32.partialorder %v1329_v57, 0.0  ;;  %v1442_v35 = vmul.f32 0.2, %v1329_v57  ;;  %v1546_v37 = vunpack.c.h.b16 %v2991_v55 }
 0x180   : > { %v3017_v44 = vpack.c.bf16 %v1461_v38, %v1460_v34  ;;  %vm1411_vm11 = vcmp.ge.f32.partialorder %v1348_v41, 0.0  ;;  %v1443_v21 = vmul.f32 0.2, %v1348_v41  ;;  %v1577_v30 = vpack.c.b16 %v1553_v28, %v1545_v8 }
 0x181   : > { %v1474_v58 = vsel %vm1410_vm10, %v1329_v57, %v1442_v35  ;;  %v1363_v4 = vpop.f32.mrf.mxu2  ;;  %v1578_v36 = vpack.c.b16 %v1554_v32, %v1546_v37 }
 0x182   : > { %1505 = vst [vmem:[%s2949_s30 + $0x18] sm:$0xff] %v3017_v44  ;;  %v1475_v39 = vsel %vm1411_vm11, %v1348_v41, %v1443_v21  ;;  %v1364_v46 = vadd.f32 %v1363_v4, %v2947_v16  ;;  %v1382_v59 = vpop.f32.mrf.mxu3  ;;  %1641 = vmatpush.bf16.msra.mxu2 %v1575_v24  ;;  %1654 = vmatpush.bf16.msra.mxu3 %v1576_v19  ;;  %v1547_v24 = vunpack.c.l.b16 %v3017_v44  ;;  %v1548_v21 = vunpack.c.h.b16 %v3017_v44 }
 0x183   : > { %v1496_v13 = vpack.c.bf16 %v1475_v39, %v1474_v58  ;;  %v1383_v27 = vadd.f32 %v1382_v59, %v2947_v16  ;;  %v1523_v39 = vpop.permute.xlu0 %1522 }
 0x184   : > { %vm1404_vm12 = vcmp.ge.f32.partialorder %v1364_v46, 0.0  ;;  %v1436_v1 = vmul.f32 0.2, %v1364_v46  ;;  %v1330_v10 = vpop.f32.mrf.mxu0 }
 0x185   : > { %1512 = vst [vmem:[%s2949_s30 + $0x50] sm:$0xff] %v1496_v13  ;;  %vm1405_vm13 = vcmp.ge.f32.partialorder %v1383_v27, 0.0  ;;  %v1437_v49 = vmul.f32 0.2, %v1383_v27  ;;  %2160 = vmatmul.msk.bf16.vlgmr.msra.gmra.mxu2 %vm763_vm0, %v2997_v23  ;;  %2161 = vmatmul.msk.bf16.vlgmr.msra.gmra.mxu3 %vm763_vm0, %v2997_v23  ;;  %v1331_v17 = vadd.f32 %v1330_v10, %v2938_v22  ;;  %v1349_v6 = vpop.f32.mrf.mxu1  ;;  %v1561_v53 = vunpack.c.l.b16 %v1496_v13 }
 0x186   : > { %v1468_v7 = vsel %vm1404_vm12, %v1364_v46, %v1436_v1  ;;  %v1350_v33 = vadd.f32 %v1349_v6, %v2938_v22  ;;  %v1562_v12 = vunpack.c.h.b16 %v1496_v13  ;;  %v1724_v46 = vld.sshfl [vmem:[#allocation1 + $0x8] sm:$0xff pattern:$0x75316420] }
 0x187   : > { %v1469_v16 = vsel %vm1405_vm13, %v1383_v27, %v1437_v49  ;;  %vm1418_vm14 = vcmp.ge.f32.partialorder %v1331_v17, 0.0  ;;  %v1450_v5 = vmul.f32 0.2, %v1331_v17  ;;  %v1723_v27 = vld.sshfl [vmem:[#allocation1] sm:$0xff pattern:$0x75316420] }
 0x188   : > { %v3030_v3 = vpack.c.bf16 %v1469_v16, %v1468_v7  ;;  %vm1419_vm15 = vcmp.ge.f32.partialorder %v1350_v33, 0.0  ;;  %v1451_v48 = vmul.f32 0.2, %v1350_v33  ;;  %v1726_v16 = vld.sshfl [vmem:[#allocation1 + $0x18] sm:$0xff pattern:$0x75316420] }
 0x189   : > { %v1482_v54 = vsel %vm1418_vm14, %v1331_v17, %v1450_v5  ;;  %v1366_v43 = vpop.f32.mrf.mxu2 }
 0x18a   : > { %1509 = vst [vmem:[%s2949_s30 + $0x38] sm:$0xff] %v3030_v3  ;;  %v1483_v60 = vsel %vm1419_vm15, %v1350_v33, %v1451_v48  ;;  %v1367_v51 = vadd.f32 %v1366_v43, %v2936_v50  ;;  %v1385_v52 = vpop.f32.mrf.mxu3  ;;  %v1555_v38 = vunpack.c.l.b16 %v3030_v3  ;;  %v1556_v35 = vunpack.c.h.b16 %v3030_v3  ;;  %v1725_v48 = vld.sshfl [vmem:[#allocation1 + $0x10] sm:$0xff pattern:$0x75316420] }
 0x18b   : > { %v1500_v0 = vpack.c.bf16 %v1483_v60, %v1482_v54  ;;  %v1386_v31 = vadd.f32 %v1385_v52, %v2936_v50 }
 0x18c   : > { %vm1412_vm1 = vcmp.ge.f32.partialorder %v1367_v51, 0.0  ;;  %v1444_v18 = vmul.f32 0.2, %v1367_v51  ;;  %v1579_v19 = vpack.c.b16 %v1555_v38, %v1547_v24  ;;  %v1580_v58 = vpack.c.b16 %v1556_v35, %v1548_v21  ;;  %v1825_v38 = vld [vmem:[%s2949_s30 + $0x48] sm:$0xff] (%p2425_p5)  ;;  %v1827_v35 = vld [vmem:[%s2949_s30 + $0x50] sm:$0xff] (%p2425_p5)  ;;  %v1831_v21 = vld [vmem:[%s2949_s30 + $0x60] sm:$0xff] (%p2425_p5) }
 0x18d   : > { %1516 = vst [vmem:[%s2949_s30 + $0x70] sm:$0xff] %v1500_v0  ;;  %vm1413_vm2 = vcmp.ge.f32.partialorder %v1386_v31, 0.0  ;;  %v1445_v61 = vmul.f32 0.2, %v1386_v31  ;;  %v1569_v20 = vunpack.c.l.b16 %v1500_v0  ;;  %v1570_v25 = vunpack.c.h.b16 %v1500_v0 }
 0x18e   : > { %v1476_v62 = vsel %vm1412_vm1, %v1367_v51, %v1444_v18  ;;  %1826 = vst [vmem:[%s1794_s28 + $0x108] sm:$0xff] (%p2425_p5), %v1825_v38 }
 0x18f   : > { %v1477_v47 = vsel %vm1413_vm2, %v1386_v31, %v1445_v61  ;;  %v1585_v9 = vpack.c.b16 %v1569_v20, %v1561_v53  ;;  %v1586_v29 = vpack.c.b16 %v1570_v25, %v1562_v12  ;;  %v1728_v53 = vld.sshfl [vmem:[#allocation1 + $0x28] sm:$0xff pattern:$0x75316420]  ;;  %v1727_v20 = vld.sshfl [vmem:[#allocation1 + $0x20] sm:$0xff pattern:$0x75316420] }
 0x190   : > { %v1497_v26 = vpack.c.bf16 %v1477_v47, %v1476_v62  ;;  %1828 = vst [vmem:[%s1794_s28 + $0x110] sm:$0xff] (%p2425_p5), %v1827_v35 }
 0x191   : > { %v1368_v50 = vpop.f32.mrf.mxu2  ;;  %1666 = vmatpush.bf16.msrb.mxu0 %v1585_v9  ;;  %1679 = vmatpush.bf16.msrb.mxu1 %v1586_v29  ;;  %1832 = vst [vmem:[%s1794_s28 + $0x180] sm:$0xff] (%p2425_p5), %v1831_v21 }
 0x192   : > { %1513 = vst [vmem:[%s2949_s30 + $0x58] sm:$0xff] %v1497_v26  ;;  %v1369_v42 = vadd.f32 %v1368_v50, %v2938_v22  ;;  %v1387_v15 = vpop.f32.mrf.mxu3  ;;  %v1563_v55 = vunpack.c.l.b16 %v1497_v26  ;;  %v1564_v11 = vunpack.c.h.b16 %v1497_v26  ;;  %v1730_v50 = vld.sshfl [vmem:[#allocation1 + $0x38] sm:$0xff pattern:$0x75316420] }
 0x193   : > { %v1388_v56 = vadd.f32 %v1387_v15, %v2938_v22 }
 0x194   : > { %vm1420_vm3 = vcmp.ge.f32.partialorder %v1369_v42, 0.0  ;;  %v1452_v2 = vmul.f32 0.2, %v1369_v42 }
 0x195   : > { %vm1421_vm4 = vcmp.ge.f32.partialorder %v1388_v56, 0.0  ;;  %v1453_v14 = vmul.f32 0.2, %v1388_v56  ;;  %1667 = vmatpush.bf16.msrb.mxu0 %v1577_v30  ;;  %1680 = vmatpush.bf16.msrb.mxu1 %v1578_v36 }
 0x196   : > { %v1484_v45 = vsel %vm1420_vm3, %v1369_v42, %v1452_v2  ;;  %v1729_v42 = vld.sshfl [vmem:[#allocation1 + $0x30] sm:$0xff pattern:$0x75316420] }
 0x197   : > { %v1485_v57 = vsel %vm1421_vm4, %v1388_v56, %v1453_v14 }
 0x198   : > { %v1501_v63 = vpack.c.bf16 %v1485_v57, %v1484_v45  ;;  %2162 = vmatmul.msk.bf16.vlgmr.msrb.gmra.mxu0 %vm763_vm0, %v2997_v23  ;;  %2163 = vmatmul.msk.bf16.vlgmr.msrb.gmra.mxu1 %vm763_vm0, %v2997_v23  ;;  %v1807_v45 = vld [vmem:[%s2949_s30] sm:$0xff] (%p2425_p5)  ;;  %v1809_v57 = vld [vmem:[%s2949_s30 + $0x8] sm:$0xff] (%p2425_p5) }
 0x199   : > { %1808 = vst [vmem:[%s1794_s28] sm:$0xff] (%p2425_p5), %v1807_v45  ;;  %v1829_v24 = vld [vmem:[%s2949_s30 + $0x58] sm:$0xff] (%p2425_p5) }
 0x19a   : > { %1517 = vst [vmem:[%s2949_s30 + $0x78] sm:$0xff] %v1501_v63  ;;  %v1571_v22 = vunpack.c.l.b16 %v1501_v63  ;;  %v1572_v34 = vunpack.c.h.b16 %v1501_v63  ;;  %v1811_v63 = vld [vmem:[%s2949_s30 + $0x10] sm:$0xff] (%p2425_p5) }
 0x19b   : > { %1810 = vst [vmem:[%s1794_s28 + $0x8] sm:$0xff] (%p2425_p5), %v1809_v57 }
 0x19c   : > { %v1587_v41 = vpack.c.b16 %v1571_v22, %v1563_v55  ;;  %v1588_v40 = vpack.c.b16 %v1572_v34, %v1564_v11  ;;  %v1813_v55 = vld [vmem:[%s2949_s30 + $0x18] sm:$0xff] (%p2425_p5)  ;;  %v1815_v22 = vld [vmem:[%s2949_s30 + $0x20] sm:$0xff] (%p2425_p5)  ;;  %1812 = vst [vmem:[%s1794_s28 + $0x10] sm:$0xff] (%p2425_p5), %v1811_v63  ;;  %v1817_v11 = vld [vmem:[%s2949_s30 + $0x28] sm:$0xff] (%p2425_p5) }
 0x19d   : > { %1814 = vst [vmem:[%s1794_s28 + $0x18] sm:$0xff] (%p2425_p5), %v1813_v55  ;;  %v1819_v34 = vld [vmem:[%s2949_s30 + $0x30] sm:$0xff] (%p2425_p5) }
 0x19e   : > { %1692 = vmatpush.bf16.msrb.mxu2 %v1587_v41  ;;  %1705 = vmatpush.bf16.msrb.mxu3 %v1588_v40  ;;  %1816 = vst [vmem:[%s1794_s28 + $0x80] sm:$0xff] (%p2425_p5), %v1815_v22  ;;  %v1821_v41 = vld [vmem:[%s2949_s30 + $0x38] sm:$0xff] (%p2425_p5)  ;;  %v1823_v40 = vld [vmem:[%s2949_s30 + $0x40] sm:$0xff] (%p2425_p5) }
 0x19f   : > { %1818 = vst [vmem:[%s1794_s28 + $0x88] sm:$0xff] (%p2425_p5), %v1817_v11 }
 0x1a0   : > { %1820 = vst [vmem:[%s1794_s28 + $0x90] sm:$0xff] (%p2425_p5), %v1819_v34 }
 0x1a1   : > { %1822 = vst [vmem:[%s1794_s28 + $0x98] sm:$0xff] (%p2425_p5), %v1821_v41 }
 0x1a2   : > { %1693 = vmatpush.bf16.msrb.mxu2 %v1579_v19  ;;  %1706 = vmatpush.bf16.msrb.mxu3 %v1580_v58  ;;  %1824 = vst [vmem:[%s1794_s28 + $0x100] sm:$0xff] (%p2425_p5), %v1823_v40  ;;  %v1833_v19 = vld [vmem:[%s2949_s30 + $0x68] sm:$0xff] (%p2425_p5)  ;;  %v1835_v58 = vld [vmem:[%s2949_s30 + $0x70] sm:$0xff] (%p2425_p5) }
 0x1a3   : > { %1830 = vst [vmem:[%s1794_s28 + $0x118] sm:$0xff] (%p2425_p5), %v1829_v24 }
 0x1a4   : > { %1834 = vst [vmem:[%s1794_s28 + $0x188] sm:$0xff] (%p2425_p5), %v1833_v19 }
 0x1a5   : > { %2164 = vmatmul.msk.bf16.vlgmr.msrb.gmra.mxu2 %vm763_vm0, %v2997_v23  ;;  %2165 = vmatmul.msk.bf16.vlgmr.msrb.gmra.mxu3 %vm763_vm0, %v2997_v23  ;;  %1836 = vst [vmem:[%s1794_s28 + $0x190] sm:$0xff] (%p2425_p5), %v1835_v58 }
 0x1f5   : > { %v1617_v4 = vpop.f32.mrf.mxu0 }
 0x1f6   : > { %v1630_v44 = vpop.f32.mrf.mxu1  ;;  %v1618_v59 = vadd.f32 %v1617_v4, %v1523_v39  ;;  %v1837_v4 = vld [vmem:[%s2949_s30 + $0x78] sm:$0xff] (%p2425_p5) }
 0x1f7   : > { %v1631_v13 = vadd.f32 %v1630_v44, %v1523_v39  ;;  %1838 = vst [vmem:[%s1794_s28 + $0x198] sm:$0xff] (%p2425_p5), %v1837_v4 }
 0x1f8   : > { %v1739_v23 = vadd.f32 %v1723_v27, %v1618_v59 }
 0x1f9   : > { %v1740_v1 = vadd.f32 %v1724_v46, %v1631_v13 }
 0x1fb   : > { %v1755_v10 = vrot.slane %v1740_v1, 4 }
 0x1fd   : > { %v1760_v49 = vsel %vm1759_vm5, %v1739_v23, %v1755_v10  ;;  %v1619_v17 = vpop.f32.mrf.mxu0 }
 0x1fe   : > { %1768 = vst [vmem:[%s3066_s19] sm:$0x77] %v1760_v49  ;;  %v1632_v6 = vpop.f32.mrf.mxu1 }
 0x208   : > { %v1643_v7 = vpop.f32.mrf.mxu2  ;;  %v1656_v33 = vpop.f32.mrf.mxu3 }
 0x209   : > { %v1644_v5 = vadd.f32 %v1643_v7, %v1523_v39  ;;  %v1657_v3 = vadd.f32 %v1656_v33, %v1523_v39 }
 0x20b   : > { %v1742_v54 = vadd.f32 %v1726_v16, %v1657_v3  ;;  %v1741_v43 = vadd.f32 %v1725_v48, %v1644_v5 }
 0x20d   : > { %v1756_v60 = vrot.slane %v1742_v54, 4 }
 0x20f   : > { %v1761_v51 = vsel %vm1759_vm5, %v1741_v43, %v1756_v60 }
 0x210   : > { %1769 = vst [vmem:[%s3066_s19 + $0x8] sm:$0x77] %v1761_v51  ;;  %v1645_v52 = vpop.f32.mrf.mxu2  ;;  %v1658_v0 = vpop.f32.mrf.mxu3 }
 0x215   : > { %v1669_v31 = vpop.f32.mrf.mxu0  ;;  %v1682_v18 = vpop.f32.mrf.mxu1 }
 0x216   : > { %v1670_v12 = vadd.f32 %v1669_v31, %v1523_v39  ;;  %v1683_v61 = vadd.f32 %v1682_v18, %v1523_v39 }
 0x218   : > { %v1744_v25 = vadd.f32 %v1728_v53, %v1683_v61  ;;  %v1743_v62 = vadd.f32 %v1727_v20, %v1670_v12 }
 0x21a   : > { %v1757_v28 = vrot.slane %v1744_v25, 4 }
 0x21c   : > { %v1762_v47 = vsel %vm1759_vm5, %v1743_v62, %v1757_v28 }
 0x21d   : > { %1770 = vst [vmem:[%s3066_s19 + $0x10] sm:$0x77] %v1762_v47  ;;  %v1671_v9 = vpop.f32.mrf.mxu0  ;;  %v1684_v29 = vpop.f32.mrf.mxu1 }
 0x228   : > { %v1695_v32 = vpop.f32.mrf.mxu2  ;;  %v1708_v26 = vpop.f32.mrf.mxu3 }
 0x229   : > { %v1696_v8 = vadd.f32 %v1695_v32, %v1523_v39  ;;  %v1709_v37 = vadd.f32 %v1708_v26, %v1523_v39 }
 0x22b   : > { %v1746_v15 = vadd.f32 %v1730_v50, %v1709_v37  ;;  %v1745_v56 = vadd.f32 %v1729_v42, %v1696_v8 }
 0x22c   : > { %1788 = sbr.rel (!%p2425_p5) target bundleno = 561 (0x231), region = 64 }
 0x22d   : > { %v1758_v30 = vrot.slane %v1746_v15, 4 }
 0x22f   : > { %v1763_v36 = vsel %vm1759_vm5, %v1745_v56, %v1758_v30 }
 0x230   : > { %1771 = vst [vmem:[%s3066_s19 + $0x18] sm:$0x77] %v1763_v36  ;;  %v1697_v2 = vpop.f32.mrf.mxu2  ;;  %v1710_v14 = vpop.f32.mrf.mxu3 }
 0x231 PF: > { %s22_s23 = sadd.s32 1, %s2315_s23   ;;  %s3153_s25 = sld [smem:[#allocation3_spill]] }
 0x232   : > { %p19_p11 = scmp.ge.s32.totalorder %s22_s23, 10   ;;  %s3154_s17 = smov %s2295_s18 }
 0x233   : > { %s3155_s18 = smov %s2436_s13  ;;  %s3156_s19 = smov %s2307_s21 }
 0x234   : > { %s3157_s20 = smov %s2311_s22  ;;  %s3158_s21 = smov %s3161_s24 }
 0x235   :  { %21 = sbr.rel (!%p19_p11) target bundleno = 6 (0x6), region = 143 }
 0x237   : > { %s3159_s22 = smov %s3153_s25 }

// kernel: inrgan_forward.7
= control target key start
LH: loop header
LB: loop body
LE: loop exit
PB: predicated region body
PF: predicated region fallthrough
CT: control target
= control target key end

     0   :  { %s3372_s0 = inlined_call_operand.vmem [shape: bf16[2,32,4096], index: 0, kind: input, shape index: {}]   ;;  %s3373_s1 = inlined_call_operand.vmem [shape: f32[2,1024], index: 1, kind: input, shape index: {}]   ;;  %s3374_s2 = inlined_call_operand.vmem [shape: f32[2,3,4096], index: 2, kind: input, shape index: {}]   ;;  %s3375_s3 = inlined_call_operand.vmem [shape: bf16[2,32,32], index: 3, kind: input, shape index: {}]   ;;  %s3376_s4 = inlined_call_operand.vmem [shape: f32[2,32,2], index: 4, kind: input, shape index: {}]   ;;  %s3377_s5 = inlined_call_operand.vmem [shape: f32[32,1], index: 5, kind: input, shape index: {}]   ;;  %s3378_s6 = inlined_call_operand.vmem [shape: bf16[2,32,32], index: 6, kind: input, shape index: {}]   ;;  %s3379_s7 = inlined_call_operand.vmem [shape: f32[32,1], index: 7, kind: input, shape index: {}]   ;;  %s3380_s8 = inlined_call_operand.vmem [shape: bf16[2,3,32], index: 8, kind: input, shape index: {}]   ;;  %s3381_s9 = inlined_call_operand.vmem [shape: f32[3,1], index: 9, kind: input, shape index: {}]   ;;  %s3382_s10 = inlined_call_operand.hbm [shape: bf16[2,32,16384], index: 10, kind: output, shape index: {0}]   ;;  %s3383_s11 = inlined_call_operand.vmem [shape: f32[2,3,16384], index: 11, kind: output, shape index: {1}]  }
   0x1   :  { %3394 = sst [smem:[#allocation14_spill]] %s3372_s0 }
   0x2   :  { %3395 = sst [smem:[#allocation15_spill]] %s3373_s1 }
   0x3   :  { %3396 = sst [smem:[#allocation16_spill]] %s3374_s2 }
   0x4   :  { %3397 = sst [smem:[#allocation17_spill]] %s3375_s3 }
   0x5   :  { %3398 = sst [smem:[#allocation18_spill]] %s3376_s4 }
   0x6   :  { %3399 = sst [smem:[#allocation19_spill]] %s3377_s5 }
   0x7   :  { %3400 = sst [smem:[#allocation20_spill]] %s3378_s6 }
   0x8   :  { %3401 = sst [smem:[#allocation21_spill]] %s3379_s7 }
   0x9   :  { %3402 = sst [smem:[#allocation22_spill]] %s3380_s8 }
   0xa   :  { %3403 = sst [smem:[#allocation23_spill]] %s3381_s9 }
   0xb   :  { %3404 = sst [smem:[#allocation24_spill]] %s3382_s10 }
   0xc   :  { %3405 = sst [smem:[#allocation25_spill]] %s3383_s11 }
   0xd   :  { %17 = vsyncpa [#allocation4], 0 }
   0xe   :  { %19 = vsyncpa [#allocation4 + $0x1], 0  ;;  %s2544_s17 = smov 0   ;;  %s2546_s18 = smov 0  }
   0xf   :  { %s2548_s19 = smov 0   ;;  %s2550_s20 = smov 0  }
  0x10   :  { %s2552_s21 = smov 0   ;;  %s2554_s22 = smov 0  }
  0x11   :  { %s2556_s23 = smov 0   ;;  %s2558_s24 = smov 0  }
  0x12   :  { %s2560_s25 = smov 0   ;;  %s2562_s26 = smov 0  }
  0x13   :  { %s2564_s27 = smov 0   ;;  %s2566_s28 = smov 0  }
  0x14 LB: > { %3406 = sst [smem:[#allocation6_spill]] %s2453_s22  ;;  %s2058_s29 = sadd.s32 4294967295, %s2477_s28   ;;  %s2477_s28 = sphi %s2566_s28, %s25_s28   ;;  %s2473_s27 = sphi %s2564_s27, %s3449_s27   ;;  %s2469_s26 = sphi %s2562_s26, %s3448_s26   ;;  %s2465_s25 = sphi %s2560_s25, %s3439_s25   ;;  %s2461_s24 = sphi %s2558_s24, %s3447_s24   ;;  %s2457_s23 = sphi %s2556_s23, %s3446_s23   ;;  %s2453_s22 = sphi %s2554_s22, %s3438_s22   ;;  %s2449_s21 = sphi %s2552_s21, %s3445_s21   ;;  %s2445_s20 = sphi %s2550_s20, %s3444_s20   ;;  %s2441_s19 = sphi %s2548_s19, %s3443_s19   ;;  %s2437_s18 = sphi %s2546_s18, %s3442_s18   ;;  %s2433_s17 = sphi %s2544_s17, %s3441_s17  }
  0x15   : > { %3407 = sst [smem:[#allocation7_spill]] %s2465_s25  ;;  %s2059_s30 = sadd.s32 4294967294, %s2477_s28  }
  0x16   : > { %s37_s12 = sadd.s32 1, %s2465_s25  ;;  %s40_s13 = sadd.s32 1, %s2469_s26 }
  0x17   : > { %p38_p0 = scmp.ge.s32.totalorder %s37_s12, 4  ;;  %s44_s14 = sadd.s32 1, %s2473_s27 }
  0x18   : > { %p60_p1 = scmp.ne.s32.totalorder %s2449_s21, %s2445_s20  ;;  %p61_p2 = scmp.eq.s32.totalorder %s2477_s28, 0 }
  0x19   : > { %s3451_s12 = smov (%p38_p0, %s37_s12), 0  ;;  %s3453_s13 = smov (!%p38_p0, %s40_s13), %s2469_s26 }
  0x1a   : > { %3408 = sst [smem:[#allocation8_spill]] %s3451_s12  ;;  %s2060_s16 = sshll.u32 %s2465_s25, 2 }
  0x1b   : > { %p42_p3 = scmp.ge.s32.totalorder %s3453_s13, 4  ;;  %s293_s11 = sadd.s32 %s2469_s26, %s2060_s16 }
  0x1c   : > { %p2618_p4 = por %p61_p2, %p60_p1  ;;  %s2061_s15 = sshll.u32 %s3451_s12, 2 }
  0x1d   : > { %s3455_s13 = smov (%p42_p3, %s3453_s13), 0  ;;  %s3457_s14 = smov (!%p42_p3, %s44_s14), %s2473_s27 }
  0x1e   : > { %3410 = sst [smem:[#allocation9_spill]] %s3455_s13  ;;  %s49_s22 = ssub.s32 %s2469_s26, %s3455_s13 }
  0x1f   : > { %s295_s8 = sadd.s32 %s2061_s15, %s3455_s13  ;;  %p46_p5 = scmp.ge.s32.totalorder %s3457_s14, 2 }
  0x20   : > { %s297_s25 = ssub.s32 %s293_s11, %s295_s8  ;;  %s301_s6 = sadd.s32 1, %s2441_s19 }
  0x21   : > { %p311_p6 = scmp.ne.s32.totalorder %s2441_s19, %s2437_s18  ;;  %s3459_s14 = smov (%p46_p5, %s3457_s14), 0 }
  0x22   : > { %p312_p7 = scmp.eq.s32.totalorder %s2058_s29, 31  ;;  %p317_p8 = scmp.ne.s32.totalorder %s2437_s18, %s2433_s17 }
  0x23   : > { %s48_s16 = ssub.s32 %s2473_s27, %s3459_s14  ;;  %p318_p9 = scmp.eq.s32.totalorder %s2059_s30, 31 }
  0x24   : > { %s50_s12 = sor.u32 %s49_s22, %s48_s16  ;;  %s298_s1 = sor.u32 %s297_s25, %s48_s16 }
  0x25   : > { %p51_p10 = scmp.eq.s32.totalorder %s50_s12, 0  ;;  %p299_p11 = scmp.eq.s32.totalorder %s298_s1, 0 }
  0x26   : > { %p2638_p12 = por %p312_p7, %p311_p6  ;;  %p2642_p13 = por %p318_p9, %p317_p8 }
  0x27   : > { %s3413_s8 = sadd.s32 1, %s2449_s21  ;;  %p2065_p0 = scmp.ge.s32.totalorder %s2477_s28, 32 }
  0x28   : > { %s2649_s11 = scalar_select %p51_p10, %s2449_s21, %s3413_s8  }
  0x29   : > { %s2652_s7 = scalar_select %p299_p11, %s2441_s19, %s301_s6  }
  0x2a   : > { %378 = sbr.rel (%p2065_p0) target bundleno = 73 (0x49), region = 32 }
  0x2f   : > { %381 = sbr.rel (!%p2618_p4) target bundleno = 73 (0x49), region = 36  ;;  %s383_s1 = sand.u32 (%p2618_p4), 1, %s2449_s21  }
  0x30   : > { %s2067_s22 = sshll.u32 (%p2618_p4), %s2469_s26, 3  ;;  %s2066_s25 = sshll.u32 (%p2618_p4), %s383_s1, 7 }
  0x31   : > { %s2068_s29 = sshll.u32 (%p2618_p4), %s2473_s27, 7  ;;  %s3414_s0 = sld [smem:[#allocation14_spill]] (%p2618_p4) }
  0x32   : > { %s388_s30 = sadd.s32 (%p2618_p4), %s2068_s29, %s2067_s22  ;;  %s385_s10 = scalar_lea.vmem (%p2618_p4), [#allocation2], %s2066_s25 }
  0x33   : > { %s2069_s12 = sshll.u32 (%p2618_p4), %s388_s30, 2 }
  0x37   : > { %s2663_s6 = scalar_lea.vmem %s3414_s0, %s2069_s12 }
  0x38   : > { %v403_v0 = vld [vmem:[%s2663_s6] sm:$0xff]  ;;  %v405_v1 = vld [vmem:[%s2663_s6 + $0x8] sm:$0xff]  ;;  %v407_v2 = vld [vmem:[%s2663_s6 + $0x10] sm:$0xff] }
  0x39   : > { %404 = vst [vmem:[%s385_s10] sm:$0xff] %v403_v0  ;;  %v409_v3 = vld [vmem:[%s2663_s6 + $0x18] sm:$0xff]  ;;  %v411_v4 = vld [vmem:[%s2663_s6 + $0x80] sm:$0xff]  ;;  %v413_v5 = vld [vmem:[%s2663_s6 + $0x88] sm:$0xff] }
  0x3a   : > { %406 = vst [vmem:[%s385_s10 + $0x8] sm:$0xff] %v405_v1  ;;  %v415_v6 = vld [vmem:[%s2663_s6 + $0x90] sm:$0xff]  ;;  %v417_v7 = vld [vmem:[%s2663_s6 + $0x98] sm:$0xff]  ;;  %v419_v8 = vld [vmem:[%s2663_s6 + $0x100] sm:$0xff] }
  0x3b   : > { %408 = vst [vmem:[%s385_s10 + $0x10] sm:$0xff] %v407_v2  ;;  %v421_v9 = vld [vmem:[%s2663_s6 + $0x108] sm:$0xff]  ;;  %v423_v10 = vld [vmem:[%s2663_s6 + $0x110] sm:$0xff]  ;;  %v425_v11 = vld [vmem:[%s2663_s6 + $0x118] sm:$0xff] }
  0x3c   : > { %410 = vst [vmem:[%s385_s10 + $0x18] sm:$0xff] %v409_v3  ;;  %v427_v12 = vld [vmem:[%s2663_s6 + $0x180] sm:$0xff]  ;;  %v429_v13 = vld [vmem:[%s2663_s6 + $0x188] sm:$0xff]  ;;  %v431_v14 = vld [vmem:[%s2663_s6 + $0x190] sm:$0xff] }
  0x3d   : > { %412 = vst [vmem:[%s385_s10 + $0x20] sm:$0xff] %v411_v4  ;;  %v433_v15 = vld [vmem:[%s2663_s6 + $0x198] sm:$0xff] }
  0x3e   : > { %414 = vst [vmem:[%s385_s10 + $0x28] sm:$0xff] %v413_v5 }
  0x3f   : > { %416 = vst [vmem:[%s385_s10 + $0x30] sm:$0xff] %v415_v6 }
  0x40   : > { %418 = vst [vmem:[%s385_s10 + $0x38] sm:$0xff] %v417_v7 }
  0x41   : > { %420 = vst [vmem:[%s385_s10 + $0x40] sm:$0xff] %v419_v8 }
  0x42   : > { %422 = vst [vmem:[%s385_s10 + $0x48] sm:$0xff] %v421_v9 }
  0x43   : > { %424 = vst [vmem:[%s385_s10 + $0x50] sm:$0xff] %v423_v10 }
  0x44   : > { %426 = vst [vmem:[%s385_s10 + $0x58] sm:$0xff] %v425_v11 }
  0x45   : > { %428 = vst [vmem:[%s385_s10 + $0x60] sm:$0xff] %v427_v12 }
  0x46   : > { %430 = vst [vmem:[%s385_s10 + $0x68] sm:$0xff] %v429_v13 }
  0x47   : > { %432 = vst [vmem:[%s385_s10 + $0x70] sm:$0xff] %v431_v14 }
  0x48   : > { %434 = vst [vmem:[%s385_s10 + $0x78] sm:$0xff] %v433_v15 }
  0x49 PF: > { %p2070_p1 = scmp.ge.s32.totalorder %s2477_s28, 1  ;;  %p483_p2 = scmp.lt.s32.totalorder %s2477_s28, 33 }
  0x4b   : > { %p484_p3 = pnand %p2070_p1, %p483_p2 }
  0x4d   : > { %487 = sbr.rel (%p484_p3) target bundleno = 621 (0x26d), region = 79 }
  0x52   : > { %s490_s1 = sand.u32 1, %s2445_s20   ;;  %p570_p4 = scmp.lt.s32.totalorder %s2461_s24, 1  ;;  %v2479_v16 = vmov 0   ;;  %v2480_v17 = vmov 1   ;;  %vm814_vm0 = vcmask 261120  }
  0x53   : > { %s2071_s22 = sshll.u32 %s490_s1, 7  ;;  %2345 = vset.pattern.permute.xlu0 %v2479_v16  ;;  %s2073_s25 = sshll.u32 %s2457_s23, 3  ;;  %2346 = vset.pattern.permute.xlu1 %v2480_v17 }
  0x54   : > { %p2688_p5 = scmp.lt.s32.totalorder %s2073_s25, 31  ;;  %2347 = vset.pattern.permute.xlu2 %v2479_v16  ;;  %s2693_s30 = scalar_lea.vmem [#allocation2], %s2071_s22 }
  0x55   : > { %v2129_v18 = vld [vmem:[%s2693_s30 + $0x40] sm:$0xf]  ;;  %v2225_v20 = vld [vmem:[%s2693_s30 + $0x44] sm:$0xf]  ;;  %v2137_v23 = vld [vmem:[%s2693_s30 + $0x48] sm:$0xf] }
  0x56   : > { %v2229_v19 = vld [vmem:[%s2693_s30 + $0x5c] sm:$0xf0]  ;;  %v2131_v22 = vld [vmem:[%s2693_s30 + $0x60] sm:$0xf0]  ;;  %v2230_v24 = vld [vmem:[%s2693_s30 + $0x64] sm:$0xf0] }
  0x57   : > { %v2130_v21 = vor.u32 %v2229_v19, %v2129_v18  ;;  %v2134_v25 = vor.u32 %v2225_v20, %v2131_v22  ;;  %v2138_v26 = vor.u32 %v2230_v24, %v2137_v23  ;;  %v2226_v27 = vld [vmem:[%s2693_s30 + $0x4c] sm:$0xf]  ;;  %s2706_s20 = scalar_select %p570_p4, %s2461_s24, 1  ;;  %v2097_v30 = vld [vmem:[%s2693_s30] sm:$0xf] }
  0x58   : > { %v2139_v28 = vld [vmem:[%s2693_s30 + $0x68] sm:$0xf0]  ;;  %s3461_s25 = smov (!%p2688_p5, %s2073_s25), 31  ;;  %v2221_v31 = vld [vmem:[%s2693_s30 + $0x1c] sm:$0xf0]  ;;  %s3416_s3 = sld [smem:[#allocation17_spill]] }
  0x59   : > { %827 = vmatpush.bf16.msra.mxu0 %v2130_v21  ;;  %v2142_v29 = vor.u32 %v2226_v27, %v2139_v28  ;;  %846 = vmatpush.bf16.msra.mxu1 %v2134_v25  ;;  %s2074_s12 = sshll.u32 %s2706_s20, 5  ;;  %s2214_s16 = sshll.u32 %s2706_s20, 4  ;;  %v2098_v32 = vor.u32 %v2221_v31, %v2097_v30  ;;  %v2217_v33 = vld [vmem:[%s2693_s30 + $0x4] sm:$0xf]  ;;  %v2105_v36 = vld [vmem:[%s2693_s30 + $0x8] sm:$0xf] }
  0x5a   : > { %865 = vmatpush.bf16.msra.mxu2 %v2138_v26  ;;  %v2099_v34 = vld [vmem:[%s2693_s30 + $0x20] sm:$0xf0]  ;;  %s3417_s4 = sld [smem:[#allocation18_spill]]  ;;  %v2222_v37 = vld [vmem:[%s2693_s30 + $0x24] sm:$0xf0]  ;;  %s575_s0 = sadd.s32 %s2074_s12, %s3461_s25 }
  0x5b   : > { %884 = vmatpush.bf16.msra.mxu3 %v2142_v29  ;;  %v2102_v35 = vor.u32 %v2217_v33, %v2099_v34  ;;  %v2218_v38 = vld [vmem:[%s2693_s30 + $0xc] sm:$0xf]  ;;  %v2106_v41 = vor.u32 %v2222_v37, %v2105_v36  ;;  %s2075_s8 = sshll.u32 %s575_s0, 2  ;;  %s3418_s2 = sld [smem:[#allocation16_spill]]  ;;  %v2145_v50 = vld [vmem:[%s2693_s30 + $0x50] sm:$0xf] }
  0x5c   : > { %v2107_v42 = vld [vmem:[%s2693_s30 + $0x28] sm:$0xf0]  ;;  %v2231_v51 = vld [vmem:[%s2693_s30 + $0x6c] sm:$0xf0]  ;;  %v2227_v52 = vld [vmem:[%s2693_s30 + $0x54] sm:$0xf] }
  0x5d   : > { %828 = vmatpush.bf16.msra.mxu0 %v2098_v32  ;;  %847 = vmatpush.bf16.msra.mxu1 %v2102_v35  ;;  %v2110_v43 = vor.u32 %v2218_v38, %v2107_v42  ;;  %v2146_v53 = vor.u32 %v2231_v51, %v2145_v50  ;;  %v2147_v54 = vld [vmem:[%s2693_s30 + $0x70] sm:$0xf0]  ;;  %v2153_v55 = vld [vmem:[%s2693_s30 + $0x58] sm:$0xf]  ;;  %v2228_v58 = vld [vmem:[%s2693_s30 + $0x5c] sm:$0xf] }
  0x5e   : > { %s2721_s10 = scalar_lea.vmem %s3416_s3, %s2214_s16  ;;  %866 = vmatpush.bf16.msra.mxu2 %v2106_v41  ;;  %v2150_v56 = vor.u32 %v2227_v52, %v2147_v54  ;;  %v2232_v57 = vld [vmem:[%s2693_s30 + $0x74] sm:$0xf0]  ;;  %v2155_v61 = vld [vmem:[%s2693_s30 + $0x78] sm:$0xf0]  ;;  %v2113_v62 = vld [vmem:[%s2693_s30 + $0x10] sm:$0xf] }
  0x5f   : > { %v2733_v40 = vld [vmem:[%s2721_s10] sm:$0xff]  ;;  %885 = vmatpush.bf16.msra.mxu3 %v2110_v43  ;;  %v2154_v60 = vor.u32 %v2232_v57, %v2153_v55  ;;  %v2158_v63 = vor.u32 %v2228_v58, %v2155_v61  ;;  %v2223_v0 = vld [vmem:[%s2693_s30 + $0x2c] sm:$0xf0]  ;;  %v2219_v1 = vld [vmem:[%s2693_s30 + $0x14] sm:$0xf]  ;;  %s3419_s5 = sld [smem:[#allocation19_spill]] }
  0x60   : > { %s2726_s29 = scalar_lea.vmem %s3417_s4, %s2074_s12  ;;  %2159 = vmatmul.msk.bf16.vlgmr.msra.gmra.mxu0 %vm814_vm0, %v2733_v40  ;;  %2161 = vmatmul.msk.bf16.vlgmr.msra.gmra.mxu1 %vm814_vm0, %v2733_v40  ;;  %v2115_v2 = vld [vmem:[%s2693_s30 + $0x30] sm:$0xf0]  ;;  %v2114_v3 = vor.u32 %v2223_v0, %v2113_v62  ;;  %v2121_v5 = vld [vmem:[%s2693_s30 + $0x18] sm:$0xf]  ;;  %v2220_v7 = vld [vmem:[%s2693_s30 + $0x1c] sm:$0xf] }
  0x61   : > { %v640_v39 = vld [vmem:[%s2726_s29 + $0x10] sm:$0xff]  ;;  %s577_s22 = scalar_lea.vmem %s3418_s2, %s2075_s8  ;;  %v638_v44 = vld [vmem:[%s2726_s29] sm:$0xff]  ;;  %v641_v49 = vld [vmem:[%s2726_s29 + $0x18] sm:$0xff]  ;;  %2163 = vmatmul.msk.bf16.vlgmr.msra.gmra.mxu2 %vm814_vm0, %v2733_v40  ;;  %903 = vmatpush.bf16.msrb.mxu0 %v2146_v53  ;;  %v2118_v4 = vor.u32 %v2219_v1, %v2115_v2  ;;  %s3420_s9 = sld [smem:[#allocation23_spill]] }
  0x62   : > { %658 = vperm.xlu0 %2345, %v640_v39   ;;  %v634_v45 = vld [vmem:[%s577_s22] sm:$0x77]  ;;  %v635_v46 = vld [vmem:[%s577_s22 + $0x8] sm:$0x77]  ;;  %v636_v47 = vld [vmem:[%s577_s22 + $0x10] sm:$0x77]  ;;  %982 = vperm.xlu1 %2346, %v640_v39  }
  0x63   : > { %648 = vperm.xlu2 %2347, %v638_v44   ;;  %v637_v48 = vld [vmem:[%s577_s22 + $0x18] sm:$0x77]  ;;  %1767 = vst [vmem:[#allocation1] ss:$2 sm:$0xff] %v634_v45  ;;  %2165 = vmatmul.msk.bf16.vlgmr.msra.gmra.mxu3 %vm814_vm0, %v2733_v40  ;;  %v639_v59 = vld [vmem:[%s2726_s29 + $0x8] sm:$0xff]  ;;  %s3422_s25 = sld [smem:[#allocation15_spill]] }
  0x64   : > { %1769 = vst [vmem:[#allocation1 + $0x10] ss:$2 sm:$0xff] %v635_v46  ;;  %922 = vmatpush.bf16.msrb.mxu1 %v2150_v56  ;;  %941 = vmatpush.bf16.msrb.mxu2 %v2154_v60  ;;  %v2224_v6 = vld [vmem:[%s2693_s30 + $0x34] sm:$0xf0]  ;;  %v2123_v9 = vld [vmem:[%s2693_s30 + $0x38] sm:$0xf0] }
  0x65   : > { %1771 = vst [vmem:[#allocation1 + $0x20] ss:$2 sm:$0xff] %v636_v47  ;;  %v2122_v8 = vor.u32 %v2224_v6, %v2121_v5  ;;  %960 = vmatpush.bf16.msrb.mxu3 %v2158_v63  ;;  %904 = vmatpush.bf16.msrb.mxu0 %v2114_v3  ;;  %v2126_v10 = vor.u32 %v2220_v7, %v2123_v9  ;;  %v2234_v11 = vld [vmem:[%s2721_s10 + $0x8] sm:$0xff]  ;;  %v1079_v12 = vld [vmem:[%s3419_s5 + $0x10] sm:$0xff]  ;;  %v1080_v14 = vld [vmem:[%s3419_s5 + $0x18] sm:$0xff]  ;;  %s3421_s30 = sld [smem:[#allocation21_spill]] }
  0x66   : > { %1773 = vst [vmem:[#allocation1 + $0x30] ss:$2 sm:$0xff] %v637_v48  ;;  %v1078_v13 = vld [vmem:[%s3419_s5 + $0x8] sm:$0xff]  ;;  %v1077_v15 = vld [vmem:[%s3419_s5] sm:$0xff]  ;;  %s3428_s1 = sld [smem:[#allocation20_spill]]  ;;  %s2082_s10 = sshll.u32 %s2706_s20, 1 }
  0x67   : > { %s3433_s6 = sld [smem:[#allocation22_spill]]  ;;  %s2210_s29 = sshll.u32 %s2461_s24, 9 }
  0x68   : > { %923 = vmatpush.bf16.msrb.mxu1 %v2118_v4  ;;  %942 = vmatpush.bf16.msrb.mxu2 %v2122_v8  ;;  %s3436_s3 = sand.u32 1, %s2437_s18  }
  0x69   : > { %961 = vmatpush.bf16.msrb.mxu3 %v2126_v10  ;;  %s3423_s12 = smov %s3422_s25  ;;  %v632_v24 = vld [vmem:[%s3422_s25] sm:$0xff] }
  0x6a   : > { %663 = vperm.xlu0 %2345, %v641_v49   ;;  %986 = vperm.xlu1 %2346, %v641_v49   ;;  %v668_v25 = vperm.slane %v632_v24, 0  ;;  %v669_v26 = vperm.slane %v632_v24, 2  ;;  %v670_v29 = vperm.slane %v632_v24, 4  ;;  %v671_v31 = vperm.slane %v632_v24, 6  ;;  %v633_v36 = vld [vmem:[%s3423_s12 + $0x8] sm:$0xff] }
  0x6b   : > { %653 = vperm.xlu2 %2347, %v639_v59   ;;  %v1251_v18 = vld [vmem:[%s3421_s30 + $0x10] sm:$0xff]  ;;  %v1252_v19 = vld [vmem:[%s3421_s30 + $0x18] sm:$0xff]  ;;  %v1250_v20 = vld [vmem:[%s3421_s30 + $0x8] sm:$0xff]  ;;  %v991_v38 = vperm.slane %v632_v24, 5  ;;  %v992_v41 = vperm.slane %v632_v24, 7  ;;  %v989_v42 = vperm.slane %v632_v24, 1 }
  0x6c   : > { %v2826_v30 = vperm.slane %v668_v25, 0  ;;  %v2830_v34 = vperm.slane %v669_v26, 0  ;;  %v2835_v37 = vperm.slane %v670_v29, 0  ;;  %v993_v45 = vperm.slane %v633_v36, 1  ;;  %s3007_s22 = scalar_lea.vmem %s3428_s1, %s2214_s16  ;;  %s3392_s16 = sand.u32 1, %s2437_s18  }
  0x6d   : > { %v994_v46 = vperm.slane %v633_v36, 3  ;;  %v672_v47 = vperm.slane %v633_v36, 0  ;;  %v673_v48 = vperm.slane %v633_v36, 2  ;;  %v995_v49 = vperm.slane %v633_v36, 5  ;;  %s2072_s0 = sshll.u32 %s3392_s16, 7  ;;  %s597_s1 = scalar_lea.vmem %s3433_s6, %s2082_s10 }
  0x6e   : > { %v996_v50 = vperm.slane %v633_v36, 7  ;;  %v2847_v52 = vperm.slane %v991_v38, 1  ;;  %v674_v53 = vperm.slane %v633_v36, 4  ;;  %v675_v54 = vperm.slane %v633_v36, 6  ;;  %s3187_s25 = scalar_lea.vmem [#allocation3], %s2072_s0 }
  0x6f   : > { %v2855_v58 = vperm.slane %v992_v41, 1  ;;  %v2859_v60 = vperm.slane %v989_v42, 1  ;;  %v2865_v1 = vperm.slane %v993_v45, 1  ;;  %v2867_v2 = vperm.slane %v994_v46, 1  ;;  %s1851_s24 = sshll.u32 %s3187_s25, 4  ;;  %s1852_s24 = int_to_ptr.vmem [resolvable:$true] %s1851_s24 }
  0x70   : > { %2160 = vmatmul.msk.bf16.gmra.mxu0 %vm814_vm0, %v2234_v11  ;;  %2162 = vmatmul.msk.bf16.gmra.mxu1 %vm814_vm0, %v2234_v11  ;;  %v2869_v5 = vperm.slane %v672_v47, 0  ;;  %v2871_v6 = vperm.slane %v673_v48, 0  ;;  %v2873_v7 = vperm.slane %v995_v49, 1  ;;  %v2875_v8 = vperm.slane %v996_v50, 1 }
  0x71   : > { %2164 = vmatmul.msk.bf16.gmra.mxu2 %vm814_vm0, %v2234_v11 }
  0x72   : > { %2348 = vset.pattern.permute.xlu0 %v2480_v17  ;;  %978 = vperm.xlu1 %2346, %v639_v59   ;;  %v1570_v17 = vld [vmem:[%s3420_s9] sm:$0x7] }
  0x73   : > { %974 = vperm.xlu0 %2348, %v638_v44   ;;  %1093 = vperm.xlu2 %2347, %v1079_v12   ;;  %v990_v44 = vperm.slane %v632_v24, 3  ;;  %v2887_v12 = vperm.slane %v674_v53, 0 }
  0x74   : > { %2166 = vmatmul.msk.bf16.gmra.mxu3 %vm814_vm0, %v2234_v11 }
  0x75   : > { %v1006_v0 = vperm.slane %v990_v44, 1 }
  0x7a   : > { %2349 = vset.pattern.permute.xlu1 %v2479_v16 }
  0x7b   : > { %2350 = vset.pattern.permute.xlu0 %v2479_v16  ;;  %1098 = vperm.xlu1 %2349, %v1080_v14   ;;  %v1249_v16 = vld [vmem:[%s3421_s30] sm:$0xff] }
  0x7c   : > { %1088 = vperm.xlu0 %2350, %v1078_v13   ;;  %1083 = vperm.xlu2 %2347, %v1077_v15   ;;  %v2889_v13 = vperm.slane %v675_v54, 0 }
  0x80   : > { %2167 = vmatmul.msk.bf16.vlgmr.msrb.gmra.mxu0 %vm814_vm0, %v2733_v40  ;;  %2169 = vmatmul.msk.bf16.vlgmr.msrb.gmra.mxu1 %vm814_vm0, %v2733_v40 }
  0x81   : > { %2171 = vmatmul.msk.bf16.vlgmr.msrb.gmra.mxu2 %vm814_vm0, %v2733_v40 }
  0x83   : > { %1265 = vperm.xlu1 %2349, %v1251_v18  }
  0x84   : > { %1573 = vperm.xlu0 %2350, %v1570_v17   ;;  %1270 = vperm.xlu2 %2347, %v1252_v19  }
  0x85   : > { %2173 = vmatmul.msk.bf16.vlgmr.msrb.gmra.mxu3 %vm814_vm0, %v2733_v40  ;;  %v2839_v40 = vperm.slane %v671_v31, 0 }
  0x8b   : > { %1255 = vperm.xlu1 %2349, %v1249_v16  }
  0x8c   : > { %1260 = vperm.xlu2 %2347, %v1250_v20  }
  0x90   : > { %2168 = vmatmul.msk.bf16.gmra.mxu0 %vm814_vm0, %v2234_v11  ;;  %2170 = vmatmul.msk.bf16.gmra.mxu1 %vm814_vm0, %v2234_v11 }
  0x91   : > { %2172 = vmatmul.msk.bf16.gmra.mxu2 %vm814_vm0, %v2234_v11 }
  0x95   : > { %2174 = vmatmul.msk.bf16.gmra.mxu3 %vm814_vm0, %v2234_v11 }
  0xbd   : > { %v2813_v21 = vpop.permute.xlu2 %648 }
  0xbe   : > { %v692_v39 = vmul.f32 %v2826_v30, %v2813_v21  ;;  %v693_v43 = vmul.f32 %v2830_v34, %v2813_v21  ;;  %v2845_v51 = vmul.f32 %v2835_v37, %v2813_v21  ;;  %v2853_v57 = vmul.f32 %v2839_v40, %v2813_v21 }
  0xbf   : > { %v2893_v15 = vmul.f32 %v2869_v5, %v2813_v21  ;;  %v2897_v17 = vmul.f32 %v2871_v6, %v2813_v21  ;;  %v2903_v16 = vmul.f32 %v2887_v12, %v2813_v21  ;;  %v2907_v20 = vmul.f32 %v2889_v13, %v2813_v21 }
  0xc1   : > { %3425 = vst [vmem:[#allocation11_spill] sm:$0xff] %v2907_v20 }
  0xc5   : > { %v2822_v27 = vpop.permute.xlu2 %653 }
  0xc6   : > { %v700_v59 = vmul.f32 %v2826_v30, %v2822_v27  ;;  %v701_v63 = vmul.f32 %v2830_v34, %v2822_v27  ;;  %v2881_v10 = vmul.f32 %v2835_v37, %v2822_v27  ;;  %v2885_v11 = vmul.f32 %v2839_v40, %v2822_v27 }
  0xc7   : > { %v2922_v21 = vmul.f32 %v2869_v5, %v2822_v27  ;;  %v2926_v36 = vmul.f32 %v2871_v6, %v2822_v27  ;;  %v2938_v48 = vmul.f32 %v2889_v13, %v2822_v27 }
  0xc9   : > { %3427 = vst [vmem:[#allocation13_spill] sm:$0xff] %v2938_v48 }
  0xcd   : > { %v2849_v55 = vpop.permute.xlu2 %1093 }
  0xd4   : > { %v2815_v22 = vpop.permute.xlu0 %658  ;;  %v2817_v23 = vpop.permute.xlu1 %982 }
  0xd5   : > { %v708_v29 = vmul.f32 %v2826_v30, %v2815_v22  ;;  %v709_v31 = vmul.f32 %v2830_v34, %v2815_v22  ;;  %v1029_v45 = vmul.f32 %v2859_v60, %v2817_v23  ;;  %v1030_v46 = vmul.f32 %v1006_v0, %v2817_v23 }
  0xdc   : > { %v2824_v28 = vpop.permute.xlu0 %663  ;;  %v2828_v32 = vpop.permute.xlu1 %986 }
  0xdd   : > { %3424 = vst [vmem:[#allocation10_spill] sm:$0xff] %v2828_v32  ;;  %v830_v33 = vpop.f32.mrf.mxu0  ;;  %v849_v35 = vpop.f32.mrf.mxu1 }
  0xde   : > { %v831_v14 = vadd.f32 %v830_v33, %v692_v39  ;;  %v850_v19 = vadd.f32 %v849_v35, %v693_v43  ;;  %v710_v33 = vmul.f32 %v2835_v37, %v2815_v22  ;;  %v711_v35 = vmul.f32 %v2839_v40, %v2815_v22 }
  0xdf   : > { %v2931_v43 = vmul.f32 %v2887_v12, %v2822_v27  ;;  %v717_v27 = vmul.f32 %v2830_v34, %v2824_v28  ;;  %v2965_v34 = vmul.f32 %v2839_v40, %v2824_v28  ;;  %v2978_v40 = vmul.f32 %v2855_v58, %v2828_v32 }
  0xe1   : > { %3426 = vst [vmem:[#allocation12_spill] sm:$0xff] %v2931_v43 }
  0xe4   : > { %v868_v56 = vpop.f32.mrf.mxu2  ;;  %v2877_v9 = vpop.permute.xlu1 %978 }
  0xe5   : > { %v2861_v61 = vpop.permute.xlu0 %974  ;;  %v832_v62 = vpop.f32.mrf.mxu0  ;;  %v1021_v26 = vmul.f32 %v2859_v60, %v2877_v9  ;;  %v1022_v39 = vmul.f32 %v1006_v0, %v2877_v9 }
  0xe6   : > { %v887_v3 = vpop.f32.mrf.mxu3  ;;  %v851_v4 = vpop.f32.mrf.mxu1  ;;  %v1013_v18 = vmul.f32 %v2859_v60, %v2861_v61  ;;  %v1014_v24 = vmul.f32 %v1006_v0, %v2861_v61  ;;  %v833_v25 = vadd.f32 %v832_v62, %v700_v59  ;;  %v1031_v59 = vmul.f32 %v2847_v52, %v2817_v23 }
  0xe7   : > { %v852_v38 = vadd.f32 %v851_v4, %v701_v63  ;;  %v1032_v62 = vmul.f32 %v2855_v58, %v2817_v23  ;;  %v2944_v63 = vpop.permute.xlu2 %1083 }
  0xe8   : > { %v1045_v42 = vadd.f32 %v1013_v18, %v831_v14  ;;  %v1046_v47 = vadd.f32 %v1014_v24, %v850_v19  ;;  %v1053_v49 = vadd.f32 %v1021_v26, %v833_v25  ;;  %v716_v18 = vmul.f32 %v2826_v30, %v2824_v28 }
  0xe9   : > { %v2954_v19 = vmul.f32 %v2835_v37, %v2824_v28  ;;  %v869_v24 = vadd.f32 %v868_v56, %v2845_v51  ;;  %v1015_v25 = vmul.f32 %v2847_v52, %v2861_v61  ;;  %v1054_v26 = vadd.f32 %v1022_v39, %v852_v38 }
  0xea   : > { %v1016_v30 = vmul.f32 %v2855_v58, %v2861_v61  ;;  %v1102_v37 = vadd.f32 %v2944_v63, %v1046_v47  ;;  %v1037_v51 = vmul.f32 %v2859_v60, %v2828_v32  ;;  %v1038_v56 = vmul.f32 %v1006_v0, %v2828_v32 }
  0xeb   : > { %v1039_v39 = vmul.f32 %v2847_v52, %v2828_v32  ;;  %v1024_v60 = vmul.f32 %v2855_v58, %v2877_v9 }
  0xec   : > { %v870_v41 = vpop.f32.mrf.mxu2  ;;  %vm1134_vm2 = vcmp.ge.f32.partialorder %v1102_v37, 0.0  ;;  %v1166_v20 = vmul.f32 0.2, %v1102_v37 }
  0xed   : > { %v835_v44 = vpop.f32.mrf.mxu0 }
  0xee   : > { %v889_v50 = vpop.f32.mrf.mxu3  ;;  %v836_v53 = vadd.f32 %v835_v44, %v708_v29  ;;  %v854_v54 = vpop.f32.mrf.mxu1  ;;  %v1101_v29 = vadd.f32 %v2944_v63, %v1045_v42  ;;  %v2980_v42 = vadd.f32 %v1015_v25, %v869_v24 }
  0xef   : > { %v2946_v4 = vpop.permute.xlu0 %1088  ;;  %v855_v14 = vadd.f32 %v854_v54, %v709_v31  ;;  %v888_v31 = vadd.f32 %v887_v3, %v2853_v57  ;;  %v1023_v57 = vmul.f32 %v2847_v52, %v2877_v9 }
  0xf0   : > { %v1061_v44 = vadd.f32 %v1029_v45, %v836_v53  ;;  %v1109_v38 = vadd.f32 %v2946_v4, %v1053_v49  ;;  %v1165_v0 = vmul.f32 0.2, %v1101_v29  ;;  %v1110_v47 = vadd.f32 %v2946_v4, %v1054_v26 }
  0xf1   : > { %v1062_v3 = vadd.f32 %v1030_v46, %v855_v14  ;;  %v1048_v49 = vadd.f32 %v1016_v30, %v888_v31  ;;  %v871_v53 = vadd.f32 %v870_v41, %v2881_v10  ;;  %vm1133_vm1 = vcmp.ge.f32.partialorder %v1101_v29, 0.0  ;;  %v2991_v30 = vpop.permute.xlu1 %1098 }
  0xf2   : > { %v1117_v52 = vadd.f32 %v2849_v55, %v1061_v44  ;;  %v1173_v25 = vmul.f32 0.2, %v1109_v38  ;;  %vm1141_vm3 = vcmp.ge.f32.partialorder %v1109_v38, 0.0  ;;  %v2988_v31 = vsel %vm1133_vm1, %v1101_v29, %v1165_v0 }
  0xf3   : > { %v1118_v43 = vadd.f32 %v2849_v55, %v1062_v3  ;;  %vm1142_vm4 = vcmp.ge.f32.partialorder %v1110_v47, 0.0  ;;  %v1055_v10 = vadd.f32 %v1023_v57, %v871_v53  ;;  %v890_v41 = vadd.f32 %v889_v50, %v2885_v11 }
  0xf4   : > { %v873_v45 = vpop.f32.mrf.mxu2  ;;  %v1174_v44 = vmul.f32 0.2, %v1110_v47  ;;  %v1205_v3 = vsel %vm1141_vm3, %v1109_v38, %v1173_v25  ;;  %vm1149_vm5 = vcmp.ge.f32.partialorder %v1117_v52, 0.0 }
  0xf5   : > { %v837_v46 = vpop.f32.mrf.mxu0  ;;  %v874_v54 = vadd.f32 %v873_v45, %v710_v33  ;;  %vm1150_vm6 = vcmp.ge.f32.partialorder %v1118_v43, 0.0  ;;  %v1111_v50 = vadd.f32 %v2946_v4, %v1055_v10 }
  0xf6   : > { %v838_v48 = vadd.f32 %v837_v46, %v716_v18  ;;  %v856_v24 = vpop.f32.mrf.mxu1  ;;  %v1181_v18 = vmul.f32 0.2, %v1117_v52 }
  0xf7   : > { %v892_v14 = vpop.f32.mrf.mxu3  ;;  %v857_v58 = vadd.f32 %v856_v24, %v717_v27  ;;  %v1063_v45 = vadd.f32 %v1031_v59, %v874_v54  ;;  %v1182_v27 = vmul.f32 0.2, %v1118_v43  ;;  %vm1143_vm11 = vcmp.ge.f32.partialorder %v1111_v50, 0.0 }
  0xf8   : > { %v893_v32 = vadd.f32 %v892_v14, %v711_v35  ;;  %v1069_v26 = vadd.f32 %v1037_v51, %v838_v48  ;;  %v1198_v48 = vsel %vm1134_vm2, %v1102_v37, %v1166_v20  ;;  %v1213_v20 = vsel %vm1149_vm5, %v1117_v52, %v1181_v18 }
  0xf9   : > { %v1070_v33 = vadd.f32 %v1038_v56, %v857_v58  ;;  %v1056_v56 = vadd.f32 %v1024_v60, %v890_v41  ;;  %v1119_v38 = vadd.f32 %v2849_v55, %v1063_v45  ;;  %v1214_v14 = vsel %vm1150_vm6, %v1118_v43, %v1182_v27 }
  0xfa   : > { %v1125_v46 = vadd.f32 %v2991_v30, %v1069_v26  ;;  %v1064_v29 = vadd.f32 %v1032_v62, %v893_v32  ;;  %v1206_v52 = vsel %vm1142_vm4, %v1110_v47, %v1174_v44  ;;  %v1104_v58 = vadd.f32 %v2944_v63, %v1048_v49 }
  0xfb   : > { %v1126_v35 = vadd.f32 %v2991_v30, %v1070_v33  ;;  %v3017_v26 = vmul.f32 %v2869_v5, %v2815_v22  ;;  %v1112_v10 = vadd.f32 %v2946_v4, %v1056_v56  ;;  %v1183_v41 = vmul.f32 0.2, %v1119_v38  ;;  %v3023_v33 = vld [vmem:[%s3007_s22] sm:$0xff] }
  0xfc   : > { %vm1157_vm7 = vcmp.ge.f32.partialorder %v1125_v46, 0.0  ;;  %v1189_v51 = vmul.f32 0.2, %v1125_v46  ;;  %v875_v11 = vpop.f32.mrf.mxu2  ;;  %v1229_v47 = vpack.c.bf16 %v1205_v3, %v2988_v31  ;;  %vm1151_vm9 = vcmp.ge.f32.partialorder %v1119_v38, 0.0 }
  0xfd   : > { %vm1158_vm8 = vcmp.ge.f32.partialorder %v1126_v35, 0.0  ;;  %v1190_v59 = vmul.f32 0.2, %v1126_v35  ;;  %v906_v57 = vpop.f32.mrf.mxu0  ;;  %v876_v0 = vadd.f32 %v875_v11, %v2954_v19  ;;  %v1120_v19 = vadd.f32 %v2849_v55, %v1064_v29 }
  0xfe   : > { %v925_v54 = vpop.f32.mrf.mxu1  ;;  %v1221_v37 = vsel %vm1157_vm7, %v1125_v46, %v1189_v51  ;;  %v907_v27 = vadd.f32 %v906_v57, %v2893_v15  ;;  %v1176_v3 = vmul.f32 0.2, %v1112_v10  ;;  %v1017_v56 = vmul.f32 %v2865_v1, %v2861_v61 }
  0xff   : > { %v894_v53 = vpop.f32.mrf.mxu3  ;;  %v1237_v62 = vpack.c.bf16 %v1221_v37, %v1213_v20  ;;  %v1222_v24 = vsel %vm1158_vm8, %v1126_v35, %v1190_v59  ;;  %v1071_v60 = vadd.f32 %v1039_v39, %v876_v0  ;;  %v1184_v44 = vmul.f32 0.2, %v1120_v19 }
 0x100   : > { %v895_v32 = vadd.f32 %v894_v53, %v2965_v34  ;;  %v1238_v25 = vpack.c.bf16 %v1222_v24, %v1214_v14  ;;  %v1103_v34 = vadd.f32 %v2944_v63, %v2980_v42  ;;  %v1175_v42 = vmul.f32 0.2, %v1111_v50 }
 0x101   : > { %1295 = vmatpush.bf16.msra.mxu0 %v1237_v62  ;;  %v1127_v39 = vadd.f32 %v2991_v30, %v1071_v60  ;;  %vm1152_vm12 = vcmp.ge.f32.partialorder %v1120_v19, 0.0  ;;  %vm1144_vm15 = vcmp.ge.f32.partialorder %v1112_v10, 0.0  ;;  %v1168_v0 = vmul.f32 0.2, %v1104_v58 }
 0x102   : > { %v1072_v43 = vadd.f32 %v2978_v40, %v895_v32  ;;  %1314 = vmatpush.bf16.msra.mxu1 %v1238_v25  ;;  %v1230_v40 = vpack.c.bf16 %v1206_v52, %v1198_v48  ;;  %v1167_v31 = vmul.f32 0.2, %v1103_v34  ;;  %v1215_v48 = vsel %vm1151_vm9, %v1119_v38, %v1183_v41 }
 0x103   : > { %vm1159_vm10 = vcmp.ge.f32.partialorder %v1127_v39, 0.0  ;;  %v1191_v18 = vmul.f32 0.2, %v1127_v39  ;;  %vm1135_vm14 = vcmp.ge.f32.partialorder %v1103_v34, 0.0  ;;  %v1216_v15 = vsel %vm1152_vm12, %v1120_v19, %v1184_v44 }
 0x104   : > { %v1128_v49 = vadd.f32 %v2991_v30, %v1072_v43  ;;  %v944_v45 = vpop.f32.mrf.mxu2  ;;  %v1207_v53 = vsel %vm1143_vm11, %v1111_v50, %v1175_v42  ;;  %v1049_v20 = vadd.f32 %v1017_v56, %v907_v27  ;;  %v926_v38 = vadd.f32 %v925_v54, %v2897_v17 }
 0x105   : > { %v908_v35 = vpop.f32.mrf.mxu0  ;;  %1296 = vmatpush.bf16.msra.mxu0 %v1229_v47  ;;  %v1223_v11 = vsel %vm1159_vm10, %v1127_v39, %v1191_v18  ;;  %vm1136_vm1 = vcmp.ge.f32.partialorder %v1104_v58, 0.0  ;;  %v1199_v32 = vsel %vm1135_vm14, %v1103_v34, %v1167_v31  ;;  %v1208_v62 = vsel %vm1144_vm15, %v1112_v10, %v1176_v3 }
 0x106   : > { %vm1160_vm13 = vcmp.ge.f32.partialorder %v1128_v49, 0.0  ;;  %v1192_v46 = vmul.f32 0.2, %v1128_v49  ;;  %v927_v51 = vpop.f32.mrf.mxu1  ;;  %1315 = vmatpush.bf16.msra.mxu1 %v1230_v40  ;;  %v1239_v59 = vpack.c.bf16 %v1223_v11, %v1215_v48  ;;  %v1033_v14 = vmul.f32 %v2865_v1, %v2817_v23 }
 0x107   : > { %v713_v24 = vmul.f32 %v2871_v6, %v2815_v22  ;;  %v1018_v50 = vmul.f32 %v2867_v2, %v2861_v61  ;;  %v1231_v19 = vpack.c.bf16 %v1207_v53, %v1199_v32  ;;  %v1034_v17 = vmul.f32 %v2867_v2, %v2817_v23 }
 0x108   : > { %v3027_v29 = vpop.f32.mrf.mxu3  ;;  %v1224_v57 = vsel %vm1160_vm13, %v1128_v49, %v1192_v46  ;;  %2183 = vmatmul.msk.bf16.vlgmr.msra.gmra.mxu0 %vm814_vm0, %v3023_v33  ;;  %1333 = vmatpush.bf16.msra.mxu2 %v1239_v59  ;;  %v714_v54 = vmul.f32 %v2887_v12, %v2815_v22  ;;  %v909_v60 = vadd.f32 %v908_v35, %v2922_v21 }
 0x109   : > { %v1240_v37 = vpack.c.bf16 %v1224_v57, %v1216_v15  ;;  %2185 = vmatmul.msk.bf16.vlgmr.msra.gmra.mxu1 %vm814_vm0, %v3023_v33  ;;  %v1200_v52 = vsel %vm1136_vm1, %v1104_v58, %v1168_v0  ;;  %v3054_v34 = vmul.f32 %v2873_v7, %v2817_v23  ;;  %v715_v43 = vmul.f32 %v2889_v13, %v2815_v22  ;;  %v3102_v0 = vld [vmem:[%s3007_s22 + $0x8] sm:$0xff]  ;;  %s3434_s22 = sld [smem:[#allocation6_spill]] }
 0x10a   : > { %v1105_v10 = vadd.f32 %v2944_v63, %v1049_v20  ;;  %v1050_v41 = vadd.f32 %v1018_v50, %v926_v38  ;;  %v928_v39 = vadd.f32 %v927_v51, %v2926_v36  ;;  %v1232_v47 = vpack.c.bf16 %v1208_v62, %v1200_v52  ;;  %v3429_v51 = vld [vmem:[#allocation10_spill] sm:$0xff] }
 0x10b   : > { %1352 = vmatpush.bf16.msra.mxu3 %v1240_v37  ;;  %v1025_v21 = vmul.f32 %v2865_v1, %v2877_v9  ;;  %v1036_v44 = vmul.f32 %v2875_v8, %v2817_v23  ;;  %v720_v22 = vmul.f32 %v2869_v5, %v2824_v28  ;;  %v945_v18 = vadd.f32 %v944_v45, %v2903_v16 }
 0x10c   : > { %v946_v25 = vpop.f32.mrf.mxu2  ;;  %1334 = vmatpush.bf16.msra.mxu2 %v1231_v19  ;;  %v1026_v36 = vmul.f32 %v2867_v2, %v2877_v9  ;;  %v721_v27 = vmul.f32 %v2871_v6, %v2824_v28  ;;  %v3078_v23 = vmul.f32 %v2887_v12, %v2824_v28  ;;  %v3082_v5 = vmul.f32 %v2889_v13, %v2824_v28  ;;  %v3430_v28 = vld [vmem:[#allocation11_spill] sm:$0xff] }
 0x10d   : > { %v911_v42 = vpop.f32.mrf.mxu0  ;;  %v1057_v35 = vadd.f32 %v1025_v21, %v909_v60  ;;  %v1169_v16 = vmul.f32 0.2, %v1105_v10  ;;  %v3085_v45 = vadd.f32 %v2944_v63, %v1050_v41  ;;  %v1041_v48 = vmul.f32 %v2865_v1, %v3429_v51  ;;  %v3431_v60 = vld [vmem:[#allocation12_spill] sm:$0xff] }
 0x10e   : > { %v912_v58 = vadd.f32 %v911_v42, %v3017_v26  ;;  %v930_v40 = vpop.f32.mrf.mxu1  ;;  %v1019_v26 = vmul.f32 %v2873_v7, %v2861_v61  ;;  %v1058_v6 = vadd.f32 %v1026_v36, %v928_v39  ;;  %v1042_v12 = vmul.f32 %v2867_v2, %v3429_v51 }
 0x10f   : > { %1353 = vmatpush.bf16.msra.mxu3 %v1232_v47  ;;  %v931_v46 = vadd.f32 %v930_v40, %v713_v24  ;;  %2187 = vmatmul.msk.bf16.vlgmr.msra.gmra.mxu2 %vm814_vm0, %v3023_v33  ;;  %vm1137_vm2 = vcmp.ge.f32.partialorder %v1105_v10, 0.0  ;;  %v964_v13 = vadd.f32 %v3027_v29, %v3430_v28  ;;  %v1043_v56 = vmul.f32 %v2873_v7, %v3429_v51  ;;  %s2083_s0 = sshll.u32 %s3434_s22, 2 }
 0x110   : > { %v965_v49 = vpop.f32.mrf.mxu3  ;;  %v1065_v31 = vadd.f32 %v1033_v14, %v912_v58  ;;  %v1051_v11 = vadd.f32 %v1019_v26, %v945_v18  ;;  %v3099_v59 = vmul.f32 %v2875_v8, %v3429_v51  ;;  %v1020_v1 = vmul.f32 %v2875_v8, %v2861_v61  ;;  %s602_s10 = sadd.s32 %s2457_s23, %s2083_s0  ;;  %s3435_s0 = sld [smem:[#allocation24_spill]] }
 0x111   : > { %v1066_v3 = vadd.f32 %v1034_v17, %v931_v46  ;;  %v1113_v15 = vadd.f32 %v2946_v4, %v1057_v35  ;;  %v1027_v2 = vmul.f32 %v2873_v7, %v2877_v9  ;;  %v1028_v29 = vmul.f32 %v2875_v8, %v2877_v9  ;;  %s3293_s8 = sshll.u32 %s602_s10, 3  ;;  %s1824_s10 = scalar_lea.sflag [#allocation4], %s3436_s3 }
 0x112   : > { %2189 = vmatmul.msk.bf16.vlgmr.msra.gmra.mxu3 %vm814_vm0, %v3023_v33  ;;  %v1170_v53 = vmul.f32 0.2, %v3085_v45  ;;  %v1114_v20 = vadd.f32 %v2946_v4, %v1058_v6  ;;  %v1121_v38 = vadd.f32 %v2849_v55, %v1065_v31  ;;  %v3114_v32 = vsel %vm1137_vm2, %v1105_v10, %v1169_v16  ;;  %v3432_v10 = vld [vmem:[#allocation13_spill] sm:$0xff]  ;;  %s1848_s6 = sadd.s32 %s2210_s29, %s3293_s8 }
 0x113   : > { %v1122_v61 = vadd.f32 %v2849_v55, %v1066_v3  ;;  %vm1138_vm3 = vcmp.ge.f32.partialorder %v3085_v45, 0.0  ;;  %v3119_v7 = vadd.f32 %v2944_v63, %v1051_v11  ;;  %v1052_v8 = vadd.f32 %v1020_v1, %v964_v13 }
 0x114   : > { %v949_v57 = vpop.f32.mrf.mxu2  ;;  %v1177_v17 = vmul.f32 0.2, %v1113_v15  ;;  %v947_v52 = vadd.f32 %v946_v25, %v3431_v60  ;;  %vm1145_vm4 = vcmp.ge.f32.partialorder %v1113_v15, 0.0  ;;  %v966_v39 = vadd.f32 %v965_v49, %v3432_v10  ;;  %v3173_v60 = vpop.permute.xlu2 %1270 }
 0x115   : > { %v913_v37 = vpop.f32.mrf.mxu0  ;;  %v950_v62 = vadd.f32 %v949_v57, %v714_v54  ;;  %v1178_v54 = vmul.f32 0.2, %v1114_v20  ;;  %v1185_v47 = vmul.f32 0.2, %v1121_v38  ;;  %vm1153_vm5 = vcmp.ge.f32.partialorder %v1121_v38, 0.0 }
 0x116   : > { %v914_v24 = vadd.f32 %v913_v37, %v720_v22  ;;  %v932_v50 = vpop.f32.mrf.mxu1  ;;  %v1186_v21 = vmul.f32 0.2, %v1122_v61  ;;  %vm1154_vm6 = vcmp.ge.f32.partialorder %v1122_v61, 0.0  ;;  %vm1146_vm7 = vcmp.ge.f32.partialorder %v1114_v20, 0.0 }
 0x117   : > { %v933_v19 = vadd.f32 %v932_v50, %v721_v27  ;;  %v1067_v58 = vadd.f32 %v3054_v34, %v950_v62  ;;  %v1059_v22 = vadd.f32 %v1027_v2, %v947_v52  ;;  %v1209_v36 = vsel %vm1145_vm4, %v1113_v15, %v1177_v17 }
 0x118   : > { %v968_v14 = vpop.f32.mrf.mxu3  ;;  %v1073_v41 = vadd.f32 %v1041_v48, %v914_v24  ;;  %2184 = vmatmul.msk.bf16.gmra.mxu0 %vm814_vm0, %v3102_v0  ;;  %v1060_v46 = vadd.f32 %v1028_v29, %v966_v39  ;;  %v1217_v34 = vsel %vm1153_vm5, %v1121_v38, %v1185_v47  ;;  %v1218_v6 = vsel %vm1154_vm6, %v1122_v61, %v1186_v21 }
 0x119   : > { %v969_v9 = vadd.f32 %v968_v14, %v715_v43  ;;  %v1074_v42 = vadd.f32 %v1042_v12, %v933_v19  ;;  %2186 = vmatmul.msk.bf16.gmra.mxu1 %vm814_vm0, %v3102_v0  ;;  %v1123_v26 = vadd.f32 %v2849_v55, %v1067_v58  ;;  %v1115_v12 = vadd.f32 %v2946_v4, %v1059_v22 }
 0x11a   : > { %v1129_v43 = vadd.f32 %v2991_v30, %v1073_v41  ;;  %v1210_v13 = vsel %vm1146_vm7, %v1114_v20, %v1178_v54  ;;  %v1116_v1 = vadd.f32 %v2946_v4, %v1060_v46  ;;  %v1233_v29 = vpack.c.bf16 %v1209_v36, %v3114_v32 }
 0x11b   : > { %v1068_v25 = vadd.f32 %v1036_v44, %v969_v9  ;;  %v1130_v40 = vadd.f32 %v2991_v30, %v1074_v42  ;;  %vm1155_vm10 = vcmp.ge.f32.partialorder %v1123_v26, 0.0  ;;  %v1179_v20 = vmul.f32 0.2, %v1115_v12 }
 0x11c   : > { %vm1161_vm8 = vcmp.ge.f32.partialorder %v1129_v43, 0.0  ;;  %v1193_v18 = vmul.f32 0.2, %v1129_v43  ;;  %v951_v49 = vpop.f32.mrf.mxu2  ;;  %vm1147_vm14 = vcmp.ge.f32.partialorder %v1115_v12, 0.0  ;;  %vm1139_vm15 = vcmp.ge.f32.partialorder %v3119_v7, 0.0  ;;  %v3182_v21 = vpop.permute.xlu2 %1260 }
 0x11d   : > { %vm1162_vm9 = vcmp.ge.f32.partialorder %v1130_v40, 0.0  ;;  %v1194_v27 = vmul.f32 0.2, %v1130_v40  ;;  %v952_v35 = vadd.f32 %v951_v49, %v3078_v23  ;;  %v1124_v31 = vadd.f32 %v2849_v55, %v1068_v25 }
 0x11e   : > { %v1225_v44 = vsel %vm1161_vm8, %v1129_v43, %v1193_v18  ;;  %v1171_v23 = vmul.f32 0.2, %v3119_v7  ;;  %v1202_v55 = vsel %vm1138_vm3, %v3085_v45, %v1170_v53  ;;  %v1180_v53 = vmul.f32 0.2, %v1116_v1 }
 0x11f   : > { %v1241_v51 = vpack.c.bf16 %v1225_v44, %v1217_v34  ;;  %v1226_v48 = vsel %vm1162_vm9, %v1130_v40, %v1194_v27  ;;  %v1075_v11 = vadd.f32 %v1043_v56, %v952_v35  ;;  %2188 = vmatmul.msk.bf16.gmra.mxu2 %vm814_vm0, %v3102_v0  ;;  %v1187_v56 = vmul.f32 0.2, %v1123_v26 }
 0x120   : > { %v970_v16 = vpop.f32.mrf.mxu3  ;;  %v1242_v28 = vpack.c.bf16 %v1226_v48, %v1218_v6  ;;  %v1188_v4 = vmul.f32 0.2, %v1124_v31  ;;  %v1234_v57 = vpack.c.bf16 %v1210_v13, %v1202_v55  ;;  %vm1156_vm11 = vcmp.ge.f32.partialorder %v1124_v31, 0.0 }
 0x121   : > { %v971_v3 = vadd.f32 %v970_v16, %v3082_v5  ;;  %1371 = vmatpush.bf16.msrb.mxu0 %v1241_v51  ;;  %v1108_v5 = vadd.f32 %v2944_v63, %v1052_v8  ;;  %v1131_v2 = vadd.f32 %v2991_v30, %v1075_v11  ;;  %v1219_v38 = vsel %vm1155_vm10, %v1123_v26, %v1187_v56 }
 0x122   : > { %2190 = vmatmul.msk.bf16.gmra.mxu3 %vm814_vm0, %v3102_v0  ;;  %1390 = vmatpush.bf16.msrb.mxu1 %v1242_v28  ;;  %vm1148_vm1 = vcmp.ge.f32.partialorder %v1116_v1, 0.0  ;;  %v1220_v62 = vsel %vm1156_vm11, %v1124_v31, %v1188_v4  ;;  %v1211_v24 = vsel %vm1147_vm14, %v1115_v12, %v1179_v20  ;;  %v1203_v8 = vsel %vm1139_vm15, %v3119_v7, %v1171_v23  ;;  %v3171_v7 = vpop.permute.xlu1 %1265 }
 0x123   : > { %v1076_v15 = vadd.f32 %v3099_v59, %v971_v3  ;;  %vm1163_vm12 = vcmp.ge.f32.partialorder %v1131_v2, 0.0  ;;  %v1195_v45 = vmul.f32 0.2, %v1131_v2  ;;  %v1172_v32 = vmul.f32 0.2, %v1108_v5 }
 0x124   : > { %vm1140_vm2 = vcmp.ge.f32.partialorder %v1108_v5, 0.0  ;;  %v1212_v50 = vsel %vm1148_vm1, %v1116_v1, %v1180_v53  ;;  %v1235_v9 = vpack.c.bf16 %v1211_v24, %v1203_v8 }
 0x125   : > { %v1132_v59 = vadd.f32 %v2991_v30, %v1076_v15  ;;  %1372 = vmatpush.bf16.msrb.mxu0 %v1233_v29  ;;  %v1227_v37 = vsel %vm1163_vm12, %v1131_v2, %v1195_v45  ;;  %v1204_v19 = vsel %vm1140_vm2, %v1108_v5, %v1172_v32 }
 0x126   : > { %1391 = vmatpush.bf16.msrb.mxu1 %v1234_v57  ;;  %v1243_v61 = vpack.c.bf16 %v1227_v37, %v1219_v38  ;;  %v1236_v17 = vpack.c.bf16 %v1212_v50, %v1204_v19 }
 0x127   : > { %vm1164_vm13 = vcmp.ge.f32.partialorder %v1132_v59, 0.0  ;;  %v1196_v63 = vmul.f32 0.2, %v1132_v59 }
 0x128   : > { %2191 = vmatmul.msk.bf16.vlgmr.msrb.gmra.mxu0 %vm814_vm0, %v3023_v33  ;;  %1409 = vmatpush.bf16.msrb.mxu2 %v1243_v61 }
 0x129   : > { %v1228_v30 = vsel %vm1164_vm13, %v1132_v59, %v1196_v63  ;;  %2193 = vmatmul.msk.bf16.vlgmr.msrb.gmra.mxu1 %vm814_vm0, %v3023_v33 }
 0x12a   : > { %v1244_v14 = vpack.c.bf16 %v1228_v30, %v1220_v62  ;;  %v3175_v52 = vpop.permute.xlu1 %1255 }
 0x12c   : > { %1428 = vmatpush.bf16.msrb.mxu3 %v1244_v14  ;;  %1410 = vmatpush.bf16.msrb.mxu2 %v1235_v9 }
 0x12f   : > { %2195 = vmatmul.msk.bf16.vlgmr.msrb.gmra.mxu2 %vm814_vm0, %v3023_v33 }
 0x130   : > { %1429 = vmatpush.bf16.msrb.mxu3 %v1236_v17 }
 0x133   : > { %2197 = vmatmul.msk.bf16.vlgmr.msrb.gmra.mxu3 %vm814_vm0, %v3023_v33 }
 0x138   : > { %2192 = vmatmul.msk.bf16.gmra.mxu0 %vm814_vm0, %v3102_v0 }
 0x139   : > { %2194 = vmatmul.msk.bf16.gmra.mxu1 %vm814_vm0, %v3102_v0 }
 0x13f   : > { %2196 = vmatmul.msk.bf16.gmra.mxu2 %vm814_vm0, %v3102_v0 }
 0x143   : > { %2198 = vmatmul.msk.bf16.gmra.mxu3 %vm814_vm0, %v3102_v0 }
 0x185   : > { %v1298_v41 = vpop.f32.mrf.mxu0 }
 0x186   : > { %v1299_v33 = vadd.f32 %v1298_v41, %v3175_v52  ;;  %v1317_v54 = vpop.f32.mrf.mxu1 }
 0x187   : > { %v1318_v39 = vadd.f32 %v1317_v54, %v3175_v52 }
 0x188   : > { %vm1441_vm3 = vcmp.ge.f32.partialorder %v1299_v33, 0.0  ;;  %v1473_v10 = vmul.f32 0.2, %v1299_v33 }
 0x189   : > { %vm1442_vm4 = vcmp.ge.f32.partialorder %v1318_v39, 0.0  ;;  %v1474_v0 = vmul.f32 0.2, %v1318_v39 }
 0x18a   : > { %v1505_v47 = vsel %vm1441_vm3, %v1299_v33, %v1473_v10 }
 0x18b   : > { %v1506_v42 = vsel %vm1442_vm4, %v1318_v39, %v1474_v0 }
 0x18c   : > { %v3184_v58 = vpack.c.bf16 %v1506_v42, %v1505_v47 }
 0x18d   : > { %v1300_v43 = vpop.f32.mrf.mxu0 }
 0x18e   : > { %v1301_v25 = vadd.f32 %v1300_v43, %v3182_v21  ;;  %1553 = vst [vmem:[%s3187_s25] sm:$0xff] %v3184_v58  ;;  %v1319_v40 = vpop.f32.mrf.mxu1 }
 0x18f   : > { %v1320_v18 = vadd.f32 %v1319_v40, %v3182_v21 }
 0x190   : > { %vm1449_vm5 = vcmp.ge.f32.partialorder %v1301_v25, 0.0  ;;  %v1481_v22 = vmul.f32 0.2, %v1301_v25 }
 0x191   : > { %vm1450_vm6 = vcmp.ge.f32.partialorder %v1320_v18, 0.0  ;;  %v1482_v36 = vmul.f32 0.2, %v1320_v18 }
 0x192   : > { %v1513_v49 = vsel %vm1449_vm5, %v1301_v25, %v1481_v22  ;;  %v1336_v46 = vpop.f32.mrf.mxu2 }
 0x193   : > { %v1514_v27 = vsel %vm1450_vm6, %v1320_v18, %v1482_v36  ;;  %v1337_v34 = vadd.f32 %v1336_v46, %v3175_v52  ;;  %v1592_v46 = vunpack.c.l.b16 %v3184_v58 }
 0x194   : > { %v3193_v26 = vpack.c.bf16 %v1514_v27, %v1513_v49  ;;  %v1593_v27 = vunpack.c.h.b16 %v3184_v58 }
 0x195   : > { %v1355_v35 = vpop.f32.mrf.mxu3  ;;  %v1303_v16 = vpop.f32.mrf.mxu0  ;;  %vm1443_vm7 = vcmp.ge.f32.partialorder %v1337_v34, 0.0  ;;  %v1475_v44 = vmul.f32 0.2, %v1337_v34 }
 0x196   : > { %v1356_v6 = vadd.f32 %v1355_v35, %v3175_v52  ;;  %v1304_v31 = vadd.f32 %v1303_v16, %v3171_v7  ;;  %1557 = vst [vmem:[%s3187_s25 + $0x20] sm:$0xff] %v3193_v26  ;;  %v1322_v3 = vpop.f32.mrf.mxu1  ;;  %v1600_v19 = vunpack.c.l.b16 %v3193_v26  ;;  %v1601_v17 = vunpack.c.h.b16 %v3193_v26 }
 0x197   : > { %v1507_v51 = vsel %vm1443_vm7, %v1337_v34, %v1475_v44  ;;  %v1323_v11 = vadd.f32 %v1322_v3, %v3171_v7 }
 0x198   : > { %vm1444_vm8 = vcmp.ge.f32.partialorder %v1356_v6, 0.0  ;;  %v1476_v48 = vmul.f32 0.2, %v1356_v6  ;;  %vm1457_vm9 = vcmp.ge.f32.partialorder %v1304_v31, 0.0  ;;  %v1489_v12 = vmul.f32 0.2, %v1304_v31 }
 0x199   : > { %vm1458_vm10 = vcmp.ge.f32.partialorder %v1323_v11, 0.0  ;;  %v1490_v1 = vmul.f32 0.2, %v1323_v11  ;;  %v1625_v58 = vpack.c.b16 %v1601_v17, %v1593_v27 }
 0x19a   : > { %v1508_v28 = vsel %vm1444_vm8, %v1356_v6, %v1476_v48  ;;  %v1521_v23 = vsel %vm1457_vm9, %v1304_v31, %v1489_v12  ;;  %v1338_v15 = vpop.f32.mrf.mxu2 }
 0x19b   : > { %v3200_v13 = vpack.c.bf16 %v1508_v28, %v1507_v51  ;;  %v1339_v55 = vadd.f32 %v1338_v15, %v3182_v21  ;;  %v1522_v5 = vsel %vm1458_vm10, %v1323_v11, %v1490_v1  ;;  %v1624_v51 = vpack.c.b16 %v1600_v19, %v1592_v46  ;;  %v3232_v1 = vld [vmem:[%s597_s1] sm:$0x3]  ;;  %s2211_s1 = sshll.u32 %s1848_s6, 2  ;;  %s2371_s6 = scalar_lea.hbm %s3435_s0, 4096 }
 0x19c   : > { %v1545_v29 = vpack.c.bf16 %v1522_v5, %v1521_v23  ;;  %s1850_s16 = scalar_lea.hbm %s3435_s0, %s2211_s1 }
 0x19d   : > { %1554 = vst [vmem:[%s3187_s25 + $0x8] sm:$0xff] %v3200_v13  ;;  %v1357_v56 = vpop.f32.mrf.mxu3  ;;  %v1305_v2 = vpop.f32.mrf.mxu0  ;;  %vm1451_vm11 = vcmp.ge.f32.partialorder %v1339_v55, 0.0  ;;  %v1483_v4 = vmul.f32 0.2, %v1339_v55  ;;  %s1853_s2 = sshll.u32 %s1850_s16, 4  ;;  %s1854_s2 = int_to_ptr.hbm [resolvable:$true] %s1853_s2 }
 0x19e   : > { %v1358_v59 = vadd.f32 %v1357_v56, %v3182_v21  ;;  %v1306_v57 = vadd.f32 %v1305_v2, %v3173_v60  ;;  %v1324_v20 = vpop.f32.mrf.mxu1  ;;  %1561 = vst [vmem:[%s3187_s25 + $0x40] sm:$0xff] %v1545_v29  ;;  %v1608_v39 = vunpack.c.l.b16 %v1545_v29  ;;  %v1609_v0 = vunpack.c.h.b16 %v1545_v29  ;;  %s2365_s4 = sshra.s32 %s1854_s2, 4  ;;  %s2366_s4 = int_to_ptr.hbm [resolvable:$true] %s2365_s4 }
 0x19f   : > { %v1515_v45 = vsel %vm1451_vm11, %v1339_v55, %v1483_v4  ;;  %v1325_v63 = vadd.f32 %v1324_v20, %v3173_v60  ;;  %s2367_s29 = scalar_lea.hbm %s2366_s4, 128  ;;  %p2372_p9 = scmp.lt.s32.totalorder %s2366_s4, %s3435_s0 }
 0x1a0   : > { %vm1452_vm12 = vcmp.ge.f32.partialorder %v1358_v59, 0.0  ;;  %v1484_v53 = vmul.f32 0.2, %v1358_v59  ;;  %vm1465_vm13 = vcmp.ge.f32.partialorder %v1306_v57, 0.0  ;;  %v1497_v38 = vmul.f32 0.2, %v1306_v57  ;;  %p2368_p6 = scmp.ne.s32.totalorder %s2366_s4, %s2367_s29  ;;  %p2373_p10 = scmp.lt.s32.totalorder %s2371_s6, %s2367_s29 }
 0x1a1   : > { %vm1466_vm14 = vcmp.ge.f32.partialorder %v1325_v63, 0.0  ;;  %v1498_v32 = vmul.f32 0.2, %v1325_v63 }
 0x1a2   : > { %v1516_v37 = vsel %vm1452_vm12, %v1358_v59, %v1484_v53  ;;  %v1529_v62 = vsel %vm1465_vm13, %v1306_v57, %v1497_v38  ;;  %v1341_v30 = vpop.f32.mrf.mxu2  ;;  %p2369_p7 = pnand %p2368_p6, %p2638_p12  ;;  %p2374_p11 = por %p2373_p10, %p2372_p9 }
 0x1a3   : > { %v3209_v61 = vpack.c.bf16 %v1516_v37, %v1515_v45  ;;  %v1530_v14 = vsel %vm1466_vm14, %v1325_v63, %v1498_v32  ;;  %v1342_v24 = vadd.f32 %v1341_v30, %v3171_v7 }
 0x1a4   : > { %v1549_v50 = vpack.c.bf16 %v1530_v14, %v1529_v62  ;;  %p2370_p8 = pneg %p2369_p7 }
 0x1a5   : > { %1558 = vst [vmem:[%s3187_s25 + $0x28] sm:$0xff] %v3209_v61  ;;  %v1360_v8 = vpop.f32.mrf.mxu3  ;;  %v1374_v9 = vpop.f32.mrf.mxu0  ;;  %vm1459_vm15 = vcmp.ge.f32.partialorder %v1342_v24, 0.0  ;;  %v1491_v41 = vmul.f32 0.2, %v1342_v24  ;;  %v1602_v20 = vunpack.c.l.b16 %v3209_v61  ;;  %v1603_v38 = vunpack.c.h.b16 %v3209_v61 }
 0x1a6   : > { %v1361_v33 = vadd.f32 %v1360_v8, %v3171_v7  ;;  %v1375_v54 = vadd.f32 %v1374_v9, %v3175_v52  ;;  %1565 = vst [vmem:[%s3187_s25 + $0x60] sm:$0xff] %v1549_v50  ;;  %v1393_v10 = vpop.f32.mrf.mxu1  ;;  %v1616_v47 = vunpack.c.l.b16 %v1549_v50  ;;  %v1617_v42 = vunpack.c.h.b16 %v1549_v50  ;;  %p2375_p0 = pnand %p2374_p11, %p2370_p8 }
 0x1a7   : > { %v1523_v43 = vsel %vm1459_vm15, %v1342_v24, %v1491_v41  ;;  %v1394_v22 = vadd.f32 %v1393_v10, %v3175_v52  ;;  %v1594_v61 = vunpack.c.l.b16 %v3200_v13 }
 0x1a8   : > { %vm1460_vm1 = vcmp.ge.f32.partialorder %v1361_v33, 0.0  ;;  %v1492_v25 = vmul.f32 0.2, %v1361_v33  ;;  %vm1445_vm2 = vcmp.ge.f32.partialorder %v1375_v54, 0.0  ;;  %v1477_v40 = vmul.f32 0.2, %v1375_v54 }
 0x1a9   : > { %v1632_v18 = vpack.c.b16 %v1616_v47, %v1608_v39  ;;  %v1633_v49 = vpack.c.b16 %v1617_v42, %v1609_v0  ;;  %vm1446_vm3 = vcmp.ge.f32.partialorder %v1394_v22, 0.0  ;;  %v1478_v35 = vmul.f32 0.2, %v1394_v22 }
 0x1aa   : > { %v1524_v36 = vsel %vm1460_vm1, %v1361_v33, %v1492_v25  ;;  %v1509_v26 = vsel %vm1445_vm2, %v1375_v54, %v1477_v40  ;;  %v1343_v16 = vpop.f32.mrf.mxu2  ;;  %v1595_v33 = vunpack.c.h.b16 %v3200_v13  ;;  %v1626_v0 = vpack.c.b16 %v1602_v20, %v1594_v61 }
 0x1ab   : > { %v1546_v34 = vpack.c.bf16 %v1524_v36, %v1523_v43  ;;  %1665 = vmatpush.bf16.msra.mxu0 %v1632_v18  ;;  %1678 = vmatpush.bf16.msra.mxu1 %v1633_v49  ;;  %v1344_v44 = vadd.f32 %v1343_v16, %v3173_v60  ;;  %v1510_v6 = vsel %vm1446_vm3, %v1394_v22, %v1478_v35 }
 0x1ac   : > { %v3228_v48 = vpack.c.bf16 %v1510_v6, %v1509_v26  ;;  %v1627_v42 = vpack.c.b16 %v1603_v38, %v1595_v33 }
 0x1ad   : > { %1562 = vst [vmem:[%s3187_s25 + $0x48] sm:$0xff] %v1546_v34  ;;  %v1362_v31 = vpop.f32.mrf.mxu3  ;;  %v1376_v3 = vpop.f32.mrf.mxu0  ;;  %vm1467_vm4 = vcmp.ge.f32.partialorder %v1344_v44, 0.0  ;;  %v1499_v12 = vmul.f32 0.2, %v1344_v44  ;;  %v1610_v63 = vunpack.c.l.b16 %v1546_v34  ;;  %v1611_v14 = vunpack.c.h.b16 %v1546_v34 }
 0x1ae   : > { %v1363_v11 = vadd.f32 %v1362_v31, %v3173_v60  ;;  %v1377_v28 = vadd.f32 %v1376_v3, %v3182_v21  ;;  %v1395_v23 = vpop.f32.mrf.mxu1  ;;  %1555 = vst [vmem:[%s3187_s25 + $0x10] sm:$0xff] %v3228_v48 }
 0x1af   : > { %1666 = vmatpush.bf16.msra.mxu0 %v1624_v51  ;;  %1679 = vmatpush.bf16.msra.mxu1 %v1625_v58  ;;  %v1531_v15 = vsel %vm1467_vm4, %v1344_v44, %v1499_v12  ;;  %v1396_v5 = vadd.f32 %v1395_v23, %v3182_v21 }
 0x1b0   : > { %vm1468_vm5 = vcmp.ge.f32.partialorder %v1363_v11, 0.0  ;;  %v1500_v55 = vmul.f32 0.2, %v1363_v11  ;;  %vm1453_vm6 = vcmp.ge.f32.partialorder %v1377_v28, 0.0  ;;  %v1485_v56 = vmul.f32 0.2, %v1377_v28 }
 0x1b1   : > { %vm1454_vm7 = vcmp.ge.f32.partialorder %v1396_v5, 0.0  ;;  %v1486_v29 = vmul.f32 0.2, %v1396_v5 }
 0x1b2   : > { %v1532_v2 = vsel %vm1468_vm5, %v1363_v11, %v1500_v55  ;;  %2199 = vmatmul.msk.bf16.vlgmr.msra.gmra.mxu0 %vm814_vm0, %v3232_v1  ;;  %2200 = vmatmul.msk.bf16.vlgmr.msra.gmra.mxu1 %vm814_vm0, %v3232_v1  ;;  %v1517_v59 = vsel %vm1453_vm6, %v1377_v28, %v1485_v56  ;;  %v1412_v57 = vpop.f32.mrf.mxu2 }
 0x1b3   : > { %v1550_v4 = vpack.c.bf16 %v1532_v2, %v1531_v15  ;;  %v1518_v45 = vsel %vm1454_vm7, %v1396_v5, %v1486_v29  ;;  %v1413_v53 = vadd.f32 %v1412_v57, %v3175_v52 }
 0x1b4   : > { %v3245_v37 = vpack.c.bf16 %v1518_v45, %v1517_v59 }
 0x1b5   : > { %1566 = vst [vmem:[%s3187_s25 + $0x68] sm:$0xff] %v1550_v4  ;;  %v1379_v62 = vpop.f32.mrf.mxu0  ;;  %v1618_v30 = vunpack.c.l.b16 %v1550_v4  ;;  %v1619_v24 = vunpack.c.h.b16 %v1550_v4  ;;  %vm1447_vm8 = vcmp.ge.f32.partialorder %v1413_v53, 0.0  ;;  %v1479_v50 = vmul.f32 0.2, %v1413_v53 }
 0x1b6   : > { %v1431_v32 = vpop.f32.mrf.mxu3  ;;  %v1380_v9 = vadd.f32 %v1379_v62, %v3171_v7  ;;  %1559 = vst [vmem:[%s3187_s25 + $0x30] sm:$0xff] %v3245_v37  ;;  %v1398_v19 = vpop.f32.mrf.mxu1 }
 0x1b7   : > { %v1432_v8 = vadd.f32 %v1431_v32, %v3175_v52  ;;  %v1634_v17 = vpack.c.b16 %v1618_v30, %v1610_v63  ;;  %v1635_v41 = vpack.c.b16 %v1619_v24, %v1611_v14  ;;  %v1511_v54 = vsel %vm1447_vm8, %v1413_v53, %v1479_v50 }
 0x1b8   : > { %vm1461_vm10 = vcmp.ge.f32.partialorder %v1380_v9, 0.0  ;;  %v1493_v39 = vmul.f32 0.2, %v1380_v9  ;;  %v1399_v47 = vadd.f32 %v1398_v19, %v3171_v7  ;;  %v1604_v53 = vunpack.c.l.b16 %v3245_v37 }
 0x1b9   : > { %vm1448_vm9 = vcmp.ge.f32.partialorder %v1432_v8, 0.0  ;;  %v1480_v10 = vmul.f32 0.2, %v1432_v8  ;;  %1691 = vmatpush.bf16.msra.mxu2 %v1634_v17  ;;  %1704 = vmatpush.bf16.msra.mxu3 %v1635_v41  ;;  %v1605_v63 = vunpack.c.h.b16 %v3245_v37  ;;  %v1597_v30 = vunpack.c.h.b16 %v3228_v48 }
 0x1ba   : > { %v1525_v25 = vsel %vm1461_vm10, %v1380_v9, %v1493_v39  ;;  %vm1462_vm11 = vcmp.ge.f32.partialorder %v1399_v47, 0.0  ;;  %v1494_v40 = vmul.f32 0.2, %v1399_v47  ;;  %v1414_v13 = vpop.f32.mrf.mxu2 }
 0x1bb   : > { %v1512_v52 = vsel %vm1448_vm9, %v1432_v8, %v1480_v10  ;;  %v1415_v22 = vadd.f32 %v1414_v13, %v3182_v21  ;;  %v1629_v8 = vpack.c.b16 %v1605_v63, %v1597_v30 }
 0x1bc   : > { %v3254_v43 = vpack.c.bf16 %v1512_v52, %v1511_v54  ;;  %v1526_v18 = vsel %vm1462_vm11, %v1399_v47, %v1494_v40 }
 0x1bd   : > { %1692 = vmatpush.bf16.msra.mxu2 %v1626_v0  ;;  %1705 = vmatpush.bf16.msra.mxu3 %v1627_v42  ;;  %v1381_v36 = vpop.f32.mrf.mxu0  ;;  %v1547_v46 = vpack.c.bf16 %v1526_v18, %v1525_v25  ;;  %vm1455_vm12 = vcmp.ge.f32.partialorder %v1415_v22, 0.0  ;;  %v1487_v27 = vmul.f32 0.2, %v1415_v22 }
 0x1be   : > { %1556 = vst [vmem:[%s3187_s25 + $0x18] sm:$0xff] %v3254_v43  ;;  %v1433_v49 = vpop.f32.mrf.mxu3  ;;  %v1382_v26 = vadd.f32 %v1381_v36, %v3173_v60  ;;  %v1400_v35 = vpop.f32.mrf.mxu1  ;;  %v1598_v0 = vunpack.c.l.b16 %v3254_v43  ;;  %v1599_v42 = vunpack.c.h.b16 %v3254_v43 }
 0x1bf   : > { %v1434_v34 = vadd.f32 %v1433_v49, %v3182_v21  ;;  %1563 = vst [vmem:[%s3187_s25 + $0x50] sm:$0xff] %v1547_v46  ;;  %v1519_v16 = vsel %vm1455_vm12, %v1415_v22, %v1487_v27  ;;  %v1401_v6 = vadd.f32 %v1400_v35, %v3173_v60  ;;  %v1612_v56 = vunpack.c.l.b16 %v1547_v46 }
 0x1c0   : > { %2201 = vmatmul.msk.bf16.vlgmr.msra.gmra.mxu2 %vm814_vm0, %v3232_v1  ;;  %2202 = vmatmul.msk.bf16.vlgmr.msra.gmra.mxu3 %vm814_vm0, %v3232_v1  ;;  %vm1469_vm14 = vcmp.ge.f32.partialorder %v1382_v26, 0.0  ;;  %v1501_v31 = vmul.f32 0.2, %v1382_v26  ;;  %v1613_v29 = vunpack.c.h.b16 %v1547_v46 }
 0x1c1   : > { %vm1456_vm13 = vcmp.ge.f32.partialorder %v1434_v34, 0.0  ;;  %v1488_v44 = vmul.f32 0.2, %v1434_v34  ;;  %vm1470_vm15 = vcmp.ge.f32.partialorder %v1401_v6, 0.0  ;;  %v1502_v3 = vmul.f32 0.2, %v1401_v6 }
 0x1c2   : > { %v1533_v58 = vsel %vm1469_vm14, %v1382_v26, %v1501_v31  ;;  %v1417_v12 = vpop.f32.mrf.mxu2 }
 0x1c3   : > { %v1520_v21 = vsel %vm1456_vm13, %v1434_v34, %v1488_v44  ;;  %v1534_v11 = vsel %vm1470_vm15, %v1401_v6, %v1502_v3  ;;  %v1418_v28 = vadd.f32 %v1417_v12, %v3171_v7 }
 0x1c4   : > { %v3267_v51 = vpack.c.bf16 %v1520_v21, %v1519_v16  ;;  %v1551_v23 = vpack.c.bf16 %v1534_v11, %v1533_v58 }
 0x1c5   : > { %vm1463_vm1 = vcmp.ge.f32.partialorder %v1418_v28, 0.0  ;;  %v1495_v55 = vmul.f32 0.2, %v1418_v28 }
 0x1c6   : > { %1560 = vst [vmem:[%s3187_s25 + $0x38] sm:$0xff] %v3267_v51  ;;  %v1436_v15 = vpop.f32.mrf.mxu3  ;;  %v1620_v2 = vunpack.c.l.b16 %v1551_v23  ;;  %v1621_v4 = vunpack.c.h.b16 %v1551_v23  ;;  %v1606_v47 = vunpack.c.l.b16 %v3267_v51  ;;  %v1607_v52 = vunpack.c.h.b16 %v3267_v51 }
 0x1c7   : > { %v1437_v5 = vadd.f32 %v1436_v15, %v3171_v7  ;;  %1567 = vst [vmem:[%s3187_s25 + $0x70] sm:$0xff] %v1551_v23  ;;  %v1527_v59 = vsel %vm1463_vm1, %v1418_v28, %v1495_v55  ;;  %v1596_v7 = vunpack.c.l.b16 %v3228_v48 }
 0x1c8   : > { %v1636_v20 = vpack.c.b16 %v1620_v2, %v1612_v56  ;;  %v1637_v45 = vpack.c.b16 %v1621_v4, %v1613_v29  ;;  %v1630_v25 = vpack.c.b16 %v1606_v47, %v1598_v0  ;;  %v1631_v40 = vpack.c.b16 %v1607_v52, %v1599_v42 }
 0x1c9   : > { %vm1464_vm2 = vcmp.ge.f32.partialorder %v1437_v5, 0.0  ;;  %v1496_v57 = vmul.f32 0.2, %v1437_v5  ;;  %v1628_v50 = vpack.c.b16 %v1604_v53, %v1596_v7 }
 0x1ca   : > { %v1419_v62 = vpop.f32.mrf.mxu2  ;;  %1717 = vmatpush.bf16.msrb.mxu0 %v1636_v20  ;;  %1730 = vmatpush.bf16.msrb.mxu1 %v1637_v45 }
 0x1cb   : > { %v1528_v38 = vsel %vm1464_vm2, %v1437_v5, %v1496_v57  ;;  %v1420_v14 = vadd.f32 %v1419_v62, %v3173_v60 }
 0x1cc   : > { %v1548_v32 = vpack.c.bf16 %v1528_v38, %v1527_v59 }
 0x1cd   : > { %vm1471_vm3 = vcmp.ge.f32.partialorder %v1420_v14, 0.0  ;;  %v1503_v9 = vmul.f32 0.2, %v1420_v14 }
 0x1ce   : > { %1564 = vst [vmem:[%s3187_s25 + $0x58] sm:$0xff] %v1548_v32  ;;  %v1438_v24 = vpop.f32.mrf.mxu3  ;;  %1718 = vmatpush.bf16.msrb.mxu0 %v1628_v50  ;;  %1731 = vmatpush.bf16.msrb.mxu1 %v1629_v8  ;;  %v1614_v61 = vunpack.c.l.b16 %v1548_v32 }
 0x1cf   : > { %v1439_v37 = vadd.f32 %v1438_v24, %v3173_v60  ;;  %v1535_v19 = vsel %vm1471_vm3, %v1420_v14, %v1503_v9  ;;  %v1615_v60 = vunpack.c.h.b16 %v1548_v32 }
 0x1d1   : > { %vm1472_vm4 = vcmp.ge.f32.partialorder %v1439_v37, 0.0  ;;  %v1504_v17 = vmul.f32 0.2, %v1439_v37  ;;  %2203 = vmatmul.msk.bf16.vlgmr.msrb.gmra.mxu0 %vm814_vm0, %v3232_v1  ;;  %2204 = vmatmul.msk.bf16.vlgmr.msrb.gmra.mxu1 %vm814_vm0, %v3232_v1 }
 0x1d3   : > { %v1536_v41 = vsel %vm1472_vm4, %v1439_v37, %v1504_v17 }
 0x1d4   : > { %v1552_v48 = vpack.c.bf16 %v1536_v41, %v1535_v19 }
 0x1d6   : > { %1568 = vst [vmem:[%s3187_s25 + $0x78] sm:$0xff] %v1552_v48  ;;  %v1622_v33 = vunpack.c.l.b16 %v1552_v48  ;;  %v1623_v54 = vunpack.c.h.b16 %v1552_v48 }
 0x1d8   : > { %v1638_v10 = vpack.c.b16 %v1622_v33, %v1614_v61  ;;  %v1639_v39 = vpack.c.b16 %v1623_v54, %v1615_v60 }
 0x1da   : > { %1743 = vmatpush.bf16.msrb.mxu2 %v1638_v10  ;;  %1756 = vmatpush.bf16.msrb.mxu3 %v1639_v39 }
 0x1de   : > { %1744 = vmatpush.bf16.msrb.mxu2 %v1630_v25  ;;  %1757 = vmatpush.bf16.msrb.mxu3 %v1631_v40 }
 0x1e1   : > { %2205 = vmatmul.msk.bf16.vlgmr.msrb.gmra.mxu2 %vm814_vm0, %v3232_v1  ;;  %2206 = vmatmul.msk.bf16.vlgmr.msrb.gmra.mxu3 %vm814_vm0, %v3232_v1 }
 0x1e2   : > { %2378 = shalt.err (!%p2375_p0)
}
 0x1e3   : > { %s2481_s3 = smov 512   ;;  %s2482_s16 = smov 8192   ;;  %v1574_v1 = vpop.permute.xlu0 %1573  ;;  %v1775_v22 = vld.sshfl [vmem:[#allocation1 + $0x8] sm:$0xff pattern:$0x75316420]  ;;  %vm1810_vm0 = vcmask 1043456  }
 0x1e4   : > { %s2483_s25 = smov 32   ;;  %p606_p1 = scmp.lt.s32.totalorder %s3293_s8, 127  ;;  %v1774_v36 = vld.sshfl [vmem:[#allocation1] sm:$0xff pattern:$0x75316420] }
 0x1e5   : > { %2237 = dma.vmem_to_hbm [thread:$0]  (%p2638_p12), %s1852_s24, 2048, %s1854_s2, %s1824_s10, %s2481_s3, %s2482_s16, %s2483_s25   ;;  %v1777_v31 = vld.sshfl [vmem:[#allocation1 + $0x18] sm:$0xff pattern:$0x75316420] }
 0x1e6   : > { %s3463_s8 = smov (!%p606_p1, %s3293_s8), 127  ;;  %s2085_s5 = sshll.u32 %s2706_s20, 7  ;;  %v1776_v51 = vld.sshfl [vmem:[#allocation1 + $0x10] sm:$0xff pattern:$0x75316420] }
 0x1e7   : > { %s609_s9 = sadd.s32 %s2085_s5, %s3463_s8  ;;  %s3437_s23 = sld [smem:[#allocation25_spill]]  ;;  %v1779_v56 = vld.sshfl [vmem:[#allocation1 + $0x28] sm:$0xff pattern:$0x75316420] }
 0x1e8   : > { %s2086_s4 = sshll.u32 %s609_s9, 2  ;;  %v1778_v4 = vld.sshfl [vmem:[#allocation1 + $0x20] sm:$0xff pattern:$0x75316420] }
 0x1e9   : > { %v1781_v62 = vld.sshfl [vmem:[#allocation1 + $0x38] sm:$0xff pattern:$0x75316420]  ;;  %v1780_v14 = vld.sshfl [vmem:[#allocation1 + $0x30] sm:$0xff pattern:$0x75316420] }
 0x1ed   : > { %s3322_s15 = scalar_lea.vmem %s3437_s23, %s2086_s4 }
 0x22f   : > { %v1668_v43 = vpop.f32.mrf.mxu0  ;;  %v1681_v13 = vpop.f32.mrf.mxu1 }
 0x230   : > { %v1669_v18 = vadd.f32 %v1668_v43, %v1574_v1  ;;  %v1682_v49 = vadd.f32 %v1681_v13, %v1574_v1 }
 0x232   : > { %v1791_v46 = vadd.f32 %v1775_v22, %v1682_v49  ;;  %v1790_v27 = vadd.f32 %v1774_v36, %v1669_v18 }
 0x234   : > { %v1806_v34 = vrot.slane %v1791_v46, 4 }
 0x236   : > { %v1811_v26 = vsel %vm1810_vm0, %v1790_v27, %v1806_v34 }
 0x237   : > { %1819 = vst [vmem:[%s3322_s15] sm:$0x77] %v1811_v26  ;;  %v1670_v35 = vpop.f32.mrf.mxu0  ;;  %v1683_v16 = vpop.f32.mrf.mxu1 }
 0x243   : > { %v1694_v44 = vpop.f32.mrf.mxu2  ;;  %v1707_v6 = vpop.f32.mrf.mxu3 }
 0x244   : > { %v1695_v21 = vadd.f32 %v1694_v44, %v1574_v1  ;;  %v1708_v3 = vadd.f32 %v1707_v6, %v1574_v1 }
 0x246   : > { %v1793_v58 = vadd.f32 %v1777_v31, %v1708_v3  ;;  %v1792_v12 = vadd.f32 %v1776_v51, %v1695_v21 }
 0x248   : > { %v1807_v11 = vrot.slane %v1793_v58, 4 }
 0x24a   : > { %v1812_v28 = vsel %vm1810_vm0, %v1792_v12, %v1807_v11 }
 0x24b   : > { %1820 = vst [vmem:[%s3322_s15 + $0x8] sm:$0x77] %v1812_v28  ;;  %v1696_v23 = vpop.f32.mrf.mxu2  ;;  %v1709_v15 = vpop.f32.mrf.mxu3 }
 0x24e   : > { %v1720_v55 = vpop.f32.mrf.mxu0  ;;  %v1733_v5 = vpop.f32.mrf.mxu1 }
 0x24f   : > { %v1721_v2 = vadd.f32 %v1720_v55, %v1574_v1  ;;  %v1734_v29 = vadd.f32 %v1733_v5, %v1574_v1 }
 0x251   : > { %v1795_v59 = vadd.f32 %v1779_v56, %v1734_v29  ;;  %v1794_v57 = vadd.f32 %v1778_v4, %v1721_v2 }
 0x253   : > { %v1808_v20 = vrot.slane %v1795_v59, 4 }
 0x255   : > { %v1813_v45 = vsel %vm1810_vm0, %v1794_v57, %v1808_v20 }
 0x256   : > { %1821 = vst [vmem:[%s3322_s15 + $0x10] sm:$0x77] %v1813_v45  ;;  %v1722_v53 = vpop.f32.mrf.mxu0  ;;  %v1735_v63 = vpop.f32.mrf.mxu1 }
 0x264   : > { %v1746_v38 = vpop.f32.mrf.mxu2  ;;  %v1759_v32 = vpop.f32.mrf.mxu3 }
 0x265   : > { %v1747_v7 = vadd.f32 %v1746_v38, %v1574_v1  ;;  %v1760_v30 = vadd.f32 %v1759_v32, %v1574_v1 }
 0x267   : > { %v1797_v24 = vadd.f32 %v1781_v62, %v1760_v30  ;;  %v1796_v50 = vadd.f32 %v1780_v14, %v1747_v7 }
 0x269   : > { %v1809_v8 = vrot.slane %v1797_v24, 4 }
 0x26b   : > { %v1814_v9 = vsel %vm1810_vm0, %v1796_v50, %v1809_v8 }
 0x26c   : > { %1822 = vst [vmem:[%s3322_s15 + $0x18] sm:$0x77] %v1814_v9  ;;  %v1748_v37 = vpop.f32.mrf.mxu2  ;;  %v1761_v19 = vpop.f32.mrf.mxu3 }
 0x26d PF: > { %p2243_p12 = scmp.ge.s32.totalorder %s2477_s28, 2  ;;  %s1874_s2 = sand.u32 1, %s2433_s17  }
 0x26e   : > { %s1875_s20 = scalar_lea.sflag [#allocation4], %s1874_s2 }
 0x26f   : > { %p2240_p2 = pnand %p2243_p12, %p2642_p13 }
 0x271   : > { %p2241_p3 = pneg %p2240_p2 }
 0x273   : > { %2428 = dma.done.wait (%p2241_p3), %s1875_s20, 2048  }
 0x274   : > { %2430 = vsyncadd (%p2241_p3), %s1875_s20, 4294965248  ;;  %s25_s28 = sadd.s32 1, %s2477_s28   ;;  %s3438_s22 = sld [smem:[#allocation7_spill]] }
 0x275   : > { %p22_p4 = scmp.ge.s32.totalorder %s25_s28, 34   ;;  %s3439_s25 = sld [smem:[#allocation8_spill]] }
 0x276   : > { %s3440_s8 = sld [smem:[#allocation9_spill]]  ;;  %s3441_s17 = smov %s2437_s18 }
 0x277   : > { %s3442_s18 = smov %s2441_s19  ;;  %s3443_s19 = smov %s2652_s7 }
 0x278   : > { %s3444_s20 = smov %s2449_s21  ;;  %s3445_s21 = smov %s2649_s11 }
 0x279   : > { %s3446_s23 = smov %s2469_s26  ;;  %s3447_s24 = smov %s2473_s27 }
 0x27a   : > { %s3449_s27 = smov %s3459_s14  ;;  %24 = sbr.rel (!%p22_p4) target bundleno = 20 (0x14), region = 153 }
 0x27c   : > { %s3448_s26 = smov %s3440_s8 }
 0x27f   :  { %1895 = vsyncpa [#allocation4], 1 }
 0x280   :  { %1897 = vsyncpa [#allocation4 + $0x1], 1 }

</bundles_post_ra>
